<compile_context>
chip_gen: v7x
topology: tpu7x:2x2x1
jax: 0.10.0
libtpu: 0.0.40
codegen_flags: <defaults>
</compile_context>

<pallas_src>
import jax
import jax.numpy as jnp
from jax.experimental import pallas as pl
from jax.experimental.pallas import tpu as pltpu

# ----------------------------- static config --------------------------------
B = 4                          # batch
GRID_STEPS = 1                 # 1 step = whole batch per step (v5e/v6e); use 2 on v7x
SB = B // GRID_STEPS           # samples folded into one kernel step
N_SEQ = 32                     # input sequence length
DIM = 64                       # model dim
HEADS = 4
DHEAD = 16
INNER = HEADS * DHEAD          # 64
NUM_LATENTS = 28
NUM_MP = 4                     # num_latents_mean_pooled
N_LAT = NUM_LATENTS + NUM_MP   # 32 latent tokens after concat
KV_LEN = N_SEQ + N_LAT         # 64
FF_MULT = 4
HIDDEN = DIM * FF_MULT         # 256
MAX_SEQ_LEN = 64               # pos-embedding table rows
ATTN_SCALE = 8.0               # PerceiverAttention(scale=8)
LN_EPS = 1e-5

# packed bf16 weight slab A: lane-concat of the (DIM, *) matrices, offsets 128-aligned
OFF_MP, OFF_FF1, OFF_KVQ = 0, 256, 512
KVQ_W = 3 * INNER              # 192 -> outputs [k | v | q]
SLAB_A_LANES = 768             # 256 + 256 + 192, padded up to a multiple of 128
# packed bf16 weight slab B: sublane-concat of the (*, DIM) matrices
SLAB_B_ROWS = INNER + HIDDEN   # w_o rows [0:64], w_ff2 rows [64:320]

# rows of the packed (N_VEC, HIDDEN) f32 per-channel-vector matrix
(V_MP_G, V_NX_W, V_NX_B, V_NL_W, V_NL_B,
 V_QS, V_KS, V_OUT_W, V_OUT_B, V_FF_G1, V_B_MP, V_FF_G2) = range(12)
N_VEC = 12

assert NUM_MP * DIM == HIDDEN
assert B % GRID_STEPS == 0


# ----------------------------- shared math helpers ---------------------------
def _layer_norm(x, w, b):
    """nn.LayerNorm: biased variance, eps=1e-5, affine weight+bias."""
    mean = jnp.mean(x, axis=-1, keepdims=True)
    var = jnp.mean(jnp.square(x - mean), axis=-1, keepdims=True)
    return (x - mean) * jax.lax.rsqrt(var + LN_EPS) * w + b


def _layer_norm_g(x, g):
    """The module's custom LayerNorm: scale only, biased variance, eps=1e-5."""
    mean = jnp.mean(x, axis=-1, keepdims=True)
    var = jnp.mean(jnp.square(x - mean), axis=-1, keepdims=True)
    return (x - mean) * jax.lax.rsqrt(var + LN_EPS) * g


def _l2norm(t, eps=1e-12):
    """F.normalize(t, dim=-1): t / max(||t||_2, eps)."""
    n2 = jnp.sum(t * t, axis=-1, keepdims=True)
    return t * jax.lax.rsqrt(jnp.maximum(n2, eps * eps))


def _mm(a, w_bf16):
    """2D matmul: f32 activations cast to bf16, pre-cast bf16 weights, f32 MXU acc."""
    return jax.lax.dot_general(
        a.astype(jnp.bfloat16), w_bf16,
        (((1,), (0,)), ((), ())), preferred_element_type=jnp.float32)


def _gelu_tanh(x):
    # tanh approximation of nn.GELU (exact-erf) -- runs on the EUP slot.
    c = 0.7978845608028654  # sqrt(2/pi)
    return 0.5 * x * (1.0 + jnp.tanh(c * (x + 0.044715 * x * x * x)))


# ----------------------------- Pallas kernel --------------------------------
def _kernel(x_ref, pos_ref, lat0_ref, wa_ref, wb_ref, vec_ref, out_ref):
    x3 = x_ref[...]                       # (SB, N_SEQ, DIM) f32
    pos = pos_ref[...]                    # (N_SEQ, DIM) == Embedding(arange(n))
    lat0 = lat0_ref[...]                  # (NUM_LATENTS, DIM) learned latents
    vv = vec_ref[...]                     # (N_VEC, HIDDEN) packed f32 vectors

    x_pos = x3 + pos[None, :, :]          # x + pos_emb

    # --- latents = cat(to_latents_from_mean_pooled_seq(mean(x)), latents) ---
    # (masked_mean with the all-True mask returns the plain mean in the module)
    mp = _layer_norm_g(jnp.mean(x3, axis=1), vv[V_MP_G, :DIM])            # (SB, DIM)
    mp = _mm(mp, wa_ref[:, OFF_MP:OFF_MP + HIDDEN]) + vv[V_B_MP]          # (SB, NUM_MP*DIM)
    lat3 = jnp.concatenate(
        [mp.reshape(SB, NUM_MP, DIM),                                     # 'b (n d) -> b n d'
         jnp.broadcast_to(lat0[None], (SB, NUM_LATENTS, DIM))], axis=1)
    lat = lat3.reshape(SB * N_LAT, DIM)                                   # flat, sample-major

    # ------------------------- PerceiverAttention ---------------------------
    xn3 = _layer_norm(x_pos, vv[V_NX_W, :DIM], vv[V_NX_B, :DIM])          # norm(x)
    ln = _layer_norm(lat, vv[V_NL_W, :DIM], vv[V_NL_B, :DIM])             # norm_latents
    kv_in = jnp.concatenate([xn3, ln.reshape(SB, N_LAT, DIM)], axis=1)    # (SB, KV_LEN, DIM)

    # fused [k | v | q] projection; the q computed for the x rows is discarded.
    kvq = _mm(kv_in.reshape(SB * KV_LEN, DIM), wa_ref[:, OFF_KVQ:OFF_KVQ + KVQ_W])
    kvq3 = kvq.reshape(SB, KV_LEN, KVQ_W)

    q_scale = vv[V_QS, :DHEAD]
    k_scale = vv[V_KS, :DHEAD]

    # per-head attention with samples batched inside each einsum; the head
    # outputs are lane-concatenated so to_out becomes a single K=INNER matmul.
    head_outs = []
    for h in range(HEADS):
        k_sl = slice(h * DHEAD, (h + 1) * DHEAD)
        v_sl = slice(INNER + h * DHEAD, INNER + (h + 1) * DHEAD)
        q_sl = slice(2 * INNER + h * DHEAD, 2 * INNER + (h + 1) * DHEAD)
        qh = _l2norm(kvq3[:, N_SEQ:, q_sl]) * q_scale                     # (SB, N_LAT, DHEAD)
        kh = _l2norm(kvq3[..., k_sl]) * k_scale                           # (SB, KV_LEN, DHEAD)
        sim = jnp.einsum('bid,bjd->bij', qh, kh,
                         preferred_element_type=jnp.float32) * ATTN_SCALE
        # No max-subtraction: q/k are l2-normalized and scaled, so
        # |sim| <= ATTN_SCALE * q_scale * k_scale ~ 10 -> exp() is safe in f32.
        e = jnp.exp(sim)
        p = e * pl.reciprocal(jnp.sum(e, axis=-1, keepdims=True), approx=True)
        head_outs.append(jnp.einsum('bij,bjd->bid', p, kvq3[..., v_sl],
                                    preferred_element_type=jnp.float32))
    o_all = jnp.concatenate(head_outs, axis=-1).reshape(SB * N_LAT, INNER)
    attn_out = _mm(o_all, wb_ref[0:INNER, :])                             # fused to_out linear
    attn_out = _layer_norm(attn_out, vv[V_OUT_W, :DIM], vv[V_OUT_B, :DIM])
    lat = lat + attn_out                                                  # residual

    # --------------- FeedForward: LN -> Linear -> GELU -> LN -> Linear -------
    y = _layer_norm_g(lat, vv[V_FF_G1, :DIM])
    y = _mm(y, wa_ref[:, OFF_FF1:OFF_FF1 + HIDDEN])
    y = _gelu_tanh(y)
    y = _layer_norm_g(y, vv[V_FF_G2])
    y = _mm(y, wb_ref[INNER:, :])
    lat = lat + y                                                         # residual

    out_ref[...] = lat.reshape(SB, N_LAT, DIM)


# ----------------------------- wrapper ---------------------------------------
def _pack_weights(p):
    """Two contiguous bf16 slabs; slice offsets in slab A are multiples of 128."""
    w_kvq = jnp.concatenate([p["w_kv"], p["w_q"]], axis=1)                # (DIM, 3*INNER)
    pad = jnp.zeros((DIM, SLAB_A_LANES - (HIDDEN + HIDDEN + KVQ_W)), jnp.float32)
    slab_a = jnp.concatenate([p["w_mp"], p["w_ff1"], w_kvq, pad],
                             axis=1).astype(jnp.bfloat16)                 # (DIM, 768)
    slab_b = jnp.concatenate([p["w_o"], p["w_ff2"]],
                             axis=0).astype(jnp.bfloat16)                 # (320, DIM)
    return slab_a, slab_b


def _pack_vectors(p):
    def row(v):
        v = v.astype(jnp.float32)
        return jnp.pad(v, (0, HIDDEN - v.shape[0]))
    return jnp.stack([
        row(p["mp_ln_g"]),
        row(p["attn_norm_w"]), row(p["attn_norm_b"]),
        row(p["attn_normlat_w"]), row(p["attn_normlat_b"]),
        row(p["q_scale"]), row(p["k_scale"]),
        row(p["out_ln_w"]), row(p["out_ln_b"]),
        row(p["ff_ln1_g"]),
        p["b_mp"].astype(jnp.float32), p["ff_ln2_g"].astype(jnp.float32),
    ], axis=0)                                                            # (N_VEC, HIDDEN)


def perceiver_resampler_pallas(x, params):
    b = x.shape[0]
    assert x.shape == (b, N_SEQ, DIM) and b % SB == 0
    slab_a, slab_b = _pack_weights(params)
    vecs = _pack_vectors(params)

    def const(shape):
        return pl.BlockSpec(shape, lambda i: (0,) * len(shape))

    in_specs = [
        pl.BlockSpec((SB, N_SEQ, DIM), lambda i: (i, 0, 0)),              # x (SB samples/step)
        pl.BlockSpec((N_SEQ, DIM), lambda i: (0, 0)),                     # pos-table rows [0, n)
        const((NUM_LATENTS, DIM)),                                        # learned latents
        const((DIM, SLAB_A_LANES)),                                       # bf16 weight slab A
        const((SLAB_B_ROWS, DIM)),                                        # bf16 weight slab B
        const((N_VEC, HIDDEN)),                                           # packed f32 vectors
    ]
    return pl.pallas_call(
        _kernel,
        out_shape=jax.ShapeDtypeStruct((b, N_LAT, DIM), jnp.float32),
        grid=(b // SB,),
        in_specs=in_specs,
        out_specs=pl.BlockSpec((SB, N_LAT, DIM), lambda i: (i, 0, 0)),
        compiler_params=pltpu.CompilerParams(
            dimension_semantics=("parallel",)),
    )(x, params["pos_emb"], params["latents"], slab_a, slab_b, vecs)


# ----------------------------- parameter init --------------------------------
def init_params(key):
    ks = jax.random.split(key, 12)

    def rnd(k, shape, s=0.05):
        return s * jax.random.normal(k, shape, jnp.float32)

    p = {}
    p["pos_emb"] = jax.random.normal(ks[0], (MAX_SEQ_LEN, DIM), jnp.float32)
    p["latents"] = jax.random.normal(ks[1], (NUM_LATENTS, DIM), jnp.float32)
    # to_latents_from_mean_pooled_seq: LayerNorm(dim) -> Linear(dim, dim*NUM_MP)
    p["mp_ln_g"] = jnp.ones((DIM,), jnp.float32)
    p["w_mp"] = rnd(ks[2], (DIM, NUM_MP * DIM))
    p["b_mp"] = rnd(ks[3], (NUM_MP * DIM,))
    # PerceiverAttention
    p["attn_norm_w"] = jnp.ones((DIM,), jnp.float32)
    p["attn_norm_b"] = jnp.zeros((DIM,), jnp.float32)
    p["attn_normlat_w"] = jnp.ones((DIM,), jnp.float32)
    p["attn_normlat_b"] = jnp.zeros((DIM,), jnp.float32)
    p["w_q"] = rnd(ks[4], (DIM, INNER))
    p["w_kv"] = rnd(ks[5], (DIM, 2 * INNER))
    # q_scale/k_scale init to ones in torch; small perturbation exercises the path
    p["q_scale"] = 1.0 + 0.1 * jax.random.normal(ks[6], (DHEAD,), jnp.float32)
    p["k_scale"] = 1.0 + 0.1 * jax.random.normal(ks[7], (DHEAD,), jnp.float32)
    p["w_o"] = rnd(ks[8], (INNER, DIM))
    p["out_ln_w"] = jnp.ones((DIM,), jnp.float32)
    p["out_ln_b"] = jnp.zeros((DIM,), jnp.float32)
    # FeedForward(dim, mult=4)
    p["ff_ln1_g"] = jnp.ones((DIM,), jnp.float32)
    p["w_ff1"] = rnd(ks[9], (DIM, HIDDEN))
    p["ff_ln2_g"] = jnp.ones((HIDDEN,), jnp.float32)
    p["w_ff2"] = rnd(ks[10], (HIDDEN, DIM))
    return p


# ----------------------------- pure-JAX reference ----------------------------
def reference_forward(x, p):
    """Mirrors the PyTorch module in f32 (exact erf GELU, exact softmax)."""
    hi = jax.lax.Precision.HIGHEST
    b = x.shape[0]
    pos = p["pos_emb"][:N_SEQ]                                   # Embedding(arange(n))
    x_pos = x + pos[None]

    mp = _layer_norm_g(jnp.mean(x, axis=1), p["mp_ln_g"])        # masked_mean -> mean
    mp = jnp.einsum('bd,df->bf', mp, p["w_mp"], precision=hi) + p["b_mp"]
    mp_lat = mp.reshape(b, NUM_MP, DIM)                          # 'b (n d) -> b n d'
    lat = jnp.concatenate(
        [mp_lat, jnp.broadcast_to(p["latents"][None], (b, NUM_LATENTS, DIM))], axis=1)

    # PerceiverAttention
    xn = _layer_norm(x_pos, p["attn_norm_w"], p["attn_norm_b"])
    ln = _layer_norm(lat, p["attn_normlat_w"], p["attn_normlat_b"])
    q = jnp.einsum('bnd,df->bnf', ln, p["w_q"], precision=hi)
    kv_in = jnp.concatenate([xn, ln], axis=1)
    kv = jnp.einsum('bnd,df->bnf', kv_in, p["w_kv"], precision=hi)
    k, v = kv[..., :INNER], kv[..., INNER:]

    def split_heads(t):                                          # 'b n (h d) -> b h n d'
        return t.reshape(b, t.shape[1], HEADS, DHEAD).transpose(0, 2, 1, 3)

    q4 = _l2norm(split_heads(q)) * p["q_scale"]
    k4 = _l2norm(split_heads(k)) * p["k_scale"]
    v4 = split_heads(v)
    sim = jnp.einsum('bhid,bhjd->bhij', q4, k4, precision=hi) * ATTN_SCALE
    attn = jax.nn.softmax(sim, axis=-1)
    o = jnp.einsum('bhij,bhjd->bhid', attn, v4, precision=hi)
    o = o.transpose(0, 2, 1, 3).reshape(b, N_LAT, INNER)         # 'b h n d -> b n (h d)'
    o = jnp.einsum('bnd,df->bnf', o, p["w_o"], precision=hi)
    o = _layer_norm(o, p["out_ln_w"], p["out_ln_b"])
    lat = lat + o

    # FeedForward
    y = _layer_norm_g(lat, p["ff_ln1_g"])
    y = jnp.einsum('bnd,df->bnf', y, p["w_ff1"], precision=hi)
    y = 0.5 * y * (1.0 + jax.lax.erf(y * (2.0 ** -0.5)))         # exact GELU
    y = _layer_norm_g(y, p["ff_ln2_g"])
    y = jnp.einsum('bnd,df->bnf', y, p["w_ff2"], precision=hi)
    return lat + y


# ----------------------------------- main -------------------------------------
if __name__ == "__main__":
    key = jax.random.PRNGKey(0)
    kx, kp = jax.random.split(key)
    x = jax.random.normal(kx, (B, N_SEQ, DIM), jnp.float32)
    params = init_params(kp)

    out = jax.block_until_ready(perceiver_resampler_pallas(x, params))
    assert out.shape == (B, N_LAT, DIM)

    ref = reference_forward(x, params)
    max_err = float(jnp.max(jnp.abs(out - ref)))
    # tolerance covers bf16 MXU operands, tanh-GELU and approx-reciprocal softmax
    assert jnp.allclose(out, ref, atol=5e-2, rtol=5e-2), f"max abs err {max_err}"
    print("KERNEL_OK")
</pallas_src>

<mosaic_0001>
module attributes {stable_mosaic.version = 11 : i64} {
  func.func @_kernel(%arg0: i32, %arg1: memref<4x32x64xf32, #tpu.memory_space<vmem>>, %arg2: memref<32x64xf32, #tpu.memory_space<vmem>>, %arg3: memref<28x64xf32, #tpu.memory_space<vmem>>, %arg4: memref<64x768xbf16, #tpu.memory_space<vmem>>, %arg5: memref<320x64xbf16, #tpu.memory_space<vmem>>, %arg6: memref<12x256xf32, #tpu.memory_space<vmem>>, %arg7: memref<4x32x64xf32, #tpu.memory_space<vmem>>) attributes {dimension_semantics = [#tpu.dimension_semantics<parallel>], iteration_bounds = array<i64: 1>, scalar_prefetch = 0 : i64, scratch_operands = 0 : i64, tpu.core_type = #tpu.core_type<tc>, window_params = [{transform_indices = @transform_0, window_bounds = array<i64: 4, 32, 64>}, {transform_indices = @transform_1, window_bounds = array<i64: 32, 64>}, {pipeline_mode = #tpu.pipeline_mode<synchronous>, transform_indices = @transform_2, window_bounds = array<i64: 28, 64>}, {pipeline_mode = #tpu.pipeline_mode<synchronous>, transform_indices = @transform_3, window_bounds = array<i64: 64, 768>}, {pipeline_mode = #tpu.pipeline_mode<synchronous>, transform_indices = @transform_4, window_bounds = array<i64: 320, 64>}, {pipeline_mode = #tpu.pipeline_mode<synchronous>, transform_indices = @transform_5, window_bounds = array<i64: 12, 256>}, {transform_indices = @transform_6, window_bounds = array<i64: 4, 32, 64>}]} {
    %c0 = arith.constant 0 : index
    %c0_0 = arith.constant 0 : index
    %c0_1 = arith.constant 0 : index
    %0 = vector.load %arg1[%c0, %c0_0, %c0_1] : memref<4x32x64xf32, #tpu.memory_space<vmem>>, vector<4x32x64xf32>
    %c0_2 = arith.constant 0 : index
    %c0_3 = arith.constant 0 : index
    %1 = vector.load %arg2[%c0_2, %c0_3] : memref<32x64xf32, #tpu.memory_space<vmem>>, vector<32x64xf32>
    %c0_4 = arith.constant 0 : index
    %c0_5 = arith.constant 0 : index
    %2 = vector.load %arg3[%c0_4, %c0_5] : memref<28x64xf32, #tpu.memory_space<vmem>>, vector<28x64xf32>
    %c0_6 = arith.constant 0 : index
    %c0_7 = arith.constant 0 : index
    %3 = vector.load %arg6[%c0_6, %c0_7] : memref<12x256xf32, #tpu.memory_space<vmem>>, vector<12x256xf32>
    %4 = vector.shape_cast %1 : vector<32x64xf32> to vector<1x32x64xf32>
    %5 = vector.broadcast %4 : vector<1x32x64xf32> to vector<4x32x64xf32>
    %6 = arith.addf %0, %5 : vector<4x32x64xf32>
    %cst = arith.constant dense<0.000000e+00> : vector<4x64xf32>
    %7 = vector.multi_reduction <add>, %0, %cst [1] : vector<4x32x64xf32> to vector<4x64xf32>
    %cst_8 = arith.constant 3.200000e+01 : f32
    %8 = vector.broadcast %cst_8 : f32 to vector<4x64xf32>
    %9 = arith.divf %7, %8 : vector<4x64xf32>
    %10 = vector.extract_strided_slice %3 {offsets = [0, 0], sizes = [1, 64], strides = [1, 1]} : vector<12x256xf32> to vector<1x64xf32>
    %11 = vector.shape_cast %10 : vector<1x64xf32> to vector<64xf32>
    %cst_9 = arith.constant dense<0.000000e+00> : vector<4xf32>
    %12 = vector.multi_reduction <add>, %9, %cst_9 [1] : vector<4x64xf32> to vector<4xf32>
    %13 = vector.shape_cast %12 : vector<4xf32> to vector<4x1xf32>
    %cst_10 = arith.constant 6.400000e+01 : f32
    %14 = vector.broadcast %cst_10 : f32 to vector<4x1xf32>
    %15 = arith.divf %13, %14 : vector<4x1xf32>
    %16 = vector.broadcast %15 : vector<4x1xf32> to vector<4x64xf32>
    %17 = arith.subf %9, %16 : vector<4x64xf32>
    %18 = arith.mulf %17, %17 : vector<4x64xf32>
    %cst_11 = arith.constant dense<0.000000e+00> : vector<4xf32>
    %19 = vector.multi_reduction <add>, %18, %cst_11 [1] : vector<4x64xf32> to vector<4xf32>
    %20 = vector.shape_cast %19 : vector<4xf32> to vector<4x1xf32>
    %cst_12 = arith.constant 6.400000e+01 : f32
    %21 = vector.broadcast %cst_12 : f32 to vector<4x1xf32>
    %22 = arith.divf %20, %21 : vector<4x1xf32>
    %23 = vector.broadcast %15 : vector<4x1xf32> to vector<4x64xf32>
    %24 = arith.subf %9, %23 : vector<4x64xf32>
    %cst_13 = arith.constant 9.99999974E-6 : f32
    %25 = vector.broadcast %cst_13 : f32 to vector<4x1xf32>
    %26 = arith.addf %22, %25 : vector<4x1xf32>
    %27 = math.rsqrt %26 : vector<4x1xf32>
    %28 = vector.broadcast %27 : vector<4x1xf32> to vector<4x64xf32>
    %29 = arith.mulf %24, %28 : vector<4x64xf32>
    %30 = vector.shape_cast %11 : vector<64xf32> to vector<1x64xf32>
    %31 = vector.broadcast %30 : vector<1x64xf32> to vector<4x64xf32>
    %32 = arith.mulf %29, %31 : vector<4x64xf32>
    %c0_14 = arith.constant 0 : index
    %c0_15 = arith.constant 0 : index
    %33 = vector.load %arg4[%c0_14, %c0_15] : memref<64x768xbf16, #tpu.memory_space<vmem>>, vector<64x256xbf16>
    %34 = arith.truncf %32 : vector<4x64xf32> to vector<4x64xbf16>
    %cst_16 = arith.constant dense<0.000000e+00> : vector<4x256xf32>
    %35 = tpu.matmul %34, %33, %cst_16 {dimension_numbers = #tpu.dot_dimension_numbers<[1], [0], [0], [1], [0, 0, 1, 1], [], []>} : vector<4x64xbf16>, vector<64x256xbf16>, vector<4x256xf32> -> vector<4x256xf32>
    %36 = vector.extract_strided_slice %3 {offsets = [10, 0], sizes = [1, 256], strides = [1, 1]} : vector<12x256xf32> to vector<1x256xf32>
    %37 = vector.shape_cast %36 : vector<1x256xf32> to vector<256xf32>
    %38 = vector.shape_cast %37 : vector<256xf32> to vector<1x256xf32>
    %39 = vector.broadcast %38 : vector<1x256xf32> to vector<4x256xf32>
    %40 = arith.addf %35, %39 : vector<4x256xf32>
    %41 = vector.shape_cast %40 : vector<4x256xf32> to vector<4x4x64xf32>
    %42 = vector.shape_cast %2 : vector<28x64xf32> to vector<1x28x64xf32>
    %43 = vector.shape_cast %42 : vector<1x28x64xf32> to vector<1x28x64xf32>
    %44 = vector.broadcast %43 : vector<1x28x64xf32> to vector<4x28x64xf32>
    %45 = tpu.concatenate %41, %44 in 1 : vector<4x4x64xf32>, vector<4x28x64xf32> -> vector<4x32x64xf32>
    %46 = vector.shape_cast %45 : vector<4x32x64xf32> to vector<128x64xf32>
    %47 = vector.extract_strided_slice %3 {offsets = [1, 0], sizes = [1, 64], strides = [1, 1]} : vector<12x256xf32> to vector<1x64xf32>
    %48 = vector.shape_cast %47 : vector<1x64xf32> to vector<64xf32>
    %49 = vector.extract_strided_slice %3 {offsets = [2, 0], sizes = [1, 64], strides = [1, 1]} : vector<12x256xf32> to vector<1x64xf32>
    %50 = vector.shape_cast %49 : vector<1x64xf32> to vector<64xf32>
    %cst_17 = arith.constant dense<0.000000e+00> : vector<4x32xf32>
    %51 = vector.multi_reduction <add>, %6, %cst_17 [2] : vector<4x32x64xf32> to vector<4x32xf32>
    %52 = vector.shape_cast %51 : vector<4x32xf32> to vector<4x32x1xf32>
    %cst_18 = arith.constant 6.400000e+01 : f32
    %53 = vector.broadcast %cst_18 : f32 to vector<4x32x1xf32>
    %54 = arith.divf %52, %53 : vector<4x32x1xf32>
    %55 = vector.broadcast %54 : vector<4x32x1xf32> to vector<4x32x64xf32>
    %56 = arith.subf %6, %55 : vector<4x32x64xf32>
    %57 = arith.mulf %56, %56 : vector<4x32x64xf32>
    %cst_19 = arith.constant dense<0.000000e+00> : vector<4x32xf32>
    %58 = vector.multi_reduction <add>, %57, %cst_19 [2] : vector<4x32x64xf32> to vector<4x32xf32>
    %59 = vector.shape_cast %58 : vector<4x32xf32> to vector<4x32x1xf32>
    %cst_20 = arith.constant 6.400000e+01 : f32
    %60 = vector.broadcast %cst_20 : f32 to vector<4x32x1xf32>
    %61 = arith.divf %59, %60 : vector<4x32x1xf32>
    %62 = vector.broadcast %54 : vector<4x32x1xf32> to vector<4x32x64xf32>
    %63 = arith.subf %6, %62 : vector<4x32x64xf32>
    %cst_21 = arith.constant 9.99999974E-6 : f32
    %64 = vector.broadcast %cst_21 : f32 to vector<4x32x1xf32>
    %65 = arith.addf %61, %64 : vector<4x32x1xf32>
    %66 = math.rsqrt %65 : vector<4x32x1xf32>
    %67 = vector.broadcast %66 : vector<4x32x1xf32> to vector<4x32x64xf32>
    %68 = arith.mulf %63, %67 : vector<4x32x64xf32>
    %69 = vector.shape_cast %48 : vector<64xf32> to vector<1x1x64xf32>
    %70 = vector.broadcast %69 : vector<1x1x64xf32> to vector<4x32x64xf32>
    %71 = arith.mulf %68, %70 : vector<4x32x64xf32>
    %72 = vector.shape_cast %50 : vector<64xf32> to vector<1x1x64xf32>
    %73 = vector.broadcast %72 : vector<1x1x64xf32> to vector<4x32x64xf32>
    %74 = arith.addf %71, %73 : vector<4x32x64xf32>
    %75 = vector.extract_strided_slice %3 {offsets = [3, 0], sizes = [1, 64], strides = [1, 1]} : vector<12x256xf32> to vector<1x64xf32>
    %76 = vector.shape_cast %75 : vector<1x64xf32> to vector<64xf32>
    %77 = vector.extract_strided_slice %3 {offsets = [4, 0], sizes = [1, 64], strides = [1, 1]} : vector<12x256xf32> to vector<1x64xf32>
    %78 = vector.shape_cast %77 : vector<1x64xf32> to vector<64xf32>
    %cst_22 = arith.constant dense<0.000000e+00> : vector<128xf32>
    %79 = vector.multi_reduction <add>, %46, %cst_22 [1] : vector<128x64xf32> to vector<128xf32>
    %80 = vector.shape_cast %79 : vector<128xf32> to vector<128x1xf32>
    %cst_23 = arith.constant 6.400000e+01 : f32
    %81 = vector.broadcast %cst_23 : f32 to vector<128x1xf32>
    %82 = arith.divf %80, %81 : vector<128x1xf32>
    %83 = vector.broadcast %82 : vector<128x1xf32> to vector<128x64xf32>
    %84 = arith.subf %46, %83 : vector<128x64xf32>
    %85 = arith.mulf %84, %84 : vector<128x64xf32>
    %cst_24 = arith.constant dense<0.000000e+00> : vector<128xf32>
    %86 = vector.multi_reduction <add>, %85, %cst_24 [1] : vector<128x64xf32> to vector<128xf32>
    %87 = vector.shape_cast %86 : vector<128xf32> to vector<128x1xf32>
    %cst_25 = arith.constant 6.400000e+01 : f32
    %88 = vector.broadcast %cst_25 : f32 to vector<128x1xf32>
    %89 = arith.divf %87, %88 : vector<128x1xf32>
    %90 = vector.broadcast %82 : vector<128x1xf32> to vector<128x64xf32>
    %91 = arith.subf %46, %90 : vector<128x64xf32>
    %cst_26 = arith.constant 9.99999974E-6 : f32
    %92 = vector.broadcast %cst_26 : f32 to vector<128x1xf32>
    %93 = arith.addf %89, %92 : vector<128x1xf32>
    %94 = math.rsqrt %93 : vector<128x1xf32>
    %95 = vector.broadcast %94 : vector<128x1xf32> to vector<128x64xf32>
    %96 = arith.mulf %91, %95 : vector<128x64xf32>
    %97 = vector.shape_cast %76 : vector<64xf32> to vector<1x64xf32>
    %98 = vector.broadcast %97 : vector<1x64xf32> to vector<128x64xf32>
    %99 = arith.mulf %96, %98 : vector<128x64xf32>
    %100 = vector.shape_cast %78 : vector<64xf32> to vector<1x64xf32>
    %101 = vector.broadcast %100 : vector<1x64xf32> to vector<128x64xf32>
    %102 = arith.addf %99, %101 : vector<128x64xf32>
    %103 = vector.shape_cast %102 : vector<128x64xf32> to vector<4x32x64xf32>
    %104 = tpu.concatenate %74, %103 in 1 : vector<4x32x64xf32>, vector<4x32x64xf32> -> vector<4x64x64xf32>
    %105 = vector.shape_cast %104 : vector<4x64x64xf32> to vector<256x64xf32>
    %c0_27 = arith.constant 0 : index
    %c512 = arith.constant 512 : index
    %106 = vector.load %arg4[%c0_27, %c512] : memref<64x768xbf16, #tpu.memory_space<vmem>>, vector<64x192xbf16>
    %107 = arith.truncf %105 : vector<256x64xf32> to vector<256x64xbf16>
    %cst_28 = arith.constant dense<0.000000e+00> : vector<256x192xf32>
    %108 = tpu.matmul %107, %106, %cst_28 {dimension_numbers = #tpu.dot_dimension_numbers<[1], [0], [0], [1], [0, 0, 1, 1], [], []>} : vector<256x64xbf16>, vector<64x192xbf16>, vector<256x192xf32> -> vector<256x192xf32>
    %109 = vector.shape_cast %108 : vector<256x192xf32> to vector<4x64x192xf32>
    %110 = vector.extract_strided_slice %3 {offsets = [5, 0], sizes = [1, 16], strides = [1, 1]} : vector<12x256xf32> to vector<1x16xf32>
    %111 = vector.shape_cast %110 : vector<1x16xf32> to vector<16xf32>
    %112 = vector.extract_strided_slice %3 {offsets = [6, 0], sizes = [1, 16], strides = [1, 1]} : vector<12x256xf32> to vector<1x16xf32>
    %113 = vector.shape_cast %112 : vector<1x16xf32> to vector<16xf32>
    %114 = vector.extract_strided_slice %109 {offsets = [0, 32, 128], sizes = [4, 32, 16], strides = [1, 1, 1]} : vector<4x64x192xf32> to vector<4x32x16xf32>
    %115 = arith.mulf %114, %114 : vector<4x32x16xf32>
    %cst_29 = arith.constant dense<0.000000e+00> : vector<4x32xf32>
    %116 = vector.multi_reduction <add>, %115, %cst_29 [2] : vector<4x32x16xf32> to vector<4x32xf32>
    %117 = vector.shape_cast %116 : vector<4x32xf32> to vector<4x32x1xf32>
    %cst_30 = arith.constant 1.000000e-24 : f32
    %118 = vector.broadcast %cst_30 : f32 to vector<4x32x1xf32>
    %119 = arith.maximumf %117, %118 : vector<4x32x1xf32>
    %120 = math.rsqrt %119 : vector<4x32x1xf32>
    %121 = vector.broadcast %120 : vector<4x32x1xf32> to vector<4x32x16xf32>
    %122 = arith.mulf %114, %121 : vector<4x32x16xf32>
    %123 = vector.shape_cast %111 : vector<16xf32> to vector<1x1x16xf32>
    %124 = vector.broadcast %123 : vector<1x1x16xf32> to vector<4x32x16xf32>
    %125 = arith.mulf %122, %124 : vector<4x32x16xf32>
    %126 = vector.extract_strided_slice %109 {offsets = [0, 0, 0], sizes = [4, 64, 16], strides = [1, 1, 1]} : vector<4x64x192xf32> to vector<4x64x16xf32>
    %127 = arith.mulf %126, %126 : vector<4x64x16xf32>
    %cst_31 = arith.constant dense<0.000000e+00> : vector<4x64xf32>
    %128 = vector.multi_reduction <add>, %127, %cst_31 [2] : vector<4x64x16xf32> to vector<4x64xf32>
    %129 = vector.shape_cast %128 : vector<4x64xf32> to vector<4x64x1xf32>
    %cst_32 = arith.constant 1.000000e-24 : f32
    %130 = vector.broadcast %cst_32 : f32 to vector<4x64x1xf32>
    %131 = arith.maximumf %129, %130 : vector<4x64x1xf32>
    %132 = math.rsqrt %131 : vector<4x64x1xf32>
    %133 = vector.broadcast %132 : vector<4x64x1xf32> to vector<4x64x16xf32>
    %134 = arith.mulf %126, %133 : vector<4x64x16xf32>
    %135 = vector.shape_cast %113 : vector<16xf32> to vector<1x1x16xf32>
    %136 = vector.broadcast %135 : vector<1x1x16xf32> to vector<4x64x16xf32>
    %137 = arith.mulf %134, %136 : vector<4x64x16xf32>
    "tpu.trace_start"() <{level = 10 : i32, message = "bid,bjd->bij"}> : () -> ()
    %cst_33 = arith.constant dense<0.000000e+00> : vector<4x32x64xf32>
    %138 = tpu.matmul %125, %137, %cst_33 {dimension_numbers = #tpu.dot_dimension_numbers<[2], [2], [1], [1], [0, 0, 0, 1, 1, 1], [0], [0]>} : vector<4x32x16xf32>, vector<4x64x16xf32>, vector<4x32x64xf32> -> vector<4x32x64xf32>
    "tpu.trace_stop"() : () -> ()
    %cst_34 = arith.constant 8.000000e+00 : f32
    %139 = vector.broadcast %cst_34 : f32 to vector<4x32x64xf32>
    %140 = arith.mulf %138, %139 : vector<4x32x64xf32>
    %141 = math.exp %140 : vector<4x32x64xf32>
    %cst_35 = arith.constant dense<0.000000e+00> : vector<4x32xf32>
    %142 = vector.multi_reduction <add>, %141, %cst_35 [2] : vector<4x32x64xf32> to vector<4x32xf32>
    %143 = vector.shape_cast %142 : vector<4x32xf32> to vector<4x32x1xf32>
    %144 = tpu.reciprocal %143 {approx = true} : vector<4x32x1xf32> -> vector<4x32x1xf32>
    %145 = vector.broadcast %144 : vector<4x32x1xf32> to vector<4x32x64xf32>
    %146 = arith.mulf %141, %145 : vector<4x32x64xf32>
    %147 = vector.extract_strided_slice %109 {offsets = [0, 0, 64], sizes = [4, 64, 16], strides = [1, 1, 1]} : vector<4x64x192xf32> to vector<4x64x16xf32>
    "tpu.trace_start"() <{level = 10 : i32, message = "bij,bjd->bid"}> : () -> ()
    %cst_36 = arith.constant dense<0.000000e+00> : vector<4x32x16xf32>
    %148 = tpu.matmul %146, %147, %cst_36 {dimension_numbers = #tpu.dot_dimension_numbers<[2], [1], [1], [2], [0, 0, 0, 1, 1, 2], [0], [0]>} : vector<4x32x64xf32>, vector<4x64x16xf32>, vector<4x32x16xf32> -> vector<4x32x16xf32>
    "tpu.trace_stop"() : () -> ()
    %149 = vector.extract_strided_slice %109 {offsets = [0, 32, 144], sizes = [4, 32, 16], strides = [1, 1, 1]} : vector<4x64x192xf32> to vector<4x32x16xf32>
    %150 = arith.mulf %149, %149 : vector<4x32x16xf32>
    %cst_37 = arith.constant dense<0.000000e+00> : vector<4x32xf32>
    %151 = vector.multi_reduction <add>, %150, %cst_37 [2] : vector<4x32x16xf32> to vector<4x32xf32>
    %152 = vector.shape_cast %151 : vector<4x32xf32> to vector<4x32x1xf32>
    %cst_38 = arith.constant 1.000000e-24 : f32
    %153 = vector.broadcast %cst_38 : f32 to vector<4x32x1xf32>
    %154 = arith.maximumf %152, %153 : vector<4x32x1xf32>
    %155 = math.rsqrt %154 : vector<4x32x1xf32>
    %156 = vector.broadcast %155 : vector<4x32x1xf32> to vector<4x32x16xf32>
    %157 = arith.mulf %149, %156 : vector<4x32x16xf32>
    %158 = vector.shape_cast %111 : vector<16xf32> to vector<1x1x16xf32>
    %159 = vector.broadcast %158 : vector<1x1x16xf32> to vector<4x32x16xf32>
    %160 = arith.mulf %157, %159 : vector<4x32x16xf32>
    %161 = vector.extract_strided_slice %109 {offsets = [0, 0, 16], sizes = [4, 64, 16], strides = [1, 1, 1]} : vector<4x64x192xf32> to vector<4x64x16xf32>
    %162 = arith.mulf %161, %161 : vector<4x64x16xf32>
    %cst_39 = arith.constant dense<0.000000e+00> : vector<4x64xf32>
    %163 = vector.multi_reduction <add>, %162, %cst_39 [2] : vector<4x64x16xf32> to vector<4x64xf32>
    %164 = vector.shape_cast %163 : vector<4x64xf32> to vector<4x64x1xf32>
    %cst_40 = arith.constant 1.000000e-24 : f32
    %165 = vector.broadcast %cst_40 : f32 to vector<4x64x1xf32>
    %166 = arith.maximumf %164, %165 : vector<4x64x1xf32>
    %167 = math.rsqrt %166 : vector<4x64x1xf32>
    %168 = vector.broadcast %167 : vector<4x64x1xf32> to vector<4x64x16xf32>
    %169 = arith.mulf %161, %168 : vector<4x64x16xf32>
    %170 = vector.shape_cast %113 : vector<16xf32> to vector<1x1x16xf32>
    %171 = vector.broadcast %170 : vector<1x1x16xf32> to vector<4x64x16xf32>
    %172 = arith.mulf %169, %171 : vector<4x64x16xf32>
    "tpu.trace_start"() <{level = 10 : i32, message = "bid,bjd->bij"}> : () -> ()
    %cst_41 = arith.constant dense<0.000000e+00> : vector<4x32x64xf32>
    %173 = tpu.matmul %160, %172, %cst_41 {dimension_numbers = #tpu.dot_dimension_numbers<[2], [2], [1], [1], [0, 0, 0, 1, 1, 1], [0], [0]>} : vector<4x32x16xf32>, vector<4x64x16xf32>, vector<4x32x64xf32> -> vector<4x32x64xf32>
    "tpu.trace_stop"() : () -> ()
    %cst_42 = arith.constant 8.000000e+00 : f32
    %174 = vector.broadcast %cst_42 : f32 to vector<4x32x64xf32>
    %175 = arith.mulf %173, %174 : vector<4x32x64xf32>
    %176 = math.exp %175 : vector<4x32x64xf32>
    %cst_43 = arith.constant dense<0.000000e+00> : vector<4x32xf32>
    %177 = vector.multi_reduction <add>, %176, %cst_43 [2] : vector<4x32x64xf32> to vector<4x32xf32>
    %178 = vector.shape_cast %177 : vector<4x32xf32> to vector<4x32x1xf32>
    %179 = tpu.reciprocal %178 {approx = true} : vector<4x32x1xf32> -> vector<4x32x1xf32>
    %180 = vector.broadcast %179 : vector<4x32x1xf32> to vector<4x32x64xf32>
    %181 = arith.mulf %176, %180 : vector<4x32x64xf32>
    %182 = vector.extract_strided_slice %109 {offsets = [0, 0, 80], sizes = [4, 64, 16], strides = [1, 1, 1]} : vector<4x64x192xf32> to vector<4x64x16xf32>
    "tpu.trace_start"() <{level = 10 : i32, message = "bij,bjd->bid"}> : () -> ()
    %cst_44 = arith.constant dense<0.000000e+00> : vector<4x32x16xf32>
    %183 = tpu.matmul %181, %182, %cst_44 {dimension_numbers = #tpu.dot_dimension_numbers<[2], [1], [1], [2], [0, 0, 0, 1, 1, 2], [0], [0]>} : vector<4x32x64xf32>, vector<4x64x16xf32>, vector<4x32x16xf32> -> vector<4x32x16xf32>
    "tpu.trace_stop"() : () -> ()
    %184 = vector.extract_strided_slice %109 {offsets = [0, 32, 160], sizes = [4, 32, 16], strides = [1, 1, 1]} : vector<4x64x192xf32> to vector<4x32x16xf32>
    %185 = arith.mulf %184, %184 : vector<4x32x16xf32>
    %cst_45 = arith.constant dense<0.000000e+00> : vector<4x32xf32>
    %186 = vector.multi_reduction <add>, %185, %cst_45 [2] : vector<4x32x16xf32> to vector<4x32xf32>
    %187 = vector.shape_cast %186 : vector<4x32xf32> to vector<4x32x1xf32>
    %cst_46 = arith.constant 1.000000e-24 : f32
    %188 = vector.broadcast %cst_46 : f32 to vector<4x32x1xf32>
    %189 = arith.maximumf %187, %188 : vector<4x32x1xf32>
    %190 = math.rsqrt %189 : vector<4x32x1xf32>
    %191 = vector.broadcast %190 : vector<4x32x1xf32> to vector<4x32x16xf32>
    %192 = arith.mulf %184, %191 : vector<4x32x16xf32>
    %193 = vector.shape_cast %111 : vector<16xf32> to vector<1x1x16xf32>
    %194 = vector.broadcast %193 : vector<1x1x16xf32> to vector<4x32x16xf32>
    %195 = arith.mulf %192, %194 : vector<4x32x16xf32>
    %196 = vector.extract_strided_slice %109 {offsets = [0, 0, 32], sizes = [4, 64, 16], strides = [1, 1, 1]} : vector<4x64x192xf32> to vector<4x64x16xf32>
    %197 = arith.mulf %196, %196 : vector<4x64x16xf32>
    %cst_47 = arith.constant dense<0.000000e+00> : vector<4x64xf32>
    %198 = vector.multi_reduction <add>, %197, %cst_47 [2] : vector<4x64x16xf32> to vector<4x64xf32>
    %199 = vector.shape_cast %198 : vector<4x64xf32> to vector<4x64x1xf32>
    %cst_48 = arith.constant 1.000000e-24 : f32
    %200 = vector.broadcast %cst_48 : f32 to vector<4x64x1xf32>
    %201 = arith.maximumf %199, %200 : vector<4x64x1xf32>
    %202 = math.rsqrt %201 : vector<4x64x1xf32>
    %203 = vector.broadcast %202 : vector<4x64x1xf32> to vector<4x64x16xf32>
    %204 = arith.mulf %196, %203 : vector<4x64x16xf32>
    %205 = vector.shape_cast %113 : vector<16xf32> to vector<1x1x16xf32>
    %206 = vector.broadcast %205 : vector<1x1x16xf32> to vector<4x64x16xf32>
    %207 = arith.mulf %204, %206 : vector<4x64x16xf32>
    "tpu.trace_start"() <{level = 10 : i32, message = "bid,bjd->bij"}> : () -> ()
    %cst_49 = arith.constant dense<0.000000e+00> : vector<4x32x64xf32>
    %208 = tpu.matmul %195, %207, %cst_49 {dimension_numbers = #tpu.dot_dimension_numbers<[2], [2], [1], [1], [0, 0, 0, 1, 1, 1], [0], [0]>} : vector<4x32x16xf32>, vector<4x64x16xf32>, vector<4x32x64xf32> -> vector<4x32x64xf32>
    "tpu.trace_stop"() : () -> ()
    %cst_50 = arith.constant 8.000000e+00 : f32
    %209 = vector.broadcast %cst_50 : f32 to vector<4x32x64xf32>
    %210 = arith.mulf %208, %209 : vector<4x32x64xf32>
    %211 = math.exp %210 : vector<4x32x64xf32>
    %cst_51 = arith.constant dense<0.000000e+00> : vector<4x32xf32>
    %212 = vector.multi_reduction <add>, %211, %cst_51 [2] : vector<4x32x64xf32> to vector<4x32xf32>
    %213 = vector.shape_cast %212 : vector<4x32xf32> to vector<4x32x1xf32>
    %214 = tpu.reciprocal %213 {approx = true} : vector<4x32x1xf32> -> vector<4x32x1xf32>
    %215 = vector.broadcast %214 : vector<4x32x1xf32> to vector<4x32x64xf32>
    %216 = arith.mulf %211, %215 : vector<4x32x64xf32>
    %217 = vector.extract_strided_slice %109 {offsets = [0, 0, 96], sizes = [4, 64, 16], strides = [1, 1, 1]} : vector<4x64x192xf32> to vector<4x64x16xf32>
    "tpu.trace_start"() <{level = 10 : i32, message = "bij,bjd->bid"}> : () -> ()
    %cst_52 = arith.constant dense<0.000000e+00> : vector<4x32x16xf32>
    %218 = tpu.matmul %216, %217, %cst_52 {dimension_numbers = #tpu.dot_dimension_numbers<[2], [1], [1], [2], [0, 0, 0, 1, 1, 2], [0], [0]>} : vector<4x32x64xf32>, vector<4x64x16xf32>, vector<4x32x16xf32> -> vector<4x32x16xf32>
    "tpu.trace_stop"() : () -> ()
    %219 = vector.extract_strided_slice %109 {offsets = [0, 32, 176], sizes = [4, 32, 16], strides = [1, 1, 1]} : vector<4x64x192xf32> to vector<4x32x16xf32>
    %220 = arith.mulf %219, %219 : vector<4x32x16xf32>
    %cst_53 = arith.constant dense<0.000000e+00> : vector<4x32xf32>
    %221 = vector.multi_reduction <add>, %220, %cst_53 [2] : vector<4x32x16xf32> to vector<4x32xf32>
    %222 = vector.shape_cast %221 : vector<4x32xf32> to vector<4x32x1xf32>
    %cst_54 = arith.constant 1.000000e-24 : f32
    %223 = vector.broadcast %cst_54 : f32 to vector<4x32x1xf32>
    %224 = arith.maximumf %222, %223 : vector<4x32x1xf32>
    %225 = math.rsqrt %224 : vector<4x32x1xf32>
    %226 = vector.broadcast %225 : vector<4x32x1xf32> to vector<4x32x16xf32>
    %227 = arith.mulf %219, %226 : vector<4x32x16xf32>
    %228 = vector.shape_cast %111 : vector<16xf32> to vector<1x1x16xf32>
    %229 = vector.broadcast %228 : vector<1x1x16xf32> to vector<4x32x16xf32>
    %230 = arith.mulf %227, %229 : vector<4x32x16xf32>
    %231 = vector.extract_strided_slice %109 {offsets = [0, 0, 48], sizes = [4, 64, 16], strides = [1, 1, 1]} : vector<4x64x192xf32> to vector<4x64x16xf32>
    %232 = arith.mulf %231, %231 : vector<4x64x16xf32>
    %cst_55 = arith.constant dense<0.000000e+00> : vector<4x64xf32>
    %233 = vector.multi_reduction <add>, %232, %cst_55 [2] : vector<4x64x16xf32> to vector<4x64xf32>
    %234 = vector.shape_cast %233 : vector<4x64xf32> to vector<4x64x1xf32>
    %cst_56 = arith.constant 1.000000e-24 : f32
    %235 = vector.broadcast %cst_56 : f32 to vector<4x64x1xf32>
    %236 = arith.maximumf %234, %235 : vector<4x64x1xf32>
    %237 = math.rsqrt %236 : vector<4x64x1xf32>
    %238 = vector.broadcast %237 : vector<4x64x1xf32> to vector<4x64x16xf32>
    %239 = arith.mulf %231, %238 : vector<4x64x16xf32>
    %240 = vector.shape_cast %113 : vector<16xf32> to vector<1x1x16xf32>
    %241 = vector.broadcast %240 : vector<1x1x16xf32> to vector<4x64x16xf32>
    %242 = arith.mulf %239, %241 : vector<4x64x16xf32>
    "tpu.trace_start"() <{level = 10 : i32, message = "bid,bjd->bij"}> : () -> ()
    %cst_57 = arith.constant dense<0.000000e+00> : vector<4x32x64xf32>
    %243 = tpu.matmul %230, %242, %cst_57 {dimension_numbers = #tpu.dot_dimension_numbers<[2], [2], [1], [1], [0, 0, 0, 1, 1, 1], [0], [0]>} : vector<4x32x16xf32>, vector<4x64x16xf32>, vector<4x32x64xf32> -> vector<4x32x64xf32>
    "tpu.trace_stop"() : () -> ()
    %cst_58 = arith.constant 8.000000e+00 : f32
    %244 = vector.broadcast %cst_58 : f32 to vector<4x32x64xf32>
    %245 = arith.mulf %243, %244 : vector<4x32x64xf32>
    %246 = math.exp %245 : vector<4x32x64xf32>
    %cst_59 = arith.constant dense<0.000000e+00> : vector<4x32xf32>
    %247 = vector.multi_reduction <add>, %246, %cst_59 [2] : vector<4x32x64xf32> to vector<4x32xf32>
    %248 = vector.shape_cast %247 : vector<4x32xf32> to vector<4x32x1xf32>
    %249 = tpu.reciprocal %248 {approx = true} : vector<4x32x1xf32> -> vector<4x32x1xf32>
    %250 = vector.broadcast %249 : vector<4x32x1xf32> to vector<4x32x64xf32>
    %251 = arith.mulf %246, %250 : vector<4x32x64xf32>
    %252 = vector.extract_strided_slice %109 {offsets = [0, 0, 112], sizes = [4, 64, 16], strides = [1, 1, 1]} : vector<4x64x192xf32> to vector<4x64x16xf32>
    "tpu.trace_start"() <{level = 10 : i32, message = "bij,bjd->bid"}> : () -> ()
    %cst_60 = arith.constant dense<0.000000e+00> : vector<4x32x16xf32>
    %253 = tpu.matmul %251, %252, %cst_60 {dimension_numbers = #tpu.dot_dimension_numbers<[2], [1], [1], [2], [0, 0, 0, 1, 1, 2], [0], [0]>} : vector<4x32x64xf32>, vector<4x64x16xf32>, vector<4x32x16xf32> -> vector<4x32x16xf32>
    "tpu.trace_stop"() : () -> ()
    %254 = tpu.concatenate %148, %183, %218, %253 in 2 : vector<4x32x16xf32>, vector<4x32x16xf32>, vector<4x32x16xf32>, vector<4x32x16xf32> -> vector<4x32x64xf32>
    %255 = vector.shape_cast %254 : vector<4x32x64xf32> to vector<128x64xf32>
    %c0_61 = arith.constant 0 : index
    %c0_62 = arith.constant 0 : index
    %256 = vector.load %arg5[%c0_61, %c0_62] : memref<320x64xbf16, #tpu.memory_space<vmem>>, vector<64x64xbf16>
    %257 = arith.truncf %255 : vector<128x64xf32> to vector<128x64xbf16>
    %cst_63 = arith.constant dense<0.000000e+00> : vector<128x64xf32>
    %258 = tpu.matmul %257, %256, %cst_63 {dimension_numbers = #tpu.dot_dimension_numbers<[1], [0], [0], [1], [0, 0, 1, 1], [], []>} : vector<128x64xbf16>, vector<64x64xbf16>, vector<128x64xf32> -> vector<128x64xf32>
    %259 = vector.extract_strided_slice %3 {offsets = [7, 0], sizes = [1, 64], strides = [1, 1]} : vector<12x256xf32> to vector<1x64xf32>
    %260 = vector.shape_cast %259 : vector<1x64xf32> to vector<64xf32>
    %261 = vector.extract_strided_slice %3 {offsets = [8, 0], sizes = [1, 64], strides = [1, 1]} : vector<12x256xf32> to vector<1x64xf32>
    %262 = vector.shape_cast %261 : vector<1x64xf32> to vector<64xf32>
    %cst_64 = arith.constant dense<0.000000e+00> : vector<128xf32>
    %263 = vector.multi_reduction <add>, %258, %cst_64 [1] : vector<128x64xf32> to vector<128xf32>
    %264 = vector.shape_cast %263 : vector<128xf32> to vector<128x1xf32>
    %cst_65 = arith.constant 6.400000e+01 : f32
    %265 = vector.broadcast %cst_65 : f32 to vector<128x1xf32>
    %266 = arith.divf %264, %265 : vector<128x1xf32>
    %267 = vector.broadcast %266 : vector<128x1xf32> to vector<128x64xf32>
    %268 = arith.subf %258, %267 : vector<128x64xf32>
    %269 = arith.mulf %268, %268 : vector<128x64xf32>
    %cst_66 = arith.constant dense<0.000000e+00> : vector<128xf32>
    %270 = vector.multi_reduction <add>, %269, %cst_66 [1] : vector<128x64xf32> to vector<128xf32>
    %271 = vector.shape_cast %270 : vector<128xf32> to vector<128x1xf32>
    %cst_67 = arith.constant 6.400000e+01 : f32
    %272 = vector.broadcast %cst_67 : f32 to vector<128x1xf32>
    %273 = arith.divf %271, %272 : vector<128x1xf32>
    %274 = vector.broadcast %266 : vector<128x1xf32> to vector<128x64xf32>
    %275 = arith.subf %258, %274 : vector<128x64xf32>
    %cst_68 = arith.constant 9.99999974E-6 : f32
    %276 = vector.broadcast %cst_68 : f32 to vector<128x1xf32>
    %277 = arith.addf %273, %276 : vector<128x1xf32>
    %278 = math.rsqrt %277 : vector<128x1xf32>
    %279 = vector.broadcast %278 : vector<128x1xf32> to vector<128x64xf32>
    %280 = arith.mulf %275, %279 : vector<128x64xf32>
    %281 = vector.shape_cast %260 : vector<64xf32> to vector<1x64xf32>
    %282 = vector.broadcast %281 : vector<1x64xf32> to vector<128x64xf32>
    %283 = arith.mulf %280, %282 : vector<128x64xf32>
    %284 = vector.shape_cast %262 : vector<64xf32> to vector<1x64xf32>
    %285 = vector.broadcast %284 : vector<1x64xf32> to vector<128x64xf32>
    %286 = arith.addf %283, %285 : vector<128x64xf32>
    %287 = arith.addf %46, %286 : vector<128x64xf32>
    %288 = vector.extract_strided_slice %3 {offsets = [9, 0], sizes = [1, 64], strides = [1, 1]} : vector<12x256xf32> to vector<1x64xf32>
    %289 = vector.shape_cast %288 : vector<1x64xf32> to vector<64xf32>
    %cst_69 = arith.constant dense<0.000000e+00> : vector<128xf32>
    %290 = vector.multi_reduction <add>, %287, %cst_69 [1] : vector<128x64xf32> to vector<128xf32>
    %291 = vector.shape_cast %290 : vector<128xf32> to vector<128x1xf32>
    %cst_70 = arith.constant 6.400000e+01 : f32
    %292 = vector.broadcast %cst_70 : f32 to vector<128x1xf32>
    %293 = arith.divf %291, %292 : vector<128x1xf32>
    %294 = vector.broadcast %293 : vector<128x1xf32> to vector<128x64xf32>
    %295 = arith.subf %287, %294 : vector<128x64xf32>
    %296 = arith.mulf %295, %295 : vector<128x64xf32>
    %cst_71 = arith.constant dense<0.000000e+00> : vector<128xf32>
    %297 = vector.multi_reduction <add>, %296, %cst_71 [1] : vector<128x64xf32> to vector<128xf32>
    %298 = vector.shape_cast %297 : vector<128xf32> to vector<128x1xf32>
    %cst_72 = arith.constant 6.400000e+01 : f32
    %299 = vector.broadcast %cst_72 : f32 to vector<128x1xf32>
    %300 = arith.divf %298, %299 : vector<128x1xf32>
    %301 = vector.broadcast %293 : vector<128x1xf32> to vector<128x64xf32>
    %302 = arith.subf %287, %301 : vector<128x64xf32>
    %cst_73 = arith.constant 9.99999974E-6 : f32
    %303 = vector.broadcast %cst_73 : f32 to vector<128x1xf32>
    %304 = arith.addf %300, %303 : vector<128x1xf32>
    %305 = math.rsqrt %304 : vector<128x1xf32>
    %306 = vector.broadcast %305 : vector<128x1xf32> to vector<128x64xf32>
    %307 = arith.mulf %302, %306 : vector<128x64xf32>
    %308 = vector.shape_cast %289 : vector<64xf32> to vector<1x64xf32>
    %309 = vector.broadcast %308 : vector<1x64xf32> to vector<128x64xf32>
    %310 = arith.mulf %307, %309 : vector<128x64xf32>
    %c0_74 = arith.constant 0 : index
    %c256 = arith.constant 256 : index
    %311 = vector.load %arg4[%c0_74, %c256] : memref<64x768xbf16, #tpu.memory_space<vmem>>, vector<64x256xbf16>
    %312 = arith.truncf %310 : vector<128x64xf32> to vector<128x64xbf16>
    %cst_75 = arith.constant dense<0.000000e+00> : vector<128x256xf32>
    %313 = tpu.matmul %312, %311, %cst_75 {dimension_numbers = #tpu.dot_dimension_numbers<[1], [0], [0], [1], [0, 0, 1, 1], [], []>} : vector<128x64xbf16>, vector<64x256xbf16>, vector<128x256xf32> -> vector<128x256xf32>
    %cst_76 = arith.constant 5.000000e-01 : f32
    %314 = vector.broadcast %cst_76 : f32 to vector<128x256xf32>
    %315 = arith.mulf %314, %313 : vector<128x256xf32>
    %cst_77 = arith.constant 4.471500e-02 : f32
    %316 = vector.broadcast %cst_77 : f32 to vector<128x256xf32>
    %317 = arith.mulf %316, %313 : vector<128x256xf32>
    %318 = arith.mulf %317, %313 : vector<128x256xf32>
    %319 = arith.mulf %318, %313 : vector<128x256xf32>
    %320 = arith.addf %313, %319 : vector<128x256xf32>
    %cst_78 = arith.constant 0.797884583 : f32
    %321 = vector.broadcast %cst_78 : f32 to vector<128x256xf32>
    %322 = arith.mulf %321, %320 : vector<128x256xf32>
    %323 = math.tanh %322 : vector<128x256xf32>
    %cst_79 = arith.constant 1.000000e+00 : f32
    %324 = vector.broadcast %cst_79 : f32 to vector<128x256xf32>
    %325 = arith.addf %324, %323 : vector<128x256xf32>
    %326 = arith.mulf %315, %325 : vector<128x256xf32>
    %327 = vector.extract_strided_slice %3 {offsets = [11, 0], sizes = [1, 256], strides = [1, 1]} : vector<12x256xf32> to vector<1x256xf32>
    %328 = vector.shape_cast %327 : vector<1x256xf32> to vector<256xf32>
    %cst_80 = arith.constant dense<0.000000e+00> : vector<128xf32>
    %329 = vector.multi_reduction <add>, %326, %cst_80 [1] : vector<128x256xf32> to vector<128xf32>
    %330 = vector.shape_cast %329 : vector<128xf32> to vector<128x1xf32>
    %cst_81 = arith.constant 2.560000e+02 : f32
    %331 = vector.broadcast %cst_81 : f32 to vector<128x1xf32>
    %332 = arith.divf %330, %331 : vector<128x1xf32>
    %333 = vector.broadcast %332 : vector<128x1xf32> to vector<128x256xf32>
    %334 = arith.subf %326, %333 : vector<128x256xf32>
    %335 = arith.mulf %334, %334 : vector<128x256xf32>
    %cst_82 = arith.constant dense<0.000000e+00> : vector<128xf32>
    %336 = vector.multi_reduction <add>, %335, %cst_82 [1] : vector<128x256xf32> to vector<128xf32>
    %337 = vector.shape_cast %336 : vector<128xf32> to vector<128x1xf32>
    %cst_83 = arith.constant 2.560000e+02 : f32
    %338 = vector.broadcast %cst_83 : f32 to vector<128x1xf32>
    %339 = arith.divf %337, %338 : vector<128x1xf32>
    %340 = vector.broadcast %332 : vector<128x1xf32> to vector<128x256xf32>
    %341 = arith.subf %326, %340 : vector<128x256xf32>
    %cst_84 = arith.constant 9.99999974E-6 : f32
    %342 = vector.broadcast %cst_84 : f32 to vector<128x1xf32>
    %343 = arith.addf %339, %342 : vector<128x1xf32>
    %344 = math.rsqrt %343 : vector<128x1xf32>
    %345 = vector.broadcast %344 : vector<128x1xf32> to vector<128x256xf32>
    %346 = arith.mulf %341, %345 : vector<128x256xf32>
    %347 = vector.shape_cast %328 : vector<256xf32> to vector<1x256xf32>
    %348 = vector.broadcast %347 : vector<1x256xf32> to vector<128x256xf32>
    %349 = arith.mulf %346, %348 : vector<128x256xf32>
    %c64 = arith.constant 64 : index
    %c0_85 = arith.constant 0 : index
    %350 = vector.load %arg5[%c64, %c0_85] : memref<320x64xbf16, #tpu.memory_space<vmem>>, vector<256x64xbf16>
    %351 = arith.truncf %349 : vector<128x256xf32> to vector<128x256xbf16>
    %cst_86 = arith.constant dense<0.000000e+00> : vector<128x64xf32>
    %352 = tpu.matmul %351, %350, %cst_86 {dimension_numbers = #tpu.dot_dimension_numbers<[1], [0], [0], [1], [0, 0, 1, 1], [], []>} : vector<128x256xbf16>, vector<256x64xbf16>, vector<128x64xf32> -> vector<128x64xf32>
    %353 = arith.addf %287, %352 : vector<128x64xf32>
    %354 = vector.shape_cast %353 : vector<128x64xf32> to vector<4x32x64xf32>
    %c0_87 = arith.constant 0 : index
    %c0_88 = arith.constant 0 : index
    %c0_89 = arith.constant 0 : index
    %355 = vector.load %arg7[%c0_87, %c0_88, %c0_89] : memref<4x32x64xf32, #tpu.memory_space<vmem>>, vector<4x32x64xf32>
    tpu.vector_store %arg7[%c0_87, %c0_88, %c0_89], %354 {strides = array<i32>} : memref<4x32x64xf32, #tpu.memory_space<vmem>>, vector<4x32x64xf32>,
    return
  }
  func.func @transform_0(%arg0: i32) -> (i32, i32, i32) {
    %c0_i32 = arith.constant 0 : i32
    %c0_i32_0 = arith.constant 0 : i32
    %c0_i32_1 = arith.constant 0 : i32
    return %arg0, %c0_i32, %c0_i32_0 : i32, i32, i32
  }
  func.func @transform_1(%arg0: i32) -> (i32, i32) {
    %c0_i32 = arith.constant 0 : i32
    %c0_i32_0 = arith.constant 0 : i32
    %c0_i32_1 = arith.constant 0 : i32
    return %c0_i32, %c0_i32_0 : i32, i32
  }
  func.func @transform_2(%arg0: i32) -> (i32, i32) {
    %c0_i32 = arith.constant 0 : i32
    %c0_i32_0 = arith.constant 0 : i32
    %c0_i32_1 = arith.constant 0 : i32
    return %c0_i32, %c0_i32_0 : i32, i32
  }
  func.func @transform_3(%arg0: i32) -> (i32, i32) {
    %c0_i32 = arith.constant 0 : i32
    %c0_i32_0 = arith.constant 0 : i32
    %c0_i32_1 = arith.constant 0 : i32
    return %c0_i32, %c0_i32_0 : i32, i32
  }
  func.func @transform_4(%arg0: i32) -> (i32, i32) {
    %c0_i32 = arith.constant 0 : i32
    %c0_i32_0 = arith.constant 0 : i32
    %c0_i32_1 = arith.constant 0 : i32
    return %c0_i32, %c0_i32_0 : i32, i32
  }
  func.func @transform_5(%arg0: i32) -> (i32, i32) {
    %c0_i32 = arith.constant 0 : i32
    %c0_i32_0 = arith.constant 0 : i32
    %c0_i32_1 = arith.constant 0 : i32
    return %c0_i32, %c0_i32_0 : i32, i32
  }
  func.func @transform_6(%arg0: i32) -> (i32, i32, i32) {
    %c0_i32 = arith.constant 0 : i32
    %c0_i32_0 = arith.constant 0 : i32
    %c0_i32_1 = arith.constant 0 : i32
    return %arg0, %c0_i32, %c0_i32_0 : i32, i32, i32
  }
}

</mosaic_0001>

<bundles_post_ra>
// kernel: tpu_custom_call.1
= control target key start
LH: loop header
LB: loop body
LE: loop exit
PB: predicated region body
PF: predicated region fallthrough
CT: control target
= control target key end

     0   :  { %11 = vsyncpa [#allocation3], 0  ;;  %s18996_s0 = inlined_call_operand.hbm [shape: f32[4,32,64], index: 0, kind: input, shape index: {}]   ;;  %s18997_s1 = inlined_call_operand.vmem [shape: f32[64,64], index: 1, kind: input, shape index: {}]   ;;  %s18998_s2 = inlined_call_operand.hbm [shape: f32[28,64], index: 2, kind: input, shape index: {}]   ;;  %s18999_s3 = inlined_call_operand.vmem [shape: bf16[64,768], index: 3, kind: input, shape index: {}]   ;;  %s19000_s4 = inlined_call_operand.vmem [shape: bf16[320,64], index: 4, kind: input, shape index: {}]   ;;  %s19001_s5 = inlined_call_operand.hbm [shape: f32[12,256], index: 5, kind: input, shape index: {}]   ;;  %s19002_s6 = inlined_call_operand.hbm [shape: f32[4,32,64], index: 6, kind: output, shape index: {}]  }
   0x1   :  { %12 = vsyncpa [#allocation6], 0 }
   0x2   :  { %13 = vsyncpa [#allocation4], 0  ;;  %s13503_s21 = smov [#allocation5]   ;;  %s13504_s23 = smov [#allocation2]  }
   0x3   :  { %s33_s22 = sshll.u32 %s13503_s21, 4  ;;  %s19_s24 = sshll.u32 %s13504_s23, 4  ;;  %s34_s22 = int_to_ptr.vmem [resolvable:$true] %s33_s22  ;;  %s13556_s24 = int_to_ptr.vmem [resolvable:$true] %s19_s24 }
   0x4   :  { %s13409_s27 = scalar_lea.hbm %s18998_s2, 512 }
   0x5   :  { %p13410_p0 = scmp.ne.s32.totalorder %s18998_s2, %s13409_s27  ;;  %p13413_p1 = scmp.lt.u32.totalorder %s13409_s27, %s18998_s2 }
   0x7   :  { %p13415_p2 = pnand %p13413_p1, %p13410_p0 }
   0x9   :  { %13418 = shalt.err (!%p13415_p2)
}
   0xa   :  { %s13419_s8 = scalar_lea.vmem %s34_s22, 512  ;;  %p13424_p4 = scmp.lt.s32.totalorder %s34_s22, %s34_s22 }
   0xb   :  { %p13420_p3 = scmp.ne.s32.totalorder %s34_s22, %s13419_s8  ;;  %p13425_p5 = scmp.lt.s32.totalorder %s13419_s8, %s13419_s8 }
   0xd   :  { %p13426_p6 = por %p13425_p5, %p13424_p4 }
   0xf   :  { %p13427_p7 = pnand %p13426_p6, %p13420_p3 }
  0x11   :  { %13430 = shalt.err (!%p13427_p7)
}
  0x12   :  { %s13505_s9 = smov 128   ;;  %s13506_s10 = smov 8  }
  0x13   :  { %39 = dma.hbm_to_vmem [thread:$0]  %s18998_s2, 512, %s34_s22, [#allocation6], %s13505_s9, %s13505_s9, %s13506_s10  }
  0x14   :  { %s13431_s15 = scalar_lea.hbm %s18996_s0, 2048 }
  0x15   :  { %p13432_p8 = scmp.ne.s32.totalorder %s18996_s0, %s13431_s15  ;;  %p13435_p9 = scmp.lt.u32.totalorder %s13431_s15, %s18996_s0 }
  0x17   :  { %p13437_p10 = pnand %p13435_p9, %p13432_p8 }
  0x19   :  { %13440 = shalt.err (!%p13437_p10)
}
  0x1a   :  { %s13441_s20 = scalar_lea.vmem %s13556_s24, 2048  ;;  %p13446_p12 = scmp.lt.s32.totalorder %s13556_s24, %s13556_s24 }
  0x1b   :  { %p13442_p11 = scmp.ne.s32.totalorder %s13556_s24, %s13441_s20  ;;  %p13447_p13 = scmp.lt.s32.totalorder %s13441_s20, %s13441_s20 }
  0x1d   :  { %p13448_p0 = por %p13447_p13, %p13446_p12 }
  0x1f   :  { %p13449_p1 = pnand %p13448_p0, %p13442_p11 }
  0x21   :  { %13452 = shalt.err (!%p13449_p1)
}
  0x22   :  { %25 = dma.hbm_to_vmem [thread:$0]  %s18996_s0, 2048, %s13556_s24, [#allocation3], %s13505_s9, %s13505_s9, %s13506_s10  }
  0x23   :  { %s13507_s22 = smov [#allocation7]   ;;  %s13453_s27 = scalar_lea.hbm %s19001_s5, 512 }
  0x24   :  { %s49_s23 = sshll.u32 %s13507_s22, 4  ;;  %p13454_p2 = scmp.ne.s32.totalorder %s19001_s5, %s13453_s27  ;;  %s50_s23 = int_to_ptr.vmem [resolvable:$true] %s49_s23 }
  0x25   :  { %p13457_p3 = scmp.lt.u32.totalorder %s13453_s27, %s19001_s5 }
  0x27   :  { %p13459_p4 = pnand %p13457_p3, %p13454_p2 }
  0x29   :  { %13462 = shalt.err (!%p13459_p4)
}
  0x2a   :  { %s13463_s8 = scalar_lea.vmem %s50_s23, 512  ;;  %p13468_p6 = scmp.lt.s32.totalorder %s50_s23, %s50_s23 }
  0x2b   :  { %p13464_p5 = scmp.ne.s32.totalorder %s50_s23, %s13463_s8  ;;  %p13469_p7 = scmp.lt.s32.totalorder %s13463_s8, %s13463_s8 }
  0x2d   :  { %p13470_p8 = por %p13469_p7, %p13468_p6 }
  0x2f   :  { %p13471_p9 = pnand %p13470_p8, %p13464_p5 }
  0x31   :  { %13474 = shalt.err (!%p13471_p9)
}
  0x32   :  { %s13508_s0 = smov 256   ;;  %s13509_s24 = smov 16  }
  0x33   :  { %55 = dma.hbm_to_vmem [thread:$0]  %s19001_s5, 512, %s50_s23, [#allocation6], %s13508_s0, %s13508_s0, %s13509_s24  }
  0x34   :  { %13497 = dma.done.wait [#allocation3], 2048  }
  0x35   :  { %13498 = vsyncadd [#allocation3], 4294965248 }
  0x36   :  { %13499 = dma.done.wait [#allocation6], 1024  }
  0x37   :  { %13500 = vsyncadd [#allocation6], 4294966272  ;;  %v67_v0 = vld [vmem:[#allocation2 + $0x8] sm:$0xff]  ;;  %vm109_vm0 = vcmask 523264   ;;  %v66_v2 = vld [vmem:[#allocation2] sm:$0xff]  ;;  %vm402_vm1 = vcmask 1043456  }
  0x38   :  { %v13609_v1 = vld [vmem:[%s18997_s1 + $0x8] sm:$0xff]  ;;  %v111_v4 = vsel %vm109_vm0, %v67_v0, 0.0  ;;  %v13618_v5 = vld [vmem:[%s18997_s1] sm:$0xff]  ;;  %v110_v6 = vsel %vm109_vm0, %v66_v2, 0.0  ;;  %v68_v7 = vld [vmem:[#allocation2 + $0x10] sm:$0xff]  ;;  %vm171_vm2 = vcmask 1041409  }
  0x39   :  { %v13612_v3 = vadd.f32 %v13609_v1, %v67_v0  ;;  %v13624_v8 = vld [vmem:[%s18997_s1 + $0x10] sm:$0xff]  ;;  %v13627_v9 = vadd.f32 %v13618_v5, %v66_v2  ;;  %v112_v10 = vadd.f32 %v111_v4, %v110_v6  ;;  %v113_v12 = vsel %vm109_vm0, %v68_v7, 0.0  ;;  %v69_v13 = vld [vmem:[#allocation2 + $0x18] sm:$0xff]  ;;  %v86_v15 = vld [vmem:[#allocation5] sm:$0xff]  ;;  %s13512_s28 = smov 112   ;;  %s13513_s29 = smov 48  }
  0x3a   :  { %v13630_v11 = vadd.f32 %v13624_v8, %v68_v7  ;;  %v13636_v14 = vld [vmem:[%s18997_s1 + $0x18] sm:$0xff]  ;;  %v115_v18 = vsel %vm109_vm0, %v69_v13, 0.0  ;;  %v87_v19 = vld [vmem:[#allocation5 + $0x8] sm:$0xff]  ;;  %v13644_v20 = vrot.slane %v86_v15, 4  ;;  %v13646_v21 = vld [vmem:[#allocation5 + $0x10] sm:$0xff]  ;;  %vm173_vm3 = vcmask 1042434  }
  0x3b   :  { %v421_v16 = vsel %vm109_vm0, %v13612_v3, 0.0  ;;  %v13641_v17 = vadd.f32 %v13636_v14, %v69_v13  ;;  %v418_v22 = vsel %vm109_vm0, %v13627_v9, 0.0  ;;  %v114_v23 = vadd.f32 %v113_v12, %v112_v10  ;;  %v70_v25 = vld [vmem:[#allocation2 + $0x20] sm:$0xff]  ;;  %v89_v27 = vld [vmem:[#allocation5 + $0x18] sm:$0xf]  ;;  %v13660_v33 = vld [vmem:[#allocation2 + $0x28] sm:$0xff] }
  0x3c   :  { %422 = vadd.xlane.f32.xlu1 %v421_v16  ;;  %v404_v24 = vrot.slane %v87_v19, 4  ;;  %419 = vadd.xlane.f32.xlu0 %v418_v22  ;;  %v406_v26 = vrot.slane %v13646_v21, 4  ;;  %v73_v28 = vld [vmem:[#allocation2 + $0x38] sm:$0xff]  ;;  %v424_v29 = vsel %vm109_vm0, %v13630_v11, 0.0  ;;  %v13662_v34 = vld [vmem:[#allocation2 + $0x30] sm:$0xff]  ;;  %v74_v35 = vld [vmem:[#allocation2 + $0x40] sm:$0xff]  ;;  %v229_v22 = vlaneseq }
  0x3d   :  { %v116_v30 = vadd.f32 %v115_v18, %v114_v23  ;;  %v13658_v32 = vadd.f32 %v13636_v14, %v73_v28  ;;  %v427_v36 = vsel %vm109_vm0, %v13641_v17, 0.0  ;;  %v123_v37 = vsel %vm109_vm0, %v70_v25, 0.0  ;;  %v13667_v38 = vld [vmem:[#allocation2 + $0x48] sm:$0xff]  ;;  %v76_v39 = vld [vmem:[#allocation2 + $0x50] sm:$0xff]  ;;  %v13669_v40 = vld [vmem:[#allocation2 + $0x58] sm:$0xff]  ;;  %s13510_s1 = smov 32  }
  0x3e   :  { %v13655_v31 = vsel %vm402_vm1, %v13644_v20, %v404_v24  ;;  %v408_v43 = vrot.slane %v89_v27, 4  ;;  %v13673_v44 = vld [vmem:[#allocation2 + $0x60] sm:$0xff]  ;;  %v79_v45 = vld [vmem:[#allocation2 + $0x68] sm:$0xff]  ;;  %v13675_v46 = vld [vmem:[#allocation2 + $0x70] sm:$0xff]  ;;  %v13678_v48 = vsel %vm402_vm1, %v404_v24, %v406_v26  ;;  %v124_v50 = vsel %vm109_vm0, %v13660_v33, 0.0  ;;  %s13514_s30 = smov 64  }
  0x3f   :  { %19320 = vst [vmem:[#allocation12_spill] sm:$0xff] %v13655_v31  ;;  %v117_v41 = vrot.slane %v116_v30, 4  ;;  %v669_v42 = vsel %vm109_vm0, %v13655_v31, 0.0  ;;  %v81_v47 = vld [vmem:[#allocation2 + $0x78] sm:$0xff]  ;;  %19321 = vst [vmem:[#allocation13_spill] sm:$0xff] %v13678_v48  ;;  %v439_v49 = vsel %vm109_vm0, %v13658_v32, 0.0  ;;  %v125_v53 = vadd.f32 %v124_v50, %v123_v37 }
  0x40   :  { %425 = vadd.xlane.f32.xlu0 %v424_v29  ;;  %v126_v51 = vsel %vm109_vm0, %v13662_v34, 0.0  ;;  %440 = vadd.xlane.f32.xlu1 %v439_v49  ;;  %v13687_v54 = vadd.f32 %v13618_v5, %v74_v35  ;;  %v136_v55 = vsel %vm109_vm0, %v74_v35, 0.0  ;;  %v128_v56 = vsel %vm109_vm0, %v73_v28, 0.0  ;;  %s13515_s7 = smov 96   ;;  %s13519_s8 = smov 80  }
  0x41   :  { %v118_v52 = vadd.f32 %v117_v41, %v116_v30  ;;  %v137_v57 = vsel %vm109_vm0, %v13667_v38, 0.0  ;;  %v139_v58 = vsel %vm109_vm0, %v76_v39, 0.0  ;;  %v141_v59 = vsel %vm109_vm0, %v13669_v40, 0.0 }
  0x42   :  { %v127_v61 = vadd.f32 %v126_v51, %v125_v53  ;;  %v138_v62 = vadd.f32 %v137_v57, %v136_v55  ;;  %v442_v63 = vsel %vm109_vm0, %v13687_v54, 0.0  ;;  %v149_v0 = vsel %vm109_vm0, %v13673_v44, 0.0 }
  0x43   :  { %v119_v60 = vrot.slane %v118_v52, 2  ;;  %v150_v2 = vsel %vm109_vm0, %v79_v45, 0.0  ;;  %v152_v4 = vsel %vm109_vm0, %v13675_v46, 0.0  ;;  %v154_v6 = vsel %vm109_vm0, %v81_v47, 0.0 }
  0x44   :  { %428 = vadd.xlane.f32.xlu0 %v427_v36  ;;  %v129_v10 = vadd.f32 %v128_v56, %v127_v61  ;;  %v140_v12 = vadd.f32 %v139_v58, %v138_v62  ;;  %443 = vadd.xlane.f32.xlu1 %v442_v63  ;;  %v151_v13 = vadd.f32 %v150_v2, %v149_v0  ;;  %v672_v24 = vsel %vm109_vm0, %v13678_v48, 0.0 }
  0x45   :  { %v120_v7 = vadd.f32 %v119_v60, %v118_v52  ;;  %v13705_v15 = vadd.f32 %v13624_v8, %v76_v39  ;;  %v13708_v16 = vadd.f32 %v13609_v1, %v79_v45  ;;  %v13713_v27 = vadd.f32 %v13618_v5, %v70_v25 }
  0x46   :  { %v130_v18 = vrot.slane %v129_v10, 4  ;;  %v142_v19 = vadd.f32 %v141_v59, %v140_v12  ;;  %v153_v21 = vadd.f32 %v152_v4, %v151_v13  ;;  %v13718_v29 = vsel %vm402_vm1, %v406_v26, %v408_v43 }
  0x47   :  { %v121_v23 = vrot.slane %v120_v7, 1  ;;  %v448_v28 = vsel %vm109_vm0, %v13705_v15, 0.0  ;;  %19322 = vst [vmem:[#allocation14_spill] sm:$0xff] %v13718_v29  ;;  %v457_v37 = vsel %vm109_vm0, %v13708_v16, 0.0  ;;  %v13723_v39 = vadd.f32 %v13636_v14, %v81_v47 }
  0x48   :  { %670 = vadd.xlane.f32.xlu0 %v669_v42  ;;  %v131_v30 = vadd.f32 %v130_v18, %v129_v10  ;;  %v143_v35 = vrot.slane %v142_v19, 4  ;;  %v155_v36 = vadd.f32 %v154_v6, %v153_v21  ;;  %449 = vadd.xlane.f32.xlu1 %v448_v28  ;;  %v675_v45 = vsel %vm109_vm0, %v13718_v29, 0.0  ;;  %v13760_v21 = vld [vmem:[#allocation7] sm:$0xff] }
  0x49   :  { %v430_v26 = vsel %vm109_vm0, %v13713_v27, 0.0  ;;  %v122_v43 = vadd.f32 %v121_v23, %v120_v7  ;;  %v13729_v49 = vshrl.u32 %v229_v22, 7  ;;  %v463_v47 = vsel %vm109_vm0, %v13723_v39, 0.0 }
  0x4a   :  { %v132_v41 = vrot.slane %v131_v30, 2  ;;  %v144_v42 = vadd.f32 %v143_v35, %v142_v19  ;;  %v156_v25 = vrot.slane %v155_v36, 4  ;;  %vm175_vm4 = vcmask 1043459  }
  0x4b   :  { %19323 = vst [vmem:[#allocation15_spill] sm:$0xff] %v13729_v49  ;;  %v13735_v57 = vadd.f32 %v13609_v1, %v13660_v33  ;;  %v13737_v61 = vmul.f32 0.03125, %v122_v43  ;;  %vm178_vm5 = vcmask 519168   ;;  %v13756_v13 = vadd.f32 %v13624_v8, %v13662_v34 }
  0x4c   :  { %673 = vadd.xlane.f32.xlu0 %v672_v24  ;;  %v133_v50 = vadd.f32 %v132_v41, %v131_v30  ;;  %v145_v51 = vrot.slane %v144_v42, 2  ;;  %v157_v52 = vadd.f32 %v156_v25, %v155_v36  ;;  %458 = vadd.xlane.f32.xlu1 %v457_v37  ;;  %v1171_v19 = vsub.s32 5, %v13729_v49 }
  0x4d   :  { %v433_v2 = vsel %vm109_vm0, %v13735_v57, 0.0  ;;  %v436_v22 = vsel %vm109_vm0, %v13756_v13, 0.0  ;;  %v13766_v23 = vadd.f32 %v13609_v1, %v13667_v38  ;;  %v13775_v28 = vadd.f32 %v13636_v14, %v13669_v40 }
  0x4e   :  { %v134_v53 = vrot.slane %v133_v50, 1  ;;  %v146_v55 = vadd.f32 %v145_v51, %v144_v42  ;;  %v158_v56 = vrot.slane %v157_v52, 2  ;;  %v13769_v24 = vrot.slane %v13760_v21, %v1171_v19 }
  0x4f   :  { %v445_v34 = vsel %vm109_vm0, %v13766_v23, 0.0  ;;  %v451_v30 = vsel %vm109_vm0, %v13775_v28, 0.0  ;;  %v13783_v1 = vadd.f32 %v13618_v5, %v13673_v44  ;;  %v13791_v38 = vadd.f32 %v13624_v8, %v13675_v46 }
  0x50   :  { %676 = vadd.xlane.f32.xlu0 %v675_v45  ;;  %v135_v58 = vadd.f32 %v134_v53, %v133_v50  ;;  %v147_v59 = vrot.slane %v146_v55, 1  ;;  %v159_v60 = vadd.f32 %v158_v56, %v157_v52  ;;  %464 = vadd.xlane.f32.xlu1 %v463_v47  ;;  %19324 = vst [vmem:[#allocation16_spill] sm:$0xff] %v13769_v24  ;;  %v1415_v5 = vsub.s32 6, %v13729_v49 }
  0x51   :  { %v454_v14 = vsel %vm109_vm0, %v13783_v1, 0.0  ;;  %v460_v40 = vsel %vm109_vm0, %v13791_v38, 0.0  ;;  %vm1072_vm6 = vcmask 130048   ;;  %vm7869_vm8 = vcmask 261120  }
  0x52   :  { %v148_v62 = vadd.f32 %v147_v59, %v146_v55  ;;  %v160_v63 = vrot.slane %v159_v60, 1  ;;  %v13739_v0 = vmul.f32 0.03125, %v135_v58  ;;  %v13797_v44 = vrot.slane %v13760_v21, %v1415_v5  ;;  %vm14214_vm7 = vmpackc.low %vm1072_vm6, %vm1072_vm6 }
  0x53   :  { %vm7886_vm9 = vcmask 392192  }
  0x54   :  { %431 = vadd.xlane.f32.xlu0 %v430_v26  ;;  %v161_v4 = vadd.f32 %v160_v63, %v159_v60  ;;  %v13743_v6 = vmul.f32 0.03125, %v148_v62  ;;  %v172_v33 = vsel %vm171_vm2, %v13739_v0, %v13737_v61  ;;  %19325 = vst [vmem:[#allocation17_spill] sm:$0xff] %v13797_v44 }
  0x56   :  { %v13748_v7 = vmul.f32 0.03125, %v161_v4  ;;  %v174_v10 = vsel %vm173_vm3, %v13743_v6, %v172_v33 }
  0x58   :  { %434 = vadd.xlane.f32.xlu0 %v433_v2  ;;  %v176_v12 = vsel %vm175_vm4, %v13748_v7, %v174_v10 }
  0x59   :  { %v179_v18 = vsel %vm178_vm5, %v176_v12, 0.0 }
  0x5c   :  { %180 = vadd.xlane.f32.xlu0 %v179_v18 }
  0x60   :  { %437 = vadd.xlane.f32.xlu0 %v436_v22 }
  0x61   :  { %2738 = vrot.lane.b32.xlu1 %v13769_v24, %s13509_s24 }
  0x64   :  { %446 = vadd.xlane.f32.xlu0 %v445_v34 }
  0x65   :  { %4449 = vrot.lane.b32.xlu1 %v13769_v24, %s13510_s1 }
  0x68   :  { %452 = vadd.xlane.f32.xlu0 %v451_v30  ;;  %v12500_v30 = vld [vmem:[%s18999_s3 + $0x14] ss:$24 sps:$4 sm:$0xff]  }
  0x69   :  { %879 = vmatprep.subr.bf16.mxu1 %v12500_v30 }
  0x6c   :  { %455 = vadd.xlane.f32.xlu0 %v454_v14 }
  0x70   :  { %461 = vadd.xlane.f32.xlu0 %v460_v40 }
  0x86   :  { %3078 = vrot.lane.b32.xlu0 %v13797_v44, %s13509_s24 }
  0x8a   :  { %4756 = vrot.lane.b32.xlu0 %v13797_v44, %s13510_s1 }
  0xc9   :  { %v423_v35 = vpop.xlane.xlu1 %422  ;;  %v420_v8 = vpop.xlane.xlu0 %419 }
  0xca   :  { %v467_v36 = vmul.f32 0.015625, %v423_v35  ;;  %v466_v46 = vmul.f32 0.015625, %v420_v8 }
  0xcc   :  { %v13804_v37 = vsub.f32 %v13612_v3, %v467_v36  ;;  %v13807_v41 = vsub.f32 %v13627_v9, %v466_v46  ;;  %v12503_v46 = vld [vmem:[%s18999_s3 + $0x44] ss:$24 sps:$4 sm:$0xff]  }
  0xcd   :  { %v426_v42 = vpop.xlane.xlu0 %425  ;;  %v441_v47 = vpop.xlane.xlu1 %440 }
  0xce   :  { %v499_v25 = vmul.f32 %v13804_v37, %v13804_v37  ;;  %v468_v45 = vmul.f32 0.015625, %v426_v42  ;;  %v498_v26 = vmul.f32 %v13807_v41, %v13807_v41  ;;  %v473_v63 = vmul.f32 0.015625, %v441_v47 }
  0xd0   :  { %v517_v43 = vsel %vm109_vm0, %v499_v25, 0.0  ;;  %v13815_v50 = vsub.f32 %v13630_v11, %v468_v45  ;;  %v514_v3 = vsel %vm109_vm0, %v498_v26, 0.0  ;;  %v13832_v10 = vsub.f32 %v13658_v32, %v473_v63  ;;  %v12505_v26 = vld [vmem:[%s18999_s3 + $0x40] ss:$24 sps:$4 sm:$0xff]  }
  0xd1   :  { %518 = vadd.xlane.f32.xlu0 %v517_v43  ;;  %515 = vadd.xlane.f32.xlu1 %v514_v3  ;;  %v429_v51 = vpop.xlane.xlu0 %428  ;;  %v444_v60 = vpop.xlane.xlu1 %443  ;;  %v12506_v43 = vld [vmem:[%s18999_s3 + $0x74] ss:$24 sps:$4 sm:$0xff]  }
  0xd2   :  { %v469_v9 = vmul.f32 0.015625, %v429_v51  ;;  %v500_v52 = vmul.f32 %v13815_v50, %v13815_v50  ;;  %v505_v32 = vmul.f32 %v13832_v10, %v13832_v10 }
  0xd4   :  { %v13821_v53 = vsub.f32 %v13641_v17, %v469_v9  ;;  %v520_v55 = vsel %vm109_vm0, %v500_v52, 0.0  ;;  %v474_v17 = vmul.f32 0.015625, %v444_v60  ;;  %v535_v25 = vsel %vm109_vm0, %v505_v32, 0.0  ;;  %v12508_v9 = vld [vmem:[%s18999_s3 + $0x70] ss:$24 sps:$4 sm:$0xff]  }
  0xd5   :  { %521 = vadd.xlane.f32.xlu0 %v520_v55  ;;  %v13824_v56 = vpop.xlane.xlu0 %670  ;;  %v450_v2 = vpop.xlane.xlu1 %449 }
  0xd6   :  { %v501_v11 = vmul.f32 %v13821_v53, %v13821_v53  ;;  %v13838_v19 = vsub.f32 %v13687_v54, %v474_v17  ;;  %v476_v22 = vmul.f32 0.015625, %v450_v2  ;;  %v19005_v17 = vmov 0  }
  0xd7   :  { %911 = vmatprep.mubr.bf16.mxu1 %v19005_v17  ;;  %347 = vmatprep.mubr.bf16.mxu0 %v19005_v17 }
  0xd8   :  { %v523_v58 = vsel %vm109_vm0, %v501_v11, 0.0  ;;  %v13855_v36 = vsub.f32 %v13705_v15, %v476_v22  ;;  %v506_v8 = vmul.f32 %v13838_v19, %v13838_v19 }
  0xd9   :  { %524 = vadd.xlane.f32.xlu1 %v523_v58  ;;  %v674_v59 = vpop.xlane.xlu0 %673  ;;  %v459_v34 = vpop.xlane.xlu1 %458  ;;  %v12509_v58 = vld [vmem:[%s18999_s3 + $0xa4] ss:$24 sps:$4 sm:$0xff]  }
  0xda   :  { %v479_v45 = vmul.f32 0.015625, %v459_v34  ;;  %v538_v55 = vsel %vm109_vm0, %v506_v8, 0.0  ;;  %v508_v11 = vmul.f32 %v13855_v36, %v13855_v36 }
  0xdc   :  { %v13885_v2 = vsub.f32 %v13708_v16, %v479_v45  ;;  %v689_v16 = vmul.f32 0.015625, %v674_v59 }
  0xdd   :  { %v13829_v62 = vpop.xlane.xlu0 %676  ;;  %v465_v15 = vpop.xlane.xlu1 %464 }
  0xde   :  { %v511_v59 = vmul.f32 %v13885_v2, %v13885_v2 }
  0xe1   :  { %v432_v4 = vpop.xlane.xlu0 %431 }
  0xe2   :  { %v470_v33 = vmul.f32 0.015625, %v432_v4  ;;  %v481_v4 = vmul.f32 0.015625, %v465_v15 }
  0xe4   :  { %v13835_v12 = vsub.f32 %v13713_v27, %v470_v33  ;;  %v12502_v27 = vld [vmem:[%s18999_s3 + $0x10] ss:$24 sps:$4 sm:$0xff]  }
  0xe5   :  { %v435_v18 = vpop.xlane.xlu0 %434  ;;  %880 = vmatpush1.bf16.msra.mxu1 %v12502_v27 }
  0xe6   :  { %v471_v14 = vmul.f32 0.015625, %v435_v18  ;;  %v502_v40 = vmul.f32 %v13835_v12, %v13835_v12  ;;  %881 = vmatprep.subr.bf16.mxu1 %v12503_v46 }
  0xe8   :  { %v13851_v54 = vsub.f32 %v13735_v57, %v471_v14  ;;  %v526_v5 = vsel %vm109_vm0, %v502_v40, 0.0  ;;  %v544_v14 = vsel %vm109_vm0, %v508_v11, 0.0 }
  0xe9   :  { %527 = vadd.xlane.f32.xlu0 %v526_v5  ;;  %v181_v35 = vpop.xlane.xlu0 %180  ;;  %882 = vmatpush1.bf16.msra.mxu1 %v12505_v26 }
  0xea   :  { %v183_v42 = vmul.f32 0.015625, %v181_v35  ;;  %v503_v57 = vmul.f32 %v13851_v54, %v13851_v54  ;;  %883 = vmatprep.subr.bf16.mxu1 %v12506_v43 }
  0xec   :  { %v185_v3 = vrot.slane %v183_v42, 1  ;;  %v186_v51 = vrot.slane %v183_v42, 2  ;;  %v529_v52 = vsel %vm109_vm0, %v503_v57, 0.0  ;;  %v187_v33 = vrot.slane %v183_v42, 3 }
  0xed   :  { %536 = vadd.xlane.f32.xlu0 %v535_v25  ;;  %v438_v47 = vpop.xlane.xlu0 %437  ;;  %530 = vadd.xlane.f32.xlu1 %v529_v52  ;;  %v13899_v34 = vsub.f32 %v13737_v61, %v183_v42 }
  0xee   :  { %v13882_v60 = vsub.f32 %v13739_v0, %v185_v3  ;;  %v472_v63 = vmul.f32 0.015625, %v438_v47  ;;  %v13893_v22 = vsub.f32 %v13743_v6, %v186_v51  ;;  %884 = vmatpush1.bf16.msra.mxu1 %v12508_v9  ;;  %v12511_v0 = vld [vmem:[%s18999_s3 + $0xa0] ss:$24 sps:$4 sm:$0xff]   ;;  %v13905_v6 = vsub.f32 %v13723_v39, %v481_v4 }
  0xef   :  { %885 = vmatprep.subr.bf16.mxu1 %v12509_v58  ;;  %v13912_v61 = vsub.f32 %v13748_v7, %v187_v33  ;;  %v13921_v39 = vsub.f32 %v13678_v48, %v689_v16  ;;  %v196_v46 = vmul.f32 %v13899_v34, %v13899_v34 }
  0xf0   :  { %v13890_v18 = vsub.f32 %v13756_v13, %v472_v63  ;;  %v197_v13 = vmul.f32 %v13882_v60, %v13882_v60  ;;  %v198_v35 = vmul.f32 %v13893_v22, %v13893_v22  ;;  %v513_v57 = vmul.f32 %v13905_v6, %v13905_v6 }
  0xf1   :  { %539 = vadd.xlane.f32.xlu0 %v538_v55  ;;  %v447_v30 = vpop.xlane.xlu0 %446  ;;  %v199_v45 = vmul.f32 %v13912_v61, %v13912_v61  ;;  %v703_v55 = vmul.f32 %v13921_v39, %v13921_v39 }
  0xf2   :  { %v475_v40 = vmul.f32 0.015625, %v447_v30  ;;  %v504_v32 = vmul.f32 %v13890_v18, %v13890_v18  ;;  %886 = vmatpush1.bf16.msra.mxu1 %v12511_v0  ;;  %v204_v7 = vrot.slane %v197_v13, 7  ;;  %v206_v43 = vrot.slane %v198_v35, 6 }
  0xf3   :  { %v559_v52 = vsel %vm109_vm0, %v513_v57, 0.0  ;;  %v208_v11 = vrot.slane %v199_v45, 5  ;;  %v690_v0 = vmul.f32 0.015625, %v13829_v62  ;;  %v714_v30 = vsel %vm109_vm0, %v703_v55, 0.0  ;;  %v12518_v57 = vld [vmem:[%s18999_s3 + $0x64] ss:$24 sps:$4 sm:$0xff]  }
  0xf4   :  { %v13915_v27 = vsub.f32 %v13766_v23, %v475_v40  ;;  %v532_v5 = vsel %vm109_vm0, %v504_v32, 0.0  ;;  %v553_v23 = vsel %vm109_vm0, %v511_v59, 0.0  ;;  %v205_v51 = vsel %vm171_vm2, %v204_v7, %v196_v46  ;;  %v12512_v7 = vld [vmem:[%s18999_s3 + $0x4] ss:$24 sps:$4 sm:$0xff]   ;;  %v12520_v45 = vld [vmem:[%s18999_s3 + $0x60] ss:$24 sps:$4 sm:$0xff]  }
  0xf5   :  { %545 = vadd.xlane.f32.xlu0 %v544_v14  ;;  %533 = vadd.xlane.f32.xlu1 %v532_v5  ;;  %v453_v8 = vpop.xlane.xlu0 %452  ;;  %v207_v4 = vsel %vm173_vm3, %v206_v43, %v205_v51  ;;  %v13961_v62 = vsub.f32 %v13718_v29, %v690_v0  ;;  %v12523_v43 = vld [vmem:[%s18999_s3 + $0x90] ss:$24 sps:$4 sm:$0xff]   ;;  %v13999_v51 = vpop.permute.xlu1 %2738 }
  0xf6   :  { %v477_v42 = vmul.f32 0.015625, %v453_v8  ;;  %v507_v25 = vmul.f32 %v13915_v27, %v13915_v27  ;;  %315 = vmatprep.subr.bf16.mxu0 %v12512_v7  ;;  %19327 = vst [vmem:[#allocation19_spill] sm:$0xff] %v13999_v51 }
  0xf8   :  { %v13933_v26 = vsub.f32 %v13775_v28, %v477_v42  ;;  %v541_v15 = vsel %vm109_vm0, %v507_v25, 0.0  ;;  %v688_v28 = vmul.f32 0.015625, %v13824_v56  ;;  %v209_v56 = vsel %vm175_vm4, %v208_v11, %v207_v4  ;;  %v12514_v42 = vld [vmem:[%s18999_s3] ss:$24 sps:$4 sm:$0xff]   ;;  %v12517_v25 = vld [vmem:[%s18999_s3 + $0x30] ss:$24 sps:$4 sm:$0xff]  }
  0xf9   :  { %554 = vadd.xlane.f32.xlu0 %v553_v23  ;;  %542 = vadd.xlane.f32.xlu1 %v541_v15  ;;  %v456_v3 = vpop.xlane.xlu0 %455  ;;  %v211_v32 = vsel %vm178_vm5, %v209_v56, 0.0  ;;  %v12515_v23 = vld [vmem:[%s18999_s3 + $0x34] ss:$24 sps:$4 sm:$0xff]   ;;  %v19003_v56 = vsub.s32 1, %v13729_v49 }
  0xfa   :  { %v478_v9 = vmul.f32 0.015625, %v456_v3  ;;  %v509_v47 = vmul.f32 %v13933_v26, %v13933_v26  ;;  %316 = vmatpush1.bf16.msra.mxu0 %v12514_v42  ;;  %v12521_v15 = vld [vmem:[%s18999_s3 + $0x94] ss:$24 sps:$4 sm:$0xff]  }
  0xfb   :  { %317 = vmatprep.subr.bf16.mxu0 %v12515_v23 }
  0xfc   :  { %v13944_v58 = vsub.f32 %v13783_v1, %v478_v9  ;;  %v547_v63 = vsel %vm109_vm0, %v509_v47, 0.0  ;;  %v13954_v1 = vsub.f32 %v13655_v31, %v688_v28 }
  0xfd   :  { %560 = vadd.xlane.f32.xlu0 %v559_v52  ;;  %548 = vadd.xlane.f32.xlu1 %v547_v63  ;;  %v462_v33 = vpop.xlane.xlu0 %461  ;;  %v14003_v52 = vpop.permute.xlu1 %4449 }
  0xfe   :  { %v480_v16 = vmul.f32 0.015625, %v462_v33  ;;  %v510_v14 = vmul.f32 %v13944_v58, %v13944_v58  ;;  %v702_v35 = vmul.f32 %v13954_v1, %v13954_v1  ;;  %318 = vmatpush1.bf16.msra.mxu0 %v12517_v25  ;;  %19329 = vst [vmem:[#allocation21_spill] sm:$0xff] %v14003_v52 }
  0xff   :  { %319 = vmatprep.subr.bf16.mxu0 %v12518_v57 }
 0x100   :  { %v13957_v13 = vsub.f32 %v13791_v38, %v480_v16  ;;  %v550_v40 = vsel %vm109_vm0, %v510_v14, 0.0  ;;  %v704_v38 = vmul.f32 %v13961_v62, %v13961_v62  ;;  %v711_v8 = vsel %vm109_vm0, %v702_v35, 0.0 }
 0x101   :  { %715 = vadd.xlane.f32.xlu0 %v714_v30  ;;  %551 = vadd.xlane.f32.xlu1 %v550_v40  ;;  %v13997_v3 = vpop.permute.xlu0 %3078 }
 0x102   :  { %v512_v59 = vmul.f32 %v13957_v13, %v13957_v13  ;;  %v717_v46 = vsel %vm109_vm0, %v704_v38, 0.0  ;;  %320 = vmatpush1.bf16.msra.mxu0 %v12520_v45  ;;  %19326 = vst [vmem:[#allocation18_spill] sm:$0xff] %v13997_v3 }
 0x103   :  { %321 = vmatprep.subr.bf16.mxu0 %v12521_v15 }
 0x104   :  { %v556_v5 = vsel %vm109_vm0, %v512_v59, 0.0  ;;  %v14012_v59 = vrot.slane %v13760_v21, %v19003_v56 }
 0x105   :  { %212 = vadd.xlane.f32.xlu0 %v211_v32  ;;  %557 = vadd.xlane.f32.xlu1 %v556_v5  ;;  %v14001_v9 = vpop.permute.xlu0 %4756  ;;  %v14007_v32 = vsub.s32 2, %v13729_v49 }
 0x106   :  { %322 = vmatpush1.bf16.msra.mxu0 %v12523_v43  ;;  %19328 = vst [vmem:[#allocation20_spill] sm:$0xff] %v14001_v9 }
 0x109   :  { %712 = vadd.xlane.f32.xlu1 %v711_v8  ;;  %v14017_v8 = vrot.slane %v13760_v21, %v14007_v32 }
 0x10d   :  { %718 = vadd.xlane.f32.xlu1 %v717_v46 }
 0x15e   :  { %v519_v47 = vpop.xlane.xlu0 %518  ;;  %v516_v55 = vpop.xlane.xlu1 %515 }
 0x15f   :  { %v563_v11 = vmul.f32 0.015625, %v519_v47  ;;  %v562_v28 = vmul.f32 0.015625, %v516_v55 }
 0x161   :  { %v579_v63 = vadd.f32 1e-05, %v563_v11  ;;  %v578_v4 = vadd.f32 1e-05, %v562_v28 }
 0x162   :  { %v522_v33 = vpop.xlane.xlu0 %521 }
 0x163   :  { %12556 = vrsqrt.f32 %v579_v63  ;;  %v564_v0 = vmul.f32 0.015625, %v522_v33 }
 0x164   :  { %12558 = vrsqrt.f32 %v578_v4 }
 0x165   :  { %v580_v16 = vadd.f32 1e-05, %v564_v0 }
 0x166   :  { %v525_v30 = vpop.xlane.xlu1 %524 }
 0x167   :  { %12560 = vrsqrt.f32 %v580_v16  ;;  %v565_v14 = vmul.f32 0.015625, %v525_v30 }
 0x169   :  { %v581_v40 = vadd.f32 1e-05, %v565_v14 }
 0x16b   :  { %12562 = vrsqrt.f32 %v581_v40 }
 0x16d   :  { %v12557_v5 = vpop.eup %12556 }
 0x16e   :  { %v12559_v35 = vpop.eup %12558  ;;  %v611_v38 = vmul.f32 %v12557_v5, %v13804_v37 }
 0x16f   :  { %v610_v46 = vmul.f32 %v12559_v35, %v13807_v41 }
 0x170   :  { %v631_v7 = vmul.f32 %v14012_v59, %v611_v38 }
 0x171   :  { %v630_v42 = vmul.f32 %v14012_v59, %v610_v46  ;;  %v12561_v23 = vpop.eup %12560 }
 0x172   :  { %v651_v25 = vadd.f32 %v14017_v8, %v631_v7  ;;  %v612_v45 = vmul.f32 %v12561_v23, %v13815_v50 }
 0x173   :  { %v650_v57 = vadd.f32 %v14017_v8, %v630_v42 }
 0x174   :  { %v632_v41 = vmul.f32 %v14012_v59, %v612_v45 }
 0x175   :  { %v787_v15 = vpack.c.bf16 %v651_v25, %v650_v57  ;;  %v12563_v43 = vpop.eup %12562 }
 0x176   :  { %v528_v37 = vpop.xlane.xlu0 %527  ;;  %v613_v47 = vmul.f32 %v12563_v43, %v13821_v53  ;;  %v652_v4 = vadd.f32 %v14017_v8, %v632_v41 }
 0x177   :  { %9642 = vmatmul.mubr.msk.bf16.vlgmr.msra.gmra.mrb[0].mxu1 %vm109_vm0, %v787_v15  ;;  %v566_v55 = vmul.f32 0.015625, %v528_v37 }
 0x178   :  { %919 = vmatprep.mubr.bf16.mxu1 %v19005_v17  ;;  %v633_v11 = vmul.f32 %v14012_v59, %v613_v47 }
 0x179   :  { %v582_v28 = vadd.f32 1e-05, %v566_v55 }
 0x17a   :  { %v537_v63 = vpop.xlane.xlu0 %536  ;;  %v653_v50 = vadd.f32 %v14017_v8, %v633_v11  ;;  %v531_v33 = vpop.xlane.xlu1 %530 }
 0x17b   :  { %12564 = vrsqrt.f32 %v582_v28  ;;  %v569_v0 = vmul.f32 0.015625, %v537_v63  ;;  %v567_v16 = vmul.f32 0.015625, %v531_v33 }
 0x17c   :  { %v788_v30 = vpack.c.bf16 %v653_v50, %v652_v4 }
 0x17d   :  { %v585_v14 = vadd.f32 1e-05, %v569_v0  ;;  %v583_v53 = vadd.f32 1e-05, %v567_v16 }
 0x17e   :  { %v540_v40 = vpop.xlane.xlu0 %539 }
 0x17f   :  { %9643 = vmatmul.mubr.msk.bf16.gmra.mrb[4].mxu1 %vm109_vm0, %v788_v30  ;;  %12566 = vrsqrt.f32 %v585_v14  ;;  %v570_v5 = vmul.f32 0.015625, %v540_v40 }
 0x180   :  { %927 = vmatprep.mubr.bf16.mxu1 %v19005_v17  ;;  %12568 = vrsqrt.f32 %v583_v53 }
 0x181   :  { %v586_v35 = vadd.f32 1e-05, %v570_v5 }
 0x182   :  { %v534_v38 = vpop.xlane.xlu1 %533  ;;  %v546_v46 = vpop.xlane.xlu0 %545 }
 0x183   :  { %12570 = vrsqrt.f32 %v586_v35  ;;  %v568_v7 = vmul.f32 0.015625, %v534_v38  ;;  %v572_v42 = vmul.f32 0.015625, %v546_v46 }
 0x185   :  { %v12565_v23 = vpop.eup %12564  ;;  %v584_v25 = vadd.f32 1e-05, %v568_v7  ;;  %v588_v57 = vadd.f32 1e-05, %v572_v42 }
 0x186   :  { %v543_v45 = vpop.xlane.xlu1 %542  ;;  %v555_v15 = vpop.xlane.xlu0 %554  ;;  %v614_v43 = vmul.f32 %v12565_v23, %v13835_v12 }
 0x187   :  { %12572 = vrsqrt.f32 %v584_v25  ;;  %v571_v37 = vmul.f32 0.015625, %v543_v45  ;;  %v575_v47 = vmul.f32 0.015625, %v555_v15 }
 0x188   :  { %12574 = vrsqrt.f32 %v588_v57  ;;  %v634_v41 = vmul.f32 %v14012_v59, %v614_v43 }
 0x189   :  { %v12567_v55 = vpop.eup %12566  ;;  %v587_v11 = vadd.f32 1e-05, %v571_v37  ;;  %v591_v28 = vadd.f32 1e-05, %v575_v47 }
 0x18a   :  { %v12569_v63 = vpop.eup %12568  ;;  %v549_v4 = vpop.xlane.xlu1 %548  ;;  %v14037_v33 = vadd.f32 %v14017_v8, %v634_v41  ;;  %v617_v0 = vmul.f32 %v12567_v55, %v13832_v10 }
 0x18b   :  { %v561_v50 = vpop.xlane.xlu0 %560  ;;  %12576 = vrsqrt.f32 %v587_v11  ;;  %v573_v16 = vmul.f32 0.015625, %v549_v4  ;;  %v615_v30 = vmul.f32 %v12569_v63, %v13851_v54 }
 0x18c   :  { %v577_v12 = vmul.f32 0.015625, %v561_v50  ;;  %12578 = vrsqrt.f32 %v591_v28  ;;  %v637_v14 = vmul.f32 %v14012_v59, %v617_v0 }
 0x18d   :  { %v12571_v53 = vpop.eup %12570  ;;  %v589_v40 = vadd.f32 1e-05, %v573_v16  ;;  %v635_v35 = vmul.f32 %v14012_v59, %v615_v30 }
 0x18e   :  { %v593_v5 = vadd.f32 1e-05, %v577_v12  ;;  %v552_v38 = vpop.xlane.xlu1 %551  ;;  %v14046_v7 = vadd.f32 %v14017_v8, %v637_v14  ;;  %v618_v10 = vmul.f32 %v12571_v53, %v13838_v19 }
 0x18f   :  { %v14043_v46 = vpop.xlane.xlu0 %715  ;;  %12580 = vrsqrt.f32 %v589_v40  ;;  %v574_v42 = vmul.f32 0.015625, %v552_v38  ;;  %v14050_v54 = vadd.f32 %v14017_v8, %v635_v35 }
 0x190   :  { %12582 = vrsqrt.f32 %v593_v5  ;;  %v638_v23 = vmul.f32 %v14012_v59, %v618_v10 }
 0x191   :  { %v12573_v25 = vpop.eup %12572  ;;  %v590_v57 = vadd.f32 1e-05, %v574_v42 }
 0x192   :  { %v12575_v15 = vpop.eup %12574  ;;  %v558_v43 = vpop.xlane.xlu1 %557  ;;  %v616_v47 = vmul.f32 %v12573_v25, %v13890_v18  ;;  %v14057_v19 = vadd.f32 %v14017_v8, %v638_v23 }
 0x193   :  { %v213_v37 = vpop.xlane.xlu0 %212  ;;  %12584 = vrsqrt.f32 %v590_v57  ;;  %v576_v41 = vmul.f32 0.015625, %v558_v43  ;;  %v620_v11 = vmul.f32 %v12575_v15, %v13855_v36  ;;  %v19004_v57 = vsub.s32 0, %v13729_v49 }
 0x194   :  { %v214_v55 = vmul.f32 0.015625, %v213_v37  ;;  %v636_v28 = vmul.f32 %v14012_v59, %v616_v47 }
 0x195   :  { %v12577_v63 = vpop.eup %12576  ;;  %v592_v4 = vadd.f32 1e-05, %v576_v41  ;;  %v640_v0 = vmul.f32 %v14012_v59, %v620_v11 }
 0x196   :  { %v215_v50 = vadd.f32 1e-05, %v214_v55  ;;  %v12579_v16 = vpop.eup %12578  ;;  %v14063_v12 = vadd.f32 %v14017_v8, %v636_v28  ;;  %v619_v18 = vmul.f32 %v12577_v63, %v13915_v27  ;;  %v232_v55 = vrot.slane %v13760_v21, %v19004_v57 }
 0x197   :  { %12586 = vrsqrt.f32 %v592_v4  ;;  %v14067_v30 = vadd.f32 %v14017_v8, %v640_v0  ;;  %v623_v14 = vmul.f32 %v12579_v16, %v13885_v2 }
 0x198   :  { %12588 = vrsqrt.f32 %v215_v50  ;;  %v639_v53 = vmul.f32 %v14012_v59, %v619_v18 }
 0x199   :  { %v12581_v40 = vpop.eup %12580  ;;  %v643_v5 = vmul.f32 %v14012_v59, %v623_v14 }
 0x19a   :  { %v12583_v35 = vpop.eup %12582  ;;  %v14075_v38 = vadd.f32 %v14017_v8, %v639_v53  ;;  %v621_v27 = vmul.f32 %v12581_v40, %v13933_v26 }
 0x19b   :  { %v14079_v10 = vadd.f32 %v14017_v8, %v643_v5  ;;  %v625_v2 = vmul.f32 %v12583_v35, %v13905_v6 }
 0x19c   :  { %v641_v23 = vmul.f32 %v14012_v59, %v621_v27 }
 0x19d   :  { %v12585_v25 = vpop.eup %12584  ;;  %v645_v15 = vmul.f32 %v14012_v59, %v625_v2 }
 0x19e   :  { %v14088_v43 = vadd.f32 %v14017_v8, %v641_v23  ;;  %v622_v26 = vmul.f32 %v12585_v25, %v13944_v58 }
 0x19f   :  { %v14092_v37 = vadd.f32 %v14017_v8, %v645_v15 }
 0x1a0   :  { %v642_v47 = vmul.f32 %v14012_v59, %v622_v26 }
 0x1a1   :  { %v12587_v41 = vpop.eup %12586 }
 0x1a2   :  { %v12589_v11 = vpop.eup %12588  ;;  %v14101_v28 = vadd.f32 %v14017_v8, %v642_v47  ;;  %v624_v63 = vmul.f32 %v12587_v41, %v13957_v13 }
 0x1a3   :  { %v218_v58 = vrot.slane %v12589_v11, 1  ;;  %v219_v4 = vrot.slane %v12589_v11, 2  ;;  %v220_v50 = vrot.slane %v12589_v11, 3  ;;  %v225_v0 = vmul.f32 %v12589_v11, %v13899_v34 }
 0x1a4   :  { %v644_v18 = vmul.f32 %v14012_v59, %v624_v63 }
 0x1a5   :  { %v226_v14 = vmul.f32 %v218_v58, %v13882_v60  ;;  %v227_v21 = vmul.f32 %v219_v4, %v13893_v22  ;;  %v228_v53 = vmul.f32 %v220_v50, %v13912_v61  ;;  %v233_v40 = vmul.f32 %v232_v55, %v225_v0 }
 0x1a6   :  { %v14112_v5 = vadd.f32 %v14017_v8, %v644_v18 }
 0x1a7   :  { %v234_v13 = vmul.f32 %v232_v55, %v226_v14  ;;  %v235_v35 = vmul.f32 %v232_v55, %v227_v21  ;;  %v236_v27 = vmul.f32 %v232_v55, %v228_v53  ;;  %v245_v2 = vpack.c.bf16 %v233_v40, %v233_v40 }
 0x1a9   :  { %v246_v23 = vpack.c.bf16 %v234_v13, %v234_v13  ;;  %v247_v25 = vpack.c.bf16 %v235_v35, %v235_v35  ;;  %v248_v59 = vpack.c.bf16 %v236_v27, %v236_v27  ;;  %v261_v22 = vunpack.c.l.b16 %v245_v2 }
 0x1ab   :  { %v262_v15 = vunpack.c.l.b16 %v246_v23  ;;  %v263_v60 = vunpack.c.l.b16 %v247_v25  ;;  %v264_v26 = vunpack.c.l.b16 %v248_v59 }
 0x1ad   :  { %v265_v47 = vrot.slane %v262_v15, 7  ;;  %v267_v61 = vrot.slane %v263_v60, 6  ;;  %v269_v8 = vrot.slane %v264_v26, 5 }
 0x1af   :  { %v266_v41 = vsel %vm171_vm2, %v265_v47, %v261_v22 }
 0x1b0   :  { %v268_v11 = vsel %vm173_vm3, %v267_v61, %v266_v41 }
 0x1b1   :  { %v270_v55 = vsel %vm175_vm4, %v269_v8, %v268_v11  ;;  %v91_v8 = vld [vmem:[#allocation7 + $0x10] sm:$0xf] }
 0x1b2   :  { %v271_v63 = vpack.c.b16 %v270_v55, %v270_v55  ;;  %v252_v55 = vrot.slane %v91_v8, %v14007_v32 }
 0x1b4   :  { %9633 = vmatmul.mubr.msk.bf16.vlgmr.msra.gmra.mrb[0].mxu0 %vm109_vm0, %v271_v63 }
 0x24a   :  { %v14120_v58 = vpop.f32.mrb[0].mxu1 }
 0x24b   :  { %19330 = vst [vmem:[#allocation22_spill] sm:$0xff] %v14120_v58  ;;  %v915_v4 = vpop.f32.mrb[1].mxu1  ;;  %v14124_v50 = vmul.f32 %v14120_v58, %v14120_v58 }
 0x24c   :  { %v14126_v0 = vpop.f32.mrb[2].mxu1  ;;  %v92_v4 = vld [vmem:[#allocation7 + $0x18] sm:$0xf] }
 0x24d   :  { %19331 = vst [vmem:[#allocation23_spill] sm:$0xff] %v14124_v50  ;;  %19332 = vst [vmem:[#allocation24_spill] sm:$0xff] %v14126_v0  ;;  %2789 = vrot.lane.b32.xlu0 %v14124_v50, %s13512_s28  ;;  %v918_v18 = vpop.f32.mrb[3].mxu1  ;;  %v14132_v14 = vpack.i.bf16 %v14126_v0, %v14120_v58  ;;  %v14140_v21 = vmul.f32 %v14126_v0, %v14126_v0  ;;  %v1221_v2 = vsel %vm1072_vm6, %v14124_v50, 0.0 }
 0x24f   :  { %19333 = vst [vmem:[#allocation25_spill] sm:$0xff] %v14132_v14  ;;  %11826 = vrot.lane.b32.xlu1 %v14132_v14, %s13513_s29  ;;  %19334 = vst [vmem:[#allocation26_spill] sm:$0xff] %v14140_v21  ;;  %v1224_v23 = vsel %vm1072_vm6, %v14140_v21, 0.0 }
 0x251   :  { %11821 = vrot.lane.b32.xlu0 %v14132_v14, %s13514_s30 }
 0x252   :  { %v14142_v53 = vpop.f32.mrb[4].mxu1 }
 0x253   :  { %19335 = vst [vmem:[#allocation27_spill] sm:$0xff] %v14142_v53  ;;  %2791 = vrot.lane.b32.xlu1 %v14140_v21, %s13512_s28  ;;  %v923_v40 = vpop.f32.mrb[5].mxu1  ;;  %v14164_v60 = vmul.f32 %v14142_v53, %v14142_v53 }
 0x254   :  { %v14146_v13 = vpop.f32.mrb[6].mxu1 }
 0x255   :  { %19336 = vst [vmem:[#allocation28_spill] sm:$0xff] %v14146_v13  ;;  %4468 = vrot.lane.b32.xlu0 %v14124_v50, %s13515_s7  ;;  %v926_v35 = vpop.f32.mrb[7].mxu1  ;;  %v14152_v27 = vpack.i.bf16 %v14146_v13, %v14142_v53  ;;  %19338 = vst [vmem:[#allocation30_spill] sm:$0xff] %v14164_v60  ;;  %v14172_v22 = vmul.f32 %v14146_v13, %v14146_v13  ;;  %v1227_v47 = vsel %vm1072_vm6, %v14164_v60, 0.0 }
 0x257   :  { %19337 = vst [vmem:[#allocation29_spill] sm:$0xff] %v14152_v27  ;;  %4470 = vrot.lane.b32.xlu1 %v14140_v21, %s13515_s7  ;;  %19339 = vst [vmem:[#allocation31_spill] sm:$0xff] %v14172_v22  ;;  %v1230_v61 = vsel %vm1072_vm6, %v14172_v22, 0.0 }
 0x274   :  { %1222 = vadd.xlane.f32.xlu0 %v1221_v2 }
 0x27b   :  { %1225 = vadd.xlane.f32.xlu1 %v1224_v23  ;;  %v256_v23 = vrot.slane %v92_v4, %v14007_v32 }
 0x287   :  { %v349_v25 = vpop.f32.mrb[0].mxu0 }
 0x288   :  { %v351_v59 = vpop.f32.mrb[1].mxu0  ;;  %v14186_v2 = vadd.f32 %v349_v25, %v252_v55 }
 0x289   :  { %v353_v15 = vpop.f32.mrb[2].mxu0 }
 0x28a   :  { %11831 = vrot.lane.b32.xlu0 %v14152_v27, %s13514_s30  ;;  %v354_v26 = vpop.f32.mrb[3].mxu0 }
 0x28c   :  { %2793 = vrot.lane.b32.xlu1 %v14164_v60, %s13512_s28 }
 0x28e   :  { %4472 = vrot.lane.b32.xlu0 %v14164_v60, %s13515_s7 }
 0x290   :  { %2795 = vrot.lane.b32.xlu1 %v14172_v22, %s13512_s28 }
 0x292   :  { %11836 = vrot.lane.b32.xlu0 %v14152_v27, %s13513_s29 }
 0x294   :  { %4474 = vrot.lane.b32.xlu1 %v14172_v22, %s13515_s7 }
 0x2b1   :  { %1228 = vadd.xlane.f32.xlu0 %v1227_v47  ;;  %v14192_v47 = vadd.f32 %v351_v59, %v256_v23 }
 0x2b8   :  { %1231 = vadd.xlane.f32.xlu1 %v1230_v61  ;;  %v14196_v61 = vpop.xlane.xlu1 %712 }
 0x2bc   :  { %v14198_v25 = vpop.xlane.xlu1 %718 }
 0x2bf   :  { %v2790_v41 = vpop.permute.xlu0 %2789 }
 0x2c0   :  { %v2885_v11 = vsel %vm1072_vm6, %v2790_v41, 0.0 }
 0x2c1   :  { %2886 = vadd.xlane.f32.xlu0 %v2885_v11  ;;  %v14200_v41 = vpop.permute.xlu1 %11826 }
 0x2c2   :  { %19340 = vst [vmem:[#allocation32_spill] sm:$0xff] %v14200_v41 }
 0x2c3   :  { %v11822_v63 = vpop.permute.xlu0 %11821 }
 0x2c4   :  { %v11824_v18 = vunpack.i.h.bf16 %v11822_v63  ;;  %v11823_v40 = vunpack.i.l.bf16 %v11822_v63 }
 0x2c5   :  { %v2792_v32 = vpop.permute.xlu1 %2791 }
 0x2c6   :  { %v11242_v35 = vpack.c.bf16 %v11824_v18, %v11823_v40  ;;  %v2888_v8 = vsel %vm1072_vm6, %v2792_v32, 0.0 }
 0x2c7   :  { %v4469_v15 = vpop.permute.xlu0 %4468 }
 0x2c8   :  { %11243 = vmatprep.subr.bf16.mxu1 %v11242_v35  ;;  %v4564_v26 = vsel %vm1072_vm6, %v4469_v15, 0.0 }
 0x2c9   :  { %357 = vrot.lane.b32.xlu1 %v14186_v2, %s13514_s30  ;;  %4565 = vadd.xlane.f32.xlu0 %v4564_v26  ;;  %v4471_v11 = vpop.permute.xlu1 %4470 }
 0x2ca   :  { %11245 = vmatpush3.bf16.msra.mxu1 %v11242_v35  ;;  %v4567_v55 = vsel %vm1072_vm6, %v4471_v11, 0.0 }
 0x2cd   :  { %361 = vrot.lane.b32.xlu1 %v14192_v47, %s13514_s30 }
 0x2f1   :  { %2889 = vadd.xlane.f32.xlu1 %v2888_v8 }
 0x2f5   :  { %4568 = vadd.xlane.f32.xlu1 %v4567_v55 }
 0x301   :  { %v1223_v63 = vpop.xlane.xlu0 %1222 }
 0x302   :  { %v1317_v59 = vmax.f32 %v1223_v63, 1e-24 }
 0x304   :  { %12590 = vrsqrt.f32 %v1317_v59 }
 0x305   :  { %v11832_v4 = vpop.permute.xlu0 %11831 }
 0x306   :  { %v11834_v18 = vunpack.i.h.bf16 %v11832_v4  ;;  %v11833_v40 = vunpack.i.l.bf16 %v11832_v4 }
 0x308   :  { %v1226_v35 = vpop.xlane.xlu1 %1225  ;;  %v11246_v23 = vpack.c.bf16 %v11834_v18, %v11833_v40 }
 0x309   :  { %v1318_v15 = vmax.f32 %v1226_v35, 1e-24  ;;  %v4473_v56 = vpop.permute.xlu0 %4472 }
 0x30a   :  { %11247 = vmatprep.subr.bf16.mxu1 %v11246_v23  ;;  %v4570_v63 = vsel %vm1072_vm6, %v4473_v56, 0.0 }
 0x30b   :  { %12592 = vrsqrt.f32 %v1318_v15  ;;  %11249 = vmatpush3.bf16.msra.mxu1 %v11246_v23 }
 0x30c   :  { %v2794_v26 = vpop.permute.xlu1 %2793 }
 0x30d   :  { %v2891_v32 = vsel %vm1072_vm6, %v2794_v26, 0.0 }
 0x30e   :  { %2892 = vadd.xlane.f32.xlu0 %v2891_v32  ;;  %v12591_v11 = vpop.eup %12590  ;;  %v14222_v32 = vpop.permute.xlu0 %11836 }
 0x30f   :  { %v1381_v4 = vmul.f32 %v12591_v11, %v14120_v58  ;;  %19343 = vst [vmem:[#allocation33_spill] sm:$0xff] %v14222_v32 }
 0x310   :  { %v2796_v8 = vpop.permute.xlu1 %2795 }
 0x311   :  { %v2894_v55 = vsel %vm1072_vm6, %v2796_v8, 0.0  ;;  %v1417_v23 = vmul.f32 %v13797_v44, %v1381_v4 }
 0x312   :  { %2895 = vadd.xlane.f32.xlu1 %v2894_v55  ;;  %4571 = vadd.xlane.f32.xlu0 %v4570_v63  ;;  %v13516_v55 = vmov 1983009808  }
 0x313   :  { %v366_v63 = vunpack.c.l.s4 %v13516_v55 }
 0x314   :  { %v4475_v59 = vpop.permute.xlu1 %4474 }
 0x315   :  { %v12593_v18 = vpop.eup %12592  ;;  %v4573_v40 = vsel %vm1072_vm6, %v4475_v59, 0.0 }
 0x316   :  { %4574 = vadd.xlane.f32.xlu1 %v4573_v40  ;;  %v1382_v35 = vmul.f32 %v12593_v18, %v14126_v0  ;;  %v367_v18 = vunpack.c.0.s8 %v366_v63  ;;  %v13517_v40 = vmov 1934713408  }
 0x318   :  { %v1418_v15 = vmul.f32 %v13797_v44, %v1382_v35  ;;  %v383_v35 = vunpack.c.l.s4 %v13517_v40  ;;  %v370_v57 = vsub.s32 %v367_v18, %v13729_v49 }
 0x31a   :  { %v11146_v56 = vpack.c.bf16 %v1418_v15, %v1417_v23  ;;  %v364_v15 = vcombine.low %v14186_v2, %v14192_v47 }
 0x31c   :  { %11148 = vmatprep.subr.msk.bf16.mxu0 %vm14214_vm7, %v11146_v56 }
 0x31d   :  { %11151 = vmatpush3.bf16.xpose.msk.msra.mxu0 %vm14214_vm7, %v11146_v56  ;;  %v384_v56 = vunpack.c.0.s8 %v383_v35 }
 0x33e   :  { %v1229_v8 = vpop.xlane.xlu0 %1228 }
 0x33f   :  { %v1319_v11 = vmax.f32 %v1229_v8, 1e-24  ;;  %v371_v8 = vrot.slane %v364_v15, %v370_v57 }
 0x341   :  { %12594 = vrsqrt.f32 %v1319_v11  ;;  %v387_v11 = vsub.s32 %v384_v56, %v13729_v49 }
 0x345   :  { %v1232_v59 = vpop.xlane.xlu1 %1231 }
 0x346   :  { %v1320_v4 = vmax.f32 %v1232_v59, 1e-24 }
 0x348   :  { %12596 = vrsqrt.f32 %v1320_v4 }
 0x349   :  { %v358_v23 = vpop.permute.xlu1 %357 }
 0x34b   :  { %v12595_v16 = vpop.eup %12594 }
 0x34c   :  { %v1383_v55 = vmul.f32 %v12595_v16, %v14142_v53 }
 0x34d   :  { %v362_v34 = vpop.permute.xlu1 %361 }
 0x34e   :  { %v372_v6 = vcombine.low %v358_v23, %v362_v34  ;;  %v1419_v2 = vmul.f32 %v13797_v44, %v1383_v55 }
 0x350   :  { %v379_v42 = vrot.slane %v372_v6, %v370_v57  ;;  %v13518_v6 = vmov 0.0  }
 0x352   :  { %v12597_v63 = vpop.eup %12596  ;;  %v380_v59 = vcombine.low %v371_v8, %v379_v42  ;;  %v381_v4 = vcombine.high %v371_v8, %v379_v42 }
 0x353   :  { %v1384_v40 = vmul.f32 %v12597_v63, %v14146_v13 }
 0x354   :  { %v395_v36 = vrot.slane %v381_v4, %v387_v11  ;;  %v388_v45 = vrot.slane %v380_v59, %v387_v11  ;;  %v2887_v11 = vpop.xlane.xlu0 %2886 }
 0x355   :  { %v1420_v47 = vmul.f32 %v13797_v44, %v1384_v40 }
 0x356   :  { %v14234_v34 = vsel %vm402_vm1, %v395_v36, %v13644_v20  ;;  %v14238_v57 = vsel %vm402_vm1, %v388_v45, %v13644_v20  ;;  %v396_v16 = vcombine.high %v388_v45, %v13518_v6  ;;  %v397_v15 = vcombine.high %v395_v36, %v13518_v6 }
 0x357   :  { %19344 = vst [vmem:[#allocation34_spill] sm:$0xff] %v14234_v34  ;;  %19345 = vst [vmem:[#allocation35_spill] sm:$0xff] %v14238_v57  ;;  %v681_v42 = vsel %vm109_vm0, %v14234_v34, 0.0  ;;  %v666_v18 = vsel %vm109_vm0, %v14238_v57, 0.0  ;;  %v11152_v35 = vpack.c.bf16 %v1420_v47, %v1419_v2  ;;  %v2981_v36 = vmax.f32 %v2887_v11, 1e-24 }
 0x358   :  { %682 = vadd.xlane.f32.xlu1 %v681_v42  ;;  %667 = vadd.xlane.f32.xlu0 %v666_v18  ;;  %v14246_v23 = vsel %vm402_vm1, %v396_v16, %v13644_v20  ;;  %v14256_v56 = vsel %vm402_vm1, %v397_v15, %v13644_v20  ;;  %v4566_v55 = vpop.xlane.xlu0 %4565 }
 0x359   :  { %19346 = vst [vmem:[#allocation36_spill] sm:$0xff] %v14246_v23  ;;  %11154 = vmatprep.subr.msk.bf16.mxu0 %vm14214_vm7, %v11152_v35  ;;  %v678_v45 = vsel %vm109_vm0, %v14246_v23, 0.0  ;;  %19347 = vst [vmem:[#allocation37_spill] sm:$0xff] %v14256_v56  ;;  %v684_v8 = vsel %vm109_vm0, %v14256_v56, 0.0  ;;  %v4660_v63 = vmax.f32 %v4566_v55, 1e-24  ;;  %12598 = vrsqrt.f32 %v2981_v36 }
 0x35a   :  { %11157 = vmatpush3.bf16.xpose.msk.msra.mxu0 %vm14214_vm7, %v11152_v35 }
 0x35b   :  { %12600 = vrsqrt.f32 %v4660_v63  ;;  %v732_v63 = vmul.f32 0.015625, %v14198_v25 }
 0x35c   :  { %679 = vadd.xlane.f32.xlu0 %v678_v45 }
 0x35d   :  { %v739_v17 = vadd.f32 1e-05, %v732_v63 }
 0x360   :  { %685 = vadd.xlane.f32.xlu0 %v684_v8 }
 0x363   :  { %v12599_v47 = vpop.eup %12598 }
 0x364   :  { %v3045_v20 = vmul.f32 %v12599_v47, %v14120_v58 }
 0x365   :  { %v12601_v6 = vpop.eup %12600 }
 0x366   :  { %v3081_v18 = vmul.f32 %v13997_v3, %v3045_v20  ;;  %v4724_v15 = vmul.f32 %v12601_v6, %v14120_v58 }
 0x368   :  { %v14268_v36 = vmul.f32 %v14001_v9, %v4724_v15 }
 0x36a   :  { %19348 = vst [vmem:[#allocation38_spill] sm:$0xff] %v14268_v36 }
 0x37e   :  { %v2890_v59 = vpop.xlane.xlu1 %2889 }
 0x37f   :  { %v2982_v4 = vmax.f32 %v2890_v59, 1e-24 }
 0x381   :  { %12602 = vrsqrt.f32 %v2982_v4 }
 0x382   :  { %v4569_v40 = vpop.xlane.xlu1 %4568 }
 0x383   :  { %v4661_v2 = vmax.f32 %v4569_v40, 1e-24 }
 0x385   :  { %12604 = vrsqrt.f32 %v4661_v2 }
 0x38b   :  { %v12603_v16 = vpop.eup %12602 }
 0x38c   :  { %v3046_v42 = vmul.f32 %v12603_v16, %v14126_v0 }
 0x38e   :  { %v3082_v35 = vmul.f32 %v13997_v3, %v3046_v42 }
 0x38f   :  { %v12605_v45 = vpop.eup %12604 }
 0x390   :  { %v11840_v8 = vpack.i.bf16 %v3082_v35, %v3081_v18  ;;  %v4725_v11 = vmul.f32 %v12605_v45, %v14126_v0 }
 0x392   :  { %11841 = vrot.lane.b32.xlu1 %v11840_v8, %s13512_s28  ;;  %v14271_v55 = vmul.f32 %v14001_v9, %v4725_v11 }
 0x394   :  { %19349 = vst [vmem:[#allocation39_spill] sm:$0xff] %v14271_v55 }
 0x39b   :  { %v2893_v59 = vpop.xlane.xlu0 %2892 }
 0x39c   :  { %v2983_v4 = vmax.f32 %v2893_v59, 1e-24 }
 0x39e   :  { %12606 = vrsqrt.f32 %v2983_v4 }
 0x39f   :  { %v2896_v40 = vpop.xlane.xlu1 %2895  ;;  %v4572_v2 = vpop.xlane.xlu0 %4571 }
 0x3a0   :  { %v2984_v47 = vmax.f32 %v2896_v40, 1e-24  ;;  %v4662_v6 = vmax.f32 %v4572_v2, 1e-24 }
 0x3a2   :  { %12608 = vrsqrt.f32 %v2984_v47 }
 0x3a3   :  { %12610 = vrsqrt.f32 %v4662_v6  ;;  %v4575_v20 = vpop.xlane.xlu1 %4574 }
 0x3a4   :  { %v4663_v16 = vmax.f32 %v4575_v20, 1e-24 }
 0x3a6   :  { %12612 = vrsqrt.f32 %v4663_v16 }
 0x3a8   :  { %v12607_v42 = vpop.eup %12606 }
 0x3a9   :  { %v3047_v18 = vmul.f32 %v12607_v42, %v14142_v53 }
 0x3ab   :  { %v3083_v8 = vmul.f32 %v13997_v3, %v3047_v18 }
 0x3ac   :  { %v12609_v35 = vpop.eup %12608 }
 0x3ad   :  { %v12611_v15 = vpop.eup %12610  ;;  %v3048_v45 = vmul.f32 %v12609_v35, %v14146_v13 }
 0x3ae   :  { %v4726_v59 = vmul.f32 %v12611_v15, %v14142_v53 }
 0x3af   :  { %v3084_v11 = vmul.f32 %v13997_v3, %v3048_v45 }
 0x3b0   :  { %v12613_v4 = vpop.eup %12612  ;;  %v14283_v47 = vmul.f32 %v14001_v9, %v4726_v59 }
 0x3b1   :  { %v11845_v40 = vpack.i.bf16 %v3084_v11, %v3083_v8  ;;  %v4727_v2 = vmul.f32 %v12613_v4, %v14146_v13 }
 0x3b2   :  { %19350 = vst [vmem:[#allocation40_spill] sm:$0xff] %v14283_v47 }
 0x3b3   :  { %11846 = vrot.lane.b32.xlu1 %v11845_v40, %s13512_s28  ;;  %v14286_v6 = vmul.f32 %v14001_v9, %v4727_v2 }
 0x3b5   :  { %19351 = vst [vmem:[#allocation41_spill] sm:$0xff] %v14286_v6 }
 0x3e5   :  { %v683_v16 = vpop.xlane.xlu1 %682  ;;  %v668_v42 = vpop.xlane.xlu0 %667 }
 0x3e6   :  { %v692_v18 = vmul.f32 0.015625, %v683_v16  ;;  %v687_v35 = vmul.f32 0.015625, %v668_v42 }
 0x3e8   :  { %v14291_v15 = vsub.f32 %v14234_v34, %v692_v18  ;;  %v694_v45 = vsub.f32 %v14238_v57, %v687_v35 }
 0x3e9   :  { %v680_v8 = vpop.xlane.xlu0 %679 }
 0x3ea   :  { %v691_v11 = vmul.f32 0.015625, %v680_v8  ;;  %v701_v4 = vmul.f32 %v694_v45, %v694_v45  ;;  %v706_v2 = vmul.f32 %v14291_v15, %v14291_v15 }
 0x3ec   :  { %v14295_v59 = vsub.f32 %v14246_v23, %v691_v11  ;;  %v708_v40 = vsel %vm109_vm0, %v701_v4, 0.0  ;;  %v723_v35 = vsel %vm109_vm0, %v706_v2, 0.0 }
 0x3ed   :  { %709 = vadd.xlane.f32.xlu0 %v708_v40  ;;  %v686_v20 = vpop.xlane.xlu0 %685 }
 0x3ee   :  { %v693_v16 = vmul.f32 0.015625, %v686_v20  ;;  %v705_v42 = vmul.f32 %v14295_v59, %v14295_v59  ;;  %v730_v20 = vmul.f32 0.015625, %v14196_v61 }
 0x3f0   :  { %v14303_v18 = vsub.f32 %v14256_v56, %v693_v16  ;;  %v720_v8 = vsel %vm109_vm0, %v705_v42, 0.0  ;;  %v737_v40 = vadd.f32 1e-05, %v730_v20  ;;  %v731_v16 = vmul.f32 0.015625, %v14043_v46  ;;  %v13404_v20 = vld [vmem:[#allocation7] sm:$0xff] }
 0x3f1   :  { %724 = vadd.xlane.f32.xlu0 %v723_v35  ;;  %721 = vadd.xlane.f32.xlu1 %v720_v8 }
 0x3f2   :  { %v707_v11 = vmul.f32 %v14303_v18, %v14303_v18  ;;  %12614 = vrsqrt.f32 %v737_v40  ;;  %v738_v42 = vadd.f32 1e-05, %v731_v16 }
 0x3f3   :  { %12616 = vrsqrt.f32 %v739_v17 }
 0x3f4   :  { %v726_v4 = vsel %vm109_vm0, %v707_v11, 0.0  ;;  %v14314_v11 = vsub.s32 3, %v13729_v49 }
 0x3f5   :  { %727 = vadd.xlane.f32.xlu1 %v726_v4 }
 0x3f6   :  { %19352 = vst [vmem:[#allocation42_spill] sm:$0xff] %v14314_v11  ;;  %v14320_v46 = vrot.slane %v13404_v20, %v14314_v11 }
 0x3fc   :  { %v12615_v8 = vpop.eup %12614 }
 0x3fd   :  { %v751_v61 = vmul.f32 %v12615_v8, %v13954_v1  ;;  %v12617_v25 = vpop.eup %12616 }
 0x3fe   :  { %v753_v1 = vmul.f32 %v12617_v25, %v13961_v62  ;;  %v19356_v62 = vpack.c.bf16 %v14050_v54, %v14037_v33 }
 0x3ff   :  { %v762_v16 = vmul.f32 %v14320_v46, %v751_v61 }
 0x400   :  { %v764_v31 = vmul.f32 %v14320_v46, %v753_v1 }
 0x404   :  { %v14316_v4 = vpop.permute.xlu1 %11841 }
 0x405   :  { %19353 = vst [vmem:[#allocation43_spill] sm:$0xff] %v14316_v4 }
 0x425   :  { %v14322_v63 = vpop.permute.xlu1 %11846 }
 0x426   :  { %19354 = vst [vmem:[#allocation44_spill] sm:$0xff] %v14322_v63 }
 0x47a   :  { %v710_v2 = vpop.xlane.xlu0 %709 }
 0x47b   :  { %v729_v56 = vmul.f32 0.015625, %v710_v2 }
 0x47d   :  { %v736_v35 = vadd.f32 1e-05, %v729_v56  ;;  %v770_v56 = vsub.s32 4, %v13729_v49 }
 0x47f   :  { %12618 = vrsqrt.f32 %v736_v35  ;;  %v771_v34 = vrot.slane %v13404_v20, %v770_v56 }
 0x480   :  { %12620 = vrsqrt.f32 %v738_v42  ;;  %v722_v42 = vpop.xlane.xlu1 %721 }
 0x481   :  { %v773_v23 = vadd.f32 %v771_v34, %v762_v16  ;;  %v733_v29 = vmul.f32 0.015625, %v722_v42  ;;  %v775_v57 = vadd.f32 %v771_v34, %v764_v31  ;;  %v19357_v31 = vpack.c.bf16 %v14046_v7, %v14063_v12 }
 0x482   :  { %v19358_v7 = vpack.c.bf16 %v14075_v38, %v14057_v19  ;;  %v19359_v16 = vpack.c.bf16 %v14088_v43, %v14067_v30  ;;  %v19360_v30 = vpack.c.bf16 %v14079_v10, %v14101_v28 }
 0x483   :  { %v740_v61 = vadd.f32 1e-05, %v733_v29 }
 0x485   :  { %12622 = vrsqrt.f32 %v740_v61 }
 0x489   :  { %v12619_v17 = vpop.eup %12618 }
 0x48a   :  { %v750_v40 = vmul.f32 %v12619_v17, %v694_v45  ;;  %v12621_v2 = vpop.eup %12620  ;;  %v19355_v17 = vmov 0  }
 0x48b   :  { %v752_v11 = vmul.f32 %v12621_v2, %v13921_v39  ;;  %v728_v2 = vpop.xlane.xlu1 %727 }
 0x48c   :  { %v761_v35 = vmul.f32 %v14320_v46, %v750_v40 }
 0x48d   :  { %v763_v45 = vmul.f32 %v14320_v46, %v752_v11 }
 0x48e   :  { %v772_v8 = vadd.f32 %v771_v34, %v761_v35  ;;  %v735_v35 = vmul.f32 0.015625, %v728_v2 }
 0x48f   :  { %v774_v40 = vadd.f32 %v771_v34, %v763_v45  ;;  %v12623_v39 = vpop.eup %12622 }
 0x490   :  { %v789_v48 = vpack.c.bf16 %v773_v23, %v772_v8  ;;  %v742_v19 = vadd.f32 1e-05, %v735_v35  ;;  %v19361_v8 = vpack.c.bf16 %v14092_v37, %v14112_v5 }
 0x491   :  { %v790_v20 = vpack.c.bf16 %v775_v57, %v774_v40  ;;  %v725_v57 = vpop.xlane.xlu0 %724 }
 0x492   :  { %9644 = vmatmul.mubr.msk.bf16.gmra.mrb[8].mxu1 %vm109_vm0, %v789_v48  ;;  %v754_v48 = vmul.f32 %v12623_v39, %v14295_v59  ;;  %v734_v25 = vmul.f32 0.015625, %v725_v57 }
 0x493   :  { %937 = vmatprep.mubr.bf16.mxu1 %v19355_v17 }
 0x494   :  { %v765_v29 = vmul.f32 %v14320_v46, %v754_v48  ;;  %v741_v33 = vadd.f32 1e-05, %v734_v25 }
 0x496   :  { %v776_v11 = vadd.f32 %v771_v34, %v765_v29  ;;  %12624 = vrsqrt.f32 %v741_v33 }
 0x497   :  { %12626 = vrsqrt.f32 %v742_v19 }
 0x498   :  { %v793_v56 = vpack.c.bf16 %v773_v23, %v776_v11 }
 0x49a   :  { %9645 = vmatmul.mubr.msk.bf16.gmra.mrb[12].mxu1 %vm109_vm0, %v790_v20 }
 0x49b   :  { %947 = vmatprep.mubr.bf16.mxu1 %v19355_v17 }
 0x4a0   :  { %v12625_v54 = vpop.eup %12624 }
 0x4a1   :  { %v755_v12 = vmul.f32 %v12625_v54, %v14291_v15  ;;  %v12627_v38 = vpop.eup %12626 }
 0x4a2   :  { %9646 = vmatmul.mubr.msk.bf16.gmra.mrb[16].mxu1 %vm109_vm0, %v19356_v62  ;;  %v756_v43 = vmul.f32 %v12627_v38, %v14303_v18 }
 0x4a3   :  { %955 = vmatprep.mubr.bf16.mxu1 %v19355_v17  ;;  %v766_v59 = vmul.f32 %v14320_v46, %v755_v12 }
 0x4a4   :  { %v767_v15 = vmul.f32 %v14320_v46, %v756_v43 }
 0x4a5   :  { %v777_v42 = vadd.f32 %v771_v34, %v766_v59 }
 0x4a6   :  { %v778_v45 = vadd.f32 %v771_v34, %v767_v15 }
 0x4a7   :  { %v796_v1 = vpack.c.bf16 %v773_v23, %v777_v42 }
 0x4a8   :  { %v799_v61 = vpack.c.bf16 %v773_v23, %v778_v45 }
 0x4aa   :  { %9647 = vmatmul.mubr.msk.bf16.gmra.mrb[20].mxu1 %vm109_vm0, %v19357_v31 }
 0x4ab   :  { %963 = vmatprep.mubr.bf16.mxu1 %v19355_v17 }
 0x4b2   :  { %9648 = vmatmul.mubr.msk.bf16.gmra.mrb[24].mxu1 %vm109_vm0, %v793_v56 }
 0x4b3   :  { %973 = vmatprep.mubr.bf16.mxu1 %v19355_v17 }
 0x4ba   :  { %9649 = vmatmul.mubr.msk.bf16.gmra.mrb[28].mxu1 %vm109_vm0, %v790_v20 }
 0x4bb   :  { %983 = vmatprep.mubr.bf16.mxu1 %v19355_v17 }
 0x4c2   :  { %9650 = vmatmul.mubr.msk.bf16.gmra.mrb[32].mxu1 %vm109_vm0, %v19358_v7 }
 0x4c3   :  { %991 = vmatprep.mubr.bf16.mxu1 %v19355_v17 }
 0x4ca   :  { %9651 = vmatmul.mubr.msk.bf16.gmra.mrb[36].mxu1 %vm109_vm0, %v19359_v16 }
 0x4cb   :  { %999 = vmatprep.mubr.bf16.mxu1 %v19355_v17 }
 0x4d2   :  { %9652 = vmatmul.mubr.msk.bf16.gmra.mrb[40].mxu1 %vm109_vm0, %v796_v1 }
 0x4d3   :  { %1009 = vmatprep.mubr.bf16.mxu1 %v19355_v17 }
 0x4da   :  { %9653 = vmatmul.mubr.msk.bf16.gmra.mrb[44].mxu1 %vm109_vm0, %v790_v20 }
 0x4db   :  { %1019 = vmatprep.mubr.bf16.mxu1 %v19355_v17 }
 0x4e2   :  { %9654 = vmatmul.mubr.msk.bf16.gmra.mrb[48].mxu1 %vm109_vm0, %v19360_v30 }
 0x4e3   :  { %1027 = vmatprep.mubr.bf16.mxu1 %v19355_v17 }
 0x4ea   :  { %9655 = vmatmul.mubr.msk.bf16.gmra.mrb[52].mxu1 %vm109_vm0, %v19361_v8 }
 0x4eb   :  { %1035 = vmatprep.mubr.bf16.mxu1 %v19355_v17 }
 0x4f2   :  { %9656 = vmatmul.mubr.msk.bf16.gmra.mrb[56].mxu1 %vm109_vm0, %v799_v61 }
 0x4f3   :  { %1045 = vmatprep.mubr.bf16.mxu1 %v19355_v17 }
 0x4fa   :  { %9657 = vmatmul.mubr.msk.bf16.gmra.mrb[60].mxu1 %vm109_vm0, %v790_v20 }
 0x565   :  { %v14382_v10 = vpop.f32.mrb[8].mxu1 }
 0x566   :  { %19362 = vst [vmem:[#allocation45_spill] sm:$0xff] %v14382_v10  ;;  %v14384_v28 = vpop.f32.mrb[9].mxu1  ;;  %v14388_v18 = vmul.f32 %v14382_v10, %v14382_v10 }
 0x567   :  { %19363 = vst [vmem:[#allocation46_spill] sm:$0xff] %v14384_v28  ;;  %v14390_v37 = vpop.f32.mrb[10].mxu1 }
 0x568   :  { %19364 = vst [vmem:[#allocation47_spill] sm:$0xff] %v14388_v18  ;;  %19365 = vst [vmem:[#allocation48_spill] sm:$0xff] %v14390_v37  ;;  %2797 = vrot.lane.b32.xlu0 %v14388_v18, %s13512_s28  ;;  %v14394_v5 = vpop.f32.mrb[11].mxu1  ;;  %v14398_v34 = vmul.f32 %v14390_v37, %v14390_v37  ;;  %v14402_v23 = vpack.i.bf16 %v14390_v37, %v14382_v10  ;;  %v1233_v15 = vsel %vm1072_vm6, %v14388_v18, 0.0 }
 0x569   :  { %19366 = vst [vmem:[#allocation49_spill] sm:$0xff] %v14394_v5 }
 0x56a   :  { %19367 = vst [vmem:[#allocation50_spill] sm:$0xff] %v14398_v34  ;;  %19368 = vst [vmem:[#allocation51_spill] sm:$0xff] %v14402_v23  ;;  %2799 = vrot.lane.b32.xlu1 %v14398_v34, %s13512_s28  ;;  %v1236_v43 = vsel %vm1072_vm6, %v14398_v34, 0.0 }
 0x56c   :  { %11851 = vrot.lane.b32.xlu0 %v14402_v23, %s13514_s30 }
 0x56d   :  { %v14408_v46 = vpop.f32.mrb[12].mxu1 }
 0x56e   :  { %19369 = vst [vmem:[#allocation52_spill] sm:$0xff] %v14408_v46  ;;  %4478 = vrot.lane.b32.xlu1 %v14398_v34, %s13515_s7  ;;  %v14412_v40 = vpop.f32.mrb[13].mxu1 }
 0x56f   :  { %19370 = vst [vmem:[#allocation53_spill] sm:$0xff] %v14412_v40  ;;  %v14414_v20 = vpop.f32.mrb[14].mxu1 }
 0x570   :  { %19371 = vst [vmem:[#allocation54_spill] sm:$0xff] %v14414_v20  ;;  %4476 = vrot.lane.b32.xlu0 %v14388_v18, %s13515_s7  ;;  %v14418_v39 = vpop.f32.mrb[15].mxu1  ;;  %v14422_v62 = vpack.i.bf16 %v14414_v20, %v14408_v46 }
 0x571   :  { %19372 = vst [vmem:[#allocation55_spill] sm:$0xff] %v14418_v39 }
 0x572   :  { %19373 = vst [vmem:[#allocation56_spill] sm:$0xff] %v14422_v62 }
 0x574   :  { %11856 = vrot.lane.b32.xlu0 %v14402_v23, %s13513_s29 }
 0x575   :  { %v14426_v48 = vpop.f32.mrb[16].mxu1 }
 0x576   :  { %19374 = vst [vmem:[#allocation57_spill] sm:$0xff] %v14426_v48  ;;  %v951_v29 = vpop.f32.mrb[17].mxu1 }
 0x577   :  { %v14428_v31 = vpop.f32.mrb[18].mxu1 }
 0x578   :  { %19375 = vst [vmem:[#allocation58_spill] sm:$0xff] %v14428_v31  ;;  %v954_v57 = vpop.f32.mrb[19].mxu1  ;;  %v14432_v11 = vpack.i.bf16 %v14428_v31, %v14426_v48 }
 0x57a   :  { %19376 = vst [vmem:[#allocation59_spill] sm:$0xff] %v14432_v11 }
 0x57d   :  { %v14434_v25 = vpop.f32.mrb[20].mxu1 }
 0x57e   :  { %19377 = vst [vmem:[#allocation60_spill] sm:$0xff] %v14434_v25  ;;  %v959_v56 = vpop.f32.mrb[21].mxu1 }
 0x57f   :  { %v14436_v33 = vpop.f32.mrb[22].mxu1 }
 0x580   :  { %19378 = vst [vmem:[#allocation61_spill] sm:$0xff] %v14436_v33  ;;  %v962_v54 = vpop.f32.mrb[23].mxu1  ;;  %v14440_v7 = vpack.i.bf16 %v14436_v33, %v14434_v25 }
 0x582   :  { %19379 = vst [vmem:[#allocation62_spill] sm:$0xff] %v14440_v7 }
 0x585   :  { %v14442_v12 = vpop.f32.mrb[24].mxu1 }
 0x586   :  { %19380 = vst [vmem:[#allocation63_spill] sm:$0xff] %v14442_v12  ;;  %v14444_v59 = vpop.f32.mrb[25].mxu1 }
 0x587   :  { %19381 = vst [vmem:[#allocation64_spill] sm:$0xff] %v14444_v59  ;;  %v14446_v16 = vpop.f32.mrb[26].mxu1 }
 0x588   :  { %19382 = vst [vmem:[#allocation65_spill] sm:$0xff] %v14446_v16  ;;  %v14448_v2 = vpop.f32.mrb[27].mxu1  ;;  %v14452_v42 = vpack.i.bf16 %v14446_v16, %v14442_v12 }
 0x589   :  { %19383 = vst [vmem:[#allocation66_spill] sm:$0xff] %v14448_v2 }
 0x58a   :  { %19384 = vst [vmem:[#allocation67_spill] sm:$0xff] %v14452_v42 }
 0x58d   :  { %v14454_v35 = vpop.f32.mrb[28].mxu1 }
 0x58e   :  { %19385 = vst [vmem:[#allocation68_spill] sm:$0xff] %v14454_v35  ;;  %v14456_v1 = vpop.f32.mrb[29].mxu1 }
 0x58f   :  { %19386 = vst [vmem:[#allocation69_spill] sm:$0xff] %v14456_v1  ;;  %v14458_v19 = vpop.f32.mrb[30].mxu1 }
 0x590   :  { %19387 = vst [vmem:[#allocation70_spill] sm:$0xff] %v14458_v19  ;;  %v14460_v38 = vpop.f32.mrb[31].mxu1  ;;  %v14464_v30 = vpack.i.bf16 %v14458_v19, %v14454_v35 }
 0x591   :  { %19388 = vst [vmem:[#allocation71_spill] sm:$0xff] %v14460_v38 }
 0x592   :  { %19389 = vst [vmem:[#allocation72_spill] sm:$0xff] %v14464_v30  ;;  %1237 = vadd.xlane.f32.xlu1 %v1236_v43 }
 0x593   :  { %1234 = vadd.xlane.f32.xlu0 %v1233_v15  ;;  %v14488_v15 = vmul.f32 %v14394_v5, %v14394_v5 }
 0x595   :  { %v14470_v8 = vpop.f32.mrb[32].mxu1  ;;  %19396 = vst [vmem:[#allocation79_spill] sm:$0xff] %v14488_v15 }
 0x596   :  { %19390 = vst [vmem:[#allocation73_spill] sm:$0xff] %v14470_v8  ;;  %v987_v45 = vpop.f32.mrb[33].mxu1 }
 0x597   :  { %v14472_v61 = vpop.f32.mrb[34].mxu1 }
 0x598   :  { %19391 = vst [vmem:[#allocation74_spill] sm:$0xff] %v14472_v61  ;;  %v990_v29 = vpop.f32.mrb[35].mxu1  ;;  %v14476_v57 = vpack.i.bf16 %v14472_v61, %v14470_v8 }
 0x59a   :  { %19392 = vst [vmem:[#allocation75_spill] sm:$0xff] %v14476_v57 }
 0x59d   :  { %v14478_v56 = vpop.f32.mrb[36].mxu1 }
 0x59e   :  { %19393 = vst [vmem:[#allocation76_spill] sm:$0xff] %v14478_v56  ;;  %v995_v54 = vpop.f32.mrb[37].mxu1 }
 0x59f   :  { %v14480_v49 = vpop.f32.mrb[38].mxu1 }
 0x5a0   :  { %19394 = vst [vmem:[#allocation77_spill] sm:$0xff] %v14480_v49  ;;  %v998_v43 = vpop.f32.mrb[39].mxu1  ;;  %v14484_v17 = vpack.i.bf16 %v14480_v49, %v14478_v56 }
 0x5a1   :  { %v14502_v43 = vmul.f32 %v14384_v28, %v14384_v28 }
 0x5a2   :  { %19395 = vst [vmem:[#allocation78_spill] sm:$0xff] %v14484_v17 }
 0x5a3   :  { %2595 = vrot.lane.b32.xlu1 %v14488_v15, %s13512_s28  ;;  %19400 = vst [vmem:[#allocation83_spill] sm:$0xff] %v14502_v43 }
 0x5a5   :  { %v14492_v45 = vpop.f32.mrb[40].mxu1 }
 0x5a6   :  { %19397 = vst [vmem:[#allocation80_spill] sm:$0xff] %v14492_v45  ;;  %v14494_v29 = vpop.f32.mrb[41].mxu1 }
 0x5a7   :  { %19398 = vst [vmem:[#allocation81_spill] sm:$0xff] %v14494_v29  ;;  %4307 = vrot.lane.b32.xlu1 %v14488_v15, %s13515_s7  ;;  %v14498_v54 = vpop.f32.mrb[42].mxu1 }
 0x5a8   :  { %19399 = vst [vmem:[#allocation82_spill] sm:$0xff] %v14498_v54  ;;  %v14504_v23 = vpop.f32.mrb[43].mxu1  ;;  %v14508_v13 = vpack.i.bf16 %v14498_v54, %v14492_v45 }
 0x5a9   :  { %19401 = vst [vmem:[#allocation84_spill] sm:$0xff] %v14504_v23  ;;  %2593 = vrot.lane.b32.xlu0 %v14502_v43, %s13512_s28 }
 0x5aa   :  { %19402 = vst [vmem:[#allocation85_spill] sm:$0xff] %v14508_v13 }
 0x5ad   :  { %4305 = vrot.lane.b32.xlu0 %v14502_v43, %s13515_s7  ;;  %v14514_v53 = vpop.f32.mrb[44].mxu1 }
 0x5ae   :  { %19403 = vst [vmem:[#allocation86_spill] sm:$0xff] %v14514_v53  ;;  %v14516_v0 = vpop.f32.mrb[45].mxu1 }
 0x5af   :  { %19404 = vst [vmem:[#allocation87_spill] sm:$0xff] %v14516_v0  ;;  %v14518_v58 = vpop.f32.mrb[46].mxu1 }
 0x5b0   :  { %19405 = vst [vmem:[#allocation88_spill] sm:$0xff] %v14518_v58  ;;  %v14520_v14 = vpop.f32.mrb[47].mxu1  ;;  %v14524_v27 = vpack.i.bf16 %v14518_v58, %v14514_v53 }
 0x5b1   :  { %19406 = vst [vmem:[#allocation89_spill] sm:$0xff] %v14520_v14 }
 0x5b2   :  { %19407 = vst [vmem:[#allocation90_spill] sm:$0xff] %v14524_v27 }
 0x5b5   :  { %v14526_v18 = vpop.f32.mrb[48].mxu1 }
 0x5b6   :  { %19408 = vst [vmem:[#allocation91_spill] sm:$0xff] %v14526_v18  ;;  %v1023_v60 = vpop.f32.mrb[49].mxu1 }
 0x5b7   :  { %v14528_v34 = vpop.f32.mrb[50].mxu1 }
 0x5b8   :  { %19409 = vst [vmem:[#allocation92_spill] sm:$0xff] %v14528_v34  ;;  %v1026_v50 = vpop.f32.mrb[51].mxu1  ;;  %v14532_v22 = vpack.i.bf16 %v14528_v34, %v14526_v18 }
 0x5ba   :  { %19410 = vst [vmem:[#allocation93_spill] sm:$0xff] %v14532_v22 }
 0x5bd   :  { %v14534_v21 = vpop.f32.mrb[52].mxu1 }
 0x5be   :  { %19411 = vst [vmem:[#allocation94_spill] sm:$0xff] %v14534_v21  ;;  %v1031_v32 = vpop.f32.mrb[53].mxu1 }
 0x5bf   :  { %v14536_v41 = vpop.f32.mrb[54].mxu1  ;;  %v1076_v32 = vsel %vm1072_vm6, %v14488_v15, 0.0  ;;  %v14578_v15 = vmul.f32 %v14408_v46, %v14408_v46 }
 0x5c0   :  { %19412 = vst [vmem:[#allocation95_spill] sm:$0xff] %v14536_v41  ;;  %v1034_v52 = vpop.f32.mrb[55].mxu1  ;;  %v14540_v63 = vpack.i.bf16 %v14536_v41, %v14534_v21 }
 0x5c1   :  { %v1073_v52 = vsel %vm1072_vm6, %v14502_v43, 0.0  ;;  %19425 = vst [vmem:[#allocation108_spill] sm:$0xff] %v14578_v15 }
 0x5c2   :  { %19413 = vst [vmem:[#allocation96_spill] sm:$0xff] %v14540_v63 }
 0x5c5   :  { %v14542_v4 = vpop.f32.mrb[56].mxu1 }
 0x5c6   :  { %19414 = vst [vmem:[#allocation97_spill] sm:$0xff] %v14542_v4  ;;  %v14544_v60 = vpop.f32.mrb[57].mxu1 }
 0x5c7   :  { %19415 = vst [vmem:[#allocation98_spill] sm:$0xff] %v14544_v60  ;;  %v14546_v47 = vpop.f32.mrb[58].mxu1 }
 0x5c8   :  { %19416 = vst [vmem:[#allocation99_spill] sm:$0xff] %v14546_v47  ;;  %v14548_v50 = vpop.f32.mrb[59].mxu1  ;;  %v14552_v6 = vpack.i.bf16 %v14546_v47, %v14542_v4 }
 0x5c9   :  { %19417 = vst [vmem:[#allocation100_spill] sm:$0xff] %v14548_v50 }
 0x5ca   :  { %19418 = vst [vmem:[#allocation101_spill] sm:$0xff] %v14552_v6 }
 0x5cb   :  { %1077 = vadd.xlane.f32.xlu1 %v1076_v32 }
 0x5cc   :  { %1074 = vadd.xlane.f32.xlu0 %v1073_v52 }
 0x5cd   :  { %v14558_v36 = vpop.f32.mrb[60].mxu1 }
 0x5ce   :  { %19419 = vst [vmem:[#allocation102_spill] sm:$0xff] %v14558_v36  ;;  %v14560_v55 = vpop.f32.mrb[61].mxu1 }
 0x5cf   :  { %19420 = vst [vmem:[#allocation103_spill] sm:$0xff] %v14560_v55  ;;  %v14562_v51 = vpop.f32.mrb[62].mxu1 }
 0x5d0   :  { %19421 = vst [vmem:[#allocation104_spill] sm:$0xff] %v14562_v51  ;;  %v14564_v9 = vpop.f32.mrb[63].mxu1  ;;  %v14568_v3 = vpack.i.bf16 %v14562_v51, %v14558_v36  ;;  %v14584_v51 = vmul.f32 %v14414_v20, %v14414_v20 }
 0x5d1   :  { %19422 = vst [vmem:[#allocation105_spill] sm:$0xff] %v14564_v9 }
 0x5d2   :  { %19423 = vst [vmem:[#allocation106_spill] sm:$0xff] %v14568_v3  ;;  %19426 = vst [vmem:[#allocation109_spill] sm:$0xff] %v14584_v51 }
 0x5da   :  { %v14570_v50 = vpop.permute.xlu0 %2797 }
 0x5db   :  { %19424 = vst [vmem:[#allocation107_spill] sm:$0xff] %v14570_v50 }
 0x5dc   :  { %11861 = vrot.lane.b32.xlu1 %v14422_v62, %s13514_s30 }
 0x5de   :  { %v11852_v32 = vpop.permute.xlu0 %11851 }
 0x5df   :  { %v11854_v43 = vunpack.i.h.bf16 %v11852_v32  ;;  %v11853_v52 = vunpack.i.l.bf16 %v11852_v32  ;;  %v1242_v32 = vsel %vm1072_vm6, %v14584_v51, 0.0 }
 0x5e0   :  { %11866 = vrot.lane.b32.xlu1 %v14422_v62, %s13513_s29 }
 0x5e1   :  { %v11250_v9 = vpack.c.bf16 %v11854_v43, %v11853_v52  ;;  %v1239_v43 = vsel %vm1072_vm6, %v14578_v15, 0.0  ;;  %v14596_v52 = vpop.permute.xlu1 %2799 }
 0x5e2   :  { %2801 = vrot.lane.b32.xlu0 %v14578_v15, %s13512_s28  ;;  %19427 = vst [vmem:[#allocation110_spill] sm:$0xff] %v14596_v52  ;;  %v14598_v62 = vpop.permute.xlu0 %4476 }
 0x5e3   :  { %11251 = vmatprep.subr.bf16.mxu1 %v11250_v9  ;;  %19428 = vst [vmem:[#allocation111_spill] sm:$0xff] %v14598_v62 }
 0x5e4   :  { %2803 = vrot.lane.b32.xlu1 %v14584_v51, %s13512_s28  ;;  %11253 = vmatpush3.bf16.msra.mxu1 %v11250_v9  ;;  %v14602_v9 = vmul.f32 %v14412_v40, %v14412_v40 }
 0x5e5   :  { %v14604_v50 = vpop.permute.xlu1 %4478 }
 0x5e6   :  { %4480 = vrot.lane.b32.xlu0 %v14578_v15, %s13515_s7  ;;  %19429 = vst [vmem:[#allocation112_spill] sm:$0xff] %v14602_v9  ;;  %19430 = vst [vmem:[#allocation113_spill] sm:$0xff] %v14604_v50  ;;  %v14612_v15 = vpop.permute.xlu0 %11856 }
 0x5e7   :  { %19432 = vst [vmem:[#allocation115_spill] sm:$0xff] %v14612_v15 }
 0x5e8   :  { %4482 = vrot.lane.b32.xlu1 %v14584_v51, %s13515_s7 }
 0x605   :  { %1240 = vadd.xlane.f32.xlu0 %v1239_v43  ;;  %v14610_v43 = vmul.f32 %v14418_v39, %v14418_v39 }
 0x607   :  { %19431 = vst [vmem:[#allocation114_spill] sm:$0xff] %v14610_v43 }
 0x60c   :  { %1243 = vadd.xlane.f32.xlu1 %v1242_v32 }
 0x61b   :  { %2597 = vrot.lane.b32.xlu0 %v14602_v9, %s13512_s28 }
 0x61d   :  { %2599 = vrot.lane.b32.xlu1 %v14610_v43, %s13512_s28 }
 0x61f   :  { %v1238_v32 = vpop.xlane.xlu1 %1237  ;;  %4309 = vrot.lane.b32.xlu0 %v14602_v9, %s13515_s7 }
 0x620   :  { %v1322_v51 = vmax.f32 %v1238_v32, 1e-24  ;;  %v1235_v52 = vpop.xlane.xlu0 %1234 }
 0x621   :  { %v1321_v62 = vmax.f32 %v1235_v52, 1e-24  ;;  %4311 = vrot.lane.b32.xlu1 %v14610_v43, %s13515_s7 }
 0x622   :  { %12628 = vrsqrt.f32 %v1322_v51  ;;  %v1079_v51 = vsel %vm1072_vm6, %v14602_v9, 0.0 }
 0x623   :  { %12630 = vrsqrt.f32 %v1321_v62  ;;  %v1082_v62 = vsel %vm1072_vm6, %v14610_v43, 0.0 }
 0x62c   :  { %v12629_v50 = vpop.eup %12628 }
 0x62d   :  { %v12631_v55 = vpop.eup %12630  ;;  %v1386_v47 = vmul.f32 %v12629_v50, %v14390_v37 }
 0x62e   :  { %v1385_v15 = vmul.f32 %v12631_v55, %v14382_v10  ;;  %v14632_v55 = vpop.permute.xlu1 %2595 }
 0x62f   :  { %v1422_v3 = vmul.f32 %v13797_v44, %v1386_v47  ;;  %19433 = vst [vmem:[#allocation116_spill] sm:$0xff] %v14632_v55  ;;  %v14634_v47 = vpop.permute.xlu0 %2593 }
 0x630   :  { %v1421_v36 = vmul.f32 %v13797_v44, %v1385_v15  ;;  %v14646_v15 = vmul.f32 %v14428_v31, %v14428_v31 }
 0x632   :  { %v11158_v60 = vpack.c.bf16 %v1422_v3, %v1421_v36  ;;  %v14638_v3 = vmul.f32 %v14426_v48, %v14426_v48  ;;  %v14640_v36 = vpop.permute.xlu1 %4307  ;;  %19436 = vst [vmem:[#allocation119_spill] sm:$0xff] %v14646_v15 }
 0x633   :  { %19435 = vst [vmem:[#allocation118_spill] sm:$0xff] %v14640_v36 }
 0x634   :  { %11160 = vmatprep.subr.msk.bf16.mxu0 %vm14214_vm7, %v11158_v60  ;;  %19434 = vst [vmem:[#allocation117_spill] sm:$0xff] %v14638_v3 }
 0x635   :  { %11163 = vmatpush3.bf16.xpose.msk.msra.mxu0 %vm14214_vm7, %v11158_v60  ;;  %v14648_v60 = vpop.permute.xlu0 %4305 }
 0x63e   :  { %1080 = vadd.xlane.f32.xlu0 %v1079_v51 }
 0x645   :  { %1083 = vadd.xlane.f32.xlu1 %v1082_v62 }
 0x654   :  { %2805 = vrot.lane.b32.xlu0 %v14638_v3, %s13512_s28 }
 0x656   :  { %2807 = vrot.lane.b32.xlu1 %v14646_v15, %s13512_s28 }
 0x658   :  { %v1078_v50 = vpop.xlane.xlu1 %1077  ;;  %11871 = vrot.lane.b32.xlu0 %v14432_v11, %s13514_s30 }
 0x659   :  { %v1075_v52 = vpop.xlane.xlu0 %1074 }
 0x65a   :  { %v1121_v32 = vmax.f32 %v1075_v52, 1e-24  ;;  %4486 = vrot.lane.b32.xlu1 %v14646_v15, %s13515_s7 }
 0x65c   :  { %12632 = vrsqrt.f32 %v1121_v32  ;;  %v11862_v51 = vpop.permute.xlu1 %11861  ;;  %4484 = vrot.lane.b32.xlu0 %v14638_v3, %s13515_s7  ;;  %v1248_v32 = vsel %vm1072_vm6, %v14646_v15, 0.0 }
 0x65d   :  { %v11864_v62 = vunpack.i.h.bf16 %v11862_v51  ;;  %v11863_v9 = vunpack.i.l.bf16 %v11862_v51  ;;  %v1245_v51 = vsel %vm1072_vm6, %v14638_v3, 0.0 }
 0x65f   :  { %v11254_v43 = vpack.c.bf16 %v11864_v62, %v11863_v9  ;;  %v14667_v9 = vpop.permute.xlu0 %2801 }
 0x660   :  { %11876 = vrot.lane.b32.xlu0 %v14432_v11, %s13513_s29  ;;  %v14669_v62 = vpop.permute.xlu1 %11866 }
 0x661   :  { %11255 = vmatprep.subr.bf16.mxu1 %v11254_v43  ;;  %19437 = vst [vmem:[#allocation120_spill] sm:$0xff] %v14669_v62 }
 0x662   :  { %11257 = vmatpush3.bf16.msra.mxu1 %v11254_v43 }
 0x663   :  { %v14671_v43 = vpop.permute.xlu0 %4480 }
 0x664   :  { %v14673_v11 = vpop.permute.xlu1 %2803 }
 0x665   :  { %19438 = vst [vmem:[#allocation121_spill] sm:$0xff] %v14673_v11 }
 0x666   :  { %v12633_v37 = vpop.eup %12632 }
 0x667   :  { %v1153_v10 = vmul.f32 %v12633_v37, %v14384_v28  ;;  %v14681_v37 = vmul.f32 %v14434_v25, %v14434_v25 }
 0x669   :  { %v1173_v52 = vmul.f32 %v13769_v24, %v1153_v10  ;;  %19439 = vst [vmem:[#allocation122_spill] sm:$0xff] %v14681_v37 }
 0x66b   :  { %10434 = vmatprep.mubr.msk.f32.mxu0 %vm1072_vm6, %v1173_v52 }
 0x67e   :  { %1249 = vadd.xlane.f32.xlu1 %v1248_v32  ;;  %v14683_v32 = vpop.permute.xlu1 %4482 }
 0x67f   :  { %1246 = vadd.xlane.f32.xlu0 %v1245_v51  ;;  %19440 = vst [vmem:[#allocation123_spill] sm:$0xff] %v14683_v32  ;;  %v14689_v51 = vmul.f32 %v14436_v33, %v14436_v33 }
 0x681   :  { %19441 = vst [vmem:[#allocation124_spill] sm:$0xff] %v14689_v51 }
 0x68f   :  { %11881 = vrot.lane.b32.xlu1 %v14440_v7, %s13514_s30 }
 0x692   :  { %v1241_v10 = vpop.xlane.xlu0 %1240 }
 0x693   :  { %11886 = vrot.lane.b32.xlu1 %v14440_v7, %s13513_s29  ;;  %v1323_v52 = vmax.f32 %v1241_v10, 1e-24  ;;  %v1122_v10 = vmax.f32 %v1078_v50, 1e-24 }
 0x695   :  { %2809 = vrot.lane.b32.xlu0 %v14681_v37, %s13512_s28  ;;  %12634 = vrsqrt.f32 %v1323_v52 }
 0x697   :  { %2811 = vrot.lane.b32.xlu1 %v14689_v51, %s13512_s28 }
 0x699   :  { %v1244_v3 = vpop.xlane.xlu1 %1243  ;;  %4488 = vrot.lane.b32.xlu0 %v14681_v37, %s13515_s7 }
 0x69a   :  { %v1324_v7 = vmax.f32 %v1244_v3, 1e-24 }
 0x69b   :  { %4490 = vrot.lane.b32.xlu1 %v14689_v51, %s13515_s7 }
 0x69c   :  { %12636 = vrsqrt.f32 %v1324_v7 }
 0x69d   :  { %12638 = vrsqrt.f32 %v1122_v10 }
 0x69f   :  { %v12635_v15 = vpop.eup %12634 }
 0x6a0   :  { %v1387_v62 = vmul.f32 %v12635_v15, %v14408_v46  ;;  %v14712_v15 = vpop.permute.xlu0 %2597 }
 0x6a2   :  { %v1423_v11 = vmul.f32 %v13797_v44, %v1387_v62  ;;  %v14716_v62 = vpop.permute.xlu1 %2599 }
 0x6a4   :  { %v14714_v50 = vpop.permute.xlu0 %4309 }
 0x6a6   :  { %v12637_v28 = vpop.eup %12636  ;;  %v14722_v10 = vpop.permute.xlu1 %4311 }
 0x6a7   :  { %v1388_v32 = vmul.f32 %v12637_v28, %v14414_v20  ;;  %v12639_v55 = vpop.eup %12638  ;;  %v1251_v28 = vsel %vm1072_vm6, %v14681_v37, 0.0  ;;  %19443 = vst [vmem:[#allocation126_spill] sm:$0xff] %v14722_v10 }
 0x6a8   :  { %v1154_v7 = vmul.f32 %v12639_v55, %v14394_v5 }
 0x6a9   :  { %v1424_v52 = vmul.f32 %v13797_v44, %v1388_v32  ;;  %v14720_v32 = vmul.f32 %v14442_v12, %v14442_v12 }
 0x6aa   :  { %v1174_v3 = vmul.f32 %v13769_v24, %v1154_v7 }
 0x6ab   :  { %v11164_v36 = vpack.c.bf16 %v1424_v52, %v1423_v11  ;;  %v1254_v11 = vsel %vm1072_vm6, %v14689_v51, 0.0  ;;  %19442 = vst [vmem:[#allocation125_spill] sm:$0xff] %v14720_v32  ;;  %v14728_v52 = vmul.f32 %v14446_v16, %v14446_v16 }
 0x6ad   :  { %11166 = vmatprep.subr.msk.bf16.mxu0 %vm14214_vm7, %v11164_v36  ;;  %19444 = vst [vmem:[#allocation127_spill] sm:$0xff] %v14728_v52 }
 0x6ae   :  { %11169 = vmatpush3.bf16.xpose.msk.msra.mxu0 %vm14214_vm7, %v11164_v36 }
 0x6b5   :  { %10435 = vmatmul.mubr.msk.f32.vlgmr.msra.gmra.mrb[4].mxu0 %vm1072_vm6, %v1174_v3 }
 0x6b8   :  { %1252 = vadd.xlane.f32.xlu0 %v1251_v28 }
 0x6bf   :  { %1255 = vadd.xlane.f32.xlu1 %v1254_v11 }
 0x6cb   :  { %v1081_v36 = vpop.xlane.xlu0 %1080 }
 0x6cc   :  { %v1123_v55 = vmax.f32 %v1081_v36, 1e-24 }
 0x6ce   :  { %12640 = vrsqrt.f32 %v1123_v55  ;;  %2813 = vrot.lane.b32.xlu0 %v14720_v32, %s13512_s28 }
 0x6d0   :  { %2815 = vrot.lane.b32.xlu1 %v14728_v52, %s13512_s28 }
 0x6d2   :  { %v1084_v7 = vpop.xlane.xlu1 %1083  ;;  %11891 = vrot.lane.b32.xlu0 %v14452_v42, %s13514_s30 }
 0x6d3   :  { %v1124_v3 = vmax.f32 %v1084_v7, 1e-24  ;;  %v1257_v7 = vsel %vm1072_vm6, %v14720_v32, 0.0 }
 0x6d4   :  { %4494 = vrot.lane.b32.xlu1 %v14728_v52, %s13515_s7 }
 0x6d5   :  { %12642 = vrsqrt.f32 %v1124_v3  ;;  %v14746_v3 = vpop.permute.xlu0 %2805 }
 0x6d6   :  { %4492 = vrot.lane.b32.xlu0 %v14720_v32, %s13515_s7 }
 0x6d8   :  { %v12641_v28 = vpop.eup %12640 }
 0x6d9   :  { %v1155_v11 = vmul.f32 %v12641_v28, %v14412_v40  ;;  %v1260_v28 = vsel %vm1072_vm6, %v14728_v52, 0.0 }
 0x6db   :  { %v1175_v36 = vmul.f32 %v13769_v24, %v1155_v11  ;;  %v14750_v11 = vpop.permute.xlu0 %11871 }
 0x6dc   :  { %19445 = vst [vmem:[#allocation128_spill] sm:$0xff] %v14750_v11 }
 0x6dd   :  { %10437 = vmatprep.mubr.msk.f32.mxu0 %vm1072_vm6, %v1175_v36  ;;  %v14752_v36 = vpop.permute.xlu1 %2807 }
 0x6df   :  { %v12643_v55 = vpop.eup %12642  ;;  %v14754_v20 = vpop.permute.xlu0 %4484 }
 0x6e0   :  { %v1156_v37 = vmul.f32 %v12643_v55, %v14418_v39 }
 0x6e1   :  { %v14756_v55 = vpop.permute.xlu1 %4486 }
 0x6e2   :  { %v1176_v51 = vmul.f32 %v13769_v24, %v1156_v37  ;;  %v14760_v37 = vmul.f32 %v14448_v2, %v14448_v2 }
 0x6e4   :  { %10438 = vmatmul.mubr.msk.f32.gmra.mrb[6].mxu0 %vm1072_vm6, %v1176_v51  ;;  %19446 = vst [vmem:[#allocation129_spill] sm:$0xff] %v14760_v37  ;;  %v14762_v51 = vpop.permute.xlu0 %11876 }
 0x6e5   :  { %19447 = vst [vmem:[#allocation130_spill] sm:$0xff] %v14762_v51 }
 0x6f5   :  { %1258 = vadd.xlane.f32.xlu0 %v1257_v7  ;;  %v14768_v7 = vmul.f32 %v14444_v59, %v14444_v59 }
 0x6f7   :  { %19448 = vst [vmem:[#allocation131_spill] sm:$0xff] %v14768_v7 }
 0x6f8   :  { %1261 = vadd.xlane.f32.xlu1 %v1260_v28 }
 0x709   :  { %2603 = vrot.lane.b32.xlu1 %v14760_v37, %s13512_s28 }
 0x70b   :  { %v1250_v28 = vpop.xlane.xlu1 %1249  ;;  %2601 = vrot.lane.b32.xlu0 %v14768_v7, %s13512_s28 }
 0x70c   :  { %v1326_v32 = vmax.f32 %v1250_v28, 1e-24  ;;  %v1247_v52 = vpop.xlane.xlu0 %1246 }
 0x70d   :  { %v1325_v39 = vmax.f32 %v1247_v52, 1e-24  ;;  %4315 = vrot.lane.b32.xlu1 %v14760_v37, %s13515_s7 }
 0x70e   :  { %12644 = vrsqrt.f32 %v1326_v32  ;;  %v1088_v32 = vsel %vm1072_vm6, %v14760_v37, 0.0 }
 0x70f   :  { %12646 = vrsqrt.f32 %v1325_v39  ;;  %4313 = vrot.lane.b32.xlu0 %v14768_v7, %s13515_s7  ;;  %v1085_v39 = vsel %vm1072_vm6, %v14768_v7, 0.0 }
 0x718   :  { %v12645_v51 = vpop.eup %12644 }
 0x719   :  { %v12647_v46 = vpop.eup %12646  ;;  %v1390_v40 = vmul.f32 %v12645_v51, %v14428_v31  ;;  %v14808_v51 = vmul.f32 %v14458_v19, %v14458_v19 }
 0x71a   :  { %v1389_v5 = vmul.f32 %v12647_v46, %v14426_v48  ;;  %v14788_v46 = vpop.permute.xlu1 %11881 }
 0x71b   :  { %v1426_v11 = vmul.f32 %v13797_v44, %v1390_v40  ;;  %19449 = vst [vmem:[#allocation132_spill] sm:$0xff] %v14788_v46  ;;  %v14790_v40 = vpop.permute.xlu0 %2809  ;;  %19452 = vst [vmem:[#allocation135_spill] sm:$0xff] %v14808_v51 }
 0x71c   :  { %v1425_v28 = vmul.f32 %v13797_v44, %v1389_v5 }
 0x71e   :  { %v11170_v42 = vpack.c.bf16 %v1426_v11, %v1425_v28  ;;  %v14792_v5 = vpop.permute.xlu1 %11886 }
 0x71f   :  { %19450 = vst [vmem:[#allocation133_spill] sm:$0xff] %v14792_v5  ;;  %v14794_v52 = vpop.permute.xlu0 %4488 }
 0x720   :  { %11172 = vmatprep.subr.msk.bf16.mxu0 %vm14214_vm7, %v11170_v42 }
 0x721   :  { %11175 = vmatpush3.bf16.xpose.msk.msra.mxu0 %vm14214_vm7, %v11170_v42  ;;  %v14802_v42 = vmul.f32 %v14454_v35, %v14454_v35 }
 0x722   :  { %v14796_v11 = vpop.permute.xlu1 %2811 }
 0x723   :  { %19451 = vst [vmem:[#allocation134_spill] sm:$0xff] %v14802_v42 }
 0x72e   :  { %1086 = vadd.xlane.f32.xlu0 %v1085_v39 }
 0x731   :  { %1089 = vadd.xlane.f32.xlu1 %v1088_v32  ;;  %v14812_v32 = vpop.permute.xlu1 %4490 }
 0x742   :  { %11896 = vrot.lane.b32.xlu1 %v14464_v30, %s13514_s30 }
 0x744   :  { %2817 = vrot.lane.b32.xlu0 %v14802_v42, %s13512_s28 }
 0x745   :  { %v1253_v28 = vpop.xlane.xlu0 %1252 }
 0x746   :  { %2819 = vrot.lane.b32.xlu1 %v14808_v51, %s13512_s28  ;;  %v1327_v39 = vmax.f32 %v1253_v28, 1e-24 }
 0x748   :  { %4496 = vrot.lane.b32.xlu0 %v14802_v42, %s13515_s7  ;;  %12648 = vrsqrt.f32 %v1327_v39 }
 0x74a   :  { %4498 = vrot.lane.b32.xlu1 %v14808_v51, %s13515_s7 }
 0x74c   :  { %v1256_v7 = vpop.xlane.xlu1 %1255 }
 0x74d   :  { %v1328_v37 = vmax.f32 %v1256_v7, 1e-24  ;;  %v1266_v7 = vsel %vm1072_vm6, %v14808_v51, 0.0 }
 0x74f   :  { %12650 = vrsqrt.f32 %v1328_v37  ;;  %v1263_v37 = vsel %vm1072_vm6, %v14802_v42, 0.0 }
 0x752   :  { %v12649_v5 = vpop.eup %12648 }
 0x753   :  { %v1391_v30 = vmul.f32 %v12649_v5, %v14434_v25 }
 0x755   :  { %v1427_v28 = vmul.f32 %v13797_v44, %v1391_v30 }
 0x759   :  { %v12651_v46 = vpop.eup %12650 }
 0x75a   :  { %v1392_v31 = vmul.f32 %v12651_v46, %v14436_v33  ;;  %v14830_v46 = vpop.permute.xlu0 %2813 }
 0x75b   :  { %19453 = vst [vmem:[#allocation136_spill] sm:$0xff] %v14830_v46 }
 0x75c   :  { %v1428_v48 = vmul.f32 %v13797_v44, %v1392_v31  ;;  %v14834_v31 = vpop.permute.xlu1 %2815 }
 0x75d   :  { %19455 = vst [vmem:[#allocation138_spill] sm:$0xff] %v14834_v31 }
 0x75e   :  { %v11176_v10 = vpack.c.bf16 %v1428_v48, %v1427_v28  ;;  %v14832_v30 = vpop.permute.xlu0 %11891  ;;  %v14838_v48 = vmul.f32 %v14456_v1, %v14456_v1 }
 0x75f   :  { %19454 = vst [vmem:[#allocation137_spill] sm:$0xff] %v14832_v30 }
 0x760   :  { %11178 = vmatprep.subr.msk.bf16.mxu0 %vm14214_vm7, %v11176_v10  ;;  %19456 = vst [vmem:[#allocation139_spill] sm:$0xff] %v14838_v48  ;;  %v14850_v39 = vpop.permute.xlu1 %4494 }
 0x761   :  { %11181 = vmatpush3.bf16.xpose.msk.msra.mxu0 %vm14214_vm7, %v11176_v10  ;;  %v14844_v10 = vmul.f32 %v14460_v38, %v14460_v38  ;;  %19459 = vst [vmem:[#allocation142_spill] sm:$0xff] %v14850_v39 }
 0x762   :  { %v14846_v5 = vpop.permute.xlu0 %4492 }
 0x763   :  { %19457 = vst [vmem:[#allocation140_spill] sm:$0xff] %v14844_v10  ;;  %19458 = vst [vmem:[#allocation141_spill] sm:$0xff] %v14846_v5 }
 0x767   :  { %1264 = vadd.xlane.f32.xlu0 %v1263_v37 }
 0x76e   :  { %1267 = vadd.xlane.f32.xlu1 %v1266_v7 }
 0x77d   :  { %2605 = vrot.lane.b32.xlu0 %v14838_v48, %s13512_s28 }
 0x77f   :  { %2607 = vrot.lane.b32.xlu1 %v14844_v10, %s13512_s28 }
 0x781   :  { %4317 = vrot.lane.b32.xlu0 %v14838_v48, %s13515_s7 }
 0x782   :  { %v1259_v28 = vpop.xlane.xlu0 %1258 }
 0x783   :  { %v1329_v37 = vmax.f32 %v1259_v28, 1e-24  ;;  %4319 = vrot.lane.b32.xlu1 %v14844_v10, %s13515_s7 }
 0x785   :  { %12652 = vrsqrt.f32 %v1329_v37  ;;  %v1262_v7 = vpop.xlane.xlu1 %1261 }
 0x786   :  { %v1330_v42 = vmax.f32 %v1262_v7, 1e-24 }
 0x788   :  { %12654 = vrsqrt.f32 %v1330_v42  ;;  %v14856_v51 = vpop.f32.mrb[4].mxu0  ;;  %v1091_v42 = vsel %vm1072_vm6, %v14838_v48, 0.0 }
 0x789   :  { %19460 = vst [vmem:[#allocation143_spill] sm:$0xff] %v14856_v51  ;;  %v14858_v30 = vpop.f32.mrb[5].mxu0 }
 0x78a   :  { %19461 = vst [vmem:[#allocation144_spill] sm:$0xff] %v14858_v30 }
 0x78f   :  { %v12653_v33 = vpop.eup %12652 }
 0x790   :  { %v1393_v25 = vmul.f32 %v12653_v33, %v14442_v12  ;;  %v1094_v33 = vsel %vm1072_vm6, %v14844_v10, 0.0 }
 0x792   :  { %v12655_v39 = vpop.eup %12654  ;;  %v1429_v5 = vmul.f32 %v13797_v44, %v1393_v25  ;;  %v14876_v25 = vmul.f32 %v14470_v8, %v14470_v8 }
 0x793   :  { %v1394_v31 = vmul.f32 %v12655_v39, %v14446_v16  ;;  %v14872_v39 = vpop.permute.xlu0 %2601  ;;  %v14935_v16 = vmul.f32 %v14480_v49, %v14480_v49 }
 0x794   :  { %19462 = vst [vmem:[#allocation145_spill] sm:$0xff] %v14876_v25 }
 0x795   :  { %v1430_v28 = vmul.f32 %v13797_v44, %v1394_v31  ;;  %19469 = vst [vmem:[#allocation152_spill] sm:$0xff] %v14935_v16 }
 0x797   :  { %v11182_v46 = vpack.c.bf16 %v1430_v28, %v1429_v5  ;;  %v14880_v31 = vpop.permute.xlu0 %4313  ;;  %v14894_v28 = vmul.f32 %v14472_v61, %v14472_v61 }
 0x799   :  { %11184 = vmatprep.subr.msk.bf16.mxu0 %vm14214_vm7, %v11182_v46  ;;  %19465 = vst [vmem:[#allocation148_spill] sm:$0xff] %v14894_v28 }
 0x79a   :  { %11187 = vmatpush3.bf16.xpose.msk.msra.mxu0 %vm14214_vm7, %v11182_v46 }
 0x7a0   :  { %1092 = vadd.xlane.f32.xlu0 %v1091_v42 }
 0x7a7   :  { %1095 = vadd.xlane.f32.xlu1 %v1094_v33 }
 0x7b6   :  { %2821 = vrot.lane.b32.xlu0 %v14876_v25, %s13512_s28 }
 0x7b7   :  { %v14882_v46 = vpop.f32.mrb[6].mxu0 }
 0x7b8   :  { %19463 = vst [vmem:[#allocation146_spill] sm:$0xff] %v14882_v46  ;;  %11901 = vrot.lane.b32.xlu1 %v14476_v57, %s13514_s30  ;;  %v14886_v5 = vpop.f32.mrb[7].mxu0  ;;  %v1272_v46 = vsel %vm1072_vm6, %v14894_v28, 0.0 }
 0x7b9   :  { %19464 = vst [vmem:[#allocation147_spill] sm:$0xff] %v14886_v5 }
 0x7ba   :  { %4500 = vrot.lane.b32.xlu0 %v14876_v25, %s13515_s7 }
 0x7bb   :  { %v1087_v37 = vpop.xlane.xlu0 %1086 }
 0x7bc   :  { %v1125_v7 = vmax.f32 %v1087_v37, 1e-24  ;;  %11906 = vrot.lane.b32.xlu1 %v14476_v57, %s13513_s29  ;;  %v1269_v37 = vsel %vm1072_vm6, %v14876_v25, 0.0 }
 0x7be   :  { %12656 = vrsqrt.f32 %v1125_v7  ;;  %v14905_v7 = vpop.permute.xlu1 %2603 }
 0x7bf   :  { %19466 = vst [vmem:[#allocation149_spill] sm:$0xff] %v14905_v7  ;;  %v14911_v5 = vpop.permute.xlu0 %2817 }
 0x7c0   :  { %2823 = vrot.lane.b32.xlu1 %v14894_v28, %s13512_s28 }
 0x7c2   :  { %v14907_v57 = vpop.permute.xlu1 %4315 }
 0x7c4   :  { %4502 = vrot.lane.b32.xlu1 %v14894_v28, %s13515_s7 }
 0x7c6   :  { %v1090_v10 = vpop.xlane.xlu1 %1089 }
 0x7c7   :  { %v1126_v12 = vmax.f32 %v1090_v10, 1e-24 }
 0x7c8   :  { %v12657_v42 = vpop.eup %12656 }
 0x7c9   :  { %v1157_v33 = vmul.f32 %v12657_v42, %v14444_v59 }
 0x7ca   :  { %v14913_v42 = vpop.permute.xlu1 %11896 }
 0x7cb   :  { %v1177_v48 = vmul.f32 %v13769_v24, %v1157_v33  ;;  %19467 = vst [vmem:[#allocation150_spill] sm:$0xff] %v14913_v42  ;;  %v14921_v33 = vpop.permute.xlu0 %4496 }
 0x7cd   :  { %10456 = vmatprep.mubr.msk.f32.mxu0 %vm1072_vm6, %v1177_v48  ;;  %v14917_v48 = vmul.f32 %v14478_v56, %v14478_v56 }
 0x7cf   :  { %19468 = vst [vmem:[#allocation151_spill] sm:$0xff] %v14917_v48  ;;  %v1275_v10 = vsel %vm1072_vm6, %v14917_v48, 0.0 }
 0x7d9   :  { %1270 = vadd.xlane.f32.xlu0 %v1269_v37  ;;  %v14923_v37 = vpop.permute.xlu1 %2819 }
 0x7dd   :  { %v14927_v28 = vpop.permute.xlu1 %4498 }
 0x7e8   :  { %1273 = vadd.xlane.f32.xlu1 %v1272_v46 }
 0x7ef   :  { %2825 = vrot.lane.b32.xlu0 %v14917_v48, %s13512_s28 }
 0x7f3   :  { %4504 = vrot.lane.b32.xlu0 %v14917_v48, %s13515_s7 }
 0x7f4   :  { %v1265_v25 = vpop.xlane.xlu0 %1264 }
 0x7f5   :  { %v1331_v46 = vmax.f32 %v1265_v25, 1e-24 }
 0x7f7   :  { %12658 = vrsqrt.f32 %v1331_v46 }
 0x7f9   :  { %11911 = vrot.lane.b32.xlu1 %v14484_v17, %s13514_s30 }
 0x7fb   :  { %v1268_v30 = vpop.xlane.xlu1 %1267 }
 0x7fc   :  { %v1332_v51 = vmax.f32 %v1268_v30, 1e-24 }
 0x7fd   :  { %11916 = vrot.lane.b32.xlu1 %v14484_v17, %s13513_s29 }
 0x7fe   :  { %12660 = vrsqrt.f32 %v1332_v51 }
 0x7ff   :  { %12662 = vrsqrt.f32 %v1126_v12 }
 0x801   :  { %2827 = vrot.lane.b32.xlu1 %v14935_v16, %s13512_s28  ;;  %v12659_v25 = vpop.eup %12658 }
 0x802   :  { %v1395_v46 = vmul.f32 %v12659_v25, %v14454_v35 }
 0x804   :  { %v1431_v51 = vmul.f32 %v13797_v44, %v1395_v46  ;;  %v14954_v46 = vpop.permute.xlu0 %2605 }
 0x805   :  { %4506 = vrot.lane.b32.xlu1 %v14935_v16, %s13515_s7 }
 0x808   :  { %v12661_v30 = vpop.eup %12660 }
 0x809   :  { %v1396_v59 = vmul.f32 %v12661_v30, %v14458_v19  ;;  %v12663_v7 = vpop.eup %12662 }
 0x80a   :  { %v1158_v12 = vmul.f32 %v12663_v7, %v14448_v2  ;;  %v14964_v7 = vpop.permute.xlu0 %4317 }
 0x80b   :  { %v1432_v17 = vmul.f32 %v13797_v44, %v1396_v59  ;;  %v1278_v59 = vsel %vm1072_vm6, %v14935_v16, 0.0  ;;  %19471 = vst [vmem:[#allocation154_spill] sm:$0xff] %v14964_v7 }
 0x80c   :  { %v1178_v25 = vmul.f32 %v13769_v24, %v1158_v12 }
 0x80d   :  { %v11188_v42 = vpack.c.bf16 %v1432_v17, %v1431_v51  ;;  %v14958_v17 = vmul.f32 %v14492_v45, %v14492_v45 }
 0x80f   :  { %11190 = vmatprep.subr.msk.bf16.mxu0 %vm14214_vm7, %v11188_v42  ;;  %19470 = vst [vmem:[#allocation153_spill] sm:$0xff] %v14958_v17 }
 0x810   :  { %11193 = vmatpush3.bf16.xpose.msk.msra.mxu0 %vm14214_vm7, %v11188_v42  ;;  %v14966_v42 = vpop.permute.xlu1 %2607 }
 0x812   :  { %1276 = vadd.xlane.f32.xlu0 %v1275_v10 }
 0x814   :  { %v14970_v12 = vpop.permute.xlu1 %4319 }
 0x815   :  { %19472 = vst [vmem:[#allocation155_spill] sm:$0xff] %v14970_v12 }
 0x817   :  { %10457 = vmatmul.mubr.msk.f32.vlgmr.msra.gmra.mrb[8].mxu0 %vm1072_vm6, %v1178_v25 }
 0x828   :  { %2829 = vrot.lane.b32.xlu0 %v14958_v17, %s13512_s28 }
 0x829   :  { %1279 = vadd.xlane.f32.xlu1 %v1278_v59 }
 0x82c   :  { %4508 = vrot.lane.b32.xlu0 %v14958_v17, %s13515_s7 }
 0x82d   :  { %v1093_v30 = vpop.xlane.xlu0 %1092 }
 0x82e   :  { %v1127_v51 = vmax.f32 %v1093_v30, 1e-24  ;;  %v14979_v30 = vmul.f32 %v14498_v54, %v14498_v54 }
 0x830   :  { %12664 = vrsqrt.f32 %v1127_v51  ;;  %19474 = vst [vmem:[#allocation157_spill] sm:$0xff] %v14979_v30 }
 0x834   :  { %v1096_v10 = vpop.xlane.xlu1 %1095 }
 0x835   :  { %v1128_v25 = vmax.f32 %v1096_v10, 1e-24  ;;  %v14999_v10 = vpop.permute.xlu0 %2821 }
 0x836   :  { %19476 = vst [vmem:[#allocation159_spill] sm:$0xff] %v14999_v10  ;;  %v19505_v10 = vld [vmem:[#allocation98_spill] sm:$0xff] }
 0x837   :  { %12666 = vrsqrt.f32 %v1128_v25 }
 0x838   :  { %v11902_v48 = vpop.permute.xlu1 %11901 }
 0x839   :  { %v11904_v2 = vunpack.i.h.bf16 %v11902_v48  ;;  %v11903_v19 = vunpack.i.l.bf16 %v11902_v48 }
 0x83a   :  { %v12665_v16 = vpop.eup %12664  ;;  %11921 = vrot.lane.b32.xlu1 %v14508_v13, %s13514_s30 }
 0x83b   :  { %v14974_v59 = vpack.c.bf16 %v11904_v2, %v11903_v19  ;;  %v1159_v7 = vmul.f32 %v12665_v16, %v14456_v1  ;;  %v1281_v19 = vsel %vm1072_vm6, %v14958_v17, 0.0 }
 0x83c   :  { %v15001_v25 = vpop.permute.xlu1 %11906 }
 0x83d   :  { %19473 = vst [vmem:[#allocation156_spill] sm:$0xff] %v14974_v59  ;;  %11275 = vmatprep.subr.bf16.mxu1 %v14974_v59  ;;  %v1179_v51 = vmul.f32 %v13769_v24, %v1159_v7  ;;  %v14995_v7 = vmul.f32 %v14494_v29, %v14494_v29  ;;  %19477 = vst [vmem:[#allocation160_spill] sm:$0xff] %v15001_v25  ;;  %v15015_v25 = vmul.f32 %v14504_v23, %v14504_v23 }
 0x83e   :  { %2831 = vrot.lane.b32.xlu1 %v14979_v30, %s13512_s28 }
 0x83f   :  { %10459 = vmatprep.mubr.msk.f32.mxu0 %vm1072_vm6, %v1179_v51  ;;  %19475 = vst [vmem:[#allocation158_spill] sm:$0xff] %v14995_v7  ;;  %v1284_v51 = vsel %vm1072_vm6, %v14979_v30, 0.0  ;;  %19481 = vst [vmem:[#allocation164_spill] sm:$0xff] %v15015_v25 }
 0x841   :  { %v12667_v48 = vpop.eup %12666 }
 0x842   :  { %4510 = vrot.lane.b32.xlu1 %v14979_v30, %s13515_s7  ;;  %v1160_v2 = vmul.f32 %v12667_v48, %v14460_v38  ;;  %v15007_v48 = vpop.permute.xlu0 %4500 }
 0x843   :  { %19478 = vst [vmem:[#allocation161_spill] sm:$0xff] %v15007_v48 }
 0x844   :  { %v1180_v16 = vmul.f32 %v13769_v24, %v1160_v2  ;;  %v15009_v2 = vpop.permute.xlu1 %2823 }
 0x845   :  { %19479 = vst [vmem:[#allocation162_spill] sm:$0xff] %v15009_v2 }
 0x846   :  { %10460 = vmatmul.mubr.msk.f32.gmra.mrb[10].mxu0 %vm1072_vm6, %v1180_v16 }
 0x848   :  { %v15011_v17 = vpop.permute.xlu1 %4502 }
 0x849   :  { %19480 = vst [vmem:[#allocation163_spill] sm:$0xff] %v15011_v17 }
 0x84b   :  { %1282 = vadd.xlane.f32.xlu0 %v1281_v19 }
 0x861   :  { %2609 = vrot.lane.b32.xlu0 %v14995_v7, %s13512_s28 }
 0x865   :  { %4321 = vrot.lane.b32.xlu0 %v14995_v7, %s13515_s7 }
 0x866   :  { %1285 = vadd.xlane.f32.xlu1 %v1284_v51  ;;  %v1271_v16 = vpop.xlane.xlu0 %1270 }
 0x867   :  { %v1333_v19 = vmax.f32 %v1271_v16, 1e-24 }
 0x869   :  { %12668 = vrsqrt.f32 %v1333_v19  ;;  %v1097_v19 = vsel %vm1072_vm6, %v14995_v7, 0.0 }
 0x873   :  { %v12669_v51 = vpop.eup %12668 }
 0x874   :  { %v1397_v30 = vmul.f32 %v12669_v51, %v14470_v8 }
 0x875   :  { %v1274_v59 = vpop.xlane.xlu1 %1273 }
 0x876   :  { %v1334_v12 = vmax.f32 %v1274_v59, 1e-24  ;;  %v1433_v1 = vmul.f32 %v13797_v44, %v1397_v30 }
 0x877   :  { %2611 = vrot.lane.b32.xlu1 %v15015_v25, %s13512_s28 }
 0x878   :  { %12670 = vrsqrt.f32 %v1334_v12  ;;  %v15033_v12 = vmul.f32 %v14514_v53, %v14514_v53 }
 0x87a   :  { %19482 = vst [vmem:[#allocation165_spill] sm:$0xff] %v15033_v12 }
 0x87b   :  { %4323 = vrot.lane.b32.xlu1 %v15015_v25, %s13515_s7 }
 0x882   :  { %v12671_v16 = vpop.eup %12670 }
 0x883   :  { %v1398_v38 = vmul.f32 %v12671_v16, %v14472_v61 }
 0x884   :  { %1098 = vadd.xlane.f32.xlu0 %v1097_v19 }
 0x885   :  { %v1434_v59 = vmul.f32 %v13797_v44, %v1398_v38  ;;  %v1100_v38 = vsel %vm1072_vm6, %v15015_v25, 0.0  ;;  %v15065_v25 = vmul.f32 %v14518_v58, %v14518_v58 }
 0x887   :  { %v11194_v13 = vpack.c.bf16 %v1434_v59, %v1433_v1  ;;  %v15041_v1 = vpop.permute.xlu1 %11911  ;;  %v15055_v59 = vmul.f32 %v14516_v0, %v14516_v0  ;;  %19486 = vst [vmem:[#allocation169_spill] sm:$0xff] %v15065_v25 }
 0x888   :  { %19483 = vst [vmem:[#allocation166_spill] sm:$0xff] %v15041_v1 }
 0x889   :  { %11196 = vmatprep.subr.msk.bf16.mxu0 %vm14214_vm7, %v11194_v13  ;;  %19485 = vst [vmem:[#allocation168_spill] sm:$0xff] %v15055_v59  ;;  %v1103_v8 = vsel %vm1072_vm6, %v15055_v59, 0.0 }
 0x88a   :  { %11199 = vmatpush3.bf16.xpose.msk.msra.mxu0 %vm14214_vm7, %v11194_v13  ;;  %v15045_v13 = vpop.permute.xlu0 %2825 }
 0x88b   :  { %v15047_v30 = vpop.permute.xlu1 %11916 }
 0x88c   :  { %19484 = vst [vmem:[#allocation167_spill] sm:$0xff] %v15047_v30 }
 0x88e   :  { %v15049_v51 = vpop.permute.xlu0 %4504 }
 0x88f   :  { %v15051_v16 = vpop.permute.xlu1 %2827 }
 0x893   :  { %v15059_v7 = vpop.permute.xlu1 %4506 }
 0x89a   :  { %2833 = vrot.lane.b32.xlu0 %v15033_v12, %s13512_s28 }
 0x89e   :  { %11926 = vrot.lane.b32.xlu0 %v14524_v27, %s13514_s30  ;;  %v1287_v27 = vsel %vm1072_vm6, %v15033_v12, 0.0 }
 0x89f   :  { %1101 = vadd.xlane.f32.xlu1 %v1100_v38  ;;  %v1277_v19 = vpop.xlane.xlu0 %1276 }
 0x8a0   :  { %v1335_v38 = vmax.f32 %v1277_v19, 1e-24 }
 0x8a2   :  { %4512 = vrot.lane.b32.xlu0 %v15033_v12, %s13515_s7  ;;  %12672 = vrsqrt.f32 %v1335_v38 }
 0x8ac   :  { %v12673_v19 = vpop.eup %12672 }
 0x8ad   :  { %v1399_v38 = vmul.f32 %v12673_v19, %v14478_v56 }
 0x8af   :  { %v1435_v35 = vmul.f32 %v13797_v44, %v1399_v38 }
 0x8b0   :  { %2613 = vrot.lane.b32.xlu1 %v15055_v59, %s13512_s28 }
 0x8b4   :  { %4325 = vrot.lane.b32.xlu1 %v15055_v59, %s13515_s7 }
 0x8b6   :  { %v1280_v30 = vpop.xlane.xlu1 %1279 }
 0x8b7   :  { %v1336_v1 = vmax.f32 %v1280_v30, 1e-24 }
 0x8b8   :  { %2835 = vrot.lane.b32.xlu1 %v15065_v25, %s13512_s28 }
 0x8b9   :  { %12674 = vrsqrt.f32 %v1336_v1 }
 0x8bc   :  { %4514 = vrot.lane.b32.xlu1 %v15065_v25, %s13515_s7 }
 0x8c1   :  { %1288 = vadd.xlane.f32.xlu0 %v1287_v27  ;;  %v15085_v27 = vmul.f32 %v14520_v14, %v14520_v14 }
 0x8c3   :  { %v12675_v61 = vpop.eup %12674  ;;  %19487 = vst [vmem:[#allocation170_spill] sm:$0xff] %v15085_v27 }
 0x8c4   :  { %v1400_v30 = vmul.f32 %v12675_v61, %v14480_v49  ;;  %v15097_v61 = vpop.permute.xlu0 %2829 }
 0x8c5   :  { %1104 = vadd.xlane.f32.xlu0 %v1103_v8  ;;  %v15091_v8 = vmul.f32 %v14526_v18, %v14526_v18  ;;  %19489 = vst [vmem:[#allocation172_spill] sm:$0xff] %v15097_v61 }
 0x8c6   :  { %v1436_v1 = vmul.f32 %v13797_v44, %v1400_v30 }
 0x8c7   :  { %19488 = vst [vmem:[#allocation171_spill] sm:$0xff] %v15091_v8 }
 0x8c8   :  { %v11200_v17 = vpack.c.bf16 %v1436_v1, %v1435_v35  ;;  %v1290_v35 = vsel %vm1072_vm6, %v15065_v25, 0.0  ;;  %v15103_v19 = vpop.permute.xlu0 %4508 }
 0x8c9   :  { %19491 = vst [vmem:[#allocation174_spill] sm:$0xff] %v15103_v19 }
 0x8ca   :  { %11202 = vmatprep.subr.msk.bf16.mxu0 %vm14214_vm7, %v11200_v17 }
 0x8cb   :  { %11205 = vmatpush3.bf16.xpose.msk.msra.mxu0 %vm14214_vm7, %v11200_v17  ;;  %v15099_v17 = vpop.permute.xlu1 %11921 }
 0x8cc   :  { %19490 = vst [vmem:[#allocation173_spill] sm:$0xff] %v15099_v17 }
 0x8cf   :  { %v15107_v38 = vpop.permute.xlu1 %2831 }
 0x8d3   :  { %v15113_v12 = vpop.permute.xlu1 %4510 }
 0x8d8   :  { %v1283_v1 = vpop.xlane.xlu0 %1282 }
 0x8db   :  { %4327 = vrot.lane.b32.xlu0 %v15085_v27, %s13515_s7 }
 0x8dc   :  { %v15123_v2 = vpop.permute.xlu0 %2609 }
 0x8df   :  { %2837 = vrot.lane.b32.xlu0 %v15091_v8, %s13512_s28 }
 0x8e0   :  { %1291 = vadd.xlane.f32.xlu1 %v1290_v35  ;;  %v1337_v35 = vmax.f32 %v1283_v1, 1e-24  ;;  %v1293_v1 = vsel %vm1072_vm6, %v15091_v8, 0.0 }
 0x8e2   :  { %12676 = vrsqrt.f32 %v1337_v35 }
 0x8e3   :  { %11931 = vrot.lane.b32.xlu0 %v14532_v22, %s13514_s30 }
 0x8e7   :  { %4516 = vrot.lane.b32.xlu0 %v15091_v8, %s13515_s7 }
 0x8ea   :  { %v15109_v30 = vpop.f32.mrb[8].mxu0 }
 0x8eb   :  { %19492 = vst [vmem:[#allocation175_spill] sm:$0xff] %v15109_v30  ;;  %v15111_v59 = vpop.f32.mrb[9].mxu0 }
 0x8ec   :  { %19493 = vst [vmem:[#allocation176_spill] sm:$0xff] %v15111_v59  ;;  %v12677_v22 = vpop.eup %12676 }
 0x8ed   :  { %v1401_v49 = vmul.f32 %v12677_v22, %v14492_v45  ;;  %v15129_v22 = vpop.permute.xlu0 %4321 }
 0x8ef   :  { %v1437_v30 = vmul.f32 %v13797_v44, %v1401_v49  ;;  %v1106_v49 = vsel %vm1072_vm6, %v15085_v27, 0.0 }
 0x8f1   :  { %2615 = vrot.lane.b32.xlu1 %v15085_v27, %s13512_s28 }
 0x8f3   :  { %v1286_v25 = vpop.xlane.xlu1 %1285 }
 0x8f4   :  { %v1338_v17 = vmax.f32 %v1286_v25, 1e-24 }
 0x8f6   :  { %12678 = vrsqrt.f32 %v1338_v17 }
 0x900   :  { %v12679_v56 = vpop.eup %12678 }
 0x901   :  { %v1402_v19 = vmul.f32 %v12679_v56, %v14498_v54 }
 0x903   :  { %v1438_v59 = vmul.f32 %v13797_v44, %v1402_v19  ;;  %v15139_v19 = vmul.f32 %v14534_v21, %v14534_v21 }
 0x905   :  { %v11206_v61 = vpack.c.bf16 %v1438_v59, %v1437_v30  ;;  %19496 = vst [vmem:[#allocation179_spill] sm:$0xff] %v15139_v19 }
 0x906   :  { %1294 = vadd.xlane.f32.xlu0 %v1293_v1  ;;  %v15150_v1 = vmul.f32 %v14528_v34, %v14528_v34 }
 0x907   :  { %11208 = vmatprep.subr.msk.bf16.mxu0 %vm14214_vm7, %v11206_v61 }
 0x908   :  { %11211 = vmatpush3.bf16.xpose.msk.msra.mxu0 %vm14214_vm7, %v11206_v61  ;;  %19497 = vst [vmem:[#allocation180_spill] sm:$0xff] %v15150_v1 }
 0x911   :  { %v1099_v56 = vpop.xlane.xlu0 %1098 }
 0x912   :  { %v1129_v25 = vmax.f32 %v1099_v56, 1e-24  ;;  %v1299_v56 = vsel %vm1072_vm6, %v15139_v19, 0.0 }
 0x914   :  { %12680 = vrsqrt.f32 %v1129_v25  ;;  %v15158_v25 = vpop.permute.xlu1 %2611 }
 0x915   :  { %1107 = vadd.xlane.f32.xlu1 %v1106_v49  ;;  %v15168_v27 = vpop.permute.xlu0 %2833 }
 0x918   :  { %v15160_v49 = vpop.permute.xlu1 %4323 }
 0x919   :  { %v15133_v17 = vpop.f32.mrb[10].mxu0 }
 0x91a   :  { %19494 = vst [vmem:[#allocation177_spill] sm:$0xff] %v15133_v17  ;;  %v15135_v59 = vpop.f32.mrb[11].mxu0 }
 0x91b   :  { %19495 = vst [vmem:[#allocation178_spill] sm:$0xff] %v15135_v59 }
 0x91c   :  { %2841 = vrot.lane.b32.xlu0 %v15139_v19, %s13512_s28 }
 0x91e   :  { %v12681_v61 = vpop.eup %12680 }
 0x91f   :  { %v1161_v30 = vmul.f32 %v12681_v61, %v14494_v29  ;;  %v1296_v61 = vsel %vm1072_vm6, %v15150_v1, 0.0 }
 0x920   :  { %4520 = vrot.lane.b32.xlu0 %v15139_v19, %s13515_s7 }
 0x921   :  { %v1181_v35 = vmul.f32 %v13769_v24, %v1161_v30 }
 0x923   :  { %10478 = vmatprep.mubr.msk.f32.mxu0 %vm1072_vm6, %v1181_v35  ;;  %v15166_v35 = vmul.f32 %v14542_v4, %v14542_v4 }
 0x925   :  { %19498 = vst [vmem:[#allocation181_spill] sm:$0xff] %v15166_v35 }
 0x926   :  { %2839 = vrot.lane.b32.xlu1 %v15150_v1, %s13512_s28 }
 0x92a   :  { %4518 = vrot.lane.b32.xlu1 %v15150_v1, %s13515_s7  ;;  %v15188_v1 = vmul.f32 %v14536_v41, %v14536_v41 }
 0x92c   :  { %v1102_v30 = vpop.xlane.xlu1 %1101  ;;  %19503 = vst [vmem:[#allocation186_spill] sm:$0xff] %v15188_v1 }
 0x92d   :  { %v1130_v29 = vmax.f32 %v1102_v30, 1e-24 }
 0x930   :  { %v15172_v19 = vpop.permute.xlu1 %2613 }
 0x931   :  { %19499 = vst [vmem:[#allocation182_spill] sm:$0xff] %v15172_v19  ;;  %v15201_v19 = vmul.f32 %v19505_v10, %v19505_v10 }
 0x933   :  { %19506 = vst [vmem:[#allocation188_spill] sm:$0xff] %v15201_v19 }
 0x934   :  { %v15178_v8 = vpop.permute.xlu1 %4325 }
 0x935   :  { %19501 = vst [vmem:[#allocation184_spill] sm:$0xff] %v15178_v8 }
 0x938   :  { %v15190_v17 = vpop.permute.xlu1 %2835 }
 0x939   :  { %19504 = vst [vmem:[#allocation187_spill] sm:$0xff] %v15190_v17 }
 0x93f   :  { %1300 = vadd.xlane.f32.xlu0 %v1299_v56  ;;  %v15176_v56 = vpop.permute.xlu0 %11926 }
 0x940   :  { %19500 = vst [vmem:[#allocation183_spill] sm:$0xff] %v15176_v56 }
 0x94e   :  { %1297 = vadd.xlane.f32.xlu1 %v1296_v61  ;;  %v15184_v61 = vpop.permute.xlu0 %4512 }
 0x94f   :  { %19502 = vst [vmem:[#allocation185_spill] sm:$0xff] %v15184_v61 }
 0x952   :  { %v1289_v56 = vpop.xlane.xlu0 %1288 }
 0x953   :  { %v1339_v8 = vmax.f32 %v1289_v56, 1e-24  ;;  %v1305_v56 = vsel %vm1072_vm6, %v15166_v35, 0.0 }
 0x955   :  { %2845 = vrot.lane.b32.xlu0 %v15166_v35, %s13512_s28  ;;  %12682 = vrsqrt.f32 %v1339_v8 }
 0x956   :  { %v1105_v45 = vpop.xlane.xlu0 %1104 }
 0x957   :  { %v1131_v54 = vmax.f32 %v1105_v45, 1e-24 }
 0x959   :  { %11941 = vrot.lane.b32.xlu0 %v14552_v6, %s13514_s30  ;;  %v15196_v6 = vpop.permute.xlu1 %4514 }
 0x95d   :  { %4524 = vrot.lane.b32.xlu0 %v15166_v35, %s13515_s7 }
 0x95f   :  { %11936 = vrot.lane.b32.xlu1 %v14540_v63, %s13514_s30  ;;  %v12683_v61 = vpop.eup %12682 }
 0x960   :  { %v1403_v17 = vmul.f32 %v12683_v61, %v14514_v53 }
 0x963   :  { %2843 = vrot.lane.b32.xlu1 %v15188_v1, %s13512_s28 }
 0x967   :  { %4522 = vrot.lane.b32.xlu1 %v15188_v1, %s13515_s7 }
 0x96d   :  { %v1292_v63 = vpop.xlane.xlu1 %1291 }
 0x96e   :  { %v1340_v59 = vmax.f32 %v1292_v63, 1e-24  ;;  %v1439_v63 = vmul.f32 %v13797_v44, %v1403_v17 }
 0x970   :  { %12684 = vrsqrt.f32 %v1340_v59 }
 0x971   :  { %12686 = vrsqrt.f32 %v1130_v29  ;;  %v1109_v29 = vsel %vm1072_vm6, %v15201_v19, 0.0 }
 0x972   :  { %12688 = vrsqrt.f32 %v1131_v54 }
 0x97a   :  { %v12685_v48 = vpop.eup %12684 }
 0x97b   :  { %v1404_v8 = vmul.f32 %v12685_v48, %v14518_v58  ;;  %v12687_v59 = vpop.eup %12686 }
 0x97c   :  { %1306 = vadd.xlane.f32.xlu0 %v1305_v56  ;;  %v12689_v30 = vpop.eup %12688  ;;  %v1162_v48 = vmul.f32 %v12687_v59, %v14504_v23  ;;  %v19517_v23 = vld [vmem:[#allocation105_spill] sm:$0xff] }
 0x97d   :  { %v1440_v45 = vmul.f32 %v13797_v44, %v1404_v8  ;;  %v1163_v61 = vmul.f32 %v12689_v30, %v14516_v0  ;;  %v1302_v8 = vsel %vm1072_vm6, %v15188_v1, 0.0  ;;  %v19510_v30 = vld [vmem:[#allocation99_spill] sm:$0xff]  ;;  %v15255_v1 = vpop.permute.xlu0 %4327 }
 0x97e   :  { %v1182_v17 = vmul.f32 %v13769_v24, %v1162_v48  ;;  %v15240_v48 = vmul.f32 %v19510_v30, %v19510_v30  ;;  %19514 = vst [vmem:[#allocation192_spill] sm:$0xff] %v15255_v1 }
 0x97f   :  { %v11212_v54 = vpack.c.bf16 %v1440_v45, %v1439_v63  ;;  %v1183_v56 = vmul.f32 %v13769_v24, %v1163_v61  ;;  %v19507_v63 = vld [vmem:[#allocation102_spill] sm:$0xff] }
 0x980   :  { %1110 = vadd.xlane.f32.xlu0 %v1109_v29  ;;  %v15224_v45 = vmul.f32 %v19507_v63, %v19507_v63  ;;  %v19509_v29 = vld [vmem:[#allocation106_spill] sm:$0xff]  ;;  %19511 = vst [vmem:[#allocation190_spill] sm:$0xff] %v15240_v48 }
 0x981   :  { %11214 = vmatprep.subr.msk.bf16.mxu0 %vm14214_vm7, %v11212_v54 }
 0x982   :  { %11217 = vmatpush3.bf16.xpose.msk.msra.mxu0 %vm14214_vm7, %v11212_v54  ;;  %19508 = vst [vmem:[#allocation189_spill] sm:$0xff] %v15224_v45  ;;  %v15232_v54 = vpop.permute.xlu1 %2615 }
 0x989   :  { %10479 = vmatmul.mubr.msk.f32.vlgmr.msra.gmra.mrb[12].mxu0 %vm1072_vm6, %v1182_v17 }
 0x98a   :  { %10481 = vmatprep.mubr.msk.f32.mxu0 %vm1072_vm6, %v1183_v56 }
 0x98b   :  { %1303 = vadd.xlane.f32.xlu1 %v1302_v8 }
 0x996   :  { %2849 = vrot.lane.b32.xlu0 %v15224_v45, %s13512_s28 }
 0x99a   :  { %11946 = vrot.lane.b32.xlu0 %v19509_v29, %s13514_s30  ;;  %v15259_v29 = vpop.permute.xlu0 %2837 }
 0x99c   :  { %2617 = vrot.lane.b32.xlu1 %v15201_v19, %s13512_s28 }
 0x99e   :  { %4528 = vrot.lane.b32.xlu0 %v15224_v45, %s13515_s7 }
 0x9a0   :  { %4329 = vrot.lane.b32.xlu1 %v15201_v19, %s13515_s7  ;;  %v19512_v19 = vld [vmem:[#allocation103_spill] sm:$0xff] }
 0x9a1   :  { %v15251_v35 = vmul.f32 %v19512_v19, %v19512_v19 }
 0x9a2   :  { %v1108_v59 = vpop.xlane.xlu1 %1107 }
 0x9a3   :  { %v1132_v61 = vmax.f32 %v1108_v59, 1e-24  ;;  %19513 = vst [vmem:[#allocation191_spill] sm:$0xff] %v15251_v35  ;;  %v1311_v59 = vsel %vm1072_vm6, %v15224_v45, 0.0 }
 0x9a4   :  { %2847 = vrot.lane.b32.xlu1 %v15240_v48, %s13512_s28 }
 0x9a5   :  { %12690 = vrsqrt.f32 %v1132_v61  ;;  %v1115_v61 = vsel %vm1072_vm6, %v15251_v35, 0.0 }
 0x9a6   :  { %v15267_v0 = vpop.permute.xlu1 %2839 }
 0x9a8   :  { %4526 = vrot.lane.b32.xlu1 %v15240_v48, %s13515_s7 }
 0x9af   :  { %v12691_v17 = vpop.eup %12690 }
 0x9b0   :  { %v1164_v56 = vmul.f32 %v12691_v17, %v14520_v14  ;;  %v15261_v17 = vpop.permute.xlu0 %11931  ;;  %v15273_v14 = vpop.permute.xlu1 %4518 }
 0x9b1   :  { %19515 = vst [vmem:[#allocation193_spill] sm:$0xff] %v15261_v17 }
 0x9b2   :  { %v1184_v8 = vmul.f32 %v13769_v24, %v1164_v56  ;;  %v1308_v56 = vsel %vm1072_vm6, %v15240_v48, 0.0 }
 0x9b4   :  { %10482 = vmatmul.mubr.msk.f32.gmra.mrb[14].mxu0 %vm1072_vm6, %v1184_v8  ;;  %v15265_v8 = vpop.permute.xlu0 %4516 }
 0x9b5   :  { %19516 = vst [vmem:[#allocation194_spill] sm:$0xff] %v15265_v8 }
 0x9b8   :  { %v1295_v45 = vpop.xlane.xlu0 %1294 }
 0x9b9   :  { %v1341_v1 = vmax.f32 %v1295_v45, 1e-24 }
 0x9bb   :  { %12692 = vrsqrt.f32 %v1341_v1 }
 0x9bc   :  { %v15288_v17 = vpop.permute.xlu0 %2841 }
 0x9bd   :  { %1312 = vadd.xlane.f32.xlu0 %v1311_v59  ;;  %v15271_v59 = vmul.f32 %v19517_v23, %v19517_v23  ;;  %19521 = vst [vmem:[#allocation197_spill] sm:$0xff] %v15288_v17 }
 0x9bf   :  { %19518 = vst [vmem:[#allocation195_spill] sm:$0xff] %v15271_v59 }
 0x9c0   :  { %v15293_v8 = vpop.permute.xlu0 %4520 }
 0x9c1   :  { %1116 = vadd.xlane.f32.xlu0 %v1115_v61 }
 0x9c5   :  { %v12693_v45 = vpop.eup %12692 }
 0x9c6   :  { %v1405_v58 = vmul.f32 %v12693_v45, %v14526_v18  ;;  %v19522_v18 = vld [vmem:[#allocation107_spill] sm:$0xff] }
 0x9c7   :  { %v2897_v17 = vsel %vm1072_vm6, %v19522_v18, 0.0  ;;  %v4353_v18 = vsel %vm1072_vm6, %v14648_v60, 0.0  ;;  %v2909_v60 = vsel %vm1072_vm6, %v14746_v3, 0.0 }
 0x9c8   :  { %v1441_v63 = vmul.f32 %v13797_v44, %v1405_v58 }
 0x9cc   :  { %1309 = vadd.xlane.f32.xlu1 %v1308_v56  ;;  %v19519_v56 = vld [vmem:[#allocation100_spill] sm:$0xff] }
 0x9cd   :  { %v15281_v48 = vmul.f32 %v19519_v56, %v19519_v56 }
 0x9cf   :  { %19520 = vst [vmem:[#allocation196_spill] sm:$0xff] %v15281_v48 }
 0x9d7   :  { %2623 = vrot.lane.b32.xlu0 %v15271_v59, %s13512_s28 }
 0x9db   :  { %v1298_v61 = vpop.xlane.xlu1 %1297  ;;  %4335 = vrot.lane.b32.xlu0 %v15271_v59, %s13515_s7 }
 0x9dc   :  { %v1342_v53 = vmax.f32 %v1298_v61, 1e-24 }
 0x9dd   :  { %2619 = vrot.lane.b32.xlu1 %v15281_v48, %s13512_s28 }
 0x9de   :  { %12694 = vrsqrt.f32 %v1342_v53  ;;  %v1301_v53 = vpop.xlane.xlu0 %1300 }
 0x9e1   :  { %4331 = vrot.lane.b32.xlu1 %v15281_v48, %s13515_s7 }
 0x9e2   :  { %v15299_v45 = vpop.permute.xlu0 %2845 }
 0x9e8   :  { %v12695_v1 = vpop.eup %12694 }
 0x9e9   :  { %v1406_v23 = vmul.f32 %v12695_v1, %v14528_v34  ;;  %v19523_v1 = vld [vmem:[#allocation111_spill] sm:$0xff] }
 0x9ea   :  { %v4576_v58 = vsel %vm1072_vm6, %v19523_v1, 0.0 }
 0x9eb   :  { %v1442_v56 = vmul.f32 %v13797_v44, %v1406_v23  ;;  %v15305_v23 = vpop.permute.xlu0 %11941 }
 0x9ec   :  { %19524 = vst [vmem:[#allocation107_spill] sm:$0xff] %v15305_v23 }
 0x9ed   :  { %v11218_v61 = vpack.c.bf16 %v1442_v56, %v1441_v63  ;;  %v2641_v63 = vsel %vm1072_vm6, %v14634_v47, 0.0  ;;  %v1112_v56 = vsel %vm1072_vm6, %v15281_v48, 0.0 }
 0x9ef   :  { %11220 = vmatprep.subr.msk.bf16.mxu0 %vm14214_vm7, %v11218_v61 }
 0x9f0   :  { %11223 = vmatpush3.bf16.xpose.msk.msra.mxu0 %vm14214_vm7, %v11218_v61  ;;  %v15311_v61 = vpop.permute.xlu0 %4524 }
 0x9fa   :  { %2898 = vadd.xlane.f32.xlu0 %v2897_v17  ;;  %v15315_v17 = vpop.permute.xlu1 %11936 }
 0x9fe   :  { %4577 = vadd.xlane.f32.xlu0 %v4576_v58  ;;  %v2903_v58 = vsel %vm1072_vm6, %v14667_v9, 0.0  ;;  %v15323_v48 = vpop.permute.xlu1 %2843  ;;  %v4588_v9 = vsel %vm1072_vm6, %v14754_v20, 0.0 }
 0xa02   :  { %2642 = vadd.xlane.f32.xlu0 %v2641_v63  ;;  %v4582_v63 = vsel %vm1072_vm6, %v14671_v43, 0.0 }
 0xa05   :  { %1113 = vadd.xlane.f32.xlu1 %v1112_v56  ;;  %v1343_v56 = vmax.f32 %v1301_v53, 1e-24  ;;  %v19525_v53 = vld [vmem:[#allocation104_spill] sm:$0xff] }
 0xa06   :  { %4354 = vadd.xlane.f32.xlu0 %v4353_v18  ;;  %v15327_v18 = vpop.permute.xlu1 %4522  ;;  %v15340_v20 = vmul.f32 %v19525_v53, %v19525_v53 }
 0xa08   :  { %19526 = vst [vmem:[#allocation111_spill] sm:$0xff] %v15340_v20 }
 0xa09   :  { %v15317_v1 = vpop.xlane.xlu0 %1306 }
 0xa0a   :  { %2904 = vadd.xlane.f32.xlu0 %v2903_v58 }
 0xa0d   :  { %v1111_v47 = vpop.xlane.xlu0 %1110 }
 0xa0e   :  { %v1133_v23 = vmax.f32 %v1111_v47, 1e-24  ;;  %4583 = vadd.xlane.f32.xlu0 %v4582_v63  ;;  %v4591_v63 = vsel %vm1072_vm6, %v14756_v55, 0.0  ;;  %v4594_v55 = vsel %vm1072_vm6, %v14794_v52, 0.0  ;;  %v4597_v52 = vsel %vm1072_vm6, %v14812_v32, 0.0 }
 0xa10   :  { %12696 = vrsqrt.f32 %v1133_v23  ;;  %v2912_v23 = vsel %vm1072_vm6, %v14752_v36, 0.0 }
 0xa11   :  { %12698 = vrsqrt.f32 %v1343_v56  ;;  %v2915_v56 = vsel %vm1072_vm6, %v14790_v40, 0.0  ;;  %v2918_v40 = vsel %vm1072_vm6, %v14796_v11, 0.0  ;;  %v2927_v11 = vsel %vm1072_vm6, %v14911_v5, 0.0 }
 0xa12   :  { %2910 = vadd.xlane.f32.xlu0 %v2909_v60  ;;  %v2930_v5 = vsel %vm1072_vm6, %v14923_v37, 0.0  ;;  %v2662_v37 = vsel %vm1072_vm6, %v14966_v42, 0.0  ;;  %v19529_v42 = vld [vmem:[#allocation116_spill] sm:$0xff] }
 0xa16   :  { %2621 = vrot.lane.b32.xlu1 %v15251_v35, %s13512_s28  ;;  %4589 = vadd.xlane.f32.xlu0 %v4588_v9 }
 0xa18   :  { %v1304_v43 = vpop.xlane.xlu1 %1303 }
 0xa19   :  { %v1344_v58 = vmax.f32 %v1304_v43, 1e-24 }
 0xa1a   :  { %v12697_v47 = vpop.eup %12696  ;;  %4333 = vrot.lane.b32.xlu1 %v15251_v35, %s13515_s7  ;;  %2913 = vadd.xlane.f32.xlu0 %v2912_v23 }
 0xa1b   :  { %12700 = vrsqrt.f32 %v1344_v58  ;;  %v1165_v3 = vmul.f32 %v12697_v47, %v19505_v10  ;;  %v12699_v36 = vpop.eup %12698 }
 0xa1c   :  { %v1407_v9 = vmul.f32 %v12699_v36, %v14534_v21  ;;  %v15372_v36 = vpop.permute.xlu0 %2849 }
 0xa1d   :  { %v1185_v60 = vmul.f32 %v13769_v24, %v1165_v3 }
 0xa1e   :  { %2851 = vrot.lane.b32.xlu1 %v15340_v20, %s13512_s28  ;;  %4592 = vadd.xlane.f32.xlu0 %v4591_v63  ;;  %v1443_v23 = vmul.f32 %v13797_v44, %v1407_v9  ;;  %v2653_v63 = vsel %vm1072_vm6, %v14872_v39, 0.0  ;;  %v2659_v39 = vsel %vm1072_vm6, %v14954_v46, 0.0  ;;  %v15380_v9 = vpop.permute.xlu1 %2617  ;;  %v4609_v46 = vsel %vm1072_vm6, %v14927_v28, 0.0 }
 0xa1f   :  { %10500 = vmatprep.mubr.msk.f32.mxu0 %vm1072_vm6, %v1185_v60  ;;  %v4368_v60 = vsel %vm1072_vm6, %v14907_v57, 0.0  ;;  %v1314_v57 = vsel %vm1072_vm6, %v15340_v20, 0.0 }
 0xa20   :  { %v15376_v32 = vpop.permute.xlu0 %11946 }
 0xa22   :  { %4530 = vrot.lane.b32.xlu1 %v15340_v20, %s13515_s7  ;;  %2916 = vadd.xlane.f32.xlu0 %v2915_v56  ;;  %v4606_v56 = vsel %vm1072_vm6, %v14921_v33, 0.0  ;;  %v15388_v33 = vpop.permute.xlu1 %4329 }
 0xa25   :  { %v12701_v43 = vpop.eup %12700 }
 0xa26   :  { %4595 = vadd.xlane.f32.xlu0 %v4594_v55  ;;  %v1408_v58 = vmul.f32 %v12701_v43, %v14536_v41  ;;  %v15386_v43 = vpop.permute.xlu0 %4528  ;;  %v1118_v55 = vsel %vm1072_vm6, %v15271_v59, 0.0 }
 0xa28   :  { %v1444_v47 = vmul.f32 %v13797_v44, %v1408_v58 }
 0xa2a   :  { %2919 = vadd.xlane.f32.xlu0 %v2918_v40  ;;  %v11224_v3 = vpack.c.bf16 %v1444_v47, %v1443_v23  ;;  %v19527_v23 = vld [vmem:[#allocation110_spill] sm:$0xff] }
 0xa2b   :  { %v2900_v47 = vsel %vm1072_vm6, %v19527_v23, 0.0 }
 0xa2c   :  { %11226 = vmatprep.subr.msk.bf16.mxu0 %vm14214_vm7, %v11224_v3 }
 0xa2d   :  { %11229 = vmatpush3.bf16.xpose.msk.msra.mxu0 %vm14214_vm7, %v11224_v3  ;;  %v15400_v3 = vpop.permute.xlu1 %2847 }
 0xa2e   :  { %4598 = vadd.xlane.f32.xlu0 %v4597_v52 }
 0xa32   :  { %2654 = vadd.xlane.f32.xlu0 %v2653_v63  ;;  %v19528_v63 = vld [vmem:[#allocation113_spill] sm:$0xff] }
 0xa33   :  { %v4579_v28 = vsel %vm1072_vm6, %v19528_v63, 0.0  ;;  %v2665_v63 = vsel %vm1072_vm6, %v15123_v2, 0.0  ;;  %v2948_v2 = vsel %vm1072_vm6, %v15107_v38, 0.0  ;;  %v19533_v38 = vld [vmem:[#allocation126_spill] sm:$0xff] }
 0xa36   :  { %4369 = vadd.xlane.f32.xlu0 %v4368_v60  ;;  %v2939_v60 = vsel %vm1072_vm6, %v15045_v13, 0.0  ;;  %v2942_v13 = vsel %vm1072_vm6, %v15051_v16, 0.0  ;;  %v4359_v16 = vsel %vm1072_vm6, %v14714_v50, 0.0  ;;  %v19532_v50 = vld [vmem:[#allocation123_spill] sm:$0xff] }
 0xa3a   :  { %2928 = vadd.xlane.f32.xlu0 %v2927_v11  ;;  %v1345_v11 = vmax.f32 %v15317_v1, 1e-24 }
 0xa3e   :  { %4607 = vadd.xlane.f32.xlu0 %v4606_v56  ;;  %v15407_v56 = vpop.permute.xlu1 %4526 }
 0xa42   :  { %2660 = vadd.xlane.f32.xlu0 %v2659_v39  ;;  %v2644_v39 = vsel %vm1072_vm6, %v19529_v42, 0.0 }
 0xa46   :  { %1315 = vadd.xlane.f32.xlu1 %v1314_v57  ;;  %2931 = vadd.xlane.f32.xlu0 %v2930_v5  ;;  %v4618_v57 = vsel %vm1072_vm6, %v15049_v51, 0.0 }
 0xa4a   :  { %1119 = vadd.xlane.f32.xlu1 %v1118_v55  ;;  %4610 = vadd.xlane.f32.xlu0 %v4609_v46  ;;  %v15394_v58 = vpop.xlane.xlu0 %1312  ;;  %v19530_v55 = vld [vmem:[#allocation118_spill] sm:$0xff] }
 0xa4b   :  { %v4356_v46 = vsel %vm1072_vm6, %v19530_v55, 0.0 }
 0xa4e   :  { %2901 = vadd.xlane.f32.xlu1 %v2900_v47  ;;  %2663 = vadd.xlane.f32.xlu0 %v2662_v37  ;;  %v1117_v40 = vpop.xlane.xlu0 %1116 }
 0xa4f   :  { %v1135_v52 = vmax.f32 %v1117_v40, 1e-24  ;;  %v2647_v40 = vsel %vm1072_vm6, %v14712_v15, 0.0  ;;  %v4377_v15 = vsel %vm1072_vm6, %v15129_v22, 0.0 }
 0xa51   :  { %12702 = vrsqrt.f32 %v1135_v52  ;;  %v4621_v52 = vsel %vm1072_vm6, %v15059_v7, 0.0 }
 0xa52   :  { %4580 = vadd.xlane.f32.xlu1 %v4579_v28  ;;  %2940 = vadd.xlane.f32.xlu0 %v2939_v60  ;;  %12704 = vrsqrt.f32 %v1345_v11  ;;  %v19531_v60 = vld [vmem:[#allocation121_spill] sm:$0xff] }
 0xa53   :  { %v2906_v11 = vsel %vm1072_vm6, %v19531_v60, 0.0  ;;  %v19536_v60 = vld [vmem:[#allocation182_spill] sm:$0xff] }
 0xa56   :  { %2645 = vadd.xlane.f32.xlu1 %v2644_v39  ;;  %4619 = vadd.xlane.f32.xlu0 %v4618_v57  ;;  %v4585_v57 = vsel %vm1072_vm6, %v19532_v50, 0.0 }
 0xa59   :  { %v1310_v5 = vpop.xlane.xlu1 %1309 }
 0xa5a   :  { %v1346_v23 = vmax.f32 %v1310_v5, 1e-24  ;;  %4357 = vadd.xlane.f32.xlu1 %v4356_v46  ;;  %2943 = vadd.xlane.f32.xlu0 %v2942_v13  ;;  %v2650_v46 = vsel %vm1072_vm6, %v14716_v62, 0.0  ;;  %v4627_v13 = vsel %vm1072_vm6, %v15113_v12, 0.0  ;;  %v4380_v62 = vsel %vm1072_vm6, %v15160_v49, 0.0  ;;  %v19535_v12 = vld [vmem:[#allocation141_spill] sm:$0xff] }
 0xa5b   :  { %v12703_v1 = vpop.eup %12702  ;;  %v19537_v49 = vld [vmem:[#allocation138_spill] sm:$0xff] }
 0xa5c   :  { %12706 = vrsqrt.f32 %v1346_v23  ;;  %v15417_v47 = vpop.f32.mrb[12].mxu0  ;;  %v15420_v37 = vmul.f32 %v12703_v1, %v19512_v19  ;;  %v12705_v28 = vpop.eup %12704  ;;  %v4362_v23 = vsel %vm1072_vm6, %v19533_v38, 0.0  ;;  %v2668_v1 = vsel %vm1072_vm6, %v15158_v25, 0.0 }
 0xa5d   :  { %v15422_v51 = vpop.f32.mrb[13].mxu0  ;;  %v1409_v42 = vmul.f32 %v12705_v28, %v14542_v4  ;;  %v2624_v28 = vpop.permute.xlu0 %2623  ;;  %v4365_v25 = vsel %vm1072_vm6, %v14880_v31, 0.0  ;;  %v2960_v31 = vsel %vm1072_vm6, %v15267_v0, 0.0 }
 0xa5e   :  { %2648 = vadd.xlane.f32.xlu1 %v2647_v40  ;;  %4622 = vadd.xlane.f32.xlu0 %v4621_v52  ;;  %v19534_v40 = vld [vmem:[#allocation136_spill] sm:$0xff]  ;;  %v15494_v38 = vpop.permute.xlu1 %2619 }
 0xa5f   :  { %v1445_v5 = vmul.f32 %v13797_v44, %v1409_v42  ;;  %v2921_v52 = vsel %vm1072_vm6, %v19534_v40, 0.0  ;;  %v4633_v42 = vsel %vm1072_vm6, %v15196_v6, 0.0 }
 0xa62   :  { %4360 = vadd.xlane.f32.xlu1 %v4359_v16  ;;  %2666 = vadd.xlane.f32.xlu0 %v2665_v63  ;;  %v4600_v16 = vsel %vm1072_vm6, %v19535_v12, 0.0  ;;  %v2951_v63 = vsel %vm1072_vm6, %v15168_v27, 0.0  ;;  %v15472_v27 = vpop.permute.xlu0 %4335  ;;  %v19544_v12 = vld [vmem:[#allocation162_spill] sm:$0xff] }
 0xa63   :  { %19538 = vst [vmem:[#allocation110_spill] sm:$0xff] %v15472_v27 }
 0xa66   :  { %v12707_v7 = vpop.eup %12706  ;;  %2907 = vadd.xlane.f32.xlu1 %v2906_v11  ;;  %4378 = vadd.xlane.f32.xlu0 %v4377_v15  ;;  %v2671_v11 = vsel %vm1072_vm6, %v19536_v60, 0.0  ;;  %v2924_v15 = vsel %vm1072_vm6, %v19537_v49, 0.0  ;;  %v19545_v60 = vld [vmem:[#allocation163_spill] sm:$0xff] }
 0xa67   :  { %v1410_v39 = vmul.f32 %v12707_v7, %v19510_v30  ;;  %v19539_v7 = vld [vmem:[#allocation142_spill] sm:$0xff] }
 0xa69   :  { %v1446_v55 = vmul.f32 %v13797_v44, %v1410_v39  ;;  %v4603_v39 = vsel %vm1072_vm6, %v19539_v7, 0.0 }
 0xa6a   :  { %4586 = vadd.xlane.f32.xlu1 %v4585_v57  ;;  %2949 = vadd.xlane.f32.xlu0 %v2948_v2 }
 0xa6b   :  { %v11230_v22 = vpack.c.bf16 %v1446_v55, %v1445_v5  ;;  %v19540_v5 = vld [vmem:[#allocation149_spill] sm:$0xff]  ;;  %v4639_v55 = vsel %vm1072_vm6, %v15273_v14, 0.0  ;;  %v2677_v14 = vsel %vm1072_vm6, %v15380_v9, 0.0  ;;  %v4615_v9 = vsel %vm1072_vm6, %v19545_v60, 0.0 }
 0xa6c   :  { %v2656_v6 = vsel %vm1072_vm6, %v19540_v5, 0.0 }
 0xa6d   :  { %11232 = vmatprep.subr.msk.bf16.mxu0 %vm14214_vm7, %v11230_v22 }
 0xa6e   :  { %2651 = vadd.xlane.f32.xlu1 %v2650_v46  ;;  %4628 = vadd.xlane.f32.xlu0 %v4627_v13  ;;  %v19541_v46 = vld [vmem:[#allocation159_spill] sm:$0xff]  ;;  %v4645_v13 = vsel %vm1072_vm6, %v15327_v18, 0.0  ;;  %v2936_v18 = vsel %vm1072_vm6, %v19544_v12, 0.0 }
 0xa6f   :  { %11235 = vmatpush3.bf16.xpose.msk.msra.mxu0 %vm14214_vm7, %v11230_v22  ;;  %v2933_v0 = vsel %vm1072_vm6, %v19541_v46, 0.0 }
 0xa72   :  { %4363 = vadd.xlane.f32.xlu1 %v4362_v23  ;;  %2669 = vadd.xlane.f32.xlu0 %v2668_v1  ;;  %v19542_v1 = vld [vmem:[#allocation161_spill] sm:$0xff] }
 0xa73   :  { %v4612_v40 = vsel %vm1072_vm6, %v19542_v1, 0.0  ;;  %v2686_v1 = vsel %vm1072_vm6, %v2624_v28, 0.0  ;;  %v2674_v28 = vsel %vm1072_vm6, %v15232_v54, 0.0  ;;  %v19552_v54 = vld [vmem:[#allocation58_spill] sm:$0xff] }
 0xa76   :  { %2922 = vadd.xlane.f32.xlu1 %v2921_v52  ;;  %4381 = vadd.xlane.f32.xlu0 %v4380_v62  ;;  %v15502_v62 = vpop.permute.xlu1 %4331 }
 0xa7a   :  { %4601 = vadd.xlane.f32.xlu1 %v4600_v16  ;;  %2952 = vadd.xlane.f32.xlu0 %v2951_v63  ;;  %v2972_v16 = vsel %vm1072_vm6, %v15400_v3, 0.0  ;;  %v2975_v3 = vsel %vm1072_vm6, %v15372_v36, 0.0 }
 0xa7e   :  { %4366 = vadd.xlane.f32.xlu1 %v4365_v25  ;;  %2672 = vadd.xlane.f32.xlu0 %v2671_v11  ;;  %v4651_v11 = vsel %vm1072_vm6, %v15407_v56, 0.0 }
 0xa82   :  { %2925 = vadd.xlane.f32.xlu1 %v2924_v15  ;;  %4634 = vadd.xlane.f32.xlu0 %v4633_v42  ;;  %v19546_v15 = vld [vmem:[#allocation172_spill] sm:$0xff] }
 0xa83   :  { %v2945_v42 = vsel %vm1072_vm6, %v19546_v15, 0.0 }
 0xa86   :  { %4604 = vadd.xlane.f32.xlu1 %v4603_v39  ;;  %2961 = vadd.xlane.f32.xlu0 %v2960_v31  ;;  %v19547_v31 = vld [vmem:[#allocation174_spill] sm:$0xff] }
 0xa87   :  { %v15478_v50 = vpop.f32.mrb[14].mxu0  ;;  %v15480_v57 = vpop.xlane.xlu0 %2898  ;;  %v4624_v5 = vsel %vm1072_vm6, %v19547_v31, 0.0 }
 0xa88   :  { %v15482_v2 = vpop.f32.mrb[15].mxu0 }
 0xa8a   :  { %2657 = vadd.xlane.f32.xlu1 %v2656_v6  ;;  %4640 = vadd.xlane.f32.xlu0 %v4639_v55 }
 0xa8b   :  { %v15488_v22 = vpop.xlane.xlu0 %4577 }
 0xa8e   :  { %2934 = vadd.xlane.f32.xlu1 %v2933_v0  ;;  %4646 = vadd.xlane.f32.xlu0 %v4645_v13  ;;  %v19548_v0 = vld [vmem:[#allocation185_spill] sm:$0xff] }
 0xa8f   :  { %v2643_v23 = vpop.xlane.xlu0 %2642  ;;  %v4630_v13 = vsel %vm1072_vm6, %v19548_v0, 0.0  ;;  %v19553_v0 = vld [vmem:[#allocation18_spill] sm:$0xff] }
 0xa92   :  { %4613 = vadd.xlane.f32.xlu1 %v4612_v40  ;;  %2678 = vadd.xlane.f32.xlu0 %v2677_v14  ;;  %v15510_v25 = vpop.xlane.xlu1 %1113  ;;  %v19549_v14 = vld [vmem:[#allocation187_spill] sm:$0xff] }
 0xa93   :  { %v15500_v52 = vpop.xlane.xlu0 %4354  ;;  %v2954_v12 = vsel %vm1072_vm6, %v19549_v14, 0.0  ;;  %v19554_v14 = vld [vmem:[#allocation197_spill] sm:$0xff] }
 0xa94   :  { %19543 = vst [vmem:[#allocation113_spill] sm:$0xff] %v15500_v52 }
 0xa96   :  { %2937 = vadd.xlane.f32.xlu1 %v2936_v18  ;;  %2973 = vadd.xlane.f32.xlu0 %v2972_v16  ;;  %v2622_v7 = vpop.permute.xlu1 %2621  ;;  %v4654_v18 = vsel %vm1072_vm6, %v15386_v43, 0.0 }
 0xa97   :  { %v15508_v63 = vpop.xlane.xlu0 %2904  ;;  %v2683_v6 = vsel %vm1072_vm6, %v2622_v7, 0.0 }
 0xa9a   :  { %4616 = vadd.xlane.f32.xlu1 %v4615_v9  ;;  %4652 = vadd.xlane.f32.xlu0 %v4651_v11  ;;  %v2689_v9 = vmax.f32 %v2643_v23, 1e-24  ;;  %v19551_v23 = vld [vmem:[#allocation194_spill] sm:$0xff] }
 0xa9b   :  { %v15516_v49 = vpop.xlane.xlu0 %4583 }
 0xa9e   :  { %2946 = vadd.xlane.f32.xlu1 %v2945_v42  ;;  %2976 = vadd.xlane.f32.xlu0 %v2975_v3  ;;  %v2957_v42 = vsel %vm1072_vm6, %v15259_v29, 0.0 }
 0xa9f   :  { %v2911_v39 = vpop.xlane.xlu0 %2910 }
 0xaa0   :  { %v2989_v56 = vmax.f32 %v2911_v39, 1e-24  ;;  %v19550_v39 = vld [vmem:[#allocation57_spill] sm:$0xff] }
 0xaa2   :  { %4625 = vadd.xlane.f32.xlu1 %v4624_v5  ;;  %2684 = vadd.xlane.f32.xlu0 %v2683_v6  ;;  %12708 = vrsqrt.f32 %v2989_v56  ;;  %v4636_v56 = vsel %vm1072_vm6, %v19551_v23, 0.0  ;;  %v19557_v23 = vld [vmem:[#allocation67_spill] sm:$0xff] }
 0xaa3   :  { %v4590_v55 = vpop.xlane.xlu0 %4589 }
 0xaa4   :  { %v4668_v46 = vmax.f32 %v4590_v55, 1e-24 }
 0xaa6   :  { %4631 = vadd.xlane.f32.xlu1 %v4630_v13  ;;  %2687 = vadd.xlane.f32.xlu0 %v2686_v1  ;;  %12710 = vrsqrt.f32 %v4668_v46 }
 0xaa7   :  { %v2914_v36 = vpop.xlane.xlu0 %2913 }
 0xaa8   :  { %v2990_v40 = vmax.f32 %v2914_v36, 1e-24 }
 0xaaa   :  { %12712 = vrsqrt.f32 %v2990_v40  ;;  %2955 = vadd.xlane.f32.xlu1 %v2954_v12  ;;  %4655 = vadd.xlane.f32.xlu0 %v4654_v18  ;;  %v2963_v12 = vsel %vm1072_vm6, %v19554_v14, 0.0 }
 0xaab   :  { %v4593_v16 = vpop.xlane.xlu0 %4592 }
 0xaac   :  { %v4669_v60 = vmax.f32 %v4593_v16, 1e-24  ;;  %v12709_v15 = vpop.eup %12708 }
 0xaad   :  { %v3053_v31 = vmul.f32 %v12709_v15, %v19550_v39 }
 0xaae   :  { %12714 = vrsqrt.f32 %v4669_v60  ;;  %2675 = vadd.xlane.f32.xlu1 %v2674_v28  ;;  %v19555_v28 = vld [vmem:[#allocation20_spill] sm:$0xff] }
 0xaaf   :  { %v2917_v11 = vpop.xlane.xlu0 %2916  ;;  %12716 = vrsqrt.f32 %v2689_v9  ;;  %v15541_v13 = vmul.f32 %v19553_v0, %v3053_v31 }
 0xab0   :  { %v2991_v3 = vmax.f32 %v2917_v11, 1e-24  ;;  %v12711_v43 = vpop.eup %12710 }
 0xab1   :  { %v4732_v1 = vmul.f32 %v12711_v43, %v19550_v39  ;;  %v19567_v39 = vld [vmem:[#allocation128_spill] sm:$0xff] }
 0xab2   :  { %2958 = vadd.xlane.f32.xlu1 %v2957_v42  ;;  %12718 = vrsqrt.f32 %v2991_v3  ;;  %v4642_v3 = vsel %vm1072_vm6, %v15293_v8, 0.0 }
 0xab3   :  { %v4596_v7 = vpop.xlane.xlu0 %4595  ;;  %v15553_v11 = vmul.f32 %v19555_v28, %v4732_v1  ;;  %v15570_v1 = vpop.permute.xlu1 %4333 }
 0xab4   :  { %v12713_v5 = vpop.eup %12712  ;;  %v4670_v6 = vmax.f32 %v4596_v7, 1e-24  ;;  %v19556_v7 = vld [vmem:[#allocation46_spill] sm:$0xff]  ;;  %19559 = vst [vmem:[#allocation116_spill] sm:$0xff] %v15570_v1 }
 0xab5   :  { %v3054_v55 = vmul.f32 %v12713_v5, %v19552_v54 }
 0xab6   :  { %4637 = vadd.xlane.f32.xlu1 %v4636_v56  ;;  %12720 = vrsqrt.f32 %v4670_v6  ;;  %v2966_v56 = vsel %vm1072_vm6, %v15323_v48, 0.0 }
 0xab7   :  { %v2920_v46 = vpop.xlane.xlu0 %2919  ;;  %v15544_v29 = vmul.f32 %v19553_v0, %v3054_v55  ;;  %v19558_v55 = vld [vmem:[#allocation19_spill] sm:$0xff] }
 0xab8   :  { %v12715_v36 = vpop.eup %12714  ;;  %v2992_v40 = vmax.f32 %v2920_v46, 1e-24 }
 0xab9   :  { %v4733_v16 = vmul.f32 %v12715_v36, %v19552_v54  ;;  %v12717_v60 = vpop.eup %12716 }
 0xaba   :  { %12722 = vrsqrt.f32 %v2992_v40  ;;  %2964 = vadd.xlane.f32.xlu1 %v2963_v12  ;;  %v2721_v31 = vmul.f32 %v12717_v60, %v19556_v7  ;;  %v19561_v40 = vld [vmem:[#allocation60_spill] sm:$0xff]  ;;  %v19562_v60 = vld [vmem:[#allocation61_spill] sm:$0xff] }
 0xabb   :  { %v4599_v9 = vpop.xlane.xlu0 %4598  ;;  %v15556_v15 = vmul.f32 %v19555_v28, %v4733_v16  ;;  %v2969_v16 = vsel %vm1072_vm6, %v15299_v45, 0.0 }
 0xabc   :  { %v4671_v42 = vmax.f32 %v4599_v9, 1e-24  ;;  %v12719_v6 = vpop.eup %12718  ;;  %v2741_v46 = vmul.f32 %v19558_v55, %v2721_v31 }
 0xabd   :  { %v3055_v14 = vmul.f32 %v12719_v6, %v19561_v40  ;;  %v2852_v6 = vpop.permute.xlu1 %2851 }
 0xabe   :  { %12724 = vrsqrt.f32 %v4671_v42  ;;  %4643 = vadd.xlane.f32.xlu1 %v4642_v3 }
 0xabf   :  { %v15563_v5 = vpop.xlane.xlu0 %2654  ;;  %v15580_v42 = vmul.f32 %v19553_v0, %v3055_v14 }
 0xac0   :  { %11951 = vrot.lane.b32.xlu0 %v19557_v23, %s13513_s29  ;;  %v12721_v8 = vpop.eup %12720 }
 0xac1   :  { %v4734_v31 = vmul.f32 %v12721_v8, %v19561_v40  ;;  %v2680_v8 = vsel %vm1072_vm6, %v15494_v38, 0.0  ;;  %v4531_v45 = vpop.permute.xlu1 %4530 }
 0xac2   :  { %2967 = vadd.xlane.f32.xlu1 %v2966_v56  ;;  %v4657_v43 = vsel %vm1072_vm6, %v4531_v45, 0.0 }
 0xac3   :  { %v15572_v36 = vpop.xlane.xlu0 %4369  ;;  %v15592_v14 = vmul.f32 %v19555_v28, %v4734_v31  ;;  %v2978_v31 = vsel %vm1072_vm6, %v2852_v6, 0.0 }
 0xac4   :  { %19560 = vst [vmem:[#allocation118_spill] sm:$0xff] %v15572_v36  ;;  %v12723_v12 = vpop.eup %12722  ;;  %3117 = vrot.lane.b32.xlu0 %v2741_v46, %s13512_s28  ;;  %v4648_v46 = vsel %vm1072_vm6, %v15311_v61, 0.0  ;;  %v1347_v61 = vmax.f32 %v15394_v58, 1e-24  ;;  %v2985_v58 = vmax.f32 %v15480_v57, 1e-24 }
 0xac5   :  { %v3056_v9 = vmul.f32 %v12723_v12, %v19562_v60  ;;  %19563 = vst [vmem:[#allocation121_spill] sm:$0xff] %v15592_v14 }
 0xac6   :  { %2970 = vadd.xlane.f32.xlu1 %v2969_v16  ;;  %12726 = vrsqrt.f32 %v1347_v61  ;;  %v4664_v61 = vmax.f32 %v15488_v22, 1e-24 }
 0xac7   :  { %v2929_v48 = vpop.xlane.xlu0 %2928  ;;  %v15583_v3 = vmul.f32 %v19553_v0, %v3056_v9 }
 0xac8   :  { %v12725_v56 = vpop.eup %12724  ;;  %v2995_v18 = vmax.f32 %v2929_v48, 1e-24 }
 0xac9   :  { %v4735_v12 = vmul.f32 %v12725_v56, %v19562_v60 }
 0xaca   :  { %4649 = vadd.xlane.f32.xlu1 %v4648_v46  ;;  %12728 = vrsqrt.f32 %v2995_v18 }
 0xacb   :  { %v4608_v16 = vpop.xlane.xlu0 %4607  ;;  %v15595_v9 = vmul.f32 %v19555_v28, %v4735_v12 }
 0xacc   :  { %v4674_v46 = vmax.f32 %v4608_v16, 1e-24  ;;  %v1134_v16 = vmax.f32 %v15510_v25, 1e-24 }
 0xacd   :  { %19564 = vst [vmem:[#allocation123_spill] sm:$0xff] %v15595_v9  ;;  %v19576_v9 = vld [vmem:[#allocation48_spill] sm:$0xff] }
 0xace   :  { %2681 = vadd.xlane.f32.xlu1 %v2680_v8  ;;  %12730 = vrsqrt.f32 %v4674_v46 }
 0xacf   :  { %v15602_v56 = vpop.xlane.xlu0 %2660 }
 0xad2   :  { %2979 = vadd.xlane.f32.xlu1 %v2978_v31 }
 0xad3   :  { %v1316_v12 = vpop.xlane.xlu1 %1315  ;;  %v2932_v23 = vpop.xlane.xlu0 %2931 }
 0xad4   :  { %v1348_v60 = vmax.f32 %v1316_v12, 1e-24  ;;  %v2996_v38 = vmax.f32 %v2932_v23, 1e-24  ;;  %v12727_v23 = vpop.eup %12726 }
 0xad5   :  { %v12729_v57 = vpop.eup %12728 }
 0xad6   :  { %12732 = vrsqrt.f32 %v1348_v60  ;;  %4658 = vadd.xlane.f32.xlu1 %v4657_v43 }
 0xad7   :  { %12734 = vrsqrt.f32 %v2996_v38  ;;  %v1120_v48 = vpop.xlane.xlu1 %1119  ;;  %v4611_v8 = vpop.xlane.xlu0 %4610  ;;  %v19565_v38 = vld [vmem:[#allocation102_spill] sm:$0xff] }
 0xad8   :  { %v4675_v6 = vmax.f32 %v4611_v8, 1e-24  ;;  %12736 = vrsqrt.f32 %v2985_v58  ;;  %v1136_v45 = vmax.f32 %v1120_v48, 1e-24  ;;  %v12731_v43 = vpop.eup %12730  ;;  %v1411_v25 = vmul.f32 %v12727_v23, %v19565_v38  ;;  %v19566_v58 = vld [vmem:[#allocation68_spill] sm:$0xff]  ;;  %v19568_v48 = vld [vmem:[#allocation70_spill] sm:$0xff] }
 0xada   :  { %12738 = vrsqrt.f32 %v4675_v6  ;;  %v3059_v6 = vmul.f32 %v12729_v57, %v19566_v58  ;;  %v1447_v23 = vmul.f32 %v13797_v44, %v1411_v25 }
 0xadb   :  { %v2902_v18 = vpop.xlane.xlu1 %2901  ;;  %v15609_v31 = vpop.xlane.xlu0 %2663  ;;  %12740 = vrsqrt.f32 %v1134_v16  ;;  %v11874_v16 = vunpack.i.h.bf16 %v19567_v39 }
 0xadc   :  { %v2986_v46 = vmax.f32 %v2902_v18, 1e-24  ;;  %12742 = vrsqrt.f32 %v4664_v61  ;;  %v11873_v61 = vunpack.i.l.bf16 %v19567_v39  ;;  %v15620_v57 = vmul.f32 %v19553_v0, %v3059_v6 }
 0xade   :  { %12744 = vrsqrt.f32 %v2986_v46 }
 0xadf   :  { %v4581_v60 = vpop.xlane.xlu1 %4580  ;;  %v2941_v12 = vpop.xlane.xlu0 %2940  ;;  %12746 = vrsqrt.f32 %v1136_v45 }
 0xae0   :  { %v12733_v8 = vpop.eup %12732  ;;  %v4665_v22 = vmax.f32 %v4581_v60, 1e-24  ;;  %v2999_v46 = vmax.f32 %v2941_v12, 1e-24 }
 0xae1   :  { %v12735_v40 = vpop.eup %12734  ;;  %v1412_v54 = vmul.f32 %v12733_v8, %v19525_v53 }
 0xae2   :  { %12748 = vrsqrt.f32 %v4665_v22  ;;  %v3060_v18 = vmul.f32 %v12735_v40, %v19568_v48  ;;  %v12737_v60 = vpop.eup %12736  ;;  %v4738_v22 = vmul.f32 %v12731_v43, %v19566_v58 }
 0xae3   :  { %v2646_v59 = vpop.xlane.xlu1 %2645  ;;  %v4620_v35 = vpop.xlane.xlu0 %4619  ;;  %v1448_v45 = vmul.f32 %v13797_v44, %v1412_v54 }
 0xae4   :  { %v2690_v20 = vmax.f32 %v2646_v59, 1e-24  ;;  %v15623_v8 = vmul.f32 %v19553_v0, %v3060_v18  ;;  %v12739_v40 = vpop.eup %12738  ;;  %v4678_v12 = vmax.f32 %v4620_v35, 1e-24  ;;  %v19569_v59 = vld [vmem:[#allocation132_spill] sm:$0xff]  ;;  %v19571_v18 = vld [vmem:[#allocation85_spill] sm:$0xff] }
 0xae5   :  { %v11236_v36 = vpack.c.bf16 %v1448_v45, %v1447_v23  ;;  %v12741_v39 = vpop.eup %12740  ;;  %v4739_v54 = vmul.f32 %v12739_v40, %v19568_v48  ;;  %v11884_v14 = vunpack.i.h.bf16 %v19569_v59  ;;  %v19572_v35 = vld [vmem:[#allocation45_spill] sm:$0xff]  ;;  %v11883_v25 = vunpack.i.l.bf16 %v19569_v59 }
 0xae6   :  { %12750 = vrsqrt.f32 %v2690_v20  ;;  %v12743_v44 = vpop.eup %12742  ;;  %v11258_v20 = vpack.c.bf16 %v11874_v16, %v11873_v61  ;;  %v3049_v23 = vmul.f32 %v12737_v60, %v19572_v35 }
 0xae7   :  { %12752 = vrsqrt.f32 %v2999_v46  ;;  %v15630_v6 = vpop.xlane.xlu1 %4357  ;;  %11956 = vrot.lane.b32.xlu1 %v19571_v18, %s13513_s29  ;;  %11238 = vmatprep.subr.msk.bf16.mxu0 %vm14214_vm7, %v11236_v36  ;;  %v2944_v43 = vpop.xlane.xlu0 %2943  ;;  %v15641_v46 = vmul.f32 %v19555_v28, %v4738_v22  ;;  %v15644_v58 = vmul.f32 %v19555_v28, %v4739_v54  ;;  %v19575_v18 = vld [vmem:[#allocation100_spill] sm:$0xff]  ;;  %v4728_v54 = vmul.f32 %v12743_v44, %v19572_v35 }
 0xae8   :  { %19570 = vst [vmem:[#allocation126_spill] sm:$0xff] %v15630_v6  ;;  %v12745_v45 = vpop.eup %12744  ;;  %v3000_v40 = vmax.f32 %v2944_v43, 1e-24  ;;  %11241 = vmatpush3.bf16.xpose.msk.msra.mxu0 %vm14214_vm7, %v11236_v36  ;;  %v1166_v48 = vmul.f32 %v12741_v39, %v19575_v18  ;;  %12754 = vrsqrt.f32 %v4678_v12  ;;  %v3085_v36 = vmul.f32 %v19553_v0, %v3049_v23  ;;  %v19577_v12 = vld [vmem:[#allocation105_spill] sm:$0xff] }
 0xae9   :  { %19573 = vst [vmem:[#allocation136_spill] sm:$0xff] %v15641_v46  ;;  %19574 = vst [vmem:[#allocation141_spill] sm:$0xff] %v15644_v58  ;;  %11259 = vmatprep.subr.bf16.mxu0 %v11258_v20  ;;  %v3050_v16 = vmul.f32 %v12745_v45, %v19576_v9  ;;  %v12747_v61 = vpop.eup %12746  ;;  %v11262_v1 = vpack.c.bf16 %v11884_v14, %v11883_v25  ;;  %v2987_v58 = vmax.f32 %v15508_v63, 1e-24  ;;  %v4666_v25 = vmax.f32 %v15516_v49, 1e-24 }
 0xaea   :  { %12756 = vrsqrt.f32 %v3000_v40  ;;  %v1186_v45 = vmul.f32 %v13769_v24, %v1166_v48  ;;  %v1168_v27 = vmul.f32 %v12747_v61, %v19577_v12  ;;  %v19578_v40 = vld [vmem:[#allocation137_spill] sm:$0xff]  ;;  %v1187_v23 = vmul.f32 %v13769_v24, %v15420_v37 }
 0xaeb   :  { %v2649_v59 = vpop.xlane.xlu1 %2648  ;;  %v4623_v43 = vpop.xlane.xlu0 %4622  ;;  %v3086_v22 = vmul.f32 %v19553_v0, %v3050_v16  ;;  %v11894_v46 = vunpack.i.h.bf16 %v19578_v40  ;;  %v11893_v44 = vunpack.i.l.bf16 %v19578_v40  ;;  %v19579_v61 = vld [vmem:[#allocation49_spill] sm:$0xff]  ;;  %v19582_v40 = vld [vmem:[#allocation76_spill] sm:$0xff] }
 0xaec   :  { %v12749_v7 = vpop.eup %12748  ;;  %v2691_v6 = vmax.f32 %v2649_v59, 1e-24  ;;  %v4679_v39 = vmax.f32 %v4623_v43, 1e-24  ;;  %v19580_v43 = vld [vmem:[#allocation150_spill] sm:$0xff] }
 0xaed   :  { %v11960_v52 = vpack.i.bf16 %v3086_v22, %v3085_v36  ;;  %v4729_v60 = vmul.f32 %v12749_v7, %v19576_v9  ;;  %v15668_v7 = vmul.f32 %v19555_v28, %v4728_v54  ;;  %v11899_v36 = vunpack.i.h.bf16 %v19580_v43 }
 0xaee   :  { %12758 = vrsqrt.f32 %v2691_v6  ;;  %v1188_v6 = vmul.f32 %v13769_v24, %v1168_v27  ;;  %v2693_v22 = vmax.f32 %v15563_v5, 1e-24  ;;  %v19591_v24 = vld [vmem:[#allocation64_spill] sm:$0xff] }
 0xaef   :  { %12760 = vrsqrt.f32 %v4679_v39  ;;  %v15661_v16 = vpop.xlane.xlu1 %4360  ;;  %10501 = vmatmul.mubr.msk.f32.vlgmr.msra.gmra.mrb[16].mxu0 %vm1072_vm6, %v1186_v45  ;;  %11961 = vrot.lane.b32.xlu1 %v11960_v52, %s13512_s28  ;;  %v15665_v14 = vpop.xlane.xlu0 %2666  ;;  %v15671_v63 = vmul.f32 %v19555_v28, %v4729_v60  ;;  %v11898_v60 = vunpack.i.l.bf16 %v19580_v43 }
 0xaf0   :  { %v12751_v48 = vpop.eup %12750  ;;  %10503 = vmatprep.mubr.msk.f32.mxu0 %vm1072_vm6, %v1187_v23  ;;  %11261 = vmatpush3.bf16.msra.mxu0 %v11258_v20  ;;  %12762 = vrsqrt.f32 %v2987_v58  ;;  %v11266_v20 = vpack.c.bf16 %v11894_v46, %v11893_v44  ;;  %v19583_v58 = vld [vmem:[#allocation77_spill] sm:$0xff]  ;;  %v2695_v44 = vmax.f32 %v15602_v56, 1e-24 }
 0xaf1   :  { %v12753_v37 = vpop.eup %12752  ;;  %11263 = vmatprep.subr.bf16.mxu0 %v11262_v1  ;;  %v2722_v52 = vmul.f32 %v12751_v48, %v19579_v61  ;;  %12764 = vrsqrt.f32 %v4666_v25  ;;  %v11270_v5 = vpack.c.bf16 %v11899_v36, %v11898_v60 }
 0xaf2   :  { %v12755_v39 = vpop.eup %12754  ;;  %v3063_v23 = vmul.f32 %v12753_v37, %v19582_v40 }
 0xaf3   :  { %v2908_v54 = vpop.xlane.xlu1 %2907  ;;  %10504 = vmatmul.mubr.msk.f32.gmra.mrb[18].mxu0 %vm1072_vm6, %v1188_v6  ;;  %v2742_v49 = vmul.f32 %v19558_v55, %v2722_v52  ;;  %v15684_v45 = vpop.xlane.xlu0 %4378  ;;  %v19584_v6 = vld [vmem:[#allocation193_spill] sm:$0xff]  ;;  %v4742_v36 = vmul.f32 %v12755_v39, %v19582_v40 }
 0xaf4   :  { %v2988_v27 = vmax.f32 %v2908_v54, 1e-24  ;;  %19581 = vst [vmem:[#allocation182_spill] sm:$0xff] %v15684_v45  ;;  %11265 = vmatpush3.bf16.msra.mxu0 %v11262_v1  ;;  %v12757_v48 = vpop.eup %12756  ;;  %v11934_v59 = vunpack.i.h.bf16 %v19584_v6  ;;  %v11933_v46 = vunpack.i.l.bf16 %v19584_v6  ;;  %v15693_v37 = vmul.f32 %v19553_v0, %v3063_v23 }
 0xaf5   :  { %3119 = vrot.lane.b32.xlu1 %v2742_v49, %s13512_s28  ;;  %11267 = vmatprep.subr.bf16.mxu0 %v11266_v20  ;;  %v3064_v43 = vmul.f32 %v12757_v48, %v19583_v58  ;;  %v19585_v49 = vld [vmem:[#allocation53_spill] sm:$0xff] }
 0xaf6   :  { %12766 = vrsqrt.f32 %v2988_v27  ;;  %v15706_v6 = vpack.c.bf16 %v11934_v59, %v11933_v46 }
 0xaf7   :  { %12768 = vrsqrt.f32 %v2693_v22  ;;  %v4587_v52 = vpop.xlane.xlu1 %4586  ;;  %v15696_v25 = vmul.f32 %v19553_v0, %v3064_v43  ;;  %v15700_v22 = vpop.xlane.xlu0 %2949 }
 0xaf8   :  { %v12759_v1 = vpop.eup %12758  ;;  %v4667_v54 = vmax.f32 %v4587_v52, 1e-24  ;;  %11269 = vmatpush3.bf16.msra.mxu0 %v11266_v20  ;;  %v15709_v52 = vmul.f32 %v19555_v28, %v4742_v36 }
 0xaf9   :  { %v12761_v60 = vpop.eup %12760  ;;  %11271 = vmatprep.subr.bf16.mxu0 %v11270_v5  ;;  %v2723_v27 = vmul.f32 %v12759_v1, %v19585_v49 }
 0xafa   :  { %12770 = vrsqrt.f32 %v4667_v54  ;;  %v4743_v20 = vmul.f32 %v12761_v60, %v19583_v58  ;;  %v12763_v43 = vpop.eup %12762  ;;  %19586 = vst [vmem:[#allocation138_spill] sm:$0xff] %v15709_v52 }
 0xafb   :  { %v2652_v48 = vpop.xlane.xlu1 %2651  ;;  %v2743_v23 = vmul.f32 %v19558_v55, %v2723_v27  ;;  %12772 = vrsqrt.f32 %v2695_v44  ;;  %v12765_v59 = vpop.eup %12764  ;;  %v19589_v44 = vld [vmem:[#allocation52_spill] sm:$0xff] }
 0xafc   :  { %v2692_v39 = vmax.f32 %v2652_v48, 1e-24  ;;  %11273 = vmatpush3.bf16.msra.mxu0 %v11270_v5  ;;  %v15712_v1 = vmul.f32 %v19555_v28, %v4743_v20  ;;  %v3051_v60 = vmul.f32 %v12763_v43, %v19589_v44  ;;  %v15721_v27 = vpop.xlane.xlu0 %4628  ;;  %v19590_v48 = vld [vmem:[#allocation54_spill] sm:$0xff] }
 0xafd   :  { %3121 = vrot.lane.b32.xlu0 %v2743_v23, %s13512_s28  ;;  %11291 = vmatprep.subr.bf16.mxu0 %v15706_v6 }
 0xafe   :  { %19587 = vst [vmem:[#allocation142_spill] sm:$0xff] %v15712_v1  ;;  %12774 = vrsqrt.f32 %v2692_v39  ;;  %v3087_v23 = vmul.f32 %v19553_v0, %v3051_v60  ;;  %v4730_v39 = vmul.f32 %v12765_v59, %v19589_v44 }
 0xaff   :  { %v15718_v46 = vpop.xlane.xlu1 %4363 }
 0xb00   :  { %19588 = vst [vmem:[#allocation149_spill] sm:$0xff] %v15718_v46  ;;  %v12767_v5 = vpop.eup %12766  ;;  %v15729_v49 = vpop.xlane.xlu0 %2669 }
 0xb01   :  { %v12769_v36 = vpop.eup %12768  ;;  %v3052_v20 = vmul.f32 %v12767_v5, %v19590_v48  ;;  %v15733_v5 = vmul.f32 %v19555_v28, %v4730_v39 }
 0xb02   :  { %v2725_v9 = vmul.f32 %v12769_v36, %v19591_v24  ;;  %v19593_v36 = vld [vmem:[#allocation69_spill] sm:$0xff] }
 0xb03   :  { %v2923_v56 = vpop.xlane.xlu1 %2922  ;;  %v3088_v40 = vmul.f32 %v19553_v0, %v3052_v20 }
 0xb04   :  { %v12771_v58 = vpop.eup %12770  ;;  %v2745_v59 = vmul.f32 %v19558_v55, %v2725_v9  ;;  %v15747_v39 = vpop.xlane.xlu0 %4381 }
 0xb05   :  { %v11965_v54 = vpack.i.bf16 %v3088_v40, %v3087_v23  ;;  %v4731_v35 = vmul.f32 %v12771_v58, %v19590_v48  ;;  %v12773_v43 = vpop.eup %12772  ;;  %v19592_v40 = vld [vmem:[#allocation55_spill] sm:$0xff]  ;;  %v2993_v48 = vmax.f32 %v2923_v56, 1e-24  ;;  %v19594_v56 = vpack.i.bf16 %v15544_v29, %v15541_v13 }
 0xb06   :  { %v2727_v44 = vmul.f32 %v12773_v43, %v19593_v36 }
 0xb07   :  { %v4602_v52 = vpop.xlane.xlu1 %4601  ;;  %11966 = vrot.lane.b32.xlu0 %v11965_v54, %s13512_s28  ;;  %v15736_v60 = vmul.f32 %v19555_v28, %v4731_v35  ;;  %12776 = vrsqrt.f32 %v2993_v48  ;;  %v19596_v48 = vpack.i.bf16 %v15583_v3, %v15580_v42 }
 0xb08   :  { %v12775_v20 = vpop.eup %12774  ;;  %v4672_v35 = vmax.f32 %v4602_v52, 1e-24  ;;  %v2747_v9 = vmul.f32 %v19558_v55, %v2727_v44  ;;  %v19595_v52 = vpack.i.bf16 %v15623_v8, %v15620_v57 }
 0xb09   :  { %v2724_v23 = vmul.f32 %v12775_v20, %v19592_v40 }
 0xb0a   :  { %12778 = vrsqrt.f32 %v4672_v35 }
 0xb0b   :  { %v15743_v1 = vpop.xlane.xlu1 %4366  ;;  %3262 = vrot.lane.b32.xlu0 %v2745_v59, %s13512_s28  ;;  %v2744_v54 = vmul.f32 %v19558_v55, %v2724_v23  ;;  %v15756_v59 = vpop.xlane.xlu0 %2952 }
 0xb0d   :  { %3123 = vrot.lane.b32.xlu1 %v2744_v54, %s13512_s28 }
 0xb0f   :  { %v2926_v20 = vpop.xlane.xlu1 %2925  ;;  %3266 = vrot.lane.b32.xlu0 %v2747_v9, %s13512_s28  ;;  %v15766_v13 = vpop.xlane.xlu0 %2672  ;;  %v2696_v9 = vmax.f32 %v15609_v31, 1e-24 }
 0xb10   :  { %v2994_v43 = vmax.f32 %v2926_v20, 1e-24 }
 0xb11   :  { %11971 = vrot.lane.b32.xlu1 %v19594_v56, %s13512_s28  ;;  %v12777_v35 = vpop.eup %12776  ;;  %v19597_v56 = vld [vmem:[#allocation63_spill] sm:$0xff] }
 0xb12   :  { %12780 = vrsqrt.f32 %v2994_v43  ;;  %v3057_v57 = vmul.f32 %v12777_v35, %v19597_v56 }
 0xb13   :  { %v4605_v23 = vpop.xlane.xlu1 %4604  ;;  %11986 = vrot.lane.b32.xlu0 %v19595_v52, %s13512_s28  ;;  %v4635_v58 = vpop.xlane.xlu0 %4634 }
 0xb14   :  { %v4673_v44 = vmax.f32 %v4605_v23, 1e-24  ;;  %v12779_v20 = vpop.eup %12778  ;;  %v19598_v23 = vld [vmem:[#allocation65_spill] sm:$0xff] }
 0xb15   :  { %11976 = vrot.lane.b32.xlu1 %v19596_v48, %s13512_s28 }
 0xb16   :  { %12782 = vrsqrt.f32 %v4673_v44  ;;  %v3093_v44 = vmul.f32 %v19553_v0, %v3057_v57 }
 0xb17   :  { %v2658_v54 = vpop.xlane.xlu1 %2657 }
 0xb18   :  { %v2694_v29 = vmax.f32 %v2658_v54, 1e-24  ;;  %v4736_v54 = vmul.f32 %v12779_v20, %v19597_v56  ;;  %v3002_v20 = vmax.f32 %v15700_v22, 1e-24  ;;  %v4681_v56 = vmax.f32 %v15721_v27, 1e-24 }
 0xb1a   :  { %12784 = vrsqrt.f32 %v2694_v29 }
 0xb1b   :  { %v2935_v43 = vpop.xlane.xlu1 %2934  ;;  %12786 = vrsqrt.f32 %v2696_v9  ;;  %v15777_v9 = vmul.f32 %v19555_v28, %v4736_v54 }
 0xb1c   :  { %v12781_v8 = vpop.eup %12780  ;;  %v2997_v42 = vmax.f32 %v2935_v43, 1e-24 }
 0xb1d   :  { %v3058_v52 = vmul.f32 %v12781_v8, %v19598_v23  ;;  %v15782_v8 = vpop.xlane.xlu0 %2961 }
 0xb1e   :  { %12788 = vrsqrt.f32 %v2997_v42  ;;  %v2697_v42 = vmax.f32 %v15665_v14, 1e-24  ;;  %v4683_v14 = vmax.f32 %v4635_v58, 1e-24  ;;  %v19603_v58 = vld [vmem:[#allocation154_spill] sm:$0xff] }
 0xb1f   :  { %v4614_v3 = vpop.xlane.xlu1 %4613  ;;  %v3094_v48 = vmul.f32 %v19553_v0, %v3058_v52 }
 0xb20   :  { %v12783_v36 = vpop.eup %12782  ;;  %v4676_v31 = vmax.f32 %v4614_v3, 1e-24  ;;  %v19599_v3 = vld [vmem:[#allocation66_spill] sm:$0xff] }
 0xb21   :  { %v11980_v29 = vpack.i.bf16 %v3094_v48, %v3093_v44  ;;  %v4737_v40 = vmul.f32 %v12783_v36, %v19598_v23  ;;  %v15792_v22 = vpop.xlane.xlu0 %4640 }
 0xb22   :  { %12790 = vrsqrt.f32 %v4676_v31  ;;  %v4685_v46 = vmax.f32 %v15792_v22, 1e-24 }
 0xb23   :  { %v2938_v35 = vpop.xlane.xlu1 %2937  ;;  %11981 = vrot.lane.b32.xlu1 %v11980_v29, %s13512_s28  ;;  %v15780_v43 = vmul.f32 %v19555_v28, %v4737_v40 }
 0xb24   :  { %v12785_v57 = vpop.eup %12784  ;;  %v2998_v52 = vmax.f32 %v2938_v35, 1e-24  ;;  %v19600_v35 = vld [vmem:[#allocation71_spill] sm:$0xff] }
 0xb25   :  { %v2726_v44 = vmul.f32 %v12785_v57, %v19599_v3  ;;  %v12787_v40 = vpop.eup %12786 }
 0xb26   :  { %12792 = vrsqrt.f32 %v2998_v52  ;;  %v2728_v57 = vmul.f32 %v12787_v40, %v19600_v35  ;;  %v3003_v40 = vmax.f32 %v15756_v59, 1e-24 }
 0xb27   :  { %v4617_v48 = vpop.xlane.xlu1 %4616  ;;  %v2746_v54 = vmul.f32 %v19558_v55, %v2726_v44  ;;  %12794 = vrsqrt.f32 %v3002_v20  ;;  %v19601_v44 = vld [vmem:[#allocation72_spill] sm:$0xff] }
 0xb28   :  { %v4677_v29 = vmax.f32 %v4617_v48, 1e-24  ;;  %v12789_v52 = vpop.eup %12788  ;;  %v2748_v27 = vmul.f32 %v19558_v55, %v2728_v57 }
 0xb29   :  { %3264 = vrot.lane.b32.xlu1 %v2746_v54, %s13512_s28  ;;  %v19602_v54 = vld [vmem:[#allocation73_spill] sm:$0xff] }
 0xb2a   :  { %12796 = vrsqrt.f32 %v4677_v29  ;;  %v3061_v23 = vmul.f32 %v12789_v52, %v19602_v54  ;;  %v15799_v29 = vpop.xlane.xlu0 %4646 }
 0xb2b   :  { %12798 = vrsqrt.f32 %v2697_v42  ;;  %v2947_v31 = vpop.xlane.xlu1 %2946 }
 0xb2c   :  { %v3001_v36 = vmax.f32 %v2947_v31, 1e-24  ;;  %12800 = vrsqrt.f32 %v4681_v56  ;;  %v12791_v20 = vpop.eup %12790  ;;  %v4371_v56 = vsel %vm1072_vm6, %v19603_v58, 0.0  ;;  %v19604_v31 = vld [vmem:[#allocation74_spill] sm:$0xff]  ;;  %v3097_v52 = vmul.f32 %v19553_v0, %v3061_v23 }
 0xb2d   :  { %11991 = vrot.lane.b32.xlu1 %v19601_v44, %s13513_s29 }
 0xb2e   :  { %12802 = vrsqrt.f32 %v3001_v36 }
 0xb2f   :  { %v4626_v48 = vpop.xlane.xlu1 %4625  ;;  %12804 = vrsqrt.f32 %v4683_v14 }
 0xb30   :  { %v12793_v3 = vpop.eup %12792  ;;  %v4680_v42 = vmax.f32 %v4626_v48, 1e-24  ;;  %v4740_v48 = vmul.f32 %v12791_v20, %v19602_v54 }
 0xb31   :  { %3268 = vrot.lane.b32.xlu1 %v2748_v27, %s13512_s28  ;;  %v3062_v36 = vmul.f32 %v12793_v3, %v19604_v31  ;;  %v12795_v44 = vpop.eup %12794  ;;  %v19605_v27 = vld [vmem:[#allocation155_spill] sm:$0xff] }
 0xb32   :  { %12806 = vrsqrt.f32 %v4680_v42  ;;  %4372 = vadd.xlane.f32.xlu0 %v4371_v56  ;;  %v4374_v24 = vsel %vm1072_vm6, %v19605_v27, 0.0  ;;  %v15812_v42 = vpop.xlane.xlu0 %2678 }
 0xb33   :  { %v4632_v57 = vpop.xlane.xlu1 %4631  ;;  %v3098_v35 = vmul.f32 %v19553_v0, %v3062_v36  ;;  %12808 = vrsqrt.f32 %v3003_v40  ;;  %v19606_v36 = vld [vmem:[#allocation82_spill] sm:$0xff] }
 0xb34   :  { %v12797_v45 = vpop.eup %12796  ;;  %v4682_v59 = vmax.f32 %v4632_v57, 1e-24  ;;  %v3066_v20 = vmul.f32 %v12795_v44, %v19606_v36  ;;  %v15817_v57 = vmul.f32 %v19555_v28, %v4740_v48 }
 0xb35   :  { %v12799_v14 = vpop.eup %12798  ;;  %v11995_v58 = vpack.i.bf16 %v3098_v35, %v3097_v52  ;;  %v4741_v3 = vmul.f32 %v12797_v45, %v19604_v31  ;;  %v2698_v35 = vmax.f32 %v15729_v49, 1e-24  ;;  %v19607_v52 = vld [vmem:[#allocation81_spill] sm:$0xff] }
 0xb36   :  { %12810 = vrsqrt.f32 %v4682_v59  ;;  %4375 = vadd.xlane.f32.xlu0 %v4374_v24  ;;  %v12801_v56 = vpop.eup %12800  ;;  %v2729_v31 = vmul.f32 %v12799_v14, %v19607_v52  ;;  %v3006_v24 = vmax.f32 %v15782_v8, 1e-24  ;;  %v19608_v59 = vld [vmem:[#allocation80_spill] sm:$0xff]  ;;  %v15836_v52 = vpop.xlane.xlu0 %2973 }
 0xb37   :  { %v2956_v23 = vpop.xlane.xlu1 %2955  ;;  %11996 = vrot.lane.b32.xlu1 %v11995_v58, %s13512_s28  ;;  %v15820_v40 = vmul.f32 %v19555_v28, %v4741_v3  ;;  %v19609_v3 = vpack.i.bf16 %v15696_v25, %v15693_v37  ;;  %v4745_v14 = vmul.f32 %v12801_v56, %v19606_v36 }
 0xb38   :  { %v12803_v27 = vpop.eup %12802  ;;  %v3004_v45 = vmax.f32 %v2956_v23, 1e-24  ;;  %v3102_v23 = vmul.f32 %v19553_v0, %v3066_v20  ;;  %v2749_v58 = vmul.f32 %v19558_v55, %v2729_v31 }
 0xb39   :  { %v3065_v54 = vmul.f32 %v12803_v27, %v19608_v59  ;;  %v12805_v44 = vpop.eup %12804  ;;  %v2699_v27 = vmax.f32 %v15766_v13, 1e-24  ;;  %v15846_v13 = vmul.f32 %v19555_v28, %v4745_v14 }
 0xb3a   :  { %12812 = vrsqrt.f32 %v3004_v45 }
 0xb3b   :  { %v2676_v48 = vpop.xlane.xlu1 %2675  ;;  %12001 = vrot.lane.b32.xlu1 %v19609_v3, %s13512_s28  ;;  %v3101_v49 = vmul.f32 %v19553_v0, %v3065_v54  ;;  %12814 = vrsqrt.f32 %v2698_v35  ;;  %19611 = vst [vmem:[#allocation161_spill] sm:$0xff] %v15846_v13  ;;  %v19612_v35 = vld [vmem:[#allocation88_spill] sm:$0xff]  ;;  %v19613_v3 = vld [vmem:[#allocation86_spill] sm:$0xff] }
 0xb3c   :  { %v12807_v8 = vpop.eup %12806  ;;  %v2700_v45 = vmax.f32 %v2676_v48, 1e-24  ;;  %12816 = vrsqrt.f32 %v3006_v24  ;;  %v4747_v48 = vmul.f32 %v12805_v44, %v19612_v35 }
 0xb3d   :  { %v12005_v37 = vpack.i.bf16 %v3102_v23, %v3101_v49  ;;  %v4744_v25 = vmul.f32 %v12807_v8, %v19608_v59  ;;  %v12809_v54 = vpop.eup %12808  ;;  %v15852_v23 = vpop.xlane.xlu0 %4652 }
 0xb3e   :  { %12818 = vrsqrt.f32 %v2700_v45  ;;  %v3067_v8 = vmul.f32 %v12809_v54, %v19613_v3  ;;  %v15859_v44 = vmul.f32 %v19555_v28, %v4747_v48  ;;  %v2701_v48 = vmax.f32 %v15812_v42, 1e-24 }
 0xb3f   :  { %v2959_v20 = vpop.xlane.xlu1 %2958  ;;  %3407 = vrot.lane.b32.xlu1 %v2749_v58, %s13512_s28  ;;  %v15843_v56 = vmul.f32 %v19555_v28, %v4744_v25  ;;  %12820 = vrsqrt.f32 %v2699_v27  ;;  %v3010_v42 = vmax.f32 %v15836_v52, 1e-24 }
 0xb40   :  { %v12811_v31 = vpop.eup %12810  ;;  %v3005_v24 = vmax.f32 %v2959_v20, 1e-24  ;;  %12822 = vrsqrt.f32 %v4685_v46  ;;  %19615 = vst [vmem:[#allocation163_spill] sm:$0xff] %v15859_v44  ;;  %v3103_v54 = vmul.f32 %v19553_v0, %v3067_v8 }
 0xb41   :  { %19610 = vst [vmem:[#allocation159_spill] sm:$0xff] %v15843_v56  ;;  %v4746_v49 = vmul.f32 %v12811_v31, %v19613_v3  ;;  %v4687_v31 = vmax.f32 %v15799_v29, 1e-24  ;;  %v15868_v59 = vpop.xlane.xlu0 %2976 }
 0xb42   :  { %12824 = vrsqrt.f32 %v3005_v24 }
 0xb43   :  { %v4638_v58 = vpop.xlane.xlu1 %4637  ;;  %v15856_v14 = vmul.f32 %v19555_v28, %v4746_v49 }
 0xb44   :  { %v12813_v27 = vpop.eup %12812  ;;  %v4684_v45 = vmax.f32 %v4638_v58, 1e-24 }
 0xb45   :  { %19614 = vst [vmem:[#allocation162_spill] sm:$0xff] %v15856_v14  ;;  %v3068_v46 = vmul.f32 %v12813_v27, %v19612_v35  ;;  %v12815_v20 = vpop.eup %12814  ;;  %v19616_v27 = vld [vmem:[#allocation89_spill] sm:$0xff]  ;;  %v19617_v14 = vld [vmem:[#allocation84_spill] sm:$0xff] }
 0xb46   :  { %12826 = vrsqrt.f32 %v4684_v45  ;;  %v12817_v24 = vpop.eup %12816  ;;  %v2730_v29 = vmul.f32 %v12815_v20, %v19617_v14 }
 0xb47   :  { %v2965_v22 = vpop.xlane.xlu1 %2964  ;;  %v3104_v49 = vmul.f32 %v19553_v0, %v3068_v46  ;;  %12828 = vrsqrt.f32 %v4687_v31  ;;  %v3070_v8 = vmul.f32 %v12817_v24, %v14528_v34  ;;  %v2685_v31 = vpop.xlane.xlu0 %2684 }
 0xb48   :  { %v12819_v3 = vpop.eup %12818  ;;  %v3007_v58 = vmax.f32 %v2965_v22, 1e-24  ;;  %12830 = vrsqrt.f32 %v2701_v48  ;;  %v19618_v22 = vld [vmem:[#allocation91_spill] sm:$0xff]  ;;  %v2750_v20 = vmul.f32 %v19558_v55, %v2730_v29 }
 0xb49   :  { %v2732_v35 = vmul.f32 %v12819_v3, %v19616_v27  ;;  %v12010_v36 = vpack.i.bf16 %v3104_v49, %v3103_v54  ;;  %v12821_v25 = vpop.eup %12820  ;;  %v19619_v54 = vld [vmem:[#allocation87_spill] sm:$0xff] }
 0xb4a   :  { %v12823_v45 = vpop.eup %12822  ;;  %12832 = vrsqrt.f32 %v3007_v58 }
 0xb4b   :  { %v4644_v44 = vpop.xlane.xlu1 %4643  ;;  %v2752_v56 = vmul.f32 %v19558_v55, %v2732_v35  ;;  %v2731_v35 = vmul.f32 %v12821_v25, %v19619_v54 }
 0xb4c   :  { %v12825_v46 = vpop.eup %12824  ;;  %v4686_v13 = vmax.f32 %v4644_v44, 1e-24  ;;  %12006 = vrot.lane.b32.xlu0 %v12005_v37, %s13512_s28  ;;  %v3106_v44 = vmul.f32 %v19553_v0, %v3070_v8  ;;  %v4749_v37 = vmul.f32 %v12823_v45, %v14528_v34 }
 0xb4d   :  { %3413 = vrot.lane.b32.xlu1 %v2752_v56, %s13512_s28  ;;  %v3069_v3 = vmul.f32 %v12825_v46, %v19618_v22  ;;  %v4689_v56 = vmax.f32 %v15852_v23, 1e-24  ;;  %v2751_v25 = vmul.f32 %v19558_v55, %v2731_v35 }
 0xb4e   :  { %12834 = vrsqrt.f32 %v4686_v13  ;;  %v15892_v45 = vmul.f32 %v19555_v28, %v4749_v37 }
 0xb4f   :  { %v2968_v49 = vpop.xlane.xlu1 %2967  ;;  %v3105_v24 = vmul.f32 %v19553_v0, %v3069_v3  ;;  %12836 = vrsqrt.f32 %v3010_v42  ;;  %v2703_v3 = vmax.f32 %v2685_v31, 1e-24  ;;  %v2688_v42 = vpop.xlane.xlu0 %2687  ;;  %v3011_v31 = vmax.f32 %v15868_v59, 1e-24  ;;  %v19624_v59 = vld [vmem:[#allocation90_spill] sm:$0xff] }
 0xb50   :  { %v12827_v48 = vpop.eup %12826  ;;  %v3008_v52 = vmax.f32 %v2968_v49, 1e-24  ;;  %3409 = vrot.lane.b32.xlu0 %v2750_v20, %s13512_s28  ;;  %19621 = vst [vmem:[#allocation174_spill] sm:$0xff] %v15892_v45 }
 0xb51   :  { %v12020_v58 = vpack.i.bf16 %v3106_v44, %v3105_v24  ;;  %v4748_v13 = vmul.f32 %v12827_v48, %v19618_v22  ;;  %v12829_v46 = vpop.eup %12828 }
 0xb52   :  { %12838 = vrsqrt.f32 %v3008_v52  ;;  %v12831_v35 = vpop.eup %12830  ;;  %v4751_v44 = vmul.f32 %v12829_v46, %v14536_v41 }
 0xb53   :  { %v2971_v29 = vpop.xlane.xlu1 %2970  ;;  %12021 = vrot.lane.b32.xlu1 %v12020_v58, %s13512_s28  ;;  %v15889_v8 = vmul.f32 %v19555_v28, %v4748_v13  ;;  %12840 = vrsqrt.f32 %v4689_v56  ;;  %v4656_v58 = vpop.xlane.xlu0 %4655  ;;  %v2733_v56 = vmul.f32 %v12831_v35, %v19505_v10 }
 0xb54   :  { %v3009_v20 = vmax.f32 %v2971_v29, 1e-24  ;;  %3411 = vrot.lane.b32.xlu0 %v2751_v25, %s13512_s28  ;;  %v12833_v49 = vpop.eup %12832  ;;  %v15907_v46 = vmul.f32 %v19555_v28, %v4751_v44 }
 0xb55   :  { %19620 = vst [vmem:[#allocation172_spill] sm:$0xff] %v15889_v8  ;;  %v3071_v29 = vmul.f32 %v12833_v49, %v14534_v21  ;;  %v2753_v49 = vmul.f32 %v19558_v55, %v2733_v56  ;;  %v19669_v8 = vld [vmem:[#allocation166_spill] sm:$0xff] }
 0xb56   :  { %12842 = vrsqrt.f32 %v3009_v20  ;;  %19623 = vst [vmem:[#allocation187_spill] sm:$0xff] %v15907_v46  ;;  %v11914_v45 = vunpack.i.h.bf16 %v19669_v8 }
 0xb57   :  { %v4650_v24 = vpop.xlane.xlu1 %4649  ;;  %12844 = vrsqrt.f32 %v2703_v3  ;;  %v3107_v44 = vmul.f32 %v19553_v0, %v3071_v29 }
 0xb58   :  { %v12835_v48 = vpop.eup %12834  ;;  %v4688_v37 = vmax.f32 %v4650_v24, 1e-24  ;;  %12011 = vrot.lane.b32.xlu0 %v12010_v36, %s13512_s28  ;;  %v4690_v24 = vmax.f32 %v4656_v58, 1e-24 }
 0xb59   :  { %v4750_v52 = vmul.f32 %v12835_v48, %v14534_v21  ;;  %v12837_v13 = vpop.eup %12836 }
 0xb5a   :  { %12846 = vrsqrt.f32 %v4688_v37 }
 0xb5b   :  { %v2682_v25 = vpop.xlane.xlu1 %2681  ;;  %v15904_v20 = vmul.f32 %v19555_v28, %v4750_v52  ;;  %12848 = vrsqrt.f32 %v3011_v31 }
 0xb5c   :  { %v12839_v3 = vpop.eup %12838  ;;  %v2702_v36 = vmax.f32 %v2682_v25, 1e-24  ;;  %12016 = vrot.lane.b32.xlu0 %v19624_v59, %s13513_s29  ;;  %v3074_v25 = vmul.f32 %v12837_v13, %v19510_v30  ;;  %v2704_v59 = vmax.f32 %v2688_v42, 1e-24 }
 0xb5d   :  { %19622 = vst [vmem:[#allocation185_spill] sm:$0xff] %v15904_v20  ;;  %v3072_v48 = vmul.f32 %v12839_v3, %v14536_v41  ;;  %v12841_v37 = vpop.eup %12840  ;;  %v19652_v20 = vld [vmem:[#allocation101_spill] sm:$0xff] }
 0xb5e   :  { %12850 = vrsqrt.f32 %v2702_v36  ;;  %v4753_v13 = vmul.f32 %v12841_v37, %v19510_v30 }
 0xb5f   :  { %v2980_v52 = vpop.xlane.xlu1 %2979  ;;  %v3108_v23 = vmul.f32 %v19553_v0, %v3072_v48  ;;  %12852 = vrsqrt.f32 %v4690_v24  ;;  %v3110_v48 = vmul.f32 %v19553_v0, %v3074_v25 }
 0xb60   :  { %v12843_v21 = vpop.eup %12842  ;;  %v3012_v31 = vmax.f32 %v2980_v52, 1e-24  ;;  %3552 = vrot.lane.b32.xlu0 %v2753_v49, %s13512_s28 }
 0xb61   :  { %v12025_v58 = vpack.i.bf16 %v3108_v23, %v3107_v44  ;;  %v3073_v3 = vmul.f32 %v12843_v21, %v14542_v4  ;;  %v12845_v36 = vpop.eup %12844  ;;  %v15931_v44 = vmul.f32 %v19555_v28, %v4753_v13 }
 0xb62   :  { %12854 = vrsqrt.f32 %v3012_v31  ;;  %v2735_v24 = vmul.f32 %v12845_v36, %v19512_v19 }
 0xb63   :  { %v4659_v56 = vpop.xlane.xlu1 %4658  ;;  %12026 = vrot.lane.b32.xlu1 %v12025_v58, %s13512_s28  ;;  %v3109_v29 = vmul.f32 %v19553_v0, %v3073_v3  ;;  %12856 = vrsqrt.f32 %v2704_v59  ;;  %19626 = vst [vmem:[#allocation18_spill] sm:$0xff] %v15931_v44  ;;  %v19661_v44 = vld [vmem:[#allocation184_spill] sm:$0xff] }
 0xb64   :  { %v12847_v35 = vpop.eup %12846  ;;  %v4691_v42 = vmax.f32 %v4659_v56, 1e-24  ;;  %v2755_v37 = vmul.f32 %v19558_v55, %v2735_v24 }
 0xb65   :  { %v12030_v52 = vpack.i.bf16 %v3110_v48, %v3109_v29  ;;  %v4752_v23 = vmul.f32 %v12847_v35, %v14542_v4  ;;  %v12849_v21 = vpop.eup %12848 }
 0xb66   :  { %12858 = vrsqrt.f32 %v4691_v42  ;;  %v3075_v3 = vmul.f32 %v12849_v21, %v19565_v38 }
 0xb67   :  { %12031 = vrot.lane.b32.xlu0 %v12030_v52, %s13512_s28  ;;  %v15928_v49 = vmul.f32 %v19555_v28, %v4752_v23  ;;  %v16026_v22 = vpop.permute.xlu1 %11956 }
 0xb68   :  { %v12851_v25 = vpop.eup %12850  ;;  %v3111_v48 = vmul.f32 %v19553_v0, %v3075_v3  ;;  %19638 = vst [vmem:[#allocation128_spill] sm:$0xff] %v16026_v22  ;;  %v4389_v22 = vsel %vm1072_vm6, %v15388_v33, 0.0  ;;  %v19646_v33 = vld [vmem:[#allocation39_spill] sm:$0xff] }
 0xb69   :  { %19625 = vst [vmem:[#allocation194_spill] sm:$0xff] %v15928_v49  ;;  %v2734_v59 = vmul.f32 %v12851_v25, %v19575_v18  ;;  %v12853_v58 = vpop.eup %12852 }
 0xb6a   :  { %v4754_v42 = vmul.f32 %v12853_v58, %v19565_v38 }
 0xb6b   :  { %3556 = vrot.lane.b32.xlu0 %v2755_v37, %s13512_s28  ;;  %v2754_v35 = vmul.f32 %v19558_v55, %v2734_v59  ;;  %v19629_v59 = vld [vmem:[#allocation143_spill] sm:$0xff] }
 0xb6c   :  { %v12855_v36 = vpop.eup %12854  ;;  %v15949_v21 = vmul.f32 %v19555_v28, %v4754_v42 }
 0xb6d   :  { %3554 = vrot.lane.b32.xlu1 %v2754_v35, %s13512_s28  ;;  %v3076_v56 = vmul.f32 %v12855_v36, %v19525_v53  ;;  %v12857_v29 = vpop.eup %12856  ;;  %v1934_v35 = vmul.f32 8.0, %v19629_v59  ;;  %v19630_v36 = vld [vmem:[#allocation144_spill] sm:$0xff] }
 0xb6e   :  { %v2736_v23 = vmul.f32 %v12857_v29, %v19577_v12  ;;  %19627 = vst [vmem:[#allocation197_spill] sm:$0xff] %v15949_v21  ;;  %v19649_v21 = vld [vmem:[#allocation93_spill] sm:$0xff] }
 0xb6f   :  { %v3112_v13 = vmul.f32 %v19553_v0, %v3076_v56  ;;  %v1951_v3 = vmul.f32 1.442695, %v1934_v35  ;;  %v1933_v56 = vmul.f32 8.0, %v19630_v36  ;;  %v19634_v36 = vld [vmem:[#allocation175_spill] sm:$0xff] }
 0xb70   :  { %v12859_v52 = vpop.eup %12858  ;;  %v2756_v0 = vmul.f32 %v19558_v55, %v2736_v23  ;;  %v1942_v55 = vmul.f32 8.0, %v15417_v47  ;;  %v19633_v23 = vld [vmem:[#allocation146_spill] sm:$0xff]  ;;  %v1944_v47 = vmul.f32 8.0, %v15478_v50 }
 0xb71   :  { %v12035_v24 = vpack.i.bf16 %v3112_v13, %v3111_v48  ;;  %v4755_v25 = vmul.f32 %v12859_v52, %v19525_v53  ;;  %12860 = vpow2.f32 %v1951_v3  ;;  %v1949_v29 = vmul.f32 1.442695, %v1933_v56  ;;  %v19631_v48 = vld [vmem:[#allocation147_spill] sm:$0xff] }
 0xb72   :  { %v1935_v13 = vmul.f32 8.0, %v19631_v48  ;;  %v1967_v35 = vmul.f32 1.442695, %v1942_v55  ;;  %v1938_v56 = vmul.f32 8.0, %v19634_v36  ;;  %v1971_v55 = vmul.f32 1.442695, %v1944_v47 }
 0xb73   :  { %12036 = vrot.lane.b32.xlu1 %v12035_v24, %s13512_s28  ;;  %v15952_v37 = vmul.f32 %v19555_v28, %v4755_v25  ;;  %12862 = vpow2.f32 %v1949_v29  ;;  %v19632_v28 = vld [vmem:[#allocation178_spill] sm:$0xff]  ;;  %v1936_v25 = vmul.f32 8.0, %v19633_v23 }
 0xb74   :  { %v1953_v42 = vmul.f32 1.442695, %v1935_v13  ;;  %v1939_v52 = vmul.f32 8.0, %v19632_v28  ;;  %v19635_v28 = vld [vmem:[#allocation176_spill] sm:$0xff] }
 0xb75   :  { %19628 = vst [vmem:[#allocation20_spill] sm:$0xff] %v15952_v37  ;;  %v1955_v3 = vmul.f32 1.442695, %v1936_v25  ;;  %v19636_v25 = vld [vmem:[#allocation177_spill] sm:$0xff] }
 0xb76   :  { %12864 = vpow2.f32 %v1953_v42  ;;  %v1961_v24 = vmul.f32 1.442695, %v1939_v52  ;;  %v1959_v42 = vmul.f32 1.442695, %v1938_v56  ;;  %v1937_v52 = vmul.f32 8.0, %v19635_v28 }
 0xb77   :  { %3558 = vrot.lane.b32.xlu1 %v2756_v0, %s13512_s28  ;;  %v1941_v0 = vmul.f32 8.0, %v15422_v51  ;;  %v1940_v36 = vmul.f32 8.0, %v19636_v25 }
 0xb78   :  { %12866 = vpow2.f32 %v1961_v24  ;;  %v1957_v23 = vmul.f32 1.442695, %v1937_v52 }
 0xb79   :  { %12868 = vpow2.f32 %v1967_v35  ;;  %v1965_v13 = vmul.f32 1.442695, %v1941_v0  ;;  %v1963_v0 = vmul.f32 1.442695, %v1940_v36 }
 0xb7a   :  { %12870 = vpow2.f32 %v1955_v3  ;;  %v1943_v3 = vmul.f32 8.0, %v15482_v2 }
 0xb7b   :  { %v15964_v59 = vpop.eup %12860  ;;  %12872 = vpow2.f32 %v1965_v13 }
 0xb7c   :  { %v1984_v29 = vsel %vm109_vm0, %v15964_v59, 0.0  ;;  %12874 = vpow2.f32 %v1959_v42  ;;  %v1969_v47 = vmul.f32 1.442695, %v1943_v3 }
 0xb7d   :  { %v15970_v48 = vpop.eup %12862  ;;  %12876 = vpow2.f32 %v1971_v55 }
 0xb7e   :  { %v1981_v51 = vsel %vm109_vm0, %v15970_v48, 0.0  ;;  %12878 = vpow2.f32 %v1957_v23 }
 0xb7f   :  { %12880 = vpow2.f32 %v1963_v0 }
 0xb80   :  { %v15976_v24 = vpop.eup %12864  ;;  %12882 = vpow2.f32 %v1969_v47 }
 0xb81   :  { %v1987_v35 = vsel %vm109_vm0, %v15976_v24, 0.0 }
 0xb82   :  { %v15981_v50 = vpop.eup %12866 }
 0xb83   :  { %v1999_v56 = vsel %vm109_vm0, %v15981_v50, 0.0 }
 0xb8a   :  { %1985 = vadd.xlane.f32.xlu0 %v1984_v29  ;;  %v15986_v29 = vpop.eup %12868 }
 0xb8b   :  { %v15988_v13 = vpop.eup %12870  ;;  %v2008_v42 = vsel %vm109_vm0, %v15986_v29, 0.0 }
 0xb8c   :  { %v15992_v28 = vpop.eup %12872  ;;  %v1990_v52 = vsel %vm109_vm0, %v15988_v13, 0.0 }
 0xb8d   :  { %v15996_v2 = vpop.eup %12874 }
 0xb8e   :  { %1982 = vadd.xlane.f32.xlu0 %v1981_v51  ;;  %v2005_v51 = vsel %vm109_vm0, %v15992_v28, 0.0  ;;  %v16000_v55 = vpop.eup %12876  ;;  %v1996_v23 = vsel %vm109_vm0, %v15996_v2, 0.0 }
 0xb8f   :  { %v16004_v25 = vpop.eup %12878  ;;  %v2014_v36 = vsel %vm109_vm0, %v16000_v55, 0.0 }
 0xb90   :  { %v16010_v0 = vpop.eup %12880 }
 0xb91   :  { %v2002_v3 = vsel %vm109_vm0, %v16010_v0, 0.0 }
 0xb92   :  { %1988 = vadd.xlane.f32.xlu0 %v1987_v35  ;;  %v1993_v35 = vsel %vm109_vm0, %v16004_v25, 0.0 }
 0xb96   :  { %2000 = vadd.xlane.f32.xlu0 %v1999_v56  ;;  %v16014_v56 = vpop.eup %12882 }
 0xb97   :  { %v2011_v47 = vsel %vm109_vm0, %v16014_v56, 0.0 }
 0xb9a   :  { %2009 = vadd.xlane.f32.xlu0 %v2008_v42  ;;  %v16018_v42 = vpop.permute.xlu0 %11951 }
 0xb9b   :  { %1991 = vadd.xlane.f32.xlu1 %v1990_v52  ;;  %19637 = vst [vmem:[#allocation19_spill] sm:$0xff] %v16018_v42 }
 0xb9e   :  { %2006 = vadd.xlane.f32.xlu0 %v2005_v51  ;;  %v16020_v52 = vpop.permute.xlu0 %3117 }
 0xb9f   :  { %1997 = vadd.xlane.f32.xlu1 %v1996_v23 }
 0xba2   :  { %2015 = vadd.xlane.f32.xlu0 %v2014_v36  ;;  %v16022_v23 = vpop.permute.xlu0 %3121 }
 0xba3   :  { %1994 = vadd.xlane.f32.xlu1 %v1993_v35 }
 0xba6   :  { %v16024_v30 = vpop.permute.xlu0 %11966 }
 0xba7   :  { %2003 = vadd.xlane.f32.xlu1 %v2002_v3 }
 0xbaa   :  { %v16028_v19 = vpop.permute.xlu0 %3262 }
 0xbab   :  { %2012 = vadd.xlane.f32.xlu1 %v2011_v47  ;;  %19639 = vst [vmem:[#allocation132_spill] sm:$0xff] %v16028_v19 }
 0xbc2   :  { %v10502_v51 = vpop.f32.mrb[16].mxu0 }
 0xbc3   :  { %v1946_v36 = vmul.f32 8.0, %v10502_v51  ;;  %v1914_v58 = vpop.f32.mrb[17].mxu0  ;;  %v16030_v51 = vpop.permute.xlu1 %11961 }
 0xbc4   :  { %v1945_v35 = vmul.f32 8.0, %v1914_v58 }
 0xbc5   :  { %v1975_v31 = vmul.f32 1.442695, %v1946_v36 }
 0xbc6   :  { %v1973_v38 = vmul.f32 1.442695, %v1945_v35  ;;  %v10505_v53 = vpop.f32.mrb[18].mxu0 }
 0xbc7   :  { %12884 = vpow2.f32 %v1975_v31  ;;  %v1948_v3 = vmul.f32 8.0, %v10505_v53  ;;  %v1924_v4 = vpop.f32.mrb[19].mxu0  ;;  %v16038_v31 = vpop.permute.xlu0 %3266 }
 0xbc8   :  { %12886 = vpow2.f32 %v1973_v38  ;;  %v1947_v47 = vmul.f32 8.0, %v1924_v4  ;;  %19640 = vst [vmem:[#allocation137_spill] sm:$0xff] %v16038_v31  ;;  %v16046_v38 = vpop.permute.xlu1 %3119  ;;  %v19643_v31 = vld [vmem:[#allocation96_spill] sm:$0xff] }
 0xbc9   :  { %v1979_v41 = vmul.f32 1.442695, %v1948_v3 }
 0xbca   :  { %v1977_v34 = vmul.f32 1.442695, %v1947_v47 }
 0xbcb   :  { %12888 = vpow2.f32 %v1979_v41  ;;  %v16052_v47 = vpop.permute.xlu0 %11986 }
 0xbcc   :  { %12890 = vpow2.f32 %v1977_v34  ;;  %19641 = vst [vmem:[#allocation150_spill] sm:$0xff] %v16052_v47 }
 0xbcf   :  { %v16060_v12 = vpop.xlane.xlu0 %4372 }
 0xbd1   :  { %v16032_v58 = vpop.eup %12884 }
 0xbd2   :  { %v16034_v36 = vpop.eup %12886  ;;  %v2020_v53 = vsel %vm109_vm0, %v16032_v58, 0.0 }
 0xbd3   :  { %2021 = vadd.xlane.f32.xlu1 %v2020_v53  ;;  %v2017_v4 = vsel %vm109_vm0, %v16034_v36, 0.0  ;;  %v16054_v53 = vpop.permute.xlu1 %3123 }
 0xbd4   :  { %2018 = vadd.xlane.f32.xlu0 %v2017_v4  ;;  %v4392_v4 = vsel %vm1072_vm6, %v15502_v62, 0.0 }
 0xbd5   :  { %v16042_v41 = vpop.eup %12888 }
 0xbd6   :  { %v16044_v34 = vpop.eup %12890  ;;  %v2026_v35 = vsel %vm109_vm0, %v16042_v41, 0.0 }
 0xbd7   :  { %2027 = vadd.xlane.f32.xlu1 %v2026_v35  ;;  %v2023_v3 = vsel %vm109_vm0, %v16044_v34, 0.0  ;;  %v16062_v54 = vpop.permute.xlu1 %11971  ;;  %v16064_v35 = vpop.xlane.xlu0 %4375 }
 0xbd8   :  { %2024 = vadd.xlane.f32.xlu0 %v2023_v3  ;;  %19642 = vst [vmem:[#allocation193_spill] sm:$0xff] %v16064_v35 }
 0xbdb   :  { %4393 = vadd.xlane.f32.xlu1 %v4392_v4  ;;  %v16066_v42 = vpop.permute.xlu1 %11976  ;;  %v16068_v3 = vpop.permute.xlu0 %12006 }
 0xbdc   :  { %4390 = vadd.xlane.f32.xlu0 %v4389_v22  ;;  %v19647_v22 = vld [vmem:[#allocation38_spill] sm:$0xff] }
 0xbdd   :  { %v19648_v18 = vpack.i.bf16 %v19646_v33, %v19647_v22 }
 0xbdf   :  { %v16070_v27 = vpop.permute.xlu1 %11981  ;;  %v16076_v4 = vpop.permute.xlu0 %3409 }
 0xbe0   :  { %19645 = vst [vmem:[#allocation155_spill] sm:$0xff] %v16076_v4 }
 0xbe3   :  { %v16074_v62 = vpop.permute.xlu1 %3264  ;;  %v16086_v10 = vpop.permute.xlu0 %3411 }
 0xbe4   :  { %19644 = vst [vmem:[#allocation154_spill] sm:$0xff] %v16074_v62  ;;  %19651 = vst [vmem:[#allocation144_spill] sm:$0xff] %v16086_v10 }
 0xbe7   :  { %v16084_v37 = vpop.permute.xlu1 %11991  ;;  %v16092_v62 = vpop.permute.xlu0 %12011 }
 0xbe8   :  { %19650 = vst [vmem:[#allocation143_spill] sm:$0xff] %v16084_v37 }
 0xbeb   :  { %v16096_v46 = vpop.permute.xlu0 %12016 }
 0xbec   :  { %12046 = vrot.lane.b32.xlu1 %v19643_v31, %s13513_s29  ;;  %v16090_v31 = vpop.permute.xlu1 %3268  ;;  %19654 = vst [vmem:[#allocation178_spill] sm:$0xff] %v16096_v46  ;;  %v4383_v46 = vsel %vm1072_vm6, %v19661_v44, 0.0  ;;  %v19667_v44 = vld [vmem:[#allocation40_spill] sm:$0xff] }
 0xbed   :  { %19653 = vst [vmem:[#allocation147_spill] sm:$0xff] %v16090_v31  ;;  %v19660_v31 = vld [vmem:[#allocation192_spill] sm:$0xff] }
 0xbee   :  { %v4386_v49 = vsel %vm1072_vm6, %v19660_v31, 0.0  ;;  %v19666_v31 = vld [vmem:[#allocation41_spill] sm:$0xff] }
 0xbf0   :  { %12051 = vrot.lane.b32.xlu1 %v19648_v18, %s13515_s7  ;;  %v16094_v4 = vpop.permute.xlu1 %11996  ;;  %v16100_v18 = vpop.permute.xlu0 %3552 }
 0xbf1   :  { %19655 = vst [vmem:[#allocation146_spill] sm:$0xff] %v16100_v18 }
 0xbf2   :  { %12041 = vrot.lane.b32.xlu0 %v19649_v21, %s13513_s29 }
 0xbf4   :  { %v16098_v33 = vpop.permute.xlu1 %12001  ;;  %v16104_v21 = vpop.permute.xlu0 %12031 }
 0xbf5   :  { %19656 = vst [vmem:[#allocation175_spill] sm:$0xff] %v16104_v21 }
 0xbf6   :  { %12056 = vrot.lane.b32.xlu0 %v19652_v20, %s13513_s29 }
 0xbf8   :  { %v16102_v22 = vpop.permute.xlu1 %3407  ;;  %v16110_v20 = vpop.permute.xlu0 %3556 }
 0xbf9   :  { %19659 = vst [vmem:[#allocation39_spill] sm:$0xff] %v16110_v20 }
 0xbfc   :  { %v16106_v37 = vpop.permute.xlu1 %3413 }
 0xbfd   :  { %19657 = vst [vmem:[#allocation176_spill] sm:$0xff] %v16106_v37 }
 0xc00   :  { %v16108_v10 = vpop.permute.xlu1 %12021 }
 0xc01   :  { %19658 = vst [vmem:[#allocation177_spill] sm:$0xff] %v16108_v10 }
 0xc04   :  { %v16116_v47 = vpop.permute.xlu1 %12026 }
 0xc05   :  { %19662 = vst [vmem:[#allocation38_spill] sm:$0xff] %v16116_v47 }
 0xc08   :  { %v16118_v14 = vpop.permute.xlu1 %3554 }
 0xc09   :  { %19663 = vst [vmem:[#allocation192_spill] sm:$0xff] %v16118_v14 }
 0xc0c   :  { %v16120_v37 = vpop.permute.xlu1 %12036 }
 0xc0d   :  { %19664 = vst [vmem:[#allocation184_spill] sm:$0xff] %v16120_v37 }
 0xc10   :  { %v16122_v35 = vpop.permute.xlu1 %3558 }
 0xc11   :  { %19665 = vst [vmem:[#allocation198_spill] sm:$0xff] %v16122_v35  ;;  %v19670_v35 = vpack.i.bf16 %v15671_v63, %v15668_v7 }
 0xc14   :  { %4387 = vadd.xlane.f32.xlu1 %v4386_v49 }
 0xc15   :  { %4384 = vadd.xlane.f32.xlu0 %v4383_v46  ;;  %v19668_v46 = vpack.i.bf16 %v19666_v31, %v19667_v44  ;;  %v19671_v44 = vld [vmem:[#allocation173_spill] sm:$0xff] }
 0xc16   :  { %v11923_v19 = vunpack.i.l.bf16 %v19671_v44 }
 0xc17   :  { %v1986_v18 = vpop.xlane.xlu0 %1985 }
 0xc18   :  { %12892 = vrcp.f32 %v1986_v18  ;;  %v11913_v18 = vunpack.i.l.bf16 %v19669_v8 }
 0xc1a   :  { %v11278_v8 = vpack.c.bf16 %v11914_v45, %v11913_v18  ;;  %v19675_v45 = vld [vmem:[#allocation183_spill] sm:$0xff] }
 0xc1b   :  { %v1983_v21 = vpop.xlane.xlu0 %1982 }
 0xc1c   :  { %12894 = vrcp.f32 %v1983_v21 }
 0xc1f   :  { %v1989_v10 = vpop.xlane.xlu0 %1988 }
 0xc20   :  { %12896 = vrcp.f32 %v1989_v10 }
 0xc22   :  { %v12893_v49 = vpop.eup %12892 }
 0xc23   :  { %v2001_v20 = vpop.xlane.xlu0 %2000  ;;  %v2046_v37 = vmul.f32 %v12893_v49, %v15964_v59  ;;  %v19673_v59 = vld [vmem:[#allocation106_spill] sm:$0xff] }
 0xc25   :  { %12066 = vrot.lane.b32.xlu1 %v19668_v46, %s13515_s7  ;;  %v11924_v46 = vunpack.i.h.bf16 %v19671_v44 }
 0xc26   :  { %v12895_v47 = vpop.eup %12894 }
 0xc27   :  { %v2010_v14 = vpop.xlane.xlu0 %2009  ;;  %v2045_v21 = vmul.f32 %v12895_v47, %v15970_v48  ;;  %v19672_v48 = vld [vmem:[#allocation156_spill] sm:$0xff]  ;;  %v11282_v49 = vpack.c.bf16 %v11924_v46, %v11923_v19 }
 0xc28   :  { %v1992_v10 = vpop.xlane.xlu1 %1991 }
 0xc29   :  { %12898 = vrcp.f32 %v1992_v10  ;;  %12071 = vrot.lane.b32.xlu1 %v19670_v35, %s13515_s7  ;;  %10522 = vmatprep.mubr.msk.f32.mxu1 %vm109_vm0, %v2045_v21  ;;  %v19674_v35 = vpack.i.bf16 %v15556_v15, %v15553_v11 }
 0xc2a   :  { %v12897_v31 = vpop.eup %12896  ;;  %10523 = vmatmul.mubr.msk.f32.vlgmr.msra.gmra.mrb[64].mxu1 %vm109_vm0, %v2046_v37  ;;  %12900 = vrcp.f32 %v2010_v14  ;;  %v11929_v14 = vunpack.i.h.bf16 %v19675_v45  ;;  %v11928_v37 = vunpack.i.l.bf16 %v19675_v45  ;;  %v11938_v45 = vunpack.i.l.bf16 %v15315_v17 }
 0xc2b   :  { %11277 = vmatpush3.bf16.msra.mxu1 %v19672_v48  ;;  %12061 = vrot.lane.b32.xlu0 %v19673_v59, %s13513_s29  ;;  %v2007_v47 = vpop.xlane.xlu0 %2006  ;;  %v2047_v7 = vmul.f32 %v12897_v31, %v15976_v24  ;;  %v19676_v24 = vld [vmem:[#allocation43_spill] sm:$0xff] }
 0xc2c   :  { %12902 = vrcp.f32 %v2007_v47  ;;  %11279 = vmatprep.subr.bf16.mxu1 %v11278_v8  ;;  %v1998_v63 = vpop.xlane.xlu1 %1997  ;;  %v11844_v21 = vunpack.i.h.bf16 %v19676_v24  ;;  %v11843_v10 = vunpack.i.l.bf16 %v19676_v24  ;;  %v11286_v31 = vpack.c.bf16 %v11929_v14, %v11928_v37  ;;  %v19678_v24 = vld [vmem:[#allocation107_spill] sm:$0xff] }
 0xc2d   :  { %12076 = vrot.lane.b32.xlu1 %v19674_v35, %s13515_s7  ;;  %10525 = vmatprep.mubr.msk.f32.mxu1 %vm109_vm0, %v2047_v7  ;;  %12904 = vrcp.f32 %v1998_v63  ;;  %v11939_v35 = vunpack.i.h.bf16 %v15315_v17 }
 0xc2e   :  { %v11306_v46 = vpack.c.bf16 %v11844_v21, %v11843_v10  ;;  %v11944_v21 = vunpack.i.h.bf16 %v19678_v24  ;;  %v11943_v10 = vunpack.i.l.bf16 %v19678_v24  ;;  %v12004_v24 = vunpack.i.h.bf16 %v16098_v33 }
 0xc2f   :  { %11281 = vmatpush3.bf16.msra.mxu1 %v11278_v8  ;;  %v2016_v47 = vpop.xlane.xlu0 %2015 }
 0xc30   :  { %11283 = vmatprep.subr.bf16.mxu1 %v11282_v49  ;;  %v1995_v18 = vpop.xlane.xlu1 %1994 }
 0xc31   :  { %12906 = vrcp.f32 %v1995_v18 }
 0xc32   :  { %12908 = vrcp.f32 %v2001_v20 }
 0xc33   :  { %v12899_v11 = vpop.eup %12898  ;;  %11285 = vmatpush3.bf16.msra.mxu1 %v11282_v49 }
 0xc34   :  { %11287 = vmatprep.subr.bf16.mxu1 %v11286_v31  ;;  %v2004_v15 = vpop.xlane.xlu1 %2003  ;;  %v2048_v44 = vmul.f32 %v12899_v11, %v15988_v13  ;;  %v12901_v48 = vpop.eup %12900  ;;  %v11294_v11 = vpack.c.bf16 %v11939_v35, %v11938_v45 }
 0xc35   :  { %12910 = vrcp.f32 %v2004_v15  ;;  %v2054_v7 = vmul.f32 %v12901_v48, %v15986_v29 }
 0xc36   :  { %v12903_v19 = vpop.eup %12902  ;;  %10526 = vmatmul.mubr.msk.f32.gmra.mrb[66].mxu1 %vm109_vm0, %v2048_v44  ;;  %12912 = vrcp.f32 %v2016_v47  ;;  %v11298_v44 = vpack.c.bf16 %v11944_v21, %v11943_v10  ;;  %v11948_v47 = vunpack.i.l.bf16 %v15376_v32  ;;  %v12003_v21 = vunpack.i.l.bf16 %v16098_v33 }
 0xc37   :  { %11289 = vmatpush3.bf16.msra.mxu1 %v11286_v31  ;;  %v2053_v8 = vmul.f32 %v12903_v19, %v15992_v28  ;;  %v12905_v13 = vpop.eup %12904  ;;  %v19677_v28 = vld [vmem:[#allocation44_spill] sm:$0xff]  ;;  %v11963_v19 = vunpack.i.l.bf16 %v16030_v51  ;;  %v19684_v33 = vpack.i.bf16 %v15736_v60, %v15733_v5  ;;  %v19688_v5 = vld [vmem:[#allocation21_spill] sm:$0xff] }
 0xc38   :  { %11308 = vmatprep.subr.msk.bf16.mxu1 %vm14214_vm7, %v11306_v46  ;;  %v2013_v20 = vpop.xlane.xlu1 %2012  ;;  %v11849_v37 = vunpack.i.h.bf16 %v19677_v28  ;;  %v11848_v29 = vunpack.i.l.bf16 %v19677_v28  ;;  %v2050_v18 = vmul.f32 %v12905_v13, %v15996_v2  ;;  %v11998_v28 = vunpack.i.l.bf16 %v16094_v4 }
 0xc39   :  { %12914 = vrcp.f32 %v2013_v20  ;;  %10566 = vmatprep.mubr.msk.f32.mxu1 %vm109_vm0, %v2053_v8  ;;  %v11973_v20 = vunpack.i.l.bf16 %v16062_v54 }
 0xc3a   :  { %10567 = vmatmul.mubr.msk.f32.vlgmr.msra.gmra.mrb[68].mxu1 %vm109_vm0, %v2054_v7  ;;  %v11312_v15 = vpack.c.bf16 %v11849_v37, %v11848_v29  ;;  %v11974_v7 = vunpack.i.h.bf16 %v16062_v54  ;;  %v11969_v54 = vunpack.i.h.bf16 %v16024_v30  ;;  %v19682_v37 = vld [vmem:[#allocation126_spill] sm:$0xff] }
 0xc3b   :  { %v12907_v63 = vpop.eup %12906  ;;  %v4402_v29 = vmax.f32 %v19682_v37, 1e-24 }
 0xc3c   :  { %v12909_v14 = vpop.eup %12908  ;;  %v2049_v49 = vmul.f32 %v12907_v63, %v16004_v25  ;;  %v16200_v13 = vpack.c.bf16 %v11974_v7, %v11973_v20  ;;  %v19680_v63 = vld [vmem:[#allocation113_spill] sm:$0xff]  ;;  %v4410_v7 = vmax.f32 %v15747_v39, 1e-24  ;;  %v12013_v39 = vunpack.i.l.bf16 %v16092_v62 }
 0xc3d   :  { %v2051_v17 = vmul.f32 %v12909_v14, %v15981_v50  ;;  %v11949_v50 = vunpack.i.h.bf16 %v15376_v32  ;;  %v4401_v35 = vmax.f32 %v19680_v63, 1e-24  ;;  %v19681_v14 = vld [vmem:[#allocation116_spill] sm:$0xff]  ;;  %v19695_v20 = vld [vmem:[#allocation149_spill] sm:$0xff]  ;;  %v11979_v63 = vunpack.i.h.bf16 %v16066_v42 }
 0xc3e   :  { %10544 = vmatprep.mubr.msk.f32.mxu0 %vm109_vm0, %v2049_v49 }
 0xc3f   :  { %v12911_v31 = vpop.eup %12910  ;;  %10545 = vmatmul.mubr.msk.f32.vlgmr.msra.gmra.mrb[20].mxu0 %vm109_vm0, %v2050_v18  ;;  %v11302_v32 = vpack.c.bf16 %v11949_v50, %v11948_v47  ;;  %12916 = vrsqrt.f32 %v4401_v35  ;;  %v4405_v18 = vmax.f32 %v15743_v1, 1e-24  ;;  %v11978_v35 = vunpack.i.l.bf16 %v16066_v42 }
 0xc40   :  { %11293 = vmatpush3.bf16.msra.mxu0 %v15706_v6  ;;  %11311 = vmatpush3.bf16.xpose.msk.msra.mxu1 %vm14214_vm7, %v11306_v46  ;;  %v2052_v2 = vmul.f32 %v12911_v31, %v16010_v0  ;;  %v12913_v25 = vpop.eup %12912  ;;  %v11964_v6 = vunpack.i.h.bf16 %v16030_v51  ;;  %v11968_v51 = vunpack.i.l.bf16 %v16024_v30  ;;  %v11999_v30 = vunpack.i.h.bf16 %v16094_v4  ;;  %v19683_v4 = vld [vmem:[#allocation46_spill] sm:$0xff] }
 0xc41   :  { %10547 = vmatprep.mubr.msk.f32.mxu0 %vm109_vm0, %v2051_v17  ;;  %11295 = vmatprep.subr.bf16.mxu0 %v11294_v11  ;;  %v2056_v46 = vmul.f32 %v12913_v25, %v16000_v55  ;;  %12918 = vrsqrt.f32 %v4402_v29  ;;  %v11360_v31 = vpack.c.bf16 %v12004_v24, %v12003_v21  ;;  %v12008_v25 = vunpack.i.l.bf16 %v16068_v3 }
 0xc42   :  { %11314 = vmatprep.subr.msk.bf16.mxu1 %vm14214_vm7, %v11312_v15  ;;  %v11318_v8 = vpack.c.bf16 %v11964_v6, %v11963_v19  ;;  %v11324_v45 = vpack.c.bf16 %v11969_v54, %v11968_v51  ;;  %v11354_v49 = vpack.c.bf16 %v11999_v30, %v11998_v28  ;;  %12920 = vrsqrt.f32 %v4405_v18  ;;  %v19700_v18 = vld [vmem:[#allocation182_spill] sm:$0xff] }
 0xc43   :  { %v12915_v48 = vpop.eup %12914  ;;  %10548 = vmatmul.mubr.msk.f32.gmra.mrb[22].mxu0 %vm109_vm0, %v2052_v2  ;;  %v4407_v28 = vmax.f32 %v16060_v12, 1e-24  ;;  %v4409_v24 = vmax.f32 %v19700_v18, 1e-24  ;;  %v11336_v21 = vpack.c.bf16 %v11979_v63, %v11978_v35  ;;  %v19726_v18 = vld [vmem:[#allocation155_spill] sm:$0xff] }
 0xc44   :  { %11297 = vmatpush3.bf16.msra.mxu0 %v11294_v11  ;;  %v2055_v0 = vmul.f32 %v12915_v48, %v16014_v56  ;;  %v19679_v56 = vld [vmem:[#allocation110_spill] sm:$0xff]  ;;  %v4403_v11 = vmax.f32 %v15661_v16, 1e-24  ;;  %v19685_v16 = vld [vmem:[#allocation123_spill] sm:$0xff] }
 0xc45   :  { %11299 = vmatprep.subr.bf16.mxu0 %v11298_v44  ;;  %v4398_v55 = vsel %vm1072_vm6, %v19679_v56, 0.0  ;;  %v19689_v48 = vld [vmem:[#allocation118_spill] sm:$0xff] }
 0xc46   :  { %10569 = vmatprep.mubr.msk.f32.mxu1 %vm109_vm0, %v2055_v0  ;;  %v4406_v50 = vmax.f32 %v19689_v48, 1e-24 }
 0xc47   :  { %10570 = vmatmul.mubr.msk.f32.gmra.mrb[70].mxu1 %vm109_vm0, %v2056_v46  ;;  %v19692_v46 = vld [vmem:[#allocation136_spill] sm:$0xff] }
 0xc48   :  { %11301 = vmatpush3.bf16.msra.mxu0 %v11298_v44  ;;  %11317 = vmatpush3.bf16.xpose.msk.msra.mxu1 %vm14214_vm7, %v11312_v15  ;;  %v19686_v15 = vld [vmem:[#allocation121_spill] sm:$0xff] }
 0xc49   :  { %11303 = vmatprep.subr.bf16.mxu0 %v11302_v32  ;;  %11320 = vmatprep.subr.msk.bf16.mxu1 %vm14214_vm7, %v11318_v8  ;;  %v12917_v10 = vpop.eup %12916  ;;  %v19687_v2 = vpack.i.bf16 %v19685_v16, %v19686_v15  ;;  %v11984_v15 = vunpack.i.h.bf16 %v16070_v27 }
 0xc4a   :  { %10610 = vmatprep.mubr.msk.f32.mxu1 %vm1072_vm6, %v16020_v52  ;;  %4399 = vadd.xlane.f32.xlu0 %v4398_v55  ;;  %v4395_v52 = vsel %vm1072_vm6, %v19681_v14, 0.0  ;;  %v4433_v17 = vmul.f32 %v12917_v10, %v19683_v4  ;;  %v19696_v55 = vld [vmem:[#allocation64_spill] sm:$0xff]  ;;  %v19697_v14 = vld [vmem:[#allocation161_spill] sm:$0xff] }
 0xc4b   :  { %v12919_v44 = vpop.eup %12918 }
 0xc4c   :  { %11305 = vmatpush3.bf16.msra.mxu0 %v11302_v32  ;;  %v4452_v60 = vmul.f32 %v19688_v5, %v4433_v17  ;;  %v4434_v19 = vmul.f32 %v12919_v44, %v19579_v61  ;;  %v12921_v0 = vpop.eup %12920  ;;  %v4404_v32 = vmax.f32 %v19695_v20, 1e-24  ;;  %v19701_v17 = vld [vmem:[#allocation32_spill] sm:$0xff]  ;;  %v19710_v44 = vld [vmem:[#allocation66_spill] sm:$0xff] }
 0xc4d   :  { %11332 = vmatprep.subr.msk.bf16.mxu0 %vm14214_vm7, %v16200_v13  ;;  %v4437_v54 = vmul.f32 %v12921_v0, %v19696_v55  ;;  %v11828_v16 = vunpack.i.l.bf16 %v19701_v17 }
 0xc4e   :  { %v4453_v56 = vmul.f32 %v19688_v5, %v4434_v19  ;;  %v19714_v19 = vld [vmem:[#allocation193_spill] sm:$0xff] }
 0xc4f   :  { %v4408_v0 = vmax.f32 %v19714_v19, 1e-24 }
 0xc50   :  { %11323 = vmatpush3.bf16.xpose.msk.msra.mxu1 %vm14214_vm7, %v11318_v8 }
 0xc51   :  { %11326 = vmatprep.subr.msk.bf16.mxu1 %vm14214_vm7, %v11324_v45  ;;  %4396 = vadd.xlane.f32.xlu1 %v4395_v52 }
 0xc58   :  { %11329 = vmatpush3.bf16.xpose.msk.msra.mxu1 %vm14214_vm7, %v11324_v45  ;;  %v12014_v45 = vunpack.i.h.bf16 %v16092_v62  ;;  %v4456_v62 = vmul.f32 %v19688_v5, %v4437_v54 }
 0xc59   :  { %11356 = vmatprep.subr.msk.bf16.mxu1 %vm14214_vm7, %v11354_v49 }
 0xc5f   :  { %10611 = vmatmul.mubr.msk.f32.vlgmr.msra.gmra.mrb[72].mxu1 %vm1072_vm6, %v16046_v38 }
 0xc60   :  { %10613 = vmatprep.mubr.msk.f32.mxu1 %vm1072_vm6, %v16022_v23  ;;  %11359 = vmatpush3.bf16.xpose.msk.msra.mxu1 %vm14214_vm7, %v11354_v49  ;;  %v2022_v1 = vpop.xlane.xlu1 %2021  ;;  %v12009_v23 = vunpack.i.h.bf16 %v16068_v3  ;;  %v19690_v3 = vpack.i.bf16 %v15780_v43, %v15777_v9  ;;  %v19694_v9 = vpack.i.bf16 %v15820_v40, %v15817_v57  ;;  %v19698_v57 = vld [vmem:[#allocation159_spill] sm:$0xff] }
 0xc61   :  { %12081 = vrot.lane.b32.xlu0 %v19684_v33, %s13515_s7  ;;  %12922 = vrcp.f32 %v2022_v1  ;;  %11362 = vmatprep.subr.msk.bf16.mxu1 %vm14214_vm7, %v11360_v31  ;;  %v2019_v38 = vpop.xlane.xlu0 %2018  ;;  %v19699_v40 = vpack.i.bf16 %v19697_v14, %v19698_v57  ;;  %v19702_v1 = vld [vmem:[#allocation142_spill] sm:$0xff] }
 0xc62   :  { %12924 = vrcp.f32 %v2019_v38  ;;  %12086 = vrot.lane.b32.xlu1 %v19687_v2, %s13515_s7  ;;  %v19703_v33 = vld [vmem:[#allocation138_spill] sm:$0xff]  ;;  %v11983_v2 = vunpack.i.l.bf16 %v16070_v27 }
 0xc63   :  { %10614 = vmatmul.mubr.msk.f32.gmra.mrb[74].mxu1 %vm1072_vm6, %v16054_v53  ;;  %12926 = vrsqrt.f32 %v4403_v11  ;;  %v11366_v53 = vpack.c.bf16 %v12009_v23, %v12008_v25  ;;  %v11829_v11 = vunpack.i.h.bf16 %v19701_v17  ;;  %v19704_v38 = vpack.i.bf16 %v19702_v1, %v19703_v33  ;;  %v19707_v23 = vld [vmem:[#allocation162_spill] sm:$0xff]  ;;  %v19730_v33 = vld [vmem:[#allocation176_spill] sm:$0xff] }
 0xc64   :  { %10654 = vmatprep.mubr.msk.f32.mxu1 %vm1072_vm6, %v16102_v22  ;;  %v2028_v47 = vpop.xlane.xlu1 %2027  ;;  %v19691_v22 = vld [vmem:[#allocation141_spill] sm:$0xff]  ;;  %v19719_v14 = vld [vmem:[#allocation194_spill] sm:$0xff] }
 0xc65   :  { %4795 = vrot.lane.b32.xlu0 %v4452_v60, %s13515_s7  ;;  %12928 = vrcp.f32 %v2028_v47  ;;  %v2025_v6 = vpop.xlane.xlu0 %2024  ;;  %v19693_v8 = vpack.i.bf16 %v19691_v22, %v19692_v46  ;;  %v19709_v60 = vld [vmem:[#allocation132_spill] sm:$0xff]  ;;  %v11402_v22 = vpack.c.bf16 %v11829_v11, %v11828_v16  ;;  %v19729_v11 = vld [vmem:[#allocation81_spill] sm:$0xff]  ;;  %v19731_v16 = vld [vmem:[#allocation98_spill] sm:$0xff] }
 0xc66   :  { %12930 = vrcp.f32 %v2025_v6  ;;  %12091 = vrot.lane.b32.xlu1 %v19690_v3, %s13515_s7  ;;  %v19712_v47 = vld [vmem:[#allocation172_spill] sm:$0xff] }
 0xc67   :  { %12932 = vrsqrt.f32 %v4406_v50  ;;  %v19711_v50 = vld [vmem:[#allocation174_spill] sm:$0xff] }
 0xc68   :  { %11365 = vmatpush3.bf16.xpose.msk.msra.mxu1 %vm14214_vm7, %v11360_v31  ;;  %12934 = vrsqrt.f32 %v4410_v7  ;;  %v19713_v6 = vpack.i.bf16 %v19711_v50, %v19712_v47  ;;  %v4394_v46 = vpop.xlane.xlu1 %4393 }
 0xc69   :  { %12101 = vrot.lane.b32.xlu0 %v19693_v8, %s13515_s7  ;;  %11368 = vmatprep.subr.msk.bf16.mxu1 %vm14214_vm7, %v11366_v53  ;;  %v4391_v29 = vpop.xlane.xlu0 %4390  ;;  %12936 = vrsqrt.f32 %v4404_v32  ;;  %v19716_v32 = vld [vmem:[#allocation84_spill] sm:$0xff] }
 0xc6a   :  { %12096 = vrot.lane.b32.xlu1 %v19694_v9, %s13515_s7  ;;  %12938 = vrsqrt.f32 %v4407_v28  ;;  %v4413_v10 = vmax.f32 %v4391_v29, 1e-24  ;;  %v19715_v9 = vld [vmem:[#allocation33_spill] sm:$0xff]  ;;  %v19722_v28 = vld [vmem:[#allocation115_spill] sm:$0xff] }
 0xc6b   :  { %v12923_v43 = vpop.eup %12922  ;;  %12940 = vrsqrt.f32 %v4409_v24  ;;  %v11838_v20 = vunpack.i.l.bf16 %v19715_v9  ;;  %v19723_v29 = vld [vmem:[#allocation187_spill] sm:$0xff] }
 0xc6c   :  { %v12925_v51 = vpop.eup %12924  ;;  %v2058_v37 = vmul.f32 %v12923_v43, %v16032_v58  ;;  %12942 = vrsqrt.f32 %v4413_v10  ;;  %v11839_v43 = vunpack.i.h.bf16 %v19715_v9  ;;  %v19728_v10 = vld [vmem:[#allocation144_spill] sm:$0xff]  ;;  %v19737_v9 = vld [vmem:[#allocation197_spill] sm:$0xff] }
 0xc6d   :  { %12111 = vrot.lane.b32.xlu0 %v19699_v40, %s13515_s7  ;;  %v2057_v52 = vmul.f32 %v12925_v51, %v16034_v36  ;;  %v12927_v30 = vpop.eup %12926  ;;  %v11372_v36 = vpack.c.bf16 %v12014_v45, %v12013_v39  ;;  %v19717_v51 = vld [vmem:[#allocation150_spill] sm:$0xff]  ;;  %12944 = vrsqrt.f32 %v4408_v0  ;;  %v4414_v45 = vmax.f32 %v4394_v46, 1e-24  ;;  %v19721_v40 = vld [vmem:[#allocation55_spill] sm:$0xff] }
 0xc6e   :  { %4797 = vrot.lane.b32.xlu1 %v4453_v56, %s13515_s7  ;;  %v11989_v63 = vunpack.i.h.bf16 %v19717_v51  ;;  %v11988_v35 = vunpack.i.l.bf16 %v19717_v51  ;;  %v19718_v39 = vld [vmem:[#allocation18_spill] sm:$0xff] }
 0xc6f   :  { %v12929_v42 = vpop.eup %12928  ;;  %10588 = vmatprep.mubr.msk.f32.mxu0 %vm109_vm0, %v2057_v52  ;;  %v19720_v57 = vpack.i.bf16 %v19718_v39, %v19719_v14  ;;  %12946 = vrsqrt.f32 %v4414_v45  ;;  %v19741_v14 = vld [vmem:[#allocation154_spill] sm:$0xff] }
 0xc70   :  { %v12931_v49 = vpop.eup %12930  ;;  %11371 = vmatpush3.bf16.xpose.msk.msra.mxu1 %vm14214_vm7, %v11366_v53  ;;  %10589 = vmatmul.mubr.msk.f32.vlgmr.msra.gmra.mrb[24].mxu0 %vm109_vm0, %v2058_v37  ;;  %v2060_v31 = vmul.f32 %v12929_v42, %v16042_v41  ;;  %v19706_v41 = vld [vmem:[#allocation163_spill] sm:$0xff]  ;;  %v11342_v53 = vpack.c.bf16 %v11984_v15, %v11983_v2  ;;  %v11859_v37 = vunpack.i.h.bf16 %v19722_v28  ;;  %v11858_v42 = vunpack.i.l.bf16 %v19722_v28  ;;  %v19732_v2 = vld [vmem:[#allocation120_spill] sm:$0xff] }
 0xc71   :  { %4940 = vrot.lane.b32.xlu0 %v4456_v62, %s13515_s7  ;;  %11335 = vmatpush3.bf16.xpose.msk.msra.mxu0 %vm14214_vm7, %v16200_v13  ;;  %v2059_v12 = vmul.f32 %v12931_v49, %v16044_v34  ;;  %v12933_v58 = vpop.eup %12932  ;;  %v19705_v34 = vld [vmem:[#allocation53_spill] sm:$0xff]  ;;  %v19708_v25 = vpack.i.bf16 %v19706_v41, %v19707_v23  ;;  %v11869_v41 = vunpack.i.h.bf16 %v19732_v2  ;;  %v11868_v23 = vunpack.i.l.bf16 %v19732_v2 }
 0xc72   :  { %11374 = vmatprep.subr.msk.bf16.mxu1 %vm14214_vm7, %v11372_v36  ;;  %11338 = vmatprep.subr.msk.bf16.mxu0 %vm14214_vm7, %v11336_v21  ;;  %v4435_v13 = vmul.f32 %v12927_v30, %v19705_v34  ;;  %v4438_v48 = vmul.f32 %v12933_v58, %v19710_v44  ;;  %v12935_v3 = vpop.eup %12934  ;;  %v19724_v62 = vld [vmem:[#allocation185_spill] sm:$0xff]  ;;  %v11348_v58 = vpack.c.bf16 %v11989_v63, %v11988_v35  ;;  %v19740_v35 = vld [vmem:[#allocation100_spill] sm:$0xff] }
 0xc73   :  { %12106 = vrot.lane.b32.xlu1 %v19704_v38, %s13515_s7  ;;  %10591 = vmatprep.mubr.msk.f32.mxu0 %vm109_vm0, %v2059_v12  ;;  %v12937_v7 = vpop.eup %12936  ;;  %v4442_v56 = vmul.f32 %v12935_v3, %v19716_v32  ;;  %v19725_v49 = vpack.i.bf16 %v19723_v29, %v19724_v62  ;;  %v11414_v0 = vpack.c.bf16 %v11869_v41, %v11868_v23  ;;  %v19745_v29 = vld [vmem:[#allocation146_spill] sm:$0xff]  ;;  %v16409_v62 = vpop.permute.xlu1 %12046  ;;  %v19748_v23 = vld [vmem:[#allocation133_spill] sm:$0xff]  ;;  %v19833_v44 = vld [vmem:[#allocation164_spill] sm:$0xff] }
 0xc74   :  { %10592 = vmatmul.mubr.msk.f32.gmra.mrb[26].mxu0 %vm109_vm0, %v2060_v31  ;;  %v4454_v27 = vmul.f32 %v19688_v5, %v4435_v13  ;;  %v4457_v8 = vmul.f32 %v19688_v5, %v4438_v48  ;;  %v12939_v54 = vpop.eup %12938  ;;  %v4436_v52 = vmul.f32 %v12937_v7, %v19721_v40  ;;  %v11406_v31 = vpack.c.bf16 %v11839_v43, %v11838_v20  ;;  %v19736_v7 = vld [vmem:[#allocation20_spill] sm:$0xff]  ;;  %v19838_v34 = vld [vmem:[#allocation189_spill] sm:$0xff] }
 0xc75   :  { %12121 = vrot.lane.b32.xlu0 %v19708_v25, %s13515_s7  ;;  %10632 = vmatprep.mubr.msk.f32.mxu0 %vm1072_vm6, %v19709_v60  ;;  %v12941_v30 = vpop.eup %12940  ;;  %v4461_v24 = vmul.f32 %v19688_v5, %v4442_v56  ;;  %v11410_v13 = vpack.c.bf16 %v11859_v37, %v11858_v42  ;;  %v19733_v25 = vld [vmem:[#allocation177_spill] sm:$0xff]  ;;  %v19738_v43 = vpack.i.bf16 %v19736_v7, %v19737_v9  ;;  %v19739_v56 = vld [vmem:[#allocation38_spill] sm:$0xff]  ;;  %v19744_v42 = vld [vmem:[#allocation147_spill] sm:$0xff] }
 0xc76   :  { %v12943_v12 = vpop.eup %12942  ;;  %v4455_v17 = vmul.f32 %v19688_v5, %v4436_v52  ;;  %v4441_v1 = vmul.f32 %v12941_v30, %v19729_v11  ;;  %v12024_v60 = vunpack.i.h.bf16 %v19733_v25  ;;  %v12023_v48 = vunpack.i.l.bf16 %v19733_v25  ;;  %v19743_v30 = vld [vmem:[#allocation175_spill] sm:$0xff] }
 0xc77   :  { %12116 = vrot.lane.b32.xlu1 %v19713_v6, %s13515_s7  ;;  %v4445_v15 = vmul.f32 %v12943_v12, %v19731_v16  ;;  %v12945_v47 = vpop.eup %12944  ;;  %v19734_v6 = vld [vmem:[#allocation160_spill] sm:$0xff]  ;;  %v12028_v51 = vunpack.i.l.bf16 %v19739_v56  ;;  %v12034_v28 = vunpack.i.h.bf16 %v19743_v30  ;;  %v12033_v37 = vunpack.i.l.bf16 %v19743_v30  ;;  %v19753_v7 = vld [vmem:[#allocation39_spill] sm:$0xff] }
 0xc78   :  { %11377 = vmatpush3.bf16.xpose.msk.msra.mxu1 %vm14214_vm7, %v11372_v36  ;;  %v4460_v50 = vmul.f32 %v19688_v5, %v4441_v1  ;;  %v11908_v3 = vunpack.i.l.bf16 %v19734_v6  ;;  %v11378_v19 = vpack.c.bf16 %v12024_v60, %v12023_v48  ;;  %v11889_v25 = vunpack.i.h.bf16 %v19748_v23 }
 0xc79   :  { %4799 = vrot.lane.b32.xlu0 %v4454_v27, %s13515_s7  ;;  %11341 = vmatpush3.bf16.xpose.msk.msra.mxu0 %vm14214_vm7, %v11336_v21  ;;  %v19727_v21 = vld [vmem:[#allocation69_spill] sm:$0xff]  ;;  %v11909_v27 = vunpack.i.h.bf16 %v19734_v6  ;;  %v11888_v60 = vunpack.i.l.bf16 %v19748_v23  ;;  %v19761_v23 = vld [vmem:[#allocation50_spill] sm:$0xff] }
 0xc7a   :  { %11403 = vmatprep.subr.bf16.mxu1 %v11402_v22  ;;  %11344 = vmatprep.subr.msk.bf16.mxu0 %vm14214_vm7, %v11342_v53  ;;  %v4439_v36 = vmul.f32 %v12939_v54, %v19727_v21  ;;  %v12029_v54 = vunpack.i.h.bf16 %v19739_v56  ;;  %v19754_v56 = vld [vmem:[#allocation143_spill] sm:$0xff] }
 0xc7b   :  { %4942 = vrot.lane.b32.xlu1 %v4457_v8, %s13515_s7  ;;  %v12947_v8 = vpop.eup %12946  ;;  %v16385_v20 = vpack.c.bf16 %v11909_v27, %v11908_v3  ;;  %v19750_v27 = vld [vmem:[#allocation19_spill] sm:$0xff] }
 0xc7c   :  { %v4458_v38 = vmul.f32 %v19688_v5, %v4439_v36  ;;  %v4446_v45 = vmul.f32 %v12947_v8, %v19740_v35  ;;  %v11384_v39 = vpack.c.bf16 %v12029_v54, %v12028_v51  ;;  %v11954_v3 = vunpack.i.h.bf16 %v19750_v27 }
 0xc7d   :  { %12131 = vrot.lane.b32.xlu0 %v19720_v57, %s13515_s7  ;;  %v19742_v57 = vld [vmem:[#allocation137_spill] sm:$0xff]  ;;  %v11994_v54 = vunpack.i.h.bf16 %v19754_v56  ;;  %v11993_v51 = vunpack.i.l.bf16 %v19754_v56 }
 0xc7e   :  { %v4465_v52 = vmul.f32 %v19688_v5, %v4446_v45  ;;  %v19776_v56 = vld [vmem:[#allocation125_spill] sm:$0xff] }
 0xc7f   :  { %12126 = vrot.lane.b32.xlu1 %v19725_v49, %s13515_s7  ;;  %10655 = vmatmul.mubr.msk.f32.vlgmr.msra.gmra.mrb[76].mxu1 %vm1072_vm6, %v19726_v18  ;;  %v11390_v49 = vpack.c.bf16 %v12034_v28, %v12033_v37  ;;  %v12042_v18 = vpop.permute.xlu0 %12041 }
 0xc80   :  { %10657 = vmatprep.mubr.msk.f32.mxu1 %vm1072_vm6, %v19728_v10  ;;  %11405 = vmatpush3.bf16.msra.mxu1 %v11402_v22  ;;  %v19735_v22 = vld [vmem:[#allocation71_spill] sm:$0xff] }
 0xc81   :  { %5087 = vrot.lane.b32.xlu0 %v4461_v24, %s13515_s7  ;;  %11347 = vmatpush3.bf16.xpose.msk.msra.mxu0 %vm14214_vm7, %v11342_v53  ;;  %v4464_v53 = vmul.f32 %v19688_v5, %v4445_v15  ;;  %v4440_v46 = vmul.f32 %v12945_v47, %v19735_v22  ;;  %v19746_v24 = vld [vmem:[#allocation184_spill] sm:$0xff]  ;;  %v19749_v47 = vld [vmem:[#allocation89_spill] sm:$0xff] }
 0xc82   :  { %11407 = vmatprep.subr.bf16.mxu1 %v11406_v31  ;;  %11350 = vmatprep.subr.msk.bf16.mxu0 %vm14214_vm7, %v11348_v58  ;;  %v12039_v36 = vunpack.i.h.bf16 %v19746_v24  ;;  %v12038_v12 = vunpack.i.l.bf16 %v19746_v24 }
 0xc83   :  { %4801 = vrot.lane.b32.xlu1 %v4455_v17, %s13515_s7  ;;  %10658 = vmatmul.mubr.msk.f32.gmra.mrb[78].mxu1 %vm1072_vm6, %v19730_v33  ;;  %v4459_v63 = vmul.f32 %v19688_v5, %v4440_v46  ;;  %v16419_v10 = vpop.permute.xlu0 %12056  ;;  %v19752_v46 = vld [vmem:[#allocation87_spill] sm:$0xff] }
 0xc84   :  { %11409 = vmatpush3.bf16.msra.mxu1 %v11406_v31  ;;  %v11396_v31 = vpack.c.bf16 %v12039_v36, %v12038_v12  ;;  %v19756_v12 = vld [vmem:[#allocation105_spill] sm:$0xff] }
 0xc85   :  { %4944 = vrot.lane.b32.xlu0 %v4458_v38, %s13515_s7  ;;  %11411 = vmatprep.subr.bf16.mxu1 %v11410_v13 }
 0xc87   :  { %5085 = vrot.lane.b32.xlu1 %v4460_v50, %s13515_s7 }
 0xc88   :  { %11413 = vmatpush3.bf16.msra.mxu1 %v11410_v13  ;;  %v19747_v13 = vld [vmem:[#allocation130_spill] sm:$0xff] }
 0xc89   :  { %5230 = vrot.lane.b32.xlu0 %v4464_v53, %s13515_s7  ;;  %11353 = vmatpush3.bf16.xpose.msk.msra.mxu0 %vm14214_vm7, %v11348_v58  ;;  %v16417_v58 = vpop.permute.xlu1 %12051  ;;  %v11879_v15 = vunpack.i.h.bf16 %v19747_v13  ;;  %v11878_v2 = vunpack.i.l.bf16 %v19747_v13  ;;  %v11953_v53 = vunpack.i.l.bf16 %v19750_v27  ;;  %v19758_v13 = vld [vmem:[#allocation26_spill] sm:$0xff]  ;;  %v19768_v27 = vld [vmem:[#allocation117_spill] sm:$0xff] }
 0xc8a   :  { %11415 = vmatprep.subr.bf16.mxu1 %v11414_v0  ;;  %11380 = vmatprep.subr.msk.bf16.mxu0 %vm14214_vm7, %v11378_v19 }
 0xc8b   :  { %12136 = vrot.lane.b32.xlu1 %v19738_v43, %s13515_s7  ;;  %v11418_v41 = vpack.c.bf16 %v11879_v15, %v11878_v2  ;;  %v11426_v45 = vpack.c.bf16 %v11954_v3, %v11953_v53  ;;  %v19759_v2 = vld [vmem:[#allocation31_spill] sm:$0xff]  ;;  %v19769_v3 = vld [vmem:[#allocation124_spill] sm:$0xff] }
 0xc8c   :  { %11417 = vmatpush3.bf16.msra.mxu1 %v11414_v0  ;;  %v11422_v0 = vpack.c.bf16 %v11889_v25, %v11888_v60  ;;  %v19762_v25 = vld [vmem:[#allocation30_spill] sm:$0xff]  ;;  %v19763_v60 = vld [vmem:[#allocation119_spill] sm:$0xff]  ;;  %v19770_v53 = vld [vmem:[#allocation108_spill] sm:$0xff] }
 0xc8d   :  { %11435 = vmatprep.subr.bf16.mxu1 %v16385_v20 }
 0xc8f   :  { %4946 = vrot.lane.b32.xlu1 %v4459_v63, %s13515_s7  ;;  %v19755_v63 = vld [vmem:[#allocation198_spill] sm:$0xff] }
 0xc90   :  { %10633 = vmatmul.mubr.msk.f32.vlgmr.msra.gmra.mrb[28].mxu0 %vm1072_vm6, %v19741_v14  ;;  %v12043_v14 = vunpack.i.l.bf16 %v12042_v18 }
 0xc91   :  { %10635 = vmatprep.mubr.msk.f32.mxu0 %vm1072_vm6, %v19742_v57  ;;  %11383 = vmatpush3.bf16.xpose.msk.msra.mxu0 %vm14214_vm7, %v11378_v19  ;;  %v19751_v19 = vld [vmem:[#allocation192_spill] sm:$0xff]  ;;  %v11430_v57 = vpack.c.bf16 %v11994_v54, %v11993_v51  ;;  %v19777_v54 = vld [vmem:[#allocation79_spill] sm:$0xff] }
 0xc92   :  { %11386 = vmatprep.subr.msk.bf16.mxu0 %vm14214_vm7, %v11384_v39 }
 0xc93   :  { %5232 = vrot.lane.b32.xlu1 %v4465_v52, %s13515_s7 }
 0xc94   :  { %10636 = vmatmul.mubr.msk.f32.gmra.mrb[30].mxu0 %vm1072_vm6, %v19744_v42 }
 0xc95   :  { %10676 = vmatprep.mubr.msk.f32.mxu0 %vm1072_vm6, %v19745_v29 }
 0xc99   :  { %11389 = vmatpush3.bf16.xpose.msk.msra.mxu0 %vm14214_vm7, %v11384_v39  ;;  %v12044_v39 = vunpack.i.h.bf16 %v12042_v18 }
 0xc9a   :  { %11392 = vmatprep.subr.msk.bf16.mxu0 %vm14214_vm7, %v11390_v49 }
 0xc9b   :  { %v16447_v52 = vpack.c.bf16 %v12044_v39, %v12043_v14  ;;  %v19781_v14 = vld [vmem:[#allocation114_spill] sm:$0xff] }
 0xca1   :  { %11395 = vmatpush3.bf16.xpose.msk.msra.mxu0 %vm14214_vm7, %v11390_v49  ;;  %v4388_v17 = vpop.xlane.xlu1 %4387 }
 0xca2   :  { %v4412_v1 = vmax.f32 %v4388_v17, 1e-24  ;;  %11398 = vmatprep.subr.msk.bf16.mxu0 %vm14214_vm7, %v11396_v31  ;;  %v4385_v33 = vpop.xlane.xlu0 %4384 }
 0xca3   :  { %v4411_v38 = vmax.f32 %v4385_v33, 1e-24  ;;  %v19757_v33 = vld [vmem:[#allocation103_spill] sm:$0xff] }
 0xca4   :  { %12948 = vrsqrt.f32 %v4412_v1 }
 0xca5   :  { %12950 = vrsqrt.f32 %v4411_v38  ;;  %v16450_v30 = vpop.permute.xlu1 %12066 }
 0xca6   :  { %v16452_v28 = vpop.permute.xlu0 %12061 }
 0xca9   :  { %11401 = vmatpush3.bf16.xpose.msk.msra.mxu0 %vm14214_vm7, %v11396_v31  ;;  %v16454_v37 = vpop.permute.xlu1 %12071 }
 0xcaa   :  { %11419 = vmatprep.subr.bf16.mxu0 %v11418_v41 }
 0xcad   :  { %v16456_v49 = vpop.permute.xlu1 %12076 }
 0xcae   :  { %v12949_v48 = vpop.eup %12948 }
 0xcaf   :  { %v12951_v50 = vpop.eup %12950  ;;  %v4444_v6 = vmul.f32 %v12949_v48, %v19749_v47  ;;  %v19764_v48 = vld [vmem:[#allocation47_spill] sm:$0xff]  ;;  %v19832_v47 = vld [vmem:[#allocation190_spill] sm:$0xff] }
 0xcb0   :  { %10677 = vmatmul.mubr.msk.f32.vlgmr.msra.gmra.mrb[32].mxu0 %vm1072_vm6, %v19751_v19  ;;  %v4443_v8 = vmul.f32 %v12951_v50, %v19752_v46  ;;  %v19771_v19 = vld [vmem:[#allocation127_spill] sm:$0xff] }
 0xcb1   :  { %10679 = vmatprep.mubr.msk.f32.mxu0 %vm1072_vm6, %v19753_v7  ;;  %11421 = vmatpush3.bf16.msra.mxu0 %v11418_v41  ;;  %v4463_v9 = vmul.f32 %v19688_v5, %v4444_v6  ;;  %v19760_v41 = vld [vmem:[#allocation23_spill] sm:$0xff] }
 0xcb2   :  { %11423 = vmatprep.subr.bf16.mxu0 %v11422_v0  ;;  %v4462_v43 = vmul.f32 %v19688_v5, %v4443_v8  ;;  %v19773_v8 = vld [vmem:[#allocation148_spill] sm:$0xff] }
 0xcb3   :  { %5091 = vrot.lane.b32.xlu1 %v4463_v9, %s13515_s7 }
 0xcb4   :  { %10680 = vmatmul.mubr.msk.f32.gmra.mrb[34].mxu0 %vm1072_vm6, %v19755_v63  ;;  %5089 = vrot.lane.b32.xlu0 %v4462_v43, %s13515_s7 }
 0xcb5   :  { %11425 = vmatpush3.bf16.msra.mxu0 %v11422_v0  ;;  %v19772_v0 = vld [vmem:[#allocation122_spill] sm:$0xff] }
 0xcb6   :  { %11427 = vmatprep.subr.bf16.mxu0 %v11426_v45 }
 0xcb9   :  { %11429 = vmatpush3.bf16.msra.mxu0 %v11426_v45  ;;  %v19780_v45 = vld [vmem:[#allocation145_spill] sm:$0xff] }
 0xcba   :  { %11431 = vmatprep.subr.bf16.mxu0 %v11430_v57 }
 0xcbd   :  { %11433 = vmatpush3.bf16.msra.mxu0 %v11430_v57 }
 0xcbe   :  { %11451 = vmatprep.subr.bf16.mxu0 %v16447_v52 }
 0xcd7   :  { %v4400_v42 = vpop.xlane.xlu0 %4399 }
 0xcd8   :  { %v4416_v29 = vmax.f32 %v4400_v42, 1e-24 }
 0xcda   :  { %12952 = vrsqrt.f32 %v4416_v29  ;;  %v19784_v29 = vld [vmem:[#allocation83_spill] sm:$0xff] }
 0xcde   :  { %v4397_v18 = vpop.xlane.xlu1 %4396 }
 0xcdf   :  { %v4415_v24 = vmax.f32 %v4397_v18, 1e-24  ;;  %v19785_v18 = vld [vmem:[#allocation135_spill] sm:$0xff] }
 0xce1   :  { %12954 = vrsqrt.f32 %v4415_v24 }
 0xce2   :  { %v16500_v43 = vpop.permute.xlu1 %12086 }
 0xce4   :  { %v12953_v36 = vpop.eup %12952 }
 0xce5   :  { %v4448_v31 = vmul.f32 %v12953_v36, %v19756_v12 }
 0xce6   :  { %v16512_v39 = vpop.permute.xlu1 %12091 }
 0xce7   :  { %v4467_v17 = vmul.f32 %v19688_v5, %v4448_v31 }
 0xce9   :  { %5236 = vrot.lane.b32.xlu1 %v4467_v17, %s13515_s7  ;;  %v19789_v17 = vld [vmem:[#allocation112_spill] sm:$0xff] }
 0xcea   :  { %v16526_v36 = vpop.permute.xlu1 %12096 }
 0xceb   :  { %v12955_v1 = vpop.eup %12954  ;;  %19787 = vst [vmem:[#allocation110_spill] sm:$0xff] %v16526_v36  ;;  %v19867_v36 = vld [vmem:[#allocation128_spill] sm:$0xff] }
 0xcec   :  { %v4447_v38 = vmul.f32 %v12955_v1, %v19757_v33  ;;  %v19790_v1 = vld [vmem:[#allocation152_spill] sm:$0xff] }
 0xced   :  { %6148 = vrot.lane.b32.xlu1 %v19758_v13, %s13519_s8 }
 0xcee   :  { %v4466_v15 = vmul.f32 %v19688_v5, %v4447_v38  ;;  %v19765_v5 = vld [vmem:[#allocation109_spill] sm:$0xff] }
 0xcf0   :  { %5234 = vrot.lane.b32.xlu0 %v4466_v15, %s13515_s7  ;;  %v19793_v15 = vld [vmem:[#allocation134_spill] sm:$0xff] }
 0xcf1   :  { %6152 = vrot.lane.b32.xlu1 %v19759_v2, %s13519_s8  ;;  %v16540_v2 = vpop.permute.xlu1 %4797 }
 0xcf2   :  { %19794 = vst [vmem:[#allocation123_spill] sm:$0xff] %v16540_v2 }
 0xcf4   :  { %6146 = vrot.lane.b32.xlu0 %v19760_v41, %s13519_s8  ;;  %v19795_v41 = vld [vmem:[#allocation157_spill] sm:$0xff] }
 0xcf5   :  { %6156 = vrot.lane.b32.xlu1 %v19761_v23, %s13519_s8  ;;  %v16544_v23 = vpop.permute.xlu0 %12081 }
 0xcf8   :  { %6150 = vrot.lane.b32.xlu0 %v19762_v25, %s13519_s8  ;;  %v19796_v25 = vld [vmem:[#allocation151_spill] sm:$0xff] }
 0xcf9   :  { %6164 = vrot.lane.b32.xlu1 %v19763_v60, %s13519_s8  ;;  %v19797_v60 = vld [vmem:[#allocation180_spill] sm:$0xff] }
 0xcfc   :  { %6154 = vrot.lane.b32.xlu0 %v19764_v48, %s13519_s8  ;;  %v16550_v48 = vpop.permute.xlu1 %12106 }
 0xcfd   :  { %6160 = vrot.lane.b32.xlu1 %v19765_v5, %s13519_s8  ;;  %v16480_v50 = vpop.f32.mrb[64].mxu1  ;;  %19798 = vst [vmem:[#allocation121_spill] sm:$0xff] %v16550_v48  ;;  %v16552_v5 = vpop.permute.xlu0 %4795 }
 0xcfe   :  { %19766 = vst [vmem:[#allocation41_spill] sm:$0xff] %v16480_v50  ;;  %v16482_v6 = vpop.f32.mrb[65].mxu1 }
 0xcff   :  { %19767 = vst [vmem:[#allocation40_spill] sm:$0xff] %v16482_v6 }
 0xd00   :  { %6162 = vrot.lane.b32.xlu0 %v19768_v27, %s13519_s8  ;;  %v19799_v27 = vld [vmem:[#allocation153_spill] sm:$0xff] }
 0xd01   :  { %6168 = vrot.lane.b32.xlu1 %v19769_v3, %s13519_s8  ;;  %v19800_v3 = vld [vmem:[#allocation129_spill] sm:$0xff] }
 0xd04   :  { %6158 = vrot.lane.b32.xlu0 %v19770_v53, %s13519_s8  ;;  %v19801_v53 = vld [vmem:[#allocation171_spill] sm:$0xff] }
 0xd05   :  { %6172 = vrot.lane.b32.xlu1 %v19771_v19, %s13519_s8  ;;  %v16560_v19 = vpop.permute.xlu1 %12116 }
 0xd06   :  { %19802 = vst [vmem:[#allocation21_spill] sm:$0xff] %v16560_v19 }
 0xd08   :  { %6166 = vrot.lane.b32.xlu0 %v19772_v0, %s13519_s8  ;;  %v19803_v0 = vld [vmem:[#allocation140_spill] sm:$0xff] }
 0xd09   :  { %6180 = vrot.lane.b32.xlu1 %v19773_v8, %s13519_s8  ;;  %v16496_v7 = vpop.f32.mrb[66].mxu1  ;;  %v16564_v8 = vpop.permute.xlu0 %12101 }
 0xd0a   :  { %19774 = vst [vmem:[#allocation166_spill] sm:$0xff] %v16496_v7  ;;  %v16498_v9 = vpop.f32.mrb[67].mxu1 }
 0xd0b   :  { %19775 = vst [vmem:[#allocation173_spill] sm:$0xff] %v16498_v9 }
 0xd0c   :  { %6170 = vrot.lane.b32.xlu0 %v19776_v56, %s13519_s8  ;;  %v19804_v56 = vld [vmem:[#allocation131_spill] sm:$0xff] }
 0xd0d   :  { %5985 = vrot.lane.b32.xlu1 %v19777_v54, %s13519_s8  ;;  %v16506_v51 = vpop.f32.mrb[68].mxu1  ;;  %v19805_v54 = vld [vmem:[#allocation169_spill] sm:$0xff] }
 0xd0e   :  { %19778 = vst [vmem:[#allocation156_spill] sm:$0xff] %v16506_v51  ;;  %v16508_v63 = vpop.f32.mrb[69].mxu1 }
 0xd0f   :  { %19779 = vst [vmem:[#allocation183_spill] sm:$0xff] %v16508_v63 }
 0xd10   :  { %6178 = vrot.lane.b32.xlu0 %v19780_v45, %s13519_s8  ;;  %v16570_v45 = vpop.permute.xlu1 %4942 }
 0xd11   :  { %5989 = vrot.lane.b32.xlu1 %v19781_v14, %s13519_s8  ;;  %19806 = vst [vmem:[#allocation118_spill] sm:$0xff] %v16570_v45  ;;  %v16572_v14 = vpop.permute.xlu0 %12111 }
 0xd12   :  { %v16516_v57 = vpop.f32.mrb[20].mxu0  ;;  %19807 = vst [vmem:[#allocation141_spill] sm:$0xff] %v16572_v14 }
 0xd13   :  { %19782 = vst [vmem:[#allocation43_spill] sm:$0xff] %v16516_v57  ;;  %v16518_v42 = vpop.f32.mrb[21].mxu0 }
 0xd14   :  { %19783 = vst [vmem:[#allocation44_spill] sm:$0xff] %v16518_v42  ;;  %5983 = vrot.lane.b32.xlu0 %v19784_v29, %s13519_s8  ;;  %v19808_v29 = vld [vmem:[#allocation139_spill] sm:$0xff] }
 0xd15   :  { %6176 = vrot.lane.b32.xlu1 %v19785_v18, %s13519_s8  ;;  %v19809_v18 = vld [vmem:[#allocation186_spill] sm:$0xff] }
 0xd16   :  { %v16524_v24 = vpop.f32.mrb[22].mxu0 }
 0xd17   :  { %19786 = vst [vmem:[#allocation107_spill] sm:$0xff] %v16524_v24  ;;  %v16528_v31 = vpop.f32.mrb[23].mxu0 }
 0xd18   :  { %19788 = vst [vmem:[#allocation113_spill] sm:$0xff] %v16528_v31  ;;  %5987 = vrot.lane.b32.xlu0 %v19789_v17, %s13519_s8 }
 0xd19   :  { %6184 = vrot.lane.b32.xlu1 %v19790_v1, %s13519_s8 }
 0xd1a   :  { %v16534_v38 = vpop.f32.mrb[70].mxu1 }
 0xd1b   :  { %19791 = vst [vmem:[#allocation116_spill] sm:$0xff] %v16534_v38  ;;  %v16536_v13 = vpop.f32.mrb[71].mxu1 }
 0xd1c   :  { %19792 = vst [vmem:[#allocation126_spill] sm:$0xff] %v16536_v13  ;;  %6174 = vrot.lane.b32.xlu0 %v19793_v15, %s13519_s8  ;;  %v19810_v15 = vld [vmem:[#allocation165_spill] sm:$0xff] }
 0xd1d   :  { %6188 = vrot.lane.b32.xlu1 %v19795_v41, %s13519_s8  ;;  %v16582_v41 = vpop.permute.xlu1 %12126 }
 0xd1e   :  { %19811 = vst [vmem:[#allocation136_spill] sm:$0xff] %v16582_v41 }
 0xd20   :  { %6182 = vrot.lane.b32.xlu0 %v19796_v25, %s13519_s8  ;;  %v16584_v25 = vpop.permute.xlu0 %4940 }
 0xd21   :  { %6196 = vrot.lane.b32.xlu1 %v19797_v60, %s13519_s8 }
 0xd24   :  { %6186 = vrot.lane.b32.xlu0 %v19799_v27, %s13519_s8 }
 0xd25   :  { %5993 = vrot.lane.b32.xlu1 %v19800_v3, %s13519_s8  ;;  %v19812_v3 = vld [vmem:[#allocation179_spill] sm:$0xff] }
 0xd28   :  { %6194 = vrot.lane.b32.xlu0 %v19801_v53, %s13519_s8  ;;  %v16588_v53 = vpop.permute.xlu1 %4801 }
 0xd29   :  { %5997 = vrot.lane.b32.xlu1 %v19803_v0, %s13519_s8  ;;  %19813 = vst [vmem:[#allocation149_spill] sm:$0xff] %v16588_v53  ;;  %v16590_v0 = vpop.permute.xlu0 %12121  ;;  %v19844_v53 = vld [vmem:[#allocation196_spill] sm:$0xff] }
 0xd2a   :  { %19814 = vst [vmem:[#allocation161_spill] sm:$0xff] %v16590_v0 }
 0xd2c   :  { %5991 = vrot.lane.b32.xlu0 %v19804_v56, %s13519_s8  ;;  %v16592_v56 = vpop.permute.xlu1 %5085 }
 0xd2d   :  { %6192 = vrot.lane.b32.xlu1 %v19805_v54, %s13519_s8  ;;  %19815 = vst [vmem:[#allocation159_spill] sm:$0xff] %v16592_v56  ;;  %v16594_v54 = vpop.permute.xlu0 %4799 }
 0xd2e   :  { %19816 = vst [vmem:[#allocation182_spill] sm:$0xff] %v16594_v54 }
 0xd30   :  { %5995 = vrot.lane.b32.xlu0 %v19808_v29, %s13519_s8 }
 0xd31   :  { %6200 = vrot.lane.b32.xlu1 %v19809_v18, %s13519_s8  ;;  %v16604_v38 = vpop.permute.xlu0 %12131 }
 0xd32   :  { %v16578_v17 = vpop.f32.mrb[72].mxu1  ;;  %19821 = vst [vmem:[#allocation162_spill] sm:$0xff] %v16604_v38 }
 0xd33   :  { %v3239_v1 = vpop.f32.mrb[73].mxu1 }
 0xd34   :  { %6190 = vrot.lane.b32.xlu0 %v19810_v15, %s13519_s8  ;;  %v16600_v15 = vpop.permute.xlu1 %12136  ;;  %v3693_v55 = vmul.f32 8.0, %v3239_v1 }
 0xd35   :  { %19819 = vst [vmem:[#allocation138_spill] sm:$0xff] %v16600_v15  ;;  %v16610_v51 = vpop.permute.xlu0 %5087 }
 0xd36   :  { %v10615_v60 = vpop.f32.mrb[74].mxu1  ;;  %19824 = vst [vmem:[#allocation172_spill] sm:$0xff] %v16610_v51  ;;  %v3709_v4 = vmul.f32 1.442695, %v3693_v55 }
 0xd37   :  { %v3249_v27 = vpop.f32.mrb[75].mxu1  ;;  %v3696_v59 = vmul.f32 8.0, %v10615_v60 }
 0xd38   :  { %6198 = vrot.lane.b32.xlu0 %v19812_v3, %s13519_s8  ;;  %v16608_v3 = vpop.permute.xlu1 %4946  ;;  %12956 = vpow2.f32 %v3709_v4 }
 0xd39   :  { %19823 = vst [vmem:[#allocation174_spill] sm:$0xff] %v16608_v3  ;;  %v16614_v57 = vpop.permute.xlu0 %4944 }
 0xd3a   :  { %19826 = vst [vmem:[#allocation33_spill] sm:$0xff] %v16614_v57 }
 0xd3c   :  { %v16612_v24 = vpop.permute.xlu1 %5232 }
 0xd3d   :  { %19825 = vst [vmem:[#allocation193_spill] sm:$0xff] %v16612_v24  ;;  %v3695_v24 = vmul.f32 8.0, %v3249_v27 }
 0xd3f   :  { %v3713_v1 = vmul.f32 1.442695, %v3695_v24 }
 0xd43   :  { %v16596_v29 = vpop.f32.mrb[24].mxu0 }
 0xd44   :  { %19817 = vst [vmem:[#allocation32_spill] sm:$0xff] %v16596_v29  ;;  %v16598_v18 = vpop.f32.mrb[25].mxu0 }
 0xd45   :  { %19818 = vst [vmem:[#allocation142_spill] sm:$0xff] %v16598_v18  ;;  %v16618_v18 = vpop.permute.xlu1 %5091 }
 0xd46   :  { %19827 = vst [vmem:[#allocation150_spill] sm:$0xff] %v16618_v18 }
 0xd47   :  { %v16602_v13 = vpop.f32.mrb[26].mxu0 }
 0xd48   :  { %19820 = vst [vmem:[#allocation163_spill] sm:$0xff] %v16602_v13  ;;  %v16606_v63 = vpop.f32.mrb[27].mxu0  ;;  %v16620_v13 = vpop.permute.xlu0 %5230 }
 0xd49   :  { %19822 = vst [vmem:[#allocation132_spill] sm:$0xff] %v16606_v63  ;;  %19828 = vst [vmem:[#allocation18_spill] sm:$0xff] %v16620_v13 }
 0xd4c   :  { %v16624_v63 = vpop.permute.xlu0 %5089 }
 0xd4d   :  { %19830 = vst [vmem:[#allocation115_spill] sm:$0xff] %v16624_v63 }
 0xd52   :  { %v10656_v31 = vpop.f32.mrb[76].mxu1 }
 0xd53   :  { %v3529_v42 = vpop.f32.mrb[77].mxu1 }
 0xd56   :  { %v16616_v29 = vpop.f32.mrb[78].mxu1 }
 0xd57   :  { %v3539_v9 = vpop.f32.mrb[79].mxu1 }
 0xd58   :  { %v3703_v55 = vmul.f32 8.0, %v3539_v9 }
 0xd5b   :  { %v16622_v7 = vpop.permute.xlu1 %5236 }
 0xd5c   :  { %19829 = vst [vmem:[#allocation194_spill] sm:$0xff] %v16622_v7  ;;  %v3715_v7 = vmul.f32 1.442695, %v3696_v59 }
 0xd5e   :  { %12958 = vpow2.f32 %v3715_v7  ;;  %v3701_v7 = vmul.f32 8.0, %v3529_v42 }
 0xd5f   :  { %v6149_v6 = vpop.permute.xlu1 %6148 }
 0xd60   :  { %v6245_v50 = vsel %vm1072_vm6, %v6149_v6, 0.0  ;;  %v19834_v6 = vld [vmem:[#allocation181_spill] sm:$0xff]  ;;  %v3725_v9 = vmul.f32 1.442695, %v3701_v7 }
 0xd61   :  { %6246 = vadd.xlane.f32.xlu1 %v6245_v50  ;;  %v19835_v50 = vld [vmem:[#allocation158_spill] sm:$0xff] }
 0xd62   :  { %v16627_v12 = vpop.permute.xlu0 %5234 }
 0xd63   :  { %19831 = vst [vmem:[#allocation187_spill] sm:$0xff] %v16627_v12  ;;  %v10634_v35 = vpop.f32.mrb[28].mxu0 }
 0xd64   :  { %v3384_v46 = vpop.f32.mrb[29].mxu0 }
 0xd66   :  { %v6147_v11 = vpop.permute.xlu0 %6146 }
 0xd67   :  { %v10637_v33 = vpop.f32.mrb[30].mxu0  ;;  %v6242_v16 = vsel %vm1072_vm6, %v6147_v11, 0.0 }
 0xd68   :  { %v16630_v22 = vpop.f32.mrb[31].mxu0  ;;  %6243 = vadd.xlane.f32.xlu0 %v6242_v16  ;;  %v6153_v16 = vpop.permute.xlu1 %6152  ;;  %v3700_v18 = vmul.f32 8.0, %v10637_v33 }
 0xd69   :  { %v6251_v61 = vsel %vm1072_vm6, %v6153_v16, 0.0  ;;  %v3698_v16 = vmul.f32 8.0, %v10634_v35 }
 0xd6a   :  { %v3723_v4 = vmul.f32 1.442695, %v3700_v18 }
 0xd72   :  { %6204 = vrot.lane.b32.xlu1 %v19832_v47, %s13519_s8  ;;  %v6151_v47 = vpop.permute.xlu0 %6150 }
 0xd76   :  { %6001 = vrot.lane.b32.xlu1 %v19833_v44, %s13519_s8  ;;  %v6248_v44 = vsel %vm1072_vm6, %v6151_v47, 0.0  ;;  %v3719_v47 = vmul.f32 1.442695, %v3698_v16  ;;  %v3699_v16 = vmul.f32 8.0, %v16630_v22 }
 0xd78   :  { %12960 = vpow2.f32 %v3719_v47 }
 0xd7e   :  { %6202 = vrot.lane.b32.xlu0 %v19834_v6, %s13519_s8  ;;  %v19836_v6 = vld [vmem:[#allocation170_spill] sm:$0xff] }
 0xd82   :  { %5999 = vrot.lane.b32.xlu0 %v19835_v50, %s13519_s8  ;;  %v19837_v50 = vld [vmem:[#allocation168_spill] sm:$0xff] }
 0xd83   :  { %v10678_v32 = vpop.f32.mrb[32].mxu0 }
 0xd84   :  { %v16640_v40 = vpop.f32.mrb[33].mxu0  ;;  %v3706_v33 = vmul.f32 8.0, %v10678_v32 }
 0xd86   :  { %v3735_v60 = vmul.f32 1.442695, %v3706_v33 }
 0xd87   :  { %v16642_v21 = vpop.f32.mrb[34].mxu0 }
 0xd88   :  { %v16644_v11 = vpop.f32.mrb[35].mxu0 }
 0xd9a   :  { %6252 = vadd.xlane.f32.xlu1 %v6251_v61  ;;  %v3694_v61 = vmul.f32 8.0, %v16578_v17  ;;  %v3729_v17 = vmul.f32 1.442695, %v3703_v55 }
 0xd9c   :  { %v3711_v12 = vmul.f32 1.442695, %v3694_v61 }
 0xd9e   :  { %12962 = vpow2.f32 %v3711_v12 }
 0xda1   :  { %6249 = vadd.xlane.f32.xlu0 %v6248_v44  ;;  %v3697_v44 = vmul.f32 8.0, %v3384_v46 }
 0xdab   :  { %6005 = vrot.lane.b32.xlu1 %v19836_v6, %s13519_s8  ;;  %v3717_v6 = vmul.f32 1.442695, %v3697_v44 }
 0xdad   :  { %12964 = vpow2.f32 %v3717_v6  ;;  %v3721_v6 = vmul.f32 1.442695, %v3699_v16  ;;  %v6155_v16 = vpop.permute.xlu0 %6154 }
 0xdae   :  { %12966 = vpow2.f32 %v3713_v1  ;;  %v3705_v1 = vmul.f32 8.0, %v16640_v40 }
 0xdaf   :  { %12968 = vpow2.f32 %v3723_v4 }
 0xdb7   :  { %6003 = vrot.lane.b32.xlu0 %v19837_v50, %s13519_s8  ;;  %v16655_v50 = vpop.eup %12956 }
 0xdb8   :  { %v3741_v59 = vsel %vm109_vm0, %v16655_v50, 0.0  ;;  %v16659_v35 = vpop.eup %12958 }
 0xdb9   :  { %v3750_v12 = vsel %vm109_vm0, %v16659_v35, 0.0  ;;  %v16663_v24 = vpop.eup %12960 }
 0xdba   :  { %v16666_v27 = vpop.eup %12962  ;;  %v3756_v42 = vsel %vm109_vm0, %v16663_v24, 0.0 }
 0xdbb   :  { %6206 = vrot.lane.b32.xlu0 %v19838_v34, %s13519_s8  ;;  %v3702_v34 = vmul.f32 8.0, %v10656_v31  ;;  %v3704_v31 = vmul.f32 8.0, %v16616_v29  ;;  %v16670_v18 = vpop.eup %12964  ;;  %v3744_v61 = vsel %vm109_vm0, %v16666_v27, 0.0 }
 0xdbc   :  { %v16675_v47 = vpop.eup %12966  ;;  %v3753_v29 = vsel %vm109_vm0, %v16670_v18, 0.0 }
 0xdbd   :  { %v3727_v46 = vmul.f32 1.442695, %v3702_v34  ;;  %v3731_v32 = vmul.f32 1.442695, %v3704_v31  ;;  %v16679_v44 = vpop.eup %12968  ;;  %v3747_v22 = vsel %vm109_vm0, %v16675_v47, 0.0  ;;  %v3707_v31 = vmul.f32 8.0, %v16644_v11 }
 0xdbe   :  { %v3762_v55 = vsel %vm109_vm0, %v16679_v44, 0.0 }
 0xdbf   :  { %12970 = vpow2.f32 %v3727_v46  ;;  %v3708_v46 = vmul.f32 8.0, %v16642_v21 }
 0xdc0   :  { %12972 = vpow2.f32 %v3729_v17 }
 0xdc1   :  { %12974 = vpow2.f32 %v3725_v9  ;;  %v3739_v9 = vmul.f32 1.442695, %v3708_v46 }
 0xdc2   :  { %12976 = vpow2.f32 %v3735_v60 }
 0xdc3   :  { %12978 = vpow2.f32 %v3731_v32  ;;  %v3737_v32 = vmul.f32 1.442695, %v3707_v31 }
 0xdc4   :  { %12980 = vpow2.f32 %v3721_v6 }
 0xdc9   :  { %v16684_v34 = vpop.eup %12970 }
 0xdca   :  { %v16688_v4 = vpop.eup %12972  ;;  %v3768_v7 = vsel %vm109_vm0, %v16684_v34, 0.0 }
 0xdcb   :  { %v16693_v40 = vpop.eup %12974  ;;  %v3771_v17 = vsel %vm109_vm0, %v16688_v4, 0.0 }
 0xdcc   :  { %v16697_v33 = vpop.eup %12976  ;;  %v3765_v21 = vsel %vm109_vm0, %v16693_v40, 0.0 }
 0xdcd   :  { %v16702_v60 = vpop.eup %12978 }
 0xdcf   :  { %3742 = vadd.xlane.f32.xlu1 %v3741_v59  ;;  %v3733_v59 = vmul.f32 1.442695, %v3705_v1 }
 0xdd1   :  { %12982 = vpow2.f32 %v3733_v59 }
 0xdd2   :  { %12984 = vpow2.f32 %v3739_v9 }
 0xdd3   :  { %3751 = vadd.xlane.f32.xlu1 %v3750_v12  ;;  %v6157_v12 = vpop.permute.xlu1 %6156  ;;  %12986 = vpow2.f32 %v3737_v32 }
 0xdd7   :  { %3757 = vadd.xlane.f32.xlu1 %v3756_v42  ;;  %v3780_v42 = vsel %vm109_vm0, %v16697_v33, 0.0  ;;  %v6165_v6 = vpop.permute.xlu1 %6164 }
 0xdda   :  { %3745 = vadd.xlane.f32.xlu0 %v3744_v61  ;;  %v3774_v61 = vsel %vm109_vm0, %v16702_v60, 0.0 }
 0xddb   :  { %3754 = vadd.xlane.f32.xlu1 %v3753_v29  ;;  %v16708_v29 = vpop.eup %12980 }
 0xddc   :  { %v3759_v11 = vsel %vm109_vm0, %v16708_v29, 0.0  ;;  %v16712_v1 = vpop.eup %12982 }
 0xddd   :  { %v3777_v59 = vsel %vm109_vm0, %v16712_v1, 0.0  ;;  %v16716_v46 = vpop.eup %12984 }
 0xdde   :  { %3748 = vadd.xlane.f32.xlu0 %v3747_v22  ;;  %v6163_v22 = vpop.permute.xlu0 %6162  ;;  %v16720_v9 = vpop.eup %12986 }
 0xddf   :  { %3763 = vadd.xlane.f32.xlu1 %v3762_v55  ;;  %v6161_v55 = vpop.permute.xlu1 %6160  ;;  %v6266_v63 = vsel %vm1072_vm6, %v6163_v22, 0.0 }
 0xde0   :  { %v6263_v54 = vsel %vm1072_vm6, %v6161_v55, 0.0 }
 0xde2   :  { %3769 = vadd.xlane.f32.xlu0 %v3768_v7  ;;  %v6159_v7 = vpop.permute.xlu0 %6158 }
 0xde3   :  { %3772 = vadd.xlane.f32.xlu1 %v3771_v17  ;;  %v3786_v17 = vsel %vm109_vm0, %v16716_v46, 0.0  ;;  %v6169_v31 = vpop.permute.xlu1 %6168 }
 0xde6   :  { %3766 = vadd.xlane.f32.xlu0 %v3765_v21  ;;  %v19839_v21 = vld [vmem:[#allocation111_spill] sm:$0xff]  ;;  %v6167_v32 = vpop.permute.xlu0 %6166 }
 0xde7   :  { %3781 = vadd.xlane.f32.xlu1 %v3780_v42  ;;  %v3783_v42 = vsel %vm109_vm0, %v16720_v9, 0.0  ;;  %v6272_v48 = vsel %vm1072_vm6, %v6167_v32, 0.0  ;;  %v19859_v32 = vld [vmem:[#allocation191_spill] sm:$0xff] }
 0xdea   :  { %3775 = vadd.xlane.f32.xlu0 %v3774_v61  ;;  %v16726_v61 = vpop.permute.xlu1 %6172 }
 0xdee   :  { %3760 = vadd.xlane.f32.xlu0 %v3759_v11  ;;  %v6254_v11 = vsel %vm1072_vm6, %v6155_v16, 0.0  ;;  %v16732_v51 = vpop.permute.xlu1 %6180 }
 0xdf2   :  { %3778 = vadd.xlane.f32.xlu0 %v3777_v59  ;;  %v16729_v59 = vpop.permute.xlu0 %6170  ;;  %v16737_v15 = vpop.permute.xlu1 %5985 }
 0xdf6   :  { %3787 = vadd.xlane.f32.xlu0 %v3786_v17  ;;  %v6269_v17 = vsel %vm1072_vm6, %v6165_v6, 0.0  ;;  %v16741_v0 = vpop.permute.xlu1 %5989  ;;  %v19840_v6 = vld [vmem:[#allocation188_spill] sm:$0xff] }
 0xdf8   :  { %6208 = vrot.lane.b32.xlu1 %v19839_v21, %s13519_s8  ;;  %v16735_v21 = vpop.permute.xlu0 %6178 }
 0xdfa   :  { %3784 = vadd.xlane.f32.xlu0 %v3783_v42 }
 0xdfc   :  { %v16739_v42 = vpop.permute.xlu0 %5983 }
 0xdfe   :  { %6255 = vadd.xlane.f32.xlu0 %v6254_v11  ;;  %v16745_v11 = vpop.permute.xlu1 %6176 }
 0xe00   :  { %v16743_v16 = vpop.permute.xlu0 %5987 }
 0xe02   :  { %6267 = vadd.xlane.f32.xlu0 %v6266_v63  ;;  %v16749_v22 = vpop.permute.xlu1 %6184  ;;  %v6257_v63 = vsel %vm1072_vm6, %v6157_v12, 0.0 }
 0xe04   :  { %v16747_v13 = vpop.permute.xlu0 %6174 }
 0xe06   :  { %6270 = vadd.xlane.f32.xlu0 %v6269_v17  ;;  %v16756_v38 = vpop.permute.xlu1 %6188 }
 0xe08   :  { %v16754_v17 = vpop.permute.xlu0 %6182 }
 0xe09   :  { %19841 = vst [vmem:[#allocation185_spill] sm:$0xff] %v16754_v17  ;;  %v11958_v17 = vunpack.i.l.bf16 %v19867_v36 }
 0xe0a   :  { %v16760_v56 = vpop.permute.xlu1 %6196 }
 0xe0c   :  { %v16758_v3 = vpop.permute.xlu0 %6186 }
 0xe0d   :  { %19842 = vst [vmem:[#allocation155_spill] sm:$0xff] %v16758_v3 }
 0xe0e   :  { %v16764_v45 = vpop.permute.xlu1 %5993 }
 0xe10   :  { %v16762_v57 = vpop.permute.xlu0 %6194 }
 0xe11   :  { %19843 = vst [vmem:[#allocation144_spill] sm:$0xff] %v16762_v57 }
 0xe12   :  { %v16770_v14 = vpop.permute.xlu1 %5997 }
 0xe13   :  { %19846 = vst [vmem:[#allocation120_spill] sm:$0xff] %v16770_v14 }
 0xe14   :  { %v16768_v12 = vpop.permute.xlu0 %5991 }
 0xe15   :  { %19845 = vst [vmem:[#allocation176_spill] sm:$0xff] %v16768_v12 }
 0xe1c   :  { %6007 = vrot.lane.b32.xlu0 %v19840_v6, %s13519_s8  ;;  %6258 = vadd.xlane.f32.xlu1 %v6257_v63  ;;  %v16772_v63 = vpop.permute.xlu0 %5995  ;;  %v16774_v6 = vpop.permute.xlu1 %6192 }
 0xe1d   :  { %19847 = vst [vmem:[#allocation177_spill] sm:$0xff] %v16772_v63  ;;  %19848 = vst [vmem:[#allocation160_spill] sm:$0xff] %v16774_v6 }
 0xe20   :  { %v16777_v41 = vpop.permute.xlu0 %6190  ;;  %v16779_v2 = vpop.permute.xlu1 %6200 }
 0xe21   :  { %19849 = vst [vmem:[#allocation20_spill] sm:$0xff] %v16777_v41  ;;  %19850 = vst [vmem:[#allocation197_spill] sm:$0xff] %v16779_v2 }
 0xe24   :  { %v16782_v57 = vpop.xlane.xlu1 %6246 }
 0xe25   :  { %19851 = vst [vmem:[#allocation38_spill] sm:$0xff] %v16782_v57  ;;  %v12049_v57 = vunpack.i.h.bf16 %v16409_v62 }
 0xe28   :  { %v16788_v19 = vpop.permute.xlu1 %6204 }
 0xe29   :  { %19854 = vst [vmem:[#allocation175_spill] sm:$0xff] %v16788_v19 }
 0xe2c   :  { %v16792_v6 = vpop.permute.xlu1 %6001 }
 0xe2d   :  { %6009 = vrot.lane.b32.xlu1 %v19844_v53, %s13519_s8  ;;  %v16784_v53 = vpop.permute.xlu0 %6198  ;;  %19856 = vst [vmem:[#allocation146_spill] sm:$0xff] %v16792_v6 }
 0xe2e   :  { %19852 = vst [vmem:[#allocation154_spill] sm:$0xff] %v16784_v53 }
 0xe30   :  { %v16795_v55 = vpop.xlane.xlu1 %6252 }
 0xe31   :  { %v16786_v12 = vpop.xlane.xlu0 %6243  ;;  %19857 = vst [vmem:[#allocation184_spill] sm:$0xff] %v16795_v55 }
 0xe32   :  { %19853 = vst [vmem:[#allocation137_spill] sm:$0xff] %v16786_v12 }
 0xe34   :  { %v16804_v19 = vpop.permute.xlu1 %6005 }
 0xe35   :  { %v16790_v3 = vpop.permute.xlu0 %6202  ;;  %19861 = vst [vmem:[#allocation19_spill] sm:$0xff] %v16804_v19 }
 0xe36   :  { %19855 = vst [vmem:[#allocation147_spill] sm:$0xff] %v16790_v3 }
 0xe39   :  { %v16797_v2 = vpop.permute.xlu0 %5999 }
 0xe3a   :  { %19858 = vst [vmem:[#allocation130_spill] sm:$0xff] %v16797_v2  ;;  %v19864_v2 = vld [vmem:[#allocation195_spill] sm:$0xff] }
 0xe3b   :  { %6264 = vadd.xlane.f32.xlu0 %v6263_v54  ;;  %v6260_v54 = vsel %vm1072_vm6, %v6159_v7, 0.0 }
 0xe3d   :  { %v16802_v53 = vpop.xlane.xlu0 %6249 }
 0xe3e   :  { %19860 = vst [vmem:[#allocation133_spill] sm:$0xff] %v16802_v53 }
 0xe3f   :  { %6273 = vadd.xlane.f32.xlu0 %v6272_v48  ;;  %v6275_v48 = vsel %vm1072_vm6, %v6169_v31, 0.0 }
 0xe41   :  { %v16806_v41 = vpop.permute.xlu0 %6003 }
 0xe42   :  { %19862 = vst [vmem:[#allocation192_spill] sm:$0xff] %v16806_v41  ;;  %v19865_v41 = vld [vmem:[#allocation17_spill] sm:$0xff] }
 0xe51   :  { %6261 = vadd.xlane.f32.xlu1 %v6260_v54  ;;  %v16808_v54 = vpop.permute.xlu0 %6206 }
 0xe52   :  { %19863 = vst [vmem:[#allocation39_spill] sm:$0xff] %v16808_v54 }
 0xe55   :  { %6011 = vrot.lane.b32.xlu0 %v19859_v32, %s13519_s8  ;;  %6276 = vadd.xlane.f32.xlu1 %v6275_v48 }
 0xe5c   :  { %v3743_v3 = vpop.xlane.xlu1 %3742 }
 0xe5d   :  { %12988 = vrcp.f32 %v3743_v3 }
 0xe60   :  { %v3752_v7 = vpop.xlane.xlu1 %3751 }
 0xe64   :  { %v3758_v6 = vpop.xlane.xlu1 %3757 }
 0xe65   :  { %12990 = vrcp.f32 %v3758_v6 }
 0xe66   :  { %6013 = vrot.lane.b32.xlu1 %v19864_v2, %s13519_s8  ;;  %v19866_v2 = vld [vmem:[#allocation167_spill] sm:$0xff] }
 0xe67   :  { %v12989_v31 = vpop.eup %12988  ;;  %v3746_v55 = vpop.xlane.xlu0 %3745  ;;  %v11919_v12 = vunpack.i.h.bf16 %v19866_v2  ;;  %v11918_v6 = vunpack.i.l.bf16 %v19866_v2  ;;  %v11959_v2 = vunpack.i.h.bf16 %v19867_v36 }
 0xe68   :  { %12992 = vrcp.f32 %v3746_v55  ;;  %v3755_v48 = vpop.xlane.xlu1 %3754  ;;  %v3805_v32 = vmul.f32 %v12989_v31, %v16655_v50  ;;  %v12048_v50 = vunpack.i.l.bf16 %v16409_v62 }
 0xe69   :  { %12994 = vrcp.f32 %v3755_v48  ;;  %v11438_v62 = vpack.c.bf16 %v11919_v12, %v11918_v6  ;;  %v12063_v6 = vunpack.i.l.bf16 %v16452_v28 }
 0xe6a   :  { %10698 = vmatprep.mubr.msk.f32.mxu1 %vm109_vm0, %v3805_v32  ;;  %6434 = vrot.lane.b32.xlu1 %v19865_v41, %s13513_s29  ;;  %12996 = vrcp.f32 %v3752_v7  ;;  %v6281_v41 = vsel %vm1072_vm6, %v16726_v61, 0.0  ;;  %v11454_v61 = vpack.c.bf16 %v12049_v57, %v12048_v50  ;;  %v11442_v57 = vpack.c.bf16 %v11959_v2, %v11958_v17 }
 0xe6b   :  { %v3749_v3 = vpop.xlane.xlu0 %3748 }
 0xe6c   :  { %12998 = vrcp.f32 %v3749_v3  ;;  %v3764_v54 = vpop.xlane.xlu1 %3763 }
 0xe6f   :  { %v3770_v19 = vpop.xlane.xlu0 %3769  ;;  %v12991_v53 = vpop.eup %12990 }
 0xe70   :  { %v3773_v7 = vpop.xlane.xlu1 %3772  ;;  %v3810_v63 = vmul.f32 %v12991_v53, %v16663_v24  ;;  %v6290_v24 = vsel %vm1072_vm6, %v16735_v21, 0.0  ;;  %v6293_v21 = vsel %vm1072_vm6, %v16732_v51, 0.0 }
 0xe72   :  { %v12993_v55 = vpop.eup %12992 }
 0xe73   :  { %v12995_v31 = vpop.eup %12994  ;;  %v3806_v48 = vmul.f32 %v12993_v55, %v16666_v27  ;;  %v3767_v32 = vpop.xlane.xlu0 %3766  ;;  %v12059_v55 = vunpack.i.h.bf16 %v16419_v10 }
 0xe74   :  { %13000 = vrcp.f32 %v3767_v32  ;;  %6282 = vadd.xlane.f32.xlu0 %v6281_v41  ;;  %v3809_v3 = vmul.f32 %v12995_v31, %v16670_v18  ;;  %v12997_v14 = vpop.eup %12996  ;;  %v12058_v18 = vunpack.i.l.bf16 %v16419_v10  ;;  %v3782_v50 = vpop.xlane.xlu1 %3781  ;;  %v6034_v32 = vsel %vm1072_vm6, %v16737_v15, 0.0 }
 0xe75   :  { %10699 = vmatmul.mubr.msk.f32.vlgmr.msra.gmra.mrb[80].mxu1 %vm109_vm0, %v3806_v48  ;;  %13002 = vrcp.f32 %v3770_v19  ;;  %v19868_v19 = vld [vmem:[#allocation178_spill] sm:$0xff]  ;;  %v3808_v10 = vmul.f32 %v12997_v14, %v16659_v35  ;;  %v12054_v14 = vunpack.i.h.bf16 %v16417_v58  ;;  %v12053_v35 = vunpack.i.l.bf16 %v16417_v58 }
 0xe76   :  { %v12999_v27 = vpop.eup %12998  ;;  %11437 = vmatpush3.bf16.msra.mxu1 %v16385_v20  ;;  %10720 = vmatprep.mubr.msk.f32.mxu0 %vm109_vm0, %v3809_v3  ;;  %13004 = vrcp.f32 %v3773_v7  ;;  %v12019_v20 = vunpack.i.h.bf16 %v19868_v19  ;;  %v12018_v53 = vunpack.i.l.bf16 %v19868_v19  ;;  %v12078_v48 = vunpack.i.l.bf16 %v16456_v49 }
 0xe77   :  { %11439 = vmatprep.subr.bf16.mxu1 %v11438_v62  ;;  %10721 = vmatmul.mubr.msk.f32.vlgmr.msra.gmra.mrb[36].mxu0 %vm109_vm0, %v3810_v63  ;;  %v3776_v36 = vpop.xlane.xlu0 %3775  ;;  %v3807_v12 = vmul.f32 %v12999_v27, %v16675_v47  ;;  %v12064_v63 = vunpack.i.h.bf16 %v16452_v28  ;;  %v11458_v47 = vpack.c.bf16 %v12059_v55, %v12058_v18  ;;  %v11466_v3 = vpack.c.bf16 %v12054_v14, %v12053_v35 }
 0xe78   :  { %11453 = vmatpush3.bf16.msra.mxu0 %v16447_v52  ;;  %6291 = vadd.xlane.f32.xlu0 %v6290_v24  ;;  %13006 = vrcp.f32 %v3776_v36  ;;  %v11446_v28 = vpack.c.bf16 %v12019_v20, %v12018_v53  ;;  %v6040_v15 = vsel %vm1072_vm6, %v16741_v0, 0.0  ;;  %v12068_v18 = vunpack.i.l.bf16 %v16450_v30 }
 0xe79   :  { %11455 = vmatprep.subr.bf16.mxu0 %v11454_v61  ;;  %10701 = vmatprep.mubr.msk.f32.mxu1 %vm109_vm0, %v3807_v12  ;;  %13008 = vrcp.f32 %v3764_v54  ;;  %v12079_v54 = vunpack.i.h.bf16 %v16456_v49  ;;  %v11462_v31 = vpack.c.bf16 %v12064_v63, %v12063_v6  ;;  %v6287_v36 = vsel %vm1072_vm6, %v16745_v11, 0.0 }
 0xe7a   :  { %11441 = vmatpush3.bf16.msra.mxu1 %v11438_v62  ;;  %v12089_v53 = vunpack.i.h.bf16 %v16500_v43  ;;  %v12073_v11 = vunpack.i.l.bf16 %v16454_v37  ;;  %v12094_v63 = vunpack.i.h.bf16 %v16512_v39  ;;  %v12093_v6 = vunpack.i.l.bf16 %v16512_v39 }
 0xe7b   :  { %10702 = vmatmul.mubr.msk.f32.gmra.mrb[82].mxu1 %vm109_vm0, %v3808_v10  ;;  %11443 = vmatprep.subr.bf16.mxu1 %v11442_v57  ;;  %v3761_v52 = vpop.xlane.xlu0 %3760  ;;  %v11490_v2 = vpack.c.bf16 %v12079_v54, %v12078_v48  ;;  %v12088_v10 = vunpack.i.l.bf16 %v16500_v43  ;;  %v6278_v43 = vsel %vm1072_vm6, %v16729_v59, 0.0  ;;  %v6031_v59 = vsel %vm1072_vm6, %v16739_v42, 0.0  ;;  %v19873_v48 = vld [vmem:[#allocation155_spill] sm:$0xff] }
 0xe7c   :  { %11457 = vmatpush3.bf16.msra.mxu0 %v11454_v61  ;;  %13010 = vrcp.f32 %v3761_v52  ;;  %6294 = vadd.xlane.f32.xlu0 %v6293_v21  ;;  %v6037_v39 = vsel %vm1072_vm6, %v16743_v16, 0.0  ;;  %v12083_v21 = vunpack.i.l.bf16 %v16544_v23  ;;  %v12103_v16 = vunpack.i.l.bf16 %v16564_v8 }
 0xe7d   :  { %11459 = vmatprep.subr.bf16.mxu0 %v11458_v47  ;;  %13012 = vrcp.f32 %v3782_v50  ;;  %v11502_v50 = vpack.c.bf16 %v12094_v63, %v12093_v6  ;;  %v19891_v6 = vld [vmem:[#allocation138_spill] sm:$0xff] }
 0xe7e   :  { %v13001_v17 = vpop.eup %13000  ;;  %11445 = vmatpush3.bf16.msra.mxu1 %v11442_v57  ;;  %v11496_v57 = vpack.c.bf16 %v12089_v53, %v12088_v10  ;;  %v19884_v10 = vld [vmem:[#allocation33_spill] sm:$0xff] }
 0xe7f   :  { %11447 = vmatprep.subr.bf16.mxu1 %v11446_v28  ;;  %v3779_v51 = vpop.xlane.xlu0 %3778  ;;  %v3813_v41 = vmul.f32 %v13001_v17, %v16693_v40  ;;  %v13003_v7 = vpop.eup %13002 }
 0xe80   :  { %11461 = vmatpush3.bf16.msra.mxu0 %v11458_v47  ;;  %13014 = vrcp.f32 %v3779_v51  ;;  %6035 = vadd.xlane.f32.xlu0 %v6034_v32  ;;  %v13005_v58 = vpop.eup %13004  ;;  %v3814_v49 = vmul.f32 %v13003_v7, %v16684_v34  ;;  %v12069_v34 = vunpack.i.h.bf16 %v16450_v30  ;;  %v12084_v47 = vunpack.i.h.bf16 %v16544_v23 }
 0xe81   :  { %11463 = vmatprep.subr.bf16.mxu0 %v11462_v31  ;;  %10742 = vmatprep.mubr.msk.f32.mxu1 %vm109_vm0, %v3813_v41  ;;  %v3815_v27 = vmul.f32 %v13005_v58, %v16688_v4  ;;  %v6284_v23 = vsel %vm1072_vm6, %v16747_v13, 0.0  ;;  %v6302_v51 = vsel %vm1072_vm6, %v19873_v48, 0.0  ;;  %v19874_v41 = vld [vmem:[#allocation21_spill] sm:$0xff]  ;;  %v19902_v48 = vld [vmem:[#allocation160_spill] sm:$0xff] }
 0xe82   :  { %11449 = vmatpush3.bf16.msra.mxu1 %v11446_v28  ;;  %v13007_v40 = vpop.eup %13006  ;;  %v11472_v20 = vpack.c.bf16 %v12069_v34, %v12068_v18  ;;  %v19871_v28 = vld [vmem:[#allocation110_spill] sm:$0xff]  ;;  %v12119_v7 = vunpack.i.h.bf16 %v19874_v41  ;;  %v12118_v58 = vunpack.i.l.bf16 %v19874_v41  ;;  %v19878_v34 = vld [vmem:[#allocation123_spill] sm:$0xff]  ;;  %v19879_v18 = vld [vmem:[#allocation136_spill] sm:$0xff] }
 0xe83   :  { %11468 = vmatprep.subr.msk.bf16.mxu1 %vm14214_vm7, %v11466_v3  ;;  %v3788_v62 = vpop.xlane.xlu0 %3787  ;;  %v13009_v55 = vpop.eup %13008  ;;  %v3816_v4 = vmul.f32 %v13007_v40, %v16702_v60  ;;  %v12099_v17 = vunpack.i.h.bf16 %v19871_v28  ;;  %v12098_v54 = vunpack.i.l.bf16 %v19871_v28 }
 0xe84   :  { %11465 = vmatpush3.bf16.msra.mxu0 %v11462_v31  ;;  %6041 = vadd.xlane.f32.xlu0 %v6040_v15  ;;  %13016 = vrcp.f32 %v3788_v62  ;;  %v3812_v12 = vmul.f32 %v13009_v55, %v16679_v44  ;;  %v6299_v44 = vsel %vm1072_vm6, %v16749_v22, 0.0  ;;  %v11538_v40 = vpack.c.bf16 %v12119_v7, %v12118_v58 }
 0xe85   :  { %10743 = vmatmul.mubr.msk.f32.vlgmr.msra.gmra.mrb[84].mxu1 %vm109_vm0, %v3814_v49  ;;  %11492 = vmatprep.subr.msk.bf16.mxu0 %vm14214_vm7, %v11490_v2  ;;  %v11514_v32 = vpack.c.bf16 %v12099_v17, %v12098_v54  ;;  %v19876_v49 = vld [vmem:[#allocation121_spill] sm:$0xff]  ;;  %v19900_v17 = vld [vmem:[#allocation194_spill] sm:$0xff]  ;;  %v19901_v54 = vld [vmem:[#allocation184_spill] sm:$0xff] }
 0xe86   :  { %v13011_v61 = vpop.eup %13010  ;;  %10745 = vmatprep.mubr.msk.f32.mxu1 %vm109_vm0, %v3815_v27  ;;  %v12109_v62 = vunpack.i.h.bf16 %v19876_v49  ;;  %v12108_v15 = vunpack.i.l.bf16 %v19876_v49  ;;  %v19877_v27 = vld [vmem:[#allocation176_spill] sm:$0xff] }
 0xe87   :  { %v3785_v0 = vpop.xlane.xlu0 %3784  ;;  %v3811_v24 = vmul.f32 %v13011_v61, %v16708_v29  ;;  %v13013_v19 = vpop.eup %13012  ;;  %v6043_v55 = vsel %vm1072_vm6, %v19877_v27, 0.0 }
 0xe88   :  { %13018 = vrcp.f32 %v3785_v0  ;;  %6288 = vadd.xlane.f32.xlu0 %v6287_v36  ;;  %v3818_v29 = vmul.f32 %v13013_v19, %v16697_v33  ;;  %v6305_v33 = vsel %vm1072_vm6, %v16756_v38, 0.0  ;;  %v6317_v38 = vsel %vm1072_vm6, %v16760_v56, 0.0 }
 0xe89   :  { %10746 = vmatmul.mubr.msk.f32.gmra.mrb[86].mxu1 %vm109_vm0, %v3816_v4  ;;  %10723 = vmatprep.mubr.msk.f32.mxu0 %vm109_vm0, %v3811_v24  ;;  %v6046_v56 = vsel %vm1072_vm6, %v16764_v45, 0.0  ;;  %v19870_v45 = vld [vmem:[#allocation185_spill] sm:$0xff]  ;;  %v11520_v61 = vpack.c.bf16 %v12109_v62, %v12108_v15  ;;  %v12129_v0 = vunpack.i.h.bf16 %v19879_v18  ;;  %v12128_v36 = vunpack.i.l.bf16 %v19879_v18  ;;  %v19880_v4 = vld [vmem:[#allocation182_spill] sm:$0xff] }
 0xe8a   :  { %v13015_v30 = vpop.eup %13014  ;;  %10786 = vmatprep.mubr.msk.f32.mxu1 %vm1072_vm6, %v16552_v5  ;;  %10724 = vmatmul.mubr.msk.f32.gmra.mrb[38].mxu0 %vm109_vm0, %v3812_v12  ;;  %v12074_v5 = vunpack.i.h.bf16 %v16454_v37  ;;  %v6296_v35 = vsel %vm1072_vm6, %v19870_v45, 0.0  ;;  %v19881_v24 = vld [vmem:[#allocation141_spill] sm:$0xff] }
 0xe8b   :  { %11471 = vmatpush3.bf16.xpose.msk.msra.mxu1 %vm14214_vm7, %v11466_v3  ;;  %v3817_v60 = vmul.f32 %v13015_v30, %v16712_v1  ;;  %v19875_v3 = vld [vmem:[#allocation144_spill] sm:$0xff]  ;;  %v12114_v12 = vunpack.i.h.bf16 %v19881_v24  ;;  %v12113_v19 = vunpack.i.l.bf16 %v19881_v24  ;;  %v19882_v30 = vld [vmem:[#allocation149_spill] sm:$0xff]  ;;  %v11544_v53 = vpack.c.bf16 %v12129_v0, %v12128_v36 }
 0xe8c   :  { %11474 = vmatprep.subr.msk.bf16.mxu1 %vm14214_vm7, %v11472_v20  ;;  %6300 = vadd.xlane.f32.xlu0 %v6299_v44  ;;  %v11478_v37 = vpack.c.bf16 %v12074_v5, %v12073_v11  ;;  %v19885_v44 = vld [vmem:[#allocation159_spill] sm:$0xff] }
 0xe8d   :  { %10764 = vmatprep.mubr.msk.f32.mxu0 %vm109_vm0, %v3817_v60  ;;  %v11526_v60 = vpack.c.bf16 %v12114_v12, %v12113_v19  ;;  %v19905_v12 = vld [vmem:[#allocation154_spill] sm:$0xff] }
 0xe8e   :  { %6279 = vadd.xlane.f32.xlu1 %v6278_v43  ;;  %10765 = vmatmul.mubr.msk.f32.vlgmr.msra.gmra.mrb[40].mxu0 %vm109_vm0, %v3818_v29  ;;  %v13017_v1 = vpop.eup %13016  ;;  %v19886_v29 = vld [vmem:[#allocation174_spill] sm:$0xff]  ;;  %v6320_v19 = vsel %vm1072_vm6, %v19905_v12, 0.0 }
 0xe8f   :  { %11495 = vmatpush3.bf16.xpose.msk.msra.mxu0 %vm14214_vm7, %v11490_v2  ;;  %v3820_v42 = vmul.f32 %v13017_v1, %v16716_v46  ;;  %v11484_v46 = vpack.c.bf16 %v12084_v47, %v12083_v21  ;;  %v6314_v2 = vsel %vm1072_vm6, %v19875_v3, 0.0  ;;  %v19887_v43 = vld [vmem:[#allocation162_spill] sm:$0xff]  ;;  %v6256_v47 = vpop.xlane.xlu0 %6255 }
 0xe90   :  { %11498 = vmatprep.subr.msk.bf16.mxu0 %vm14214_vm7, %v11496_v57  ;;  %6306 = vadd.xlane.f32.xlu0 %v6305_v33  ;;  %v12134_v5 = vunpack.i.h.bf16 %v19887_v43  ;;  %v12133_v11 = vunpack.i.l.bf16 %v19887_v43  ;;  %v19889_v33 = vld [vmem:[#allocation161_spill] sm:$0xff]  ;;  %v6342_v7 = vmax.f32 %v6256_v47, 1e-24 }
 0xe91   :  { %v12124_v1 = vunpack.i.h.bf16 %v19889_v33 }
 0xe92   :  { %v13019_v22 = vpop.eup %13018  ;;  %6032 = vadd.xlane.f32.xlu1 %v6031_v59  ;;  %v12123_v59 = vunpack.i.l.bf16 %v19889_v33  ;;  %v19908_v33 = vld [vmem:[#allocation24_spill] sm:$0xff] }
 0xe93   :  { %11477 = vmatpush3.bf16.xpose.msk.msra.mxu1 %vm14214_vm7, %v11472_v20  ;;  %v3819_v52 = vmul.f32 %v13019_v22, %v16720_v9  ;;  %v12104_v9 = vunpack.i.h.bf16 %v16564_v8  ;;  %v19872_v8 = vld [vmem:[#allocation120_spill] sm:$0xff]  ;;  %v19883_v20 = vld [vmem:[#allocation118_spill] sm:$0xff]  ;;  %v19890_v22 = vld [vmem:[#allocation29_spill] sm:$0xff]  ;;  %v6268_v21 = vpop.xlane.xlu0 %6267 }
 0xe94   :  { %11480 = vmatprep.subr.msk.bf16.mxu1 %vm14214_vm7, %v11478_v37  ;;  %6318 = vadd.xlane.f32.xlu0 %v6317_v38  ;;  %v6052_v31 = vsel %vm1072_vm6, %v19872_v8, 0.0  ;;  %v11532_v63 = vpack.c.bf16 %v12124_v1, %v12123_v59  ;;  %v12139_v38 = vunpack.i.h.bf16 %v19891_v6  ;;  %v6341_v8 = vmax.f32 %v19901_v54, 1e-24  ;;  %v19909_v59 = vld [vmem:[#allocation45_spill] sm:$0xff] }
 0xe95   :  { %10767 = vmatprep.mubr.msk.f32.mxu0 %vm109_vm0, %v3819_v52  ;;  %v11508_v13 = vpack.c.bf16 %v12104_v9, %v12103_v16  ;;  %v12138_v52 = vunpack.i.l.bf16 %v19891_v6  ;;  %v19896_v9 = vld [vmem:[#allocation193_spill] sm:$0xff]  ;;  %v17028_v16 = vpop.permute.xlu1 %6208  ;;  %v6346_v3 = vmax.f32 %v6268_v21, 1e-24  ;;  %v19912_v21 = vld [vmem:[#allocation28_spill] sm:$0xff] }
 0xe96   :  { %6038 = vadd.xlane.f32.xlu1 %v6037_v39  ;;  %10768 = vmatmul.mubr.msk.f32.gmra.mrb[42].mxu0 %vm109_vm0, %v3820_v42  ;;  %v19892_v42 = vld [vmem:[#allocation25_spill] sm:$0xff] }
 0xe97   :  { %11501 = vmatpush3.bf16.xpose.msk.msra.mxu0 %vm14214_vm7, %v11496_v57  ;;  %10808 = vmatprep.mubr.msk.f32.mxu0 %vm1072_vm6, %v16584_v25  ;;  %v19869_v25 = vld [vmem:[#allocation177_spill] sm:$0xff]  ;;  %v19888_v57 = vld [vmem:[#allocation18_spill] sm:$0xff]  ;;  %v11556_v39 = vpack.c.bf16 %v12139_v38, %v12138_v52 }
 0xe98   :  { %11504 = vmatprep.subr.msk.bf16.mxu0 %vm14214_vm7, %v11502_v50  ;;  %6047 = vadd.xlane.f32.xlu0 %v6046_v56  ;;  %v6049_v14 = vsel %vm1072_vm6, %v19869_v25, 0.0  ;;  %v19894_v56 = vld [vmem:[#allocation115_spill] sm:$0xff] }
 0xe99   :  { %v19897_v25 = vld [vmem:[#allocation187_spill] sm:$0xff] }
 0xe9a   :  { %6285 = vadd.xlane.f32.xlu1 %v6284_v23  ;;  %v6271_v23 = vpop.xlane.xlu0 %6270 }
 0xe9b   :  { %11483 = vmatpush3.bf16.xpose.msk.msra.mxu1 %vm14214_vm7, %v11478_v37  ;;  %v11550_v37 = vpack.c.bf16 %v12134_v5, %v12133_v11  ;;  %v6347_v49 = vmax.f32 %v6271_v23, 1e-24  ;;  %v19907_v11 = vld [vmem:[#allocation22_spill] sm:$0xff] }
 0xe9c   :  { %11486 = vmatprep.subr.msk.bf16.mxu1 %vm14214_vm7, %v11484_v46  ;;  %6050 = vadd.xlane.f32.xlu0 %v6049_v14  ;;  %v19898_v14 = vld [vmem:[#allocation38_spill] sm:$0xff] }
 0xe9d   :  { %v6339_v45 = vmax.f32 %v19898_v14, 1e-24  ;;  %v19915_v14 = vld [vmem:[#allocation51_spill] sm:$0xff] }
 0xe9e   :  { %6297 = vadd.xlane.f32.xlu1 %v6296_v35  ;;  %v17033_v35 = vpop.permute.xlu0 %6007 }
 0xe9f   :  { %11507 = vmatpush3.bf16.xpose.msk.msra.mxu0 %vm14214_vm7, %v11502_v50  ;;  %v19893_v50 = vld [vmem:[#allocation172_spill] sm:$0xff]  ;;  %13020 = vrsqrt.f32 %v6339_v45 }
 0xea0   :  { %11510 = vmatprep.subr.msk.bf16.mxu0 %vm14214_vm7, %v11508_v13  ;;  %6053 = vadd.xlane.f32.xlu0 %v6052_v31 }
 0xea2   :  { %6303 = vadd.xlane.f32.xlu1 %v6302_v51  ;;  %v6311_v51 = vsel %vm1072_vm6, %v19902_v48, 0.0 }
 0xea3   :  { %11489 = vmatpush3.bf16.xpose.msk.msra.mxu1 %vm14214_vm7, %v11484_v46  ;;  %v19895_v46 = vld [vmem:[#allocation150_spill] sm:$0xff] }
 0xea4   :  { %11516 = vmatprep.subr.msk.bf16.mxu1 %vm14214_vm7, %v11514_v32 }
 0xea6   :  { %6315 = vadd.xlane.f32.xlu1 %v6314_v2 }
 0xea7   :  { %11513 = vmatpush3.bf16.xpose.msk.msra.mxu0 %vm14214_vm7, %v11508_v13  ;;  %v19899_v13 = vld [vmem:[#allocation137_spill] sm:$0xff] }
 0xea8   :  { %11540 = vmatprep.subr.msk.bf16.mxu0 %vm14214_vm7, %v11538_v40  ;;  %v6338_v28 = vmax.f32 %v19899_v13, 1e-24 }
 0xea9   :  { %v6259_v31 = vpop.xlane.xlu1 %6258  ;;  %v13021_v0 = vpop.eup %13020 }
 0xeaa   :  { %10787 = vmatmul.mubr.msk.f32.vlgmr.msra.gmra.mrb[88].mxu1 %vm1072_vm6, %v19878_v34  ;;  %6044 = vadd.xlane.f32.xlu1 %v6043_v55  ;;  %13022 = vrsqrt.f32 %v6338_v28  ;;  %v6343_v2 = vmax.f32 %v6259_v31, 1e-24  ;;  %v19904_v55 = vld [vmem:[#allocation20_spill] sm:$0xff]  ;;  %v6403_v1 = vmul.f32 %v13021_v0, %v19908_v33  ;;  %v19920_v0 = vld [vmem:[#allocation61_spill] sm:$0xff] }
 0xeab   :  { %10789 = vmatprep.mubr.msk.f32.mxu1 %vm1072_vm6, %v19880_v4  ;;  %11519 = vmatpush3.bf16.xpose.msk.msra.mxu1 %vm14214_vm7, %v11514_v32  ;;  %v19903_v32 = vld [vmem:[#allocation133_spill] sm:$0xff]  ;;  %13024 = vrsqrt.f32 %v6341_v8 }
 0xeac   :  { %11522 = vmatprep.subr.msk.bf16.mxu1 %vm14214_vm7, %v11520_v61  ;;  %v6340_v41 = vmax.f32 %v19903_v32, 1e-24 }
 0xead   :  { %v17042_v62 = vpop.permute.xlu1 %6009 }
 0xeae   :  { %10790 = vmatmul.mubr.msk.f32.gmra.mrb[90].mxu1 %vm1072_vm6, %v19882_v30  ;;  %10809 = vmatmul.mubr.msk.f32.vlgmr.msra.gmra.mrb[44].mxu0 %vm1072_vm6, %v19883_v20  ;;  %13026 = vrsqrt.f32 %v6340_v41 }
 0xeaf   :  { %10811 = vmatprep.mubr.msk.f32.mxu0 %vm1072_vm6, %v19884_v10  ;;  %10830 = vmatprep.mubr.msk.f32.mxu1 %vm1072_vm6, %v19885_v44  ;;  %13028 = vrsqrt.f32 %v6342_v7  ;;  %v19916_v7 = vld [vmem:[#allocation52_spill] sm:$0xff] }
 0xeb0   :  { %11543 = vmatpush3.bf16.xpose.msk.msra.mxu0 %vm14214_vm7, %v11538_v40  ;;  %13030 = vrsqrt.f32 %v6346_v3  ;;  %v19917_v3 = vld [vmem:[#allocation54_spill] sm:$0xff] }
 0xeb1   :  { %11546 = vmatprep.subr.msk.bf16.mxu0 %vm14214_vm7, %v11544_v53  ;;  %13032 = vrsqrt.f32 %v6343_v2 }
 0xeb2   :  { %10812 = vmatmul.mubr.msk.f32.gmra.mrb[46].mxu0 %vm1072_vm6, %v19886_v29  ;;  %13034 = vrsqrt.f32 %v6347_v49  ;;  %v19906_v29 = vld [vmem:[#allocation197_spill] sm:$0xff] }
 0xeb3   :  { %11525 = vmatpush3.bf16.xpose.msk.msra.mxu1 %vm14214_vm7, %v11520_v61  ;;  %10852 = vmatprep.mubr.msk.f32.mxu0 %vm1072_vm6, %v19888_v57  ;;  %v6308_v61 = vsel %vm1072_vm6, %v19904_v55, 0.0  ;;  %v6323_v43 = vsel %vm1072_vm6, %v19906_v29, 0.0 }
 0xeb4   :  { %11528 = vmatprep.subr.msk.bf16.mxu1 %vm14214_vm7, %v11526_v60  ;;  %v13023_v36 = vpop.eup %13022 }
 0xeb5   :  { %v13025_v4 = vpop.eup %13024  ;;  %v6402_v57 = vmul.f32 %v13023_v36, %v19907_v11  ;;  %v19922_v11 = vld [vmem:[#allocation147_spill] sm:$0xff] }
 0xeb6   :  { %12146 = vrot.lane.b32.xlu0 %v19890_v22, %s13510_s1 }
 0xeb8   :  { %11549 = vmatpush3.bf16.xpose.msk.msra.mxu0 %vm14214_vm7, %v11544_v53  ;;  %v13027_v30 = vpop.eup %13026 }
 0xeb9   :  { %11552 = vmatprep.subr.msk.bf16.mxu0 %vm14214_vm7, %v11550_v37  ;;  %v13029_v53 = vpop.eup %13028 }
 0xeba   :  { %v13031_v10 = vpop.eup %13030 }
 0xebb   :  { %11531 = vmatpush3.bf16.xpose.msk.msra.mxu1 %vm14214_vm7, %v11526_v60  ;;  %12141 = vrot.lane.b32.xlu1 %v19892_v42, %s13510_s1  ;;  %v13033_v44 = vpop.eup %13032 }
 0xebc   :  { %11534 = vmatprep.subr.msk.bf16.mxu1 %vm14214_vm7, %v11532_v63  ;;  %v13035_v5 = vpop.eup %13034 }
 0xec0   :  { %11555 = vmatpush3.bf16.xpose.msk.msra.mxu0 %vm14214_vm7, %v11550_v37  ;;  %v6406_v37 = vmul.f32 %v13029_v53, %v19909_v59 }
 0xec1   :  { %11558 = vmatprep.subr.msk.bf16.mxu0 %vm14214_vm7, %v11556_v39 }
 0xec3   :  { %11537 = vmatpush3.bf16.xpose.msk.msra.mxu1 %vm14214_vm7, %v11532_v63  ;;  %v19910_v63 = vld [vmem:[#allocation48_spill] sm:$0xff] }
 0xec4   :  { %v6407_v6 = vmul.f32 %v13033_v44, %v19910_v63 }
 0xec8   :  { %11561 = vmatpush3.bf16.xpose.msk.msra.mxu0 %vm14214_vm7, %v11556_v39  ;;  %v6265_v58 = vpop.xlane.xlu0 %6264  ;;  %v19911_v39 = vld [vmem:[#allocation27_spill] sm:$0xff] }
 0xec9   :  { %v6345_v15 = vmax.f32 %v6265_v58, 1e-24  ;;  %v6404_v47 = vmul.f32 %v13027_v30, %v19911_v39  ;;  %v19921_v30 = vld [vmem:[#allocation16_spill] sm:$0xff]  ;;  %v19925_v39 = vld [vmem:[#allocation73_spill] sm:$0xff] }
 0xeca   :  { %10831 = vmatmul.mubr.msk.f32.vlgmr.msra.gmra.mrb[92].mxu1 %vm1072_vm6, %v19893_v50  ;;  %v6405_v50 = vmul.f32 %v13025_v4, %v19912_v21 }
 0xecb   :  { %10833 = vmatprep.mubr.msk.f32.mxu1 %vm1072_vm6, %v19894_v56  ;;  %13036 = vrsqrt.f32 %v6345_v15  ;;  %v19913_v56 = vld [vmem:[#allocation57_spill] sm:$0xff] }
 0xecc   :  { %v6274_v40 = vpop.xlane.xlu0 %6273  ;;  %v6410_v23 = vmul.f32 %v13031_v10, %v19913_v56  ;;  %v19926_v56 = vld [vmem:[#allocation74_spill] sm:$0xff] }
 0xecd   :  { %v6348_v34 = vmax.f32 %v6274_v40, 1e-24 }
 0xece   :  { %10834 = vmatmul.mubr.msk.f32.gmra.mrb[94].mxu1 %vm1072_vm6, %v19895_v46  ;;  %v19914_v46 = vld [vmem:[#allocation58_spill] sm:$0xff] }
 0xecf   :  { %10853 = vmatmul.mubr.msk.f32.vlgmr.msra.gmra.mrb[48].mxu0 %vm1072_vm6, %v19896_v9  ;;  %v6411_v9 = vmul.f32 %v13035_v5, %v19914_v46 }
 0xed0   :  { %10855 = vmatprep.mubr.msk.f32.mxu0 %vm1072_vm6, %v19897_v25 }
 0xed3   :  { %10856 = vmatmul.mubr.msk.f32.gmra.mrb[50].mxu0 %vm1072_vm6, %v19900_v17 }
 0xed5   :  { %6312 = vadd.xlane.f32.xlu0 %v6311_v51  ;;  %v13037_v38 = vpop.eup %13036 }
 0xed6   :  { %v6409_v2 = vmul.f32 %v13037_v38, %v19917_v3 }
 0xede   :  { %v6262_v27 = vpop.xlane.xlu1 %6261 }
 0xedf   :  { %v6344_v18 = vmax.f32 %v6262_v27, 1e-24  ;;  %6309 = vadd.xlane.f32.xlu1 %v6308_v61  ;;  %v19918_v27 = vld [vmem:[#allocation56_spill] sm:$0xff] }
 0xee1   :  { %13038 = vrsqrt.f32 %v6344_v18 }
 0xee2   :  { %v6277_v24 = vpop.xlane.xlu1 %6276  ;;  %13040 = vrsqrt.f32 %v6348_v34  ;;  %v19919_v34 = vld [vmem:[#allocation60_spill] sm:$0xff] }
 0xee3   :  { %v6349_v20 = vmax.f32 %v6277_v24, 1e-24  ;;  %6321 = vadd.xlane.f32.xlu1 %v6320_v19  ;;  %v19942_v19 = vld [vmem:[#allocation80_spill] sm:$0xff] }
 0xee5   :  { %13042 = vrsqrt.f32 %v6349_v20  ;;  %v17120_v20 = vpop.permute.xlu0 %6011 }
 0xee6   :  { %v17048_v60 = vpop.permute.xlu1 %6013 }
 0xee7   :  { %6324 = vadd.xlane.f32.xlu1 %v6323_v43 }
 0xeea   :  { %v17056_v52 = vpop.permute.xlu1 %6434 }
 0xeeb   :  { %v13039_v25 = vpop.eup %13038  ;;  %12151 = vrot.lane.b32.xlu0 %v19915_v14, %s13510_s1  ;;  %v17065_v45 = vmul.f32 %v17056_v52, %v6402_v57  ;;  %v17068_v13 = vmul.f32 %v17056_v52, %v6403_v1  ;;  %v17071_v28 = vmul.f32 %v17056_v52, %v6406_v37  ;;  %v17074_v17 = vmul.f32 %v17056_v52, %v6407_v6  ;;  %v19923_v1 = vld [vmem:[#allocation175_spill] sm:$0xff]  ;;  %v19924_v6 = vld [vmem:[#allocation130_spill] sm:$0xff] }
 0xeec   :  { %v17077_v54 = vmul.f32 %v17056_v52, %v6404_v47  ;;  %v17080_v8 = vmul.f32 %v17056_v52, %v6405_v50  ;;  %v17083_v31 = vmul.f32 %v17056_v52, %v6410_v23  ;;  %v17086_v48 = vmul.f32 %v17056_v52, %v6411_v9  ;;  %v13041_v51 = vpop.eup %13040 }
 0xeed   :  { %v6408_v58 = vmul.f32 %v13039_v25, %v19916_v7  ;;  %v17104_v61 = vmul.f32 %v17056_v52, %v6409_v2  ;;  %v6412_v18 = vmul.f32 %v13041_v51, %v19919_v34  ;;  %v6326_v57 = vsel %vm1072_vm6, %v19922_v11, 0.0  ;;  %v19929_v7 = vld [vmem:[#allocation146_spill] sm:$0xff] }
 0xeee   :  { %v6329_v59 = vsel %vm1072_vm6, %v19923_v1, 0.0  ;;  %v6055_v38 = vsel %vm1072_vm6, %v19924_v6, 0.0 }
 0xeef   :  { %v13043_v40 = vpop.eup %13042  ;;  %12156 = vrot.lane.b32.xlu0 %v19918_v27, %s13510_s1  ;;  %v17101_v55 = vmul.f32 %v17056_v52, %v6408_v58  ;;  %v17111_v24 = vmul.f32 %v17056_v52, %v6412_v18  ;;  %v6058_v58 = vsel %vm1072_vm6, %v19929_v7, 0.0 }
 0xef0   :  { %v6413_v36 = vmul.f32 %v13043_v40, %v19920_v0 }
 0xef2   :  { %v17114_v12 = vmul.f32 %v17056_v52, %v6413_v36 }
 0xef8   :  { %6127 = vrot.lane.b32.xlu1 %v19921_v30, %s13513_s29 }
 0xf01   :  { %v6283_v53 = vpop.xlane.xlu0 %6282 }
 0xf02   :  { %v6351_v50 = vmax.f32 %v6283_v53, 1e-24 }
 0xf05   :  { %v6292_v10 = vpop.xlane.xlu0 %6291 }
 0xf06   :  { %v6354_v44 = vmax.f32 %v6292_v10, 1e-24 }
 0xf08   :  { %13044 = vrsqrt.f32 %v6354_v44 }
 0xf09   :  { %v6295_v29 = vpop.xlane.xlu0 %6294 }
 0xf0a   :  { %v6355_v43 = vmax.f32 %v6295_v29, 1e-24  ;;  %v19930_v29 = vld [vmem:[#allocation65_spill] sm:$0xff] }
 0xf0c   :  { %13046 = vrsqrt.f32 %v6355_v43 }
 0xf0d   :  { %v17122_v5 = vpop.xlane.xlu0 %6035  ;;  %13048 = vrsqrt.f32 %v6351_v50 }
 0xf0e   :  { %6327 = vadd.xlane.f32.xlu0 %v6326_v57 }
 0xf11   :  { %v17126_v33 = vpop.xlane.xlu0 %6041 }
 0xf12   :  { %v13045_v37 = vpop.eup %13044  ;;  %6330 = vadd.xlane.f32.xlu0 %v6329_v59  ;;  %v19931_v59 = vld [vmem:[#allocation63_spill] sm:$0xff] }
 0xf13   :  { %v6418_v47 = vmul.f32 %v13045_v37, %v19925_v39 }
 0xf15   :  { %v6289_v63 = vpop.xlane.xlu0 %6288  ;;  %v17135_v9 = vmul.f32 %v17056_v52, %v6418_v47  ;;  %v19932_v47 = vld [vmem:[#allocation59_spill] sm:$0xff] }
 0xf16   :  { %v13047_v21 = vpop.eup %13046  ;;  %6056 = vadd.xlane.f32.xlu0 %v6055_v38  ;;  %v6353_v0 = vmax.f32 %v6289_v63, 1e-24 }
 0xf17   :  { %v6419_v23 = vmul.f32 %v13047_v21, %v19926_v56  ;;  %19927 = vst [vmem:[#allocation143_spill] sm:$0xff] %v17135_v9  ;;  %v13049_v30 = vpop.eup %13048  ;;  %v19933_v56 = vld [vmem:[#allocation75_spill] sm:$0xff] }
 0xf18   :  { %v6415_v43 = vmul.f32 %v13049_v30, %v19930_v29  ;;  %v19979_v9 = vld [vmem:[#allocation99_spill] sm:$0xff] }
 0xf19   :  { %v6301_v46 = vpop.xlane.xlu0 %6300  ;;  %v17138_v25 = vmul.f32 %v17056_v52, %v6419_v23 }
 0xf1a   :  { %v6357_v53 = vmax.f32 %v6301_v46, 1e-24  ;;  %v17156_v38 = vmul.f32 %v17056_v52, %v6415_v43 }
 0xf1b   :  { %19928 = vst [vmem:[#allocation198_spill] sm:$0xff] %v17138_v25  ;;  %v6280_v51 = vpop.xlane.xlu1 %6279 }
 0xf1c   :  { %v6350_v2 = vmax.f32 %v6280_v51, 1e-24  ;;  %6059 = vadd.xlane.f32.xlu1 %v6058_v58 }
 0xf1d   :  { %v6307_v40 = vpop.xlane.xlu0 %6306 }
 0xf1e   :  { %13050 = vrsqrt.f32 %v6350_v2  ;;  %v6359_v1 = vmax.f32 %v6307_v40, 1e-24 }
 0xf1f   :  { %v17144_v34 = vpop.xlane.xlu1 %6032  ;;  %13052 = vrsqrt.f32 %v6353_v0  ;;  %v19935_v0 = vld [vmem:[#allocation70_spill] sm:$0xff] }
 0xf20   :  { %13054 = vrsqrt.f32 %v6357_v53 }
 0xf21   :  { %v6319_v18 = vpop.xlane.xlu0 %6318 }
 0xf22   :  { %v6363_v21 = vmax.f32 %v6319_v18, 1e-24 }
 0xf23   :  { %v17146_v36 = vpop.xlane.xlu1 %6038 }
 0xf25   :  { %v17148_v10 = vpop.xlane.xlu0 %6047 }
 0xf27   :  { %v6286_v44 = vpop.xlane.xlu1 %6285 }
 0xf28   :  { %v13051_v11 = vpop.eup %13050  ;;  %v6352_v57 = vmax.f32 %v6286_v44, 1e-24  ;;  %v19936_v44 = vld [vmem:[#allocation68_spill] sm:$0xff] }
 0xf29   :  { %v6414_v37 = vmul.f32 %v13051_v11, %v19931_v59  ;;  %v17160_v50 = vpop.xlane.xlu0 %6050  ;;  %v13053_v51 = vpop.eup %13052  ;;  %v19937_v59 = vld [vmem:[#allocation77_spill] sm:$0xff] }
 0xf2a   :  { %13056 = vrsqrt.f32 %v6352_v57  ;;  %v13055_v58 = vpop.eup %13054  ;;  %v6417_v18 = vmul.f32 %v13053_v51, %v19935_v0  ;;  %v19939_v0 = vld [vmem:[#allocation82_spill] sm:$0xff] }
 0xf2b   :  { %v6298_v6 = vpop.xlane.xlu1 %6297  ;;  %v17153_v63 = vmul.f32 %v17056_v52, %v6414_v37  ;;  %13058 = vrsqrt.f32 %v6359_v1  ;;  %v6421_v37 = vmul.f32 %v13055_v58, %v19937_v59 }
 0xf2c   :  { %v6356_v39 = vmax.f32 %v6298_v6, 1e-24  ;;  %12161 = vrot.lane.b32.xlu0 %v19932_v47, %s13510_s1  ;;  %v17176_v1 = vmul.f32 %v17056_v52, %v6417_v18 }
 0xf2d   :  { %12166 = vrot.lane.b32.xlu1 %v19933_v56, %s13510_s1  ;;  %v17166_v2 = vpop.xlane.xlu0 %6053 }
 0xf2e   :  { %13060 = vrsqrt.f32 %v6356_v39  ;;  %19934 = vst [vmem:[#allocation26_spill] sm:$0xff] %v17166_v2 }
 0xf2f   :  { %v6304_v46 = vpop.xlane.xlu1 %6303  ;;  %13062 = vrsqrt.f32 %v6363_v21 }
 0xf30   :  { %v6358_v7 = vmax.f32 %v6304_v46, 1e-24  ;;  %v19938_v46 = vld [vmem:[#allocation76_spill] sm:$0xff] }
 0xf31   :  { %v12147_v39 = vpop.permute.xlu0 %12146 }
 0xf32   :  { %13064 = vrsqrt.f32 %v6358_v7  ;;  %v12148_v58 = vunpack.i.l.bf16 %v12147_v39 }
 0xf33   :  { %v6316_v40 = vpop.xlane.xlu1 %6315 }
 0xf34   :  { %v13057_v30 = vpop.eup %13056  ;;  %v6362_v53 = vmax.f32 %v6316_v40, 1e-24 }
 0xf35   :  { %v6416_v29 = vmul.f32 %v13057_v30, %v19936_v44  ;;  %v13059_v43 = vpop.eup %13058  ;;  %v17187_v44 = vmul.f32 %v17056_v52, %v6421_v37 }
 0xf36   :  { %13066 = vrsqrt.f32 %v6362_v53  ;;  %v6423_v30 = vmul.f32 %v13059_v43, %v19939_v0 }
 0xf37   :  { %v17170_v11 = vpop.xlane.xlu1 %6044  ;;  %v17173_v57 = vmul.f32 %v17056_v52, %v6416_v29  ;;  %19941 = vst [vmem:[#allocation23_spill] sm:$0xff] %v17187_v44  ;;  %v12149_v29 = vunpack.i.h.bf16 %v12147_v39 }
 0xf38   :  { %v13061_v6 = vpop.eup %13060  ;;  %v17196_v43 = vmul.f32 %v17056_v52, %v6423_v30 }
 0xf39   :  { %v6420_v51 = vmul.f32 %v13061_v6, %v19938_v46  ;;  %v13063_v7 = vpop.eup %13062  ;;  %v11566_v4 = vpack.c.bf16 %v12149_v29, %v12148_v58 }
 0xf3a   :  { %19944 = vst [vmem:[#allocation30_spill] sm:$0xff] %v17196_v43 }
 0xf3b   :  { %v12142_v40 = vpop.permute.xlu1 %12141  ;;  %v17184_v53 = vmul.f32 %v17056_v52, %v6420_v51  ;;  %v19945_v51 = vld [vmem:[#allocation92_spill] sm:$0xff] }
 0xf3c   :  { %v13065_v18 = vpop.eup %13064  ;;  %v12144_v59 = vunpack.i.h.bf16 %v12142_v40  ;;  %v12143_v3 = vunpack.i.l.bf16 %v12142_v40  ;;  %v6427_v37 = vmul.f32 %v13063_v7, %v19945_v51 }
 0xf3d   :  { %19940 = vst [vmem:[#allocation31_spill] sm:$0xff] %v17184_v53  ;;  %v6422_v23 = vmul.f32 %v13065_v18, %v19942_v19  ;;  %v19946_v19 = vld [vmem:[#allocation91_spill] sm:$0xff]  ;;  %v19977_v53 = vld [vmem:[#allocation62_spill] sm:$0xff] }
 0xf3e   :  { %v11562_v46 = vpack.c.bf16 %v12144_v59, %v12143_v3  ;;  %v19952_v59 = vld [vmem:[#allocation19_spill] sm:$0xff] }
 0xf3f   :  { %v17193_v21 = vmul.f32 %v17056_v52, %v6422_v23  ;;  %v17206_v23 = vmul.f32 %v17056_v52, %v6427_v37 }
 0xf40   :  { %v13067_v0 = vpop.eup %13066  ;;  %11563 = vmatprep.subr.bf16.mxu1 %v11562_v46 }
 0xf41   :  { %19943 = vst [vmem:[#allocation50_spill] sm:$0xff] %v17193_v21  ;;  %11565 = vmatpush3.bf16.msra.mxu1 %v11562_v46  ;;  %v6426_v40 = vmul.f32 %v13067_v0, %v19946_v19  ;;  %19948 = vst [vmem:[#allocation47_spill] sm:$0xff] %v17206_v23  ;;  %v6064_v46 = vsel %vm1072_vm6, %v19952_v59, 0.0 }
 0xf42   :  { %11567 = vmatprep.subr.bf16.mxu1 %v11566_v4 }
 0xf43   :  { %v17203_v3 = vmul.f32 %v17056_v52, %v6426_v40  ;;  %v19956_v40 = vld [vmem:[#allocation192_spill] sm:$0xff] }
 0xf44   :  { %v6061_v29 = vsel %vm1072_vm6, %v19956_v40, 0.0 }
 0xf45   :  { %19947 = vst [vmem:[#allocation119_spill] sm:$0xff] %v17203_v3  ;;  %11569 = vmatpush3.bf16.msra.mxu1 %v11566_v4 }
 0xf48   :  { %v17210_v30 = vpop.f32.mrb[80].mxu1 }
 0xf49   :  { %19949 = vst [vmem:[#allocation109_spill] sm:$0xff] %v17210_v30  ;;  %v17212_v18 = vpop.f32.mrb[81].mxu1 }
 0xf4a   :  { %19950 = vst [vmem:[#allocation117_spill] sm:$0xff] %v17212_v18  ;;  %v17216_v58 = vpop.f32.mrb[36].mxu0 }
 0xf4b   :  { %19951 = vst [vmem:[#allocation124_spill] sm:$0xff] %v17216_v58  ;;  %v17220_v51 = vpop.f32.mrb[37].mxu0  ;;  %6065 = vadd.xlane.f32.xlu0 %v6064_v46 }
 0xf4c   :  { %19953 = vst [vmem:[#allocation108_spill] sm:$0xff] %v17220_v51 }
 0xf4e   :  { %v17224_v37 = vpop.f32.mrb[82].mxu1 }
 0xf4f   :  { %19954 = vst [vmem:[#allocation127_spill] sm:$0xff] %v17224_v37  ;;  %v17226_v0 = vpop.f32.mrb[83].mxu1  ;;  %v19972_v37 = vld [vmem:[#allocation95_spill] sm:$0xff] }
 0xf50   :  { %19955 = vst [vmem:[#allocation122_spill] sm:$0xff] %v17226_v0  ;;  %v19968_v0 = vld [vmem:[#allocation86_spill] sm:$0xff] }
 0xf51   :  { %6062 = vadd.xlane.f32.xlu1 %v6061_v29 }
 0xf58   :  { %v17232_v7 = vpop.f32.mrb[84].mxu1 }
 0xf59   :  { %19957 = vst [vmem:[#allocation148_spill] sm:$0xff] %v17232_v7  ;;  %v17234_v59 = vpop.f32.mrb[85].mxu1 }
 0xf5a   :  { %19958 = vst [vmem:[#allocation125_spill] sm:$0xff] %v17234_v59 }
 0xf5c   :  { %v17238_v6 = vpop.f32.mrb[86].mxu1 }
 0xf5d   :  { %19959 = vst [vmem:[#allocation79_spill] sm:$0xff] %v17238_v6  ;;  %v17240_v4 = vpop.f32.mrb[87].mxu1  ;;  %v17242_v39 = vpop.f32.mrb[38].mxu0 }
 0xf5e   :  { %19960 = vst [vmem:[#allocation145_spill] sm:$0xff] %v17240_v4  ;;  %19961 = vst [vmem:[#allocation114_spill] sm:$0xff] %v17242_v39  ;;  %v17246_v15 = vpop.f32.mrb[39].mxu0 }
 0xf5f   :  { %19962 = vst [vmem:[#allocation83_spill] sm:$0xff] %v17246_v15 }
 0xf61   :  { %v17250_v40 = vpop.f32.mrb[40].mxu0 }
 0xf62   :  { %19963 = vst [vmem:[#allocation135_spill] sm:$0xff] %v17250_v40  ;;  %v6313_v49 = vpop.xlane.xlu0 %6312  ;;  %v17252_v41 = vpop.f32.mrb[41].mxu0 }
 0xf63   :  { %19964 = vst [vmem:[#allocation112_spill] sm:$0xff] %v17252_v41  ;;  %v6361_v59 = vmax.f32 %v6313_v49, 1e-24 }
 0xf65   :  { %13068 = vrsqrt.f32 %v6361_v59  ;;  %v19967_v59 = vld [vmem:[#allocation88_spill] sm:$0xff] }
 0xf66   :  { %v12152_v32 = vpop.permute.xlu0 %12151 }
 0xf67   :  { %v12154_v7 = vunpack.i.h.bf16 %v12152_v32  ;;  %v12153_v51 = vunpack.i.l.bf16 %v12152_v32 }
 0xf69   :  { %v17256_v58 = vpop.f32.mrb[42].mxu0  ;;  %v11570_v19 = vpack.c.bf16 %v12154_v7, %v12153_v51 }
 0xf6a   :  { %19965 = vst [vmem:[#allocation152_spill] sm:$0xff] %v17256_v58  ;;  %v12157_v4 = vpop.permute.xlu0 %12156  ;;  %v17258_v6 = vpop.f32.mrb[43].mxu0 }
 0xf6b   :  { %19966 = vst [vmem:[#allocation134_spill] sm:$0xff] %v17258_v6  ;;  %v12159_v29 = vunpack.i.h.bf16 %v12157_v4  ;;  %v12158_v15 = vunpack.i.l.bf16 %v12157_v4  ;;  %11571 = vmatprep.subr.bf16.mxu1 %v11570_v19 }
 0xf6c   :  { %v6310_v18 = vpop.xlane.xlu1 %6309  ;;  %11573 = vmatpush3.bf16.msra.mxu1 %v11570_v19 }
 0xf6d   :  { %v6360_v46 = vmax.f32 %v6310_v18, 1e-24  ;;  %v11574_v41 = vpack.c.bf16 %v12159_v29, %v12158_v15 }
 0xf6f   :  { %13070 = vrsqrt.f32 %v6360_v46  ;;  %11575 = vmatprep.subr.bf16.mxu1 %v11574_v41  ;;  %v13069_v51 = vpop.eup %13068 }
 0xf70   :  { %v6322_v32 = vpop.xlane.xlu1 %6321  ;;  %11577 = vmatpush3.bf16.msra.mxu1 %v11574_v41  ;;  %v6425_v4 = vmul.f32 %v13069_v51, %v19967_v59 }
 0xf71   :  { %v6364_v49 = vmax.f32 %v6322_v32, 1e-24 }
 0xf72   :  { %v17268_v15 = vmul.f32 %v17056_v52, %v6425_v4 }
 0xf73   :  { %13072 = vrsqrt.f32 %v6364_v49  ;;  %v19971_v49 = vld [vmem:[#allocation94_spill] sm:$0xff] }
 0xf74   :  { %v6325_v7 = vpop.xlane.xlu1 %6324  ;;  %19970 = vst [vmem:[#allocation151_spill] sm:$0xff] %v17268_v15 }
 0xf75   :  { %v6365_v40 = vmax.f32 %v6325_v7, 1e-24 }
 0xf77   :  { %13074 = vrsqrt.f32 %v6365_v40 }
 0xf79   :  { %v13071_v30 = vpop.eup %13070 }
 0xf7a   :  { %v6424_v39 = vmul.f32 %v13071_v30, %v19968_v0 }
 0xf7c   :  { %v17265_v6 = vmul.f32 %v17056_v52, %v6424_v39 }
 0xf7d   :  { %v13073_v18 = vpop.eup %13072  ;;  %v10788_v19 = vpop.f32.mrb[88].mxu1 }
 0xf7e   :  { %19969 = vst [vmem:[#allocation157_spill] sm:$0xff] %v17265_v6  ;;  %v5372_v41 = vmul.f32 8.0, %v10788_v19  ;;  %v4917_v46 = vpop.f32.mrb[89].mxu1  ;;  %v6428_v7 = vmul.f32 %v13073_v18, %v19971_v49 }
 0xf7f   :  { %v5371_v32 = vmul.f32 8.0, %v4917_v46 }
 0xf80   :  { %v5389_v40 = vmul.f32 1.442695, %v5372_v41  ;;  %v17279_v46 = vmul.f32 %v17056_v52, %v6428_v7 }
 0xf81   :  { %v13075_v51 = vpop.eup %13074  ;;  %v5387_v59 = vmul.f32 1.442695, %v5371_v32  ;;  %v10791_v30 = vpop.f32.mrb[90].mxu1 }
 0xf82   :  { %v17273_v0 = vpop.f32.mrb[44].mxu0  ;;  %13076 = vpow2.f32 %v5389_v40  ;;  %v5374_v39 = vmul.f32 8.0, %v10791_v30  ;;  %v4927_v4 = vpop.f32.mrb[91].mxu1  ;;  %v6429_v19 = vmul.f32 %v13075_v51, %v19972_v37  ;;  %19973 = vst [vmem:[#allocation180_spill] sm:$0xff] %v17279_v46 }
 0xf83   :  { %v17275_v58 = vpop.f32.mrb[45].mxu0  ;;  %13078 = vpow2.f32 %v5387_v59  ;;  %v5373_v56 = vmul.f32 8.0, %v4927_v4 }
 0xf84   :  { %v5393_v27 = vmul.f32 1.442695, %v5374_v39  ;;  %v17282_v18 = vmul.f32 %v17056_v52, %v6429_v19 }
 0xf85   :  { %v5391_v41 = vmul.f32 1.442695, %v5373_v56  ;;  %v17284_v32 = vpop.f32.mrb[46].mxu0 }
 0xf86   :  { %19974 = vst [vmem:[#allocation153_spill] sm:$0xff] %v17282_v18  ;;  %13080 = vpow2.f32 %v5393_v27  ;;  %v5072_v40 = vpop.f32.mrb[47].mxu0 }
 0xf87   :  { %13082 = vpow2.f32 %v5391_v41 }
 0xf8c   :  { %v17288_v30 = vpop.eup %13076 }
 0xf8d   :  { %v17290_v37 = vpop.eup %13078  ;;  %v5422_v7 = vsel %vm109_vm0, %v17288_v30, 0.0 }
 0xf8e   :  { %5423 = vadd.xlane.f32.xlu0 %v5422_v7  ;;  %v5419_v51 = vsel %vm109_vm0, %v17290_v37, 0.0 }
 0xf8f   :  { %5420 = vadd.xlane.f32.xlu1 %v5419_v51 }
 0xf90   :  { %v17296_v56 = vpop.eup %13080 }
 0xf91   :  { %v5428_v27 = vsel %vm109_vm0, %v17296_v56, 0.0  ;;  %v17300_v59 = vpop.eup %13082 }
 0xf92   :  { %v5425_v39 = vsel %vm109_vm0, %v17300_v59, 0.0 }
 0xf93   :  { %5429 = vadd.xlane.f32.xlu1 %v5428_v27  ;;  %5426 = vadd.xlane.f32.xlu0 %v5425_v39  ;;  %v19976_v27 = vld [vmem:[#allocation78_spill] sm:$0xff]  ;;  %v17314_v39 = vpop.permute.xlu1 %6127 }
 0xf9b   :  { %v6328_v4 = vpop.xlane.xlu0 %6327 }
 0xf9c   :  { %v6366_v19 = vmax.f32 %v6328_v4, 1e-24 }
 0xf9d   :  { %v10832_v41 = vpop.f32.mrb[92].mxu1 }
 0xf9e   :  { %v5207_v7 = vpop.f32.mrb[93].mxu1  ;;  %13084 = vrsqrt.f32 %v6366_v19 }
 0xf9f   :  { %v6331_v49 = vpop.xlane.xlu0 %6330 }
 0xfa0   :  { %v6367_v29 = vmax.f32 %v6331_v49, 1e-24 }
 0xfa1   :  { %v17304_v51 = vpop.f32.mrb[94].mxu1 }
 0xfa2   :  { %v17306_v22 = vpop.f32.mrb[48].mxu0  ;;  %v17308_v47 = vpop.f32.mrb[95].mxu1  ;;  %13086 = vrsqrt.f32 %v6367_v29 }
 0xfa3   :  { %v5352_v14 = vpop.f32.mrb[49].mxu0  ;;  %v17310_v42 = vpop.xlane.xlu0 %6056 }
 0xfa4   :  { %19975 = vst [vmem:[#allocation129_spill] sm:$0xff] %v17310_v42  ;;  %12176 = vrot.lane.b32.xlu1 %v19976_v27, %s13510_s1  ;;  %v19978_v27 = vld [vmem:[#allocation97_spill] sm:$0xff] }
 0xfa6   :  { %v17316_v4 = vpop.f32.mrb[50].mxu0 }
 0xfa7   :  { %v17318_v46 = vpop.f32.mrb[51].mxu0  ;;  %v12162_v49 = vpop.permute.xlu0 %12161 }
 0xfa8   :  { %v12164_v19 = vunpack.i.h.bf16 %v12162_v49  ;;  %v12163_v18 = vunpack.i.l.bf16 %v12162_v49  ;;  %v13085_v23 = vpop.eup %13084 }
 0xfa9   :  { %v17320_v3 = vpop.xlane.xlu1 %6059  ;;  %12171 = vrot.lane.b32.xlu0 %v19977_v53, %s13510_s1  ;;  %v6430_v6 = vmul.f32 %v13085_v23, %v19978_v27  ;;  %v5380_v27 = vmul.f32 8.0, %v10832_v41 }
 0xfaa   :  { %v11578_v44 = vpack.c.bf16 %v12164_v19, %v12163_v18  ;;  %v5376_v18 = vmul.f32 8.0, %v17273_v0  ;;  %v5377_v19 = vmul.f32 8.0, %v5072_v40 }
 0xfab   :  { %v17329_v49 = vmul.f32 %v17056_v52, %v6430_v6 }
 0xfac   :  { %11579 = vmatprep.subr.bf16.mxu0 %v11578_v44  ;;  %v13087_v15 = vpop.eup %13086  ;;  %v5397_v23 = vmul.f32 1.442695, %v5376_v18 }
 0xfad   :  { %11581 = vmatpush3.bf16.msra.mxu0 %v11578_v44  ;;  %v12167_v29 = vpop.permute.xlu1 %12166  ;;  %v6431_v25 = vmul.f32 %v13087_v15, %v19979_v9  ;;  %19980 = vst [vmem:[#allocation171_spill] sm:$0xff] %v17329_v49  ;;  %v5405_v9 = vmul.f32 1.442695, %v5380_v27  ;;  %v5379_v15 = vmul.f32 8.0, %v5207_v7 }
 0xfae   :  { %v12169_v42 = vunpack.i.h.bf16 %v12167_v29  ;;  %v12168_v2 = vunpack.i.l.bf16 %v12167_v29  ;;  %13088 = vpow2.f32 %v5397_v23 }
 0xfaf   :  { %v17332_v43 = vmul.f32 %v17056_v52, %v6431_v25  ;;  %13090 = vpow2.f32 %v5405_v9  ;;  %v5403_v25 = vmul.f32 1.442695, %v5379_v15  ;;  %v5383_v15 = vmul.f32 8.0, %v5352_v14 }
 0xfb0   :  { %v17326_v21 = vpack.c.bf16 %v12169_v42, %v12168_v2  ;;  %v5375_v42 = vmul.f32 8.0, %v17275_v58  ;;  %v5399_v2 = vmul.f32 1.442695, %v5377_v19  ;;  %v6335_v58 = vsel %vm1072_vm6, %v17028_v16, 0.0 }
 0xfb1   :  { %19981 = vst [vmem:[#allocation140_spill] sm:$0xff] %v17332_v43 }
 0xfb2   :  { %11595 = vmatprep.subr.bf16.mxu1 %v17326_v21  ;;  %v5395_v6 = vmul.f32 1.442695, %v5375_v42  ;;  %13092 = vpow2.f32 %v5399_v2  ;;  %v19982_v42 = vld [vmem:[#allocation39_spill] sm:$0xff]  ;;  %v19983_v2 = vld [vmem:[#allocation85_spill] sm:$0xff] }
 0xfb3   :  { %v6332_v9 = vsel %vm1072_vm6, %v19982_v42, 0.0 }
 0xfb4   :  { %13094 = vpow2.f32 %v5395_v6  ;;  %v19984_v6 = vld [vmem:[#allocation67_spill] sm:$0xff] }
 0xfb5   :  { %13096 = vpow2.f32 %v5403_v25  ;;  %v5411_v25 = vmul.f32 1.442695, %v5383_v15 }
 0xfb7   :  { %13098 = vpow2.f32 %v5411_v25  ;;  %v19987_v25 = vld [vmem:[#allocation72_spill] sm:$0xff] }
 0xfb8   :  { %v17339_v0 = vpop.eup %13088 }
 0xfb9   :  { %v5434_v29 = vsel %vm109_vm0, %v17339_v0, 0.0  ;;  %v17343_v18 = vpop.eup %13090 }
 0xfba   :  { %v5446_v41 = vsel %vm109_vm0, %v17343_v18, 0.0 }
 0xfbc   :  { %v17347_v40 = vpop.eup %13092 }
 0xfbd   :  { %v5437_v23 = vsel %vm109_vm0, %v17347_v40, 0.0 }
 0xfbe   :  { %v17351_v7 = vpop.eup %13094 }
 0xfbf   :  { %v5431_v27 = vsel %vm109_vm0, %v17351_v7, 0.0  ;;  %v17357_v19 = vpop.eup %13096 }
 0xfc0   :  { %v5443_v16 = vsel %vm109_vm0, %v17357_v19, 0.0 }
 0xfc8   :  { %5435 = vadd.xlane.f32.xlu1 %v5434_v29  ;;  %6336 = vadd.xlane.f32.xlu0 %v6335_v58  ;;  %v5378_v29 = vmul.f32 8.0, %v17284_v32  ;;  %v19986_v32 = vld [vmem:[#allocation90_spill] sm:$0xff] }
 0xfca   :  { %v5401_v58 = vmul.f32 1.442695, %v5378_v29 }
 0xfcc   :  { %5447 = vadd.xlane.f32.xlu1 %v5446_v41  ;;  %5438 = vadd.xlane.f32.xlu0 %v5437_v23  ;;  %v17368_v41 = vpop.eup %13098  ;;  %13100 = vpow2.f32 %v5401_v58 }
 0xfcd   :  { %v5455_v23 = vsel %vm109_vm0, %v17368_v41, 0.0 }
 0xfd0   :  { %5432 = vadd.xlane.f32.xlu1 %v5431_v27 }
 0xfd4   :  { %5444 = vadd.xlane.f32.xlu1 %v5443_v16 }
 0xfd6   :  { %v17372_v27 = vpop.eup %13100 }
 0xfd7   :  { %v5440_v16 = vsel %vm109_vm0, %v17372_v27, 0.0 }
 0xfd8   :  { %6333 = vadd.xlane.f32.xlu1 %v6332_v9  ;;  %v17376_v42 = vpop.xlane.xlu0 %6065 }
 0xfde   :  { %v17378_v14 = vpop.xlane.xlu1 %6062 }
 0xfdf   :  { %19985 = vst [vmem:[#allocation131_spill] sm:$0xff] %v17378_v14  ;;  %v5384_v14 = vmul.f32 8.0, %v17306_v22 }
 0xfe2   :  { %12186 = vrot.lane.b32.xlu0 %v19983_v2, %s13510_s1 }
 0xfe9   :  { %12181 = vrot.lane.b32.xlu1 %v19984_v6, %s13510_s1 }
0x1001   :  { %5456 = vadd.xlane.f32.xlu0 %v5455_v23 }
0x100d   :  { %5441 = vadd.xlane.f32.xlu1 %v5440_v16 }
0x1017   :  { %12196 = vrot.lane.b32.xlu0 %v19986_v32, %s13510_s1 }
0x101b   :  { %v5424_v9 = vpop.xlane.xlu0 %5423 }
0x101c   :  { %13102 = vrcp.f32 %v5424_v9  ;;  %v5421_v15 = vpop.xlane.xlu1 %5420 }
0x101d   :  { %13104 = vrcp.f32 %v5421_v15 }
0x101e   :  { %12191 = vrot.lane.b32.xlu1 %v19987_v25, %s13510_s1 }
0x1020   :  { %v5430_v29 = vpop.xlane.xlu1 %5429  ;;  %v5427_v58 = vpop.xlane.xlu0 %5426 }
0x1021   :  { %13106 = vrcp.f32 %v5430_v29 }
0x1022   :  { %13108 = vrcp.f32 %v5427_v58 }
0x1024   :  { %v12177_v23 = vpop.permute.xlu1 %12176  ;;  %v12172_v16 = vpop.permute.xlu0 %12171 }
0x1025   :  { %v12174_v2 = vunpack.i.h.bf16 %v12172_v16  ;;  %v12173_v6 = vunpack.i.l.bf16 %v12172_v16  ;;  %v12179_v49 = vunpack.i.h.bf16 %v12177_v23  ;;  %v12178_v43 = vunpack.i.l.bf16 %v12177_v23 }
0x1026   :  { %v13103_v44 = vpop.eup %13102 }
0x1027   :  { %v13105_v53 = vpop.eup %13104  ;;  %v11582_v32 = vpack.c.bf16 %v12174_v2, %v12173_v6  ;;  %v5484_v15 = vmul.f32 %v13103_v44, %v17288_v30  ;;  %v11598_v29 = vpack.c.bf16 %v12179_v49, %v12178_v43  ;;  %v5413_v30 = vmul.f32 1.442695, %v5384_v14 }
0x1028   :  { %v5483_v9 = vmul.f32 %v13105_v53, %v17290_v37  ;;  %v6067_v43 = vsel %vm1072_vm6, %v17033_v35, 0.0  ;;  %v6076_v35 = vsel %vm1072_vm6, %v17048_v60, 0.0  ;;  %v19989_v49 = vpack.i.bf16 %v17068_v13, %v17065_v45  ;;  %v19990_v60 = vld [vmem:[#allocation96_spill] sm:$0xff] }
0x1029   :  { %11583 = vmatprep.subr.bf16.mxu0 %v11582_v32  ;;  %13110 = vpow2.f32 %v5413_v30 }
0x102a   :  { %10874 = vmatprep.mubr.msk.f32.mxu1 %vm109_vm0, %v5483_v9  ;;  %11585 = vmatpush3.bf16.msra.mxu0 %v11582_v32 }
0x102b   :  { %v13107_v25 = vpop.eup %13106  ;;  %10875 = vmatmul.mubr.msk.f32.vlgmr.msra.gmra.mrb[96].mxu1 %vm109_vm0, %v5484_v15 }
0x102c   :  { %v13109_v58 = vpop.eup %13108  ;;  %11597 = vmatpush3.bf16.msra.mxu1 %v17326_v21  ;;  %v5486_v23 = vmul.f32 %v13107_v25, %v17296_v56  ;;  %v6070_v21 = vsel %vm1072_vm6, %v17042_v62, 0.0  ;;  %v6073_v56 = vsel %vm1072_vm6, %v17120_v20, 0.0  ;;  %v5382_v62 = vmul.f32 8.0, %v17304_v51 }
0x102d   :  { %11599 = vmatprep.subr.bf16.mxu1 %v11598_v29  ;;  %v5485_v53 = vmul.f32 %v13109_v58, %v17300_v59  ;;  %v19988_v59 = vld [vmem:[#allocation93_spill] sm:$0xff] }
0x102e   :  { %v5409_v20 = vmul.f32 1.442695, %v5382_v62 }
0x102f   :  { %10877 = vmatprep.mubr.msk.f32.mxu1 %vm109_vm0, %v5485_v53 }
0x1030   :  { %10878 = vmatmul.mubr.msk.f32.gmra.mrb[98].mxu1 %vm109_vm0, %v5486_v23 }
0x1031   :  { %11601 = vmatpush3.bf16.msra.mxu1 %v11598_v29 }
0x1033   :  { %v17396_v37 = vpop.eup %13110 }
0x1034   :  { %v5458_v22 = vsel %vm109_vm0, %v17396_v37, 0.0 }
0x1036   :  { %6068 = vadd.xlane.f32.xlu0 %v6067_v43 }
0x1042   :  { %5459 = vadd.xlane.f32.xlu1 %v5458_v22 }
0x1046   :  { %6071 = vadd.xlane.f32.xlu1 %v6070_v21 }
0x104a   :  { %6074 = vadd.xlane.f32.xlu1 %v6073_v56 }
0x104c   :  { %12201 = vrot.lane.b32.xlu0 %v19988_v59, %s13510_s1 }
0x104e   :  { %6077 = vadd.xlane.f32.xlu1 %v6076_v35  ;;  %v5381_v35 = vmul.f32 8.0, %v17308_v47 }
0x1050   :  { %12211 = vrot.lane.b32.xlu0 %v19989_v49, %s13519_s8 }
0x1055   :  { %v5436_v44 = vpop.xlane.xlu1 %5435  ;;  %v6337_v2 = vpop.xlane.xlu0 %6336 }
0x1056   :  { %v6369_v15 = vmax.f32 %v6337_v2, 1e-24 }
0x1059   :  { %v5448_v6 = vpop.xlane.xlu1 %5447  ;;  %v5439_v14 = vpop.xlane.xlu0 %5438 }
0x105d   :  { %v5433_v32 = vpop.xlane.xlu1 %5432  ;;  %v12187_v25 = vpop.permute.xlu0 %12186 }
0x105e   :  { %13112 = vrcp.f32 %v5433_v32  ;;  %v12189_v16 = vunpack.i.h.bf16 %v12187_v25  ;;  %v12188_v9 = vunpack.i.l.bf16 %v12187_v25 }
0x105f   :  { %12206 = vrot.lane.b32.xlu1 %v19990_v60, %s13510_s1  ;;  %13114 = vpow2.f32 %v5409_v20  ;;  %v19991_v20 = vld [vmem:[#allocation104_spill] sm:$0xff] }
0x1060   :  { %v11602_v45 = vpack.c.bf16 %v12189_v16, %v12188_v9  ;;  %v19992_v16 = vld [vmem:[#allocation102_spill] sm:$0xff] }
0x1061   :  { %v5445_v29 = vpop.xlane.xlu1 %5444 }
0x1062   :  { %13116 = vrcp.f32 %v5445_v29  ;;  %11603 = vmatprep.subr.bf16.mxu1 %v11602_v45 }
0x1063   :  { %13118 = vrsqrt.f32 %v6369_v15  ;;  %11605 = vmatpush3.bf16.msra.mxu1 %v11602_v45 }
0x1065   :  { %v6334_v13 = vpop.xlane.xlu1 %6333 }
0x1066   :  { %v6368_v51 = vmax.f32 %v6334_v13, 1e-24  ;;  %v19993_v13 = vld [vmem:[#allocation101_spill] sm:$0xff] }
0x1068   :  { %v13113_v58 = vpop.eup %13112  ;;  %13120 = vrsqrt.f32 %v6368_v51  ;;  %v19994_v51 = vpack.i.bf16 %v17074_v17, %v17071_v28  ;;  %v19996_v28 = vpack.i.bf16 %v17080_v8, %v17077_v54 }
0x1069   :  { %v12182_v23 = vpop.permute.xlu1 %12181  ;;  %v5487_v53 = vmul.f32 %v13113_v58, %v17351_v7  ;;  %v17416_v22 = vpop.eup %13114  ;;  %v5407_v7 = vmul.f32 1.442695, %v5381_v35  ;;  %v5385_v58 = vmul.f32 8.0, %v17318_v46 }
0x106a   :  { %v12184_v30 = vunpack.i.h.bf16 %v12182_v23  ;;  %v12183_v43 = vunpack.i.l.bf16 %v12182_v23  ;;  %v5452_v62 = vsel %vm109_vm0, %v17416_v22, 0.0 }
0x106b   :  { %10896 = vmatprep.mubr.msk.f32.mxu0 %vm109_vm0, %v5487_v53  ;;  %13122 = vpow2.f32 %v5407_v7  ;;  %v5415_v35 = vmul.f32 1.442695, %v5385_v58 }
0x106c   :  { %v13117_v21 = vpop.eup %13116  ;;  %v11586_v56 = vpack.c.bf16 %v12184_v30, %v12183_v43  ;;  %13124 = vrcp.f32 %v5448_v6  ;;  %v19995_v43 = vld [vmem:[#allocation106_spill] sm:$0xff]  ;;  %v19997_v6 = vpack.i.bf16 %v17086_v48, %v17083_v31 }
0x106d   :  { %v5491_v49 = vmul.f32 %v13117_v21, %v17357_v19  ;;  %v13119_v2 = vpop.eup %13118  ;;  %13126 = vrcp.f32 %v5436_v44 }
0x106e   :  { %11587 = vmatprep.subr.bf16.mxu0 %v11586_v56  ;;  %v6433_v32 = vmul.f32 %v13119_v2, %v19991_v20  ;;  %13128 = vrcp.f32 %v5439_v14 }
0x106f   :  { %11589 = vmatpush3.bf16.msra.mxu0 %v11586_v56  ;;  %10918 = vmatprep.mubr.msk.f32.mxu1 %vm109_vm0, %v5491_v49  ;;  %13130 = vpow2.f32 %v5415_v35 }
0x1070   :  { %5453 = vadd.xlane.f32.xlu0 %v5452_v62  ;;  %v17430_v19 = vmul.f32 %v17056_v52, %v6433_v32 }
0x1072   :  { %v13121_v25 = vpop.eup %13120 }
0x1073   :  { %v6432_v9 = vmul.f32 %v13121_v25, %v19992_v16  ;;  %v5386_v25 = vmul.f32 8.0, %v17316_v4  ;;  %v19998_v4 = vpack.i.bf16 %v17104_v61, %v17101_v55  ;;  %v6085_v61 = vmax.f32 %v17160_v50, 1e-24 }
0x1075   :  { %v17427_v47 = vmul.f32 %v17056_v52, %v6432_v9  ;;  %v17434_v29 = vpop.eup %13122  ;;  %v6081_v9 = vmax.f32 %v17146_v36, 1e-24  ;;  %v20000_v36 = vld [vmem:[#allocation46_spill] sm:$0xff] }
0x1076   :  { %v5449_v45 = vsel %vm109_vm0, %v17434_v29, 0.0  ;;  %v13125_v56 = vpop.eup %13124 }
0x1077   :  { %v12295_v15 = vpack.i.bf16 %v17430_v19, %v17427_v47  ;;  %v5492_v17 = vmul.f32 %v13125_v56, %v17343_v18  ;;  %v13127_v8 = vpop.eup %13126 }
0x1078   :  { %v13129_v14 = vpop.eup %13128  ;;  %v5488_v62 = vmul.f32 %v13127_v8, %v17339_v0  ;;  %v5417_v0 = vmul.f32 1.442695, %v5386_v25  ;;  %v20005_v8 = vld [vmem:[#allocation50_spill] sm:$0xff] }
0x1079   :  { %v17457_v18 = vpop.eup %13130  ;;  %v5489_v20 = vmul.f32 %v13129_v14, %v17347_v40  ;;  %v6079_v40 = vmax.f32 %v17144_v34, 1e-24  ;;  %v19999_v34 = vpack.i.bf16 %v17156_v38, %v17153_v63 }
0x107a   :  { %v5461_v31 = vsel %vm109_vm0, %v17457_v18, 0.0 }
0x1083   :  { %5450 = vadd.xlane.f32.xlu1 %v5449_v45 }
0x1086   :  { %12216 = vrot.lane.b32.xlu0 %v19993_v13, %s13510_s1 }
0x108a   :  { %12231 = vrot.lane.b32.xlu0 %v19994_v51, %s13519_s8  ;;  %v6083_v51 = vmax.f32 %v17170_v11, 1e-24 }
0x108e   :  { %v5457_v52 = vpop.xlane.xlu0 %5456 }
0x1092   :  { %v12197_v23 = vpop.permute.xlu0 %12196 }
0x1093   :  { %v12199_v53 = vunpack.i.h.bf16 %v12197_v23  ;;  %v12198_v30 = vunpack.i.l.bf16 %v12197_v23  ;;  %v6080_v23 = vmax.f32 %v17122_v5, 1e-24 }
0x1094   :  { %12221 = vrot.lane.b32.xlu1 %v19995_v43, %s13510_s1 }
0x1095   :  { %v11606_v21 = vpack.c.bf16 %v12199_v53, %v12198_v30  ;;  %v20001_v30 = vld [vmem:[#allocation53_spill] sm:$0xff] }
0x1097   :  { %11607 = vmatprep.subr.bf16.mxu1 %v11606_v21 }
0x1098   :  { %12226 = vrot.lane.b32.xlu1 %v19996_v28, %s13519_s8  ;;  %11609 = vmatpush3.bf16.msra.mxu1 %v11606_v21  ;;  %v6082_v21 = vmax.f32 %v17126_v33, 1e-24  ;;  %v20002_v33 = vpack.i.bf16 %v17176_v1, %v17173_v57  ;;  %v6084_v57 = vmax.f32 %v17148_v10, 1e-24  ;;  %v20004_v1 = vld [vmem:[#allocation30_spill] sm:$0xff] }
0x1099   :  { %v20006_v14 = vpack.i.bf16 %v20004_v1, %v20005_v8 }
0x109a   :  { %v5442_v46 = vpop.xlane.xlu1 %5441 }
0x109b   :  { %13132 = vrcp.f32 %v5442_v46  ;;  %10919 = vmatmul.mubr.msk.f32.vlgmr.msra.gmra.mrb[100].mxu1 %vm109_vm0, %v5492_v17 }
0x109c   :  { %12236 = vrot.lane.b32.xlu1 %v19997_v6, %s13519_s8  ;;  %13134 = vrcp.f32 %v5457_v52 }
0x109d   :  { %13136 = vpow2.f32 %v5417_v0  ;;  %v20012_v0 = vld [vmem:[#allocation26_spill] sm:$0xff] }
0x109e   :  { %v12192_v44 = vpop.permute.xlu1 %12191  ;;  %13138 = vrsqrt.f32 %v6079_v40  ;;  %v6086_v40 = vmax.f32 %v20012_v0, 1e-24 }
0x109f   :  { %v12194_v49 = vunpack.i.h.bf16 %v12192_v44  ;;  %v12193_v2 = vunpack.i.l.bf16 %v12192_v44  ;;  %13140 = vrsqrt.f32 %v6081_v9 }
0x10a0   :  { %13142 = vrsqrt.f32 %v6083_v51 }
0x10a1   :  { %v11590_v54 = vpack.c.bf16 %v12194_v49, %v12193_v2  ;;  %13144 = vrsqrt.f32 %v6080_v23  ;;  %v6088_v49 = vmax.f32 %v17320_v3, 1e-24  ;;  %v20003_v2 = vpack.i.bf16 %v17114_v12, %v17111_v24  ;;  %v20008_v12 = vld [vmem:[#allocation198_spill] sm:$0xff] }
0x10a2   :  { %13146 = vrsqrt.f32 %v6085_v61  ;;  %v6090_v24 = vmax.f32 %v17376_v42, 1e-24  ;;  %v20015_v61 = vld [vmem:[#allocation129_spill] sm:$0xff] }
0x10a3   :  { %11591 = vmatprep.subr.bf16.mxu0 %v11590_v54  ;;  %13148 = vrsqrt.f32 %v6082_v21 }
0x10a4   :  { %11593 = vmatpush3.bf16.msra.mxu0 %v11590_v54  ;;  %13150 = vrsqrt.f32 %v6088_v49 }
0x10a5   :  { %v13133_v7 = vpop.eup %13132  ;;  %13152 = vrsqrt.f32 %v6084_v57  ;;  %v20025_v57 = vld [vmem:[#allocation171_spill] sm:$0xff] }
0x10a6   :  { %v13135_v32 = vpop.eup %13134  ;;  %v5490_v48 = vmul.f32 %v13133_v7, %v17372_v27  ;;  %13154 = vrsqrt.f32 %v6090_v24  ;;  %v20030_v24 = vld [vmem:[#allocation66_spill] sm:$0xff] }
0x10a7   :  { %10897 = vmatmul.mubr.msk.f32.vlgmr.msra.gmra.mrb[52].mxu0 %vm109_vm0, %v5488_v62  ;;  %v5495_v16 = vmul.f32 %v13135_v32, %v17368_v41  ;;  %v17472_v45 = vpop.eup %13136  ;;  %v20007_v62 = vld [vmem:[#allocation64_spill] sm:$0xff]  ;;  %v20009_v32 = vld [vmem:[#allocation143_spill] sm:$0xff]  ;;  %13156 = vrsqrt.f32 %v6086_v40  ;;  %v20033_v40 = vld [vmem:[#allocation98_spill] sm:$0xff] }
0x10a8   :  { %10899 = vmatprep.mubr.msk.f32.mxu0 %vm109_vm0, %v5489_v20  ;;  %v5464_v41 = vsel %vm109_vm0, %v17472_v45, 0.0  ;;  %v13139_v27 = vpop.eup %13138 }
0x10a9   :  { %5462 = vadd.xlane.f32.xlu0 %v5461_v31  ;;  %v6111_v52 = vmul.f32 %v13139_v27, %v20000_v36  ;;  %v13141_v58 = vpop.eup %13140  ;;  %v20010_v31 = vpack.i.bf16 %v20008_v12, %v20009_v32  ;;  %v20031_v32 = vld [vmem:[#allocation89_spill] sm:$0xff] }
0x10aa   :  { %v6113_v11 = vmul.f32 %v13141_v58, %v20001_v30  ;;  %v13143_v44 = vpop.eup %13142  ;;  %v6087_v30 = vmax.f32 %v20015_v61, 1e-24 }
0x10ab   :  { %10900 = vmatmul.mubr.msk.f32.gmra.mrb[54].mxu0 %vm109_vm0, %v5490_v48  ;;  %v6130_v55 = vmul.f32 %v17314_v39, %v6111_v52  ;;  %v13145_v54 = vpop.eup %13144  ;;  %v6115_v7 = vmul.f32 %v13143_v44, %v20007_v62  ;;  %v20011_v48 = vld [vmem:[#allocation49_spill] sm:$0xff]  ;;  %v20023_v44 = vld [vmem:[#allocation131_spill] sm:$0xff] }
0x10ac   :  { %10940 = vmatprep.mubr.msk.f32.mxu0 %vm109_vm0, %v5495_v16  ;;  %v6132_v35 = vmul.f32 %v17314_v39, %v6113_v11  ;;  %v13147_v20 = vpop.eup %13146  ;;  %v6112_v25 = vmul.f32 %v13145_v54, %v20011_v48  ;;  %v20017_v11 = vld [vmem:[#allocation157_spill] sm:$0xff]  ;;  %v6089_v49 = vmax.f32 %v20023_v44, 1e-24  ;;  %v20024_v54 = vld [vmem:[#allocation140_spill] sm:$0xff]  ;;  %v20028_v62 = vld [vmem:[#allocation119_spill] sm:$0xff] }
0x10ad   :  { %v6134_v10 = vmul.f32 %v17314_v39, %v6115_v7  ;;  %v13149_v16 = vpop.eup %13148  ;;  %v20026_v1 = vpack.i.bf16 %v20024_v54, %v20025_v57  ;;  %v20043_v44 = vld [vmem:[#allocation59_spill] sm:$0xff]  ;;  %v20044_v54 = vld [vmem:[#allocation105_spill] sm:$0xff] }
0x10bf   :  { %12241 = vrot.lane.b32.xlu0 %v19998_v4, %s13519_s8  ;;  %v6131_v4 = vmul.f32 %v17314_v39, %v6112_v25 }
0x10c0   :  { %5465 = vadd.xlane.f32.xlu1 %v5464_v41  ;;  %v20013_v41 = vld [vmem:[#allocation69_spill] sm:$0xff] }
0x10c1   :  { %v6117_v42 = vmul.f32 %v13147_v20, %v20013_v41 }
0x10c3   :  { %12251 = vrot.lane.b32.xlu0 %v19999_v34, %s13519_s8  ;;  %v6069_v53 = vpop.xlane.xlu0 %6068  ;;  %v6136_v51 = vmul.f32 %v17314_v39, %v6117_v42  ;;  %v20014_v34 = vld [vmem:[#allocation55_spill] sm:$0xff] }
0x10c4   :  { %v6091_v27 = vmax.f32 %v6069_v53, 1e-24  ;;  %v6114_v36 = vmul.f32 %v13149_v16, %v20014_v34  ;;  %v20016_v53 = vld [vmem:[#allocation151_spill] sm:$0xff] }
0x10c5   :  { %v20018_v21 = vpack.i.bf16 %v20016_v53, %v20017_v11  ;;  %v20032_v16 = vld [vmem:[#allocation71_spill] sm:$0xff] }
0x10c6   :  { %v6133_v58 = vmul.f32 %v17314_v39, %v6114_v36  ;;  %13158 = vrsqrt.f32 %v6091_v27  ;;  %v20034_v34 = vld [vmem:[#allocation103_spill] sm:$0xff] }
0x10c7   :  { %6473 = vrot.lane.b32.xlu0 %v6130_v55, %s13519_s8  ;;  %v12202_v63 = vpop.permute.xlu0 %12201  ;;  %v13151_v55 = vpop.eup %13150 }
0x10c8   :  { %v12204_v38 = vunpack.i.h.bf16 %v12202_v63  ;;  %v12203_v56 = vunpack.i.l.bf16 %v12202_v63 }
0x10ca   :  { %v11610_v5 = vpack.c.bf16 %v12204_v38, %v12203_v56 }
0x10cb   :  { %6477 = vrot.lane.b32.xlu0 %v6132_v35, %s13519_s8  ;;  %v12212_v28 = vpop.permute.xlu0 %12211  ;;  %v13153_v35 = vpop.eup %13152 }
0x10cc   :  { %v12214_v50 = vunpack.i.h.bf16 %v12212_v28  ;;  %v12213_v17 = vunpack.i.l.bf16 %v12212_v28  ;;  %11611 = vmatprep.subr.bf16.mxu0 %v11610_v5  ;;  %v20020_v28 = vld [vmem:[#allocation31_spill] sm:$0xff]  ;;  %v6116_v12 = vmul.f32 %v13153_v35, %v20030_v24  ;;  %v20045_v24 = vld [vmem:[#allocation29_spill] sm:$0xff] }
0x10cd   :  { %11613 = vmatpush3.bf16.msra.mxu0 %v11610_v5  ;;  %v20019_v5 = vld [vmem:[#allocation23_spill] sm:$0xff] }
0x10ce   :  { %v11626_v46 = vpack.c.bf16 %v12214_v50, %v12213_v17  ;;  %v20021_v50 = vpack.i.bf16 %v20019_v5, %v20020_v28  ;;  %v20022_v17 = vld [vmem:[#allocation84_spill] sm:$0xff]  ;;  %v6135_v48 = vmul.f32 %v17314_v39, %v6116_v12  ;;  %v20041_v5 = vld [vmem:[#allocation51_spill] sm:$0xff] }
0x10cf   :  { %12261 = vrot.lane.b32.xlu0 %v20002_v33, %s13519_s8  ;;  %v17498_v6 = vpop.xlane.xlu1 %5459  ;;  %v13155_v33 = vpop.eup %13154  ;;  %v20042_v28 = vld [vmem:[#allocation100_spill] sm:$0xff] }
0x10d0   :  { %11628 = vmatprep.subr.msk.bf16.mxu1 %vm14214_vm7, %v11626_v46  ;;  %v13157_v8 = vpop.eup %13156  ;;  %v20046_v12 = vld [vmem:[#allocation56_spill] sm:$0xff] }
0x10d1   :  { %12246 = vrot.lane.b32.xlu1 %v20003_v2, %s13519_s8  ;;  %11631 = vmatpush3.bf16.xpose.msk.msra.mxu1 %vm14214_vm7, %v11626_v46  ;;  %v6120_v46 = vmul.f32 %v13151_v55, %v20022_v17  ;;  %v6118_v0 = vmul.f32 %v13157_v8, %v20032_v16 }
0x10d3   :  { %12271 = vrot.lane.b32.xlu0 %v20006_v14, %s13519_s8  ;;  %v17514_v3 = vpop.xlane.xlu1 %6071  ;;  %v20027_v14 = vld [vmem:[#allocation47_spill] sm:$0xff]  ;;  %v6139_v20 = vmul.f32 %v17314_v39, %v6120_v46  ;;  %v6137_v42 = vmul.f32 %v17314_v39, %v6118_v0 }
0x10d4   :  { %v20029_v7 = vpack.i.bf16 %v20027_v14, %v20028_v62  ;;  %v6092_v41 = vmax.f32 %v17514_v3, 1e-24  ;;  %v20036_v3 = vld [vmem:[#allocation153_spill] sm:$0xff] }
0x10d5   :  { %12256 = vrot.lane.b32.xlu1 %v20010_v31, %s13519_s8  ;;  %v6122_v31 = vmul.f32 %v13155_v33, %v20031_v32  ;;  %v20047_v32 = vld [vmem:[#allocation62_spill] sm:$0xff] }
0x10d7   :  { %6618 = vrot.lane.b32.xlu0 %v6134_v10, %s13519_s8  ;;  %v6075_v9 = vpop.xlane.xlu1 %6074  ;;  %v13159_v10 = vpop.eup %13158  ;;  %v6141_v25 = vmul.f32 %v17314_v39, %v6122_v31 }
0x10d8   :  { %v6093_v23 = vmax.f32 %v6075_v9, 1e-24  ;;  %v6123_v9 = vmul.f32 %v13159_v10, %v20033_v40 }
0x10d9   :  { %6475 = vrot.lane.b32.xlu1 %v6131_v4, %s13519_s8 }
0x10da   :  { %13160 = vrsqrt.f32 %v6093_v23  ;;  %v20035_v23 = vld [vmem:[#allocation81_spill] sm:$0xff] }
0x10db   :  { %6622 = vrot.lane.b32.xlu0 %v6136_v51, %s13519_s8  ;;  %v6078_v52 = vpop.xlane.xlu1 %6077  ;;  %13162 = vrsqrt.f32 %v6087_v30  ;;  %v6142_v51 = vmul.f32 %v17314_v39, %v6123_v9  ;;  %v20037_v30 = vld [vmem:[#allocation180_spill] sm:$0xff] }
0x10dc   :  { %13164 = vrsqrt.f32 %v6089_v49  ;;  %v20038_v53 = vpack.i.bf16 %v20036_v3, %v20037_v30 }
0x10dd   :  { %6479 = vrot.lane.b32.xlu1 %v6133_v58, %s13519_s8  ;;  %13166 = vrsqrt.f32 %v6092_v41  ;;  %v6094_v58 = vmax.f32 %v6078_v52, 1e-24  ;;  %v20040_v52 = vld [vmem:[#allocation25_spill] sm:$0xff] }
0x10df   :  { %12281 = vrot.lane.b32.xlu0 %v20018_v21, %s13519_s8  ;;  %v12207_v63 = vpop.permute.xlu1 %12206  ;;  %13168 = vrsqrt.f32 %v6094_v58 }
0x10e0   :  { %v12209_v38 = vunpack.i.h.bf16 %v12207_v63  ;;  %v12208_v56 = vunpack.i.l.bf16 %v12207_v63  ;;  %v20039_v63 = vld [vmem:[#allocation87_spill] sm:$0xff]  ;;  %13170 = vrcp.f32 %v17498_v6 }
0x10e1   :  { %12266 = vrot.lane.b32.xlu1 %v20021_v50, %s13519_s8 }
0x10e2   :  { %v11614_v2 = vpack.c.bf16 %v12209_v38, %v12208_v56 }
0x10e3   :  { %12291 = vrot.lane.b32.xlu0 %v20026_v1, %s13519_s8 }
0x10e4   :  { %11615 = vmatprep.subr.bf16.mxu0 %v11614_v2  ;;  %v13161_v4 = vpop.eup %13160 }
0x10e5   :  { %12276 = vrot.lane.b32.xlu1 %v20029_v7, %s13519_s8  ;;  %11617 = vmatpush3.bf16.msra.mxu0 %v11614_v2  ;;  %v13163_v27 = vpop.eup %13162  ;;  %v6125_v36 = vmul.f32 %v13161_v4, %v20034_v34 }
0x10e6   :  { %v6119_v55 = vmul.f32 %v13163_v27, %v20035_v23  ;;  %v13165_v61 = vpop.eup %13164 }
0x10e7   :  { %6765 = vrot.lane.b32.xlu0 %v6139_v20, %s13519_s8  ;;  %v6144_v11 = vmul.f32 %v17314_v39, %v6125_v36  ;;  %v6121_v38 = vmul.f32 %v13165_v61, %v20039_v63  ;;  %v13167_v35 = vpop.eup %13166 }
0x10e8   :  { %v6138_v21 = vmul.f32 %v17314_v39, %v6119_v55  ;;  %v6124_v50 = vmul.f32 %v13167_v35, %v20042_v28 }
0x10e9   :  { %6620 = vrot.lane.b32.xlu1 %v6135_v48, %s13519_s8  ;;  %v6140_v56 = vmul.f32 %v17314_v39, %v6121_v38  ;;  %v13169_v17 = vpop.eup %13168 }
0x10ea   :  { %v6143_v2 = vmul.f32 %v17314_v39, %v6124_v50  ;;  %v6126_v57 = vmul.f32 %v13169_v17, %v20044_v54  ;;  %v13171_v0 = vpop.eup %13170 }
0x10eb   :  { %6769 = vrot.lane.b32.xlu0 %v6141_v25, %s13519_s8 }
0x10ed   :  { %6624 = vrot.lane.b32.xlu1 %v6137_v42, %s13519_s8 }
0x10ef   :  { %6908 = vrot.lane.b32.xlu0 %v6142_v51, %s13519_s8  ;;  %v5496_v51 = vmul.f32 %v13171_v0, %v17396_v37 }
0x10f1   :  { %12286 = vrot.lane.b32.xlu1 %v20038_v53, %s13519_s8 }
0x10f3   :  { %6912 = vrot.lane.b32.xlu0 %v6144_v11, %s13519_s8 }
0x10f5   :  { %6763 = vrot.lane.b32.xlu1 %v6138_v21, %s13519_s8 }
0x10f7   :  { %12301 = vrot.lane.b32.xlu0 %v20040_v52, %s13509_s24 }
0x10f9   :  { %6767 = vrot.lane.b32.xlu1 %v6140_v56, %s13519_s8 }
0x10fb   :  { %12311 = vrot.lane.b32.xlu0 %v20041_v5, %s13509_s24 }
0x10fd   :  { %v5454_v46 = vpop.xlane.xlu0 %5453  ;;  %12296 = vrot.lane.b32.xlu1 %v12295_v15, %s13519_s8  ;;  %v6145_v15 = vmul.f32 %v17314_v39, %v6126_v57 }
0x10fe   :  { %v17590_v33 = vpop.f32.mrb[96].mxu1  ;;  %13172 = vrcp.f32 %v5454_v46 }
0x10ff   :  { %12321 = vrot.lane.b32.xlu0 %v20043_v44, %s13509_s24  ;;  %v17594_v49 = vpop.f32.mrb[97].mxu1 }
0x1100   :  { %v12390_v1 = vpack.i.bf16 %v17590_v33, %v17594_v49 }
0x1101   :  { %v12217_v8 = vpop.permute.xlu0 %12216  ;;  %6910 = vrot.lane.b32.xlu1 %v6143_v2, %s13519_s8 }
0x1102   :  { %v12219_v14 = vunpack.i.h.bf16 %v12217_v8  ;;  %v12218_v47 = vunpack.i.l.bf16 %v12217_v8 }
0x1103   :  { %v17601_v19 = vpop.f32.mrb[98].mxu1 }
0x1104   :  { %v17604_v62 = vpop.f32.mrb[99].mxu1  ;;  %v11618_v7 = vpack.c.bf16 %v12219_v14, %v12218_v47 }
0x1105   :  { %v12395_v20 = vpack.i.bf16 %v17601_v19, %v17604_v62  ;;  %6914 = vrot.lane.b32.xlu1 %v6145_v15, %s13519_s8  ;;  %v12232_v25 = vpop.permute.xlu0 %12231 }
0x1106   :  { %11619 = vmatprep.subr.bf16.mxu0 %v11618_v7  ;;  %v12234_v9 = vunpack.i.h.bf16 %v12232_v25  ;;  %v12233_v4 = vunpack.i.l.bf16 %v12232_v25 }
0x1107   :  { %11621 = vmatpush3.bf16.msra.mxu0 %v11618_v7 }
0x1108   :  { %v13173_v27 = vpop.eup %13172  ;;  %v11638_v23 = vpack.c.bf16 %v12234_v9, %v12233_v4 }
0x1109   :  { %12306 = vrot.lane.b32.xlu1 %v20045_v24, %s13509_s24  ;;  %v5494_v3 = vmul.f32 %v13173_v27, %v17416_v22 }
0x110d   :  { %12316 = vrot.lane.b32.xlu1 %v20046_v12, %s13509_s24 }
0x1110   :  { %v5451_v39 = vpop.xlane.xlu1 %5450 }
0x1111   :  { %13174 = vrcp.f32 %v5451_v39  ;;  %12326 = vrot.lane.b32.xlu1 %v20047_v32, %s13509_s24 }
0x1114   :  { %v12222_v31 = vpop.permute.xlu1 %12221 }
0x1115   :  { %v12224_v10 = vunpack.i.h.bf16 %v12222_v31  ;;  %v12223_v48 = vunpack.i.l.bf16 %v12222_v31 }
0x1117   :  { %v11622_v16 = vpack.c.bf16 %v12224_v10, %v12223_v48 }
0x1118   :  { %v12227_v40 = vpop.permute.xlu1 %12226 }
0x1119   :  { %v12229_v41 = vunpack.i.h.bf16 %v12227_v40  ;;  %v12228_v42 = vunpack.i.l.bf16 %v12227_v40  ;;  %11623 = vmatprep.subr.bf16.mxu0 %v11622_v16 }
0x111a   :  { %11625 = vmatpush3.bf16.msra.mxu0 %v11622_v16 }
0x111b   :  { %v13175_v6 = vpop.eup %13174  ;;  %v11632_v34 = vpack.c.bf16 %v12229_v41, %v12228_v42 }
0x111c   :  { %v12237_v36 = vpop.permute.xlu1 %12236  ;;  %v5493_v58 = vmul.f32 %v13175_v6, %v17434_v29 }
0x111d   :  { %v12239_v55 = vunpack.i.h.bf16 %v12237_v36  ;;  %v12238_v61 = vunpack.i.l.bf16 %v12237_v36  ;;  %10941 = vmatmul.mubr.msk.f32.vlgmr.msra.gmra.mrb[56].mxu0 %vm109_vm0, %v5496_v51  ;;  %11634 = vmatprep.subr.msk.bf16.mxu1 %vm14214_vm7, %v11632_v34 }
0x111e   :  { %10921 = vmatprep.mubr.msk.f32.mxu1 %vm109_vm0, %v5493_v58  ;;  %11637 = vmatpush3.bf16.xpose.msk.msra.mxu1 %vm14214_vm7, %v11632_v34 }
0x111f   :  { %v11650_v37 = vpack.c.bf16 %v12239_v55, %v12238_v61  ;;  %10922 = vmatmul.mubr.msk.f32.gmra.mrb[102].mxu1 %vm109_vm0, %v5494_v3  ;;  %11640 = vmatprep.subr.msk.bf16.mxu1 %vm14214_vm7, %v11638_v23 }
0x1121   :  { %11652 = vmatprep.subr.msk.bf16.mxu0 %vm14214_vm7, %v11650_v37 }
0x1123   :  { %11655 = vmatpush3.bf16.xpose.msk.msra.mxu0 %vm14214_vm7, %v11650_v37 }
0x1126   :  { %11643 = vmatpush3.bf16.xpose.msk.msra.mxu1 %vm14214_vm7, %v11638_v23 }
0x1136   :  { %v5463_v22 = vpop.xlane.xlu0 %5462 }
0x1137   :  { %13176 = vrcp.f32 %v5463_v22 }
0x113a   :  { %v12242_v29 = vpop.permute.xlu0 %12241 }
0x113b   :  { %v12244_v30 = vunpack.i.h.bf16 %v12242_v29  ;;  %v12243_v53 = vunpack.i.l.bf16 %v12242_v29 }
0x113d   :  { %v11644_v11 = vpack.c.bf16 %v12244_v30, %v12243_v53 }
0x113e   :  { %v12252_v21 = vpop.permute.xlu0 %12251 }
0x113f   :  { %11646 = vmatprep.subr.msk.bf16.mxu1 %vm14214_vm7, %v11644_v11  ;;  %v12254_v17 = vunpack.i.h.bf16 %v12252_v21  ;;  %v12253_v46 = vunpack.i.l.bf16 %v12252_v21 }
0x1140   :  { %11649 = vmatpush3.bf16.xpose.msk.msra.mxu1 %vm14214_vm7, %v11644_v11 }
0x1141   :  { %v13177_v63 = vpop.eup %13176  ;;  %v11662_v14 = vpack.c.bf16 %v12254_v17, %v12253_v46 }
0x1142   :  { %v6474_v38 = vpop.permute.xlu0 %6473  ;;  %v5497_v52 = vmul.f32 %v13177_v63, %v17457_v18 }
0x1143   :  { %10962 = vmatprep.mubr.msk.f32.mxu1 %vm1072_vm6, %v6474_v38 }
0x1144   :  { %10943 = vmatprep.mubr.msk.f32.mxu0 %vm109_vm0, %v5497_v52 }
0x1146   :  { %v6478_v56 = vpop.permute.xlu0 %6477 }
0x114a   :  { %v12262_v35 = vpop.permute.xlu0 %12261 }
0x114b   :  { %v12264_v32 = vunpack.i.h.bf16 %v12262_v35  ;;  %v12263_v31 = vunpack.i.l.bf16 %v12262_v35 }
0x114d   :  { %v5466_v5 = vpop.xlane.xlu1 %5465  ;;  %v11668_v25 = vpack.c.bf16 %v12264_v32, %v12263_v31 }
0x114e   :  { %v12272_v28 = vpop.permute.xlu0 %12271  ;;  %13178 = vrcp.f32 %v5466_v5 }
0x114f   :  { %v12274_v0 = vunpack.i.h.bf16 %v12272_v28  ;;  %v12273_v40 = vunpack.i.l.bf16 %v12272_v28 }
0x1151   :  { %v12247_v50 = vpop.permute.xlu1 %12246  ;;  %v11686_v6 = vpack.c.bf16 %v12274_v0, %v12273_v40 }
0x1152   :  { %v6619_v44 = vpop.permute.xlu0 %6618  ;;  %v12249_v2 = vunpack.i.h.bf16 %v12247_v50  ;;  %v12248_v54 = vunpack.i.l.bf16 %v12247_v50 }
0x1154   :  { %v11656_v57 = vpack.c.bf16 %v12249_v2, %v12248_v54 }
0x1155   :  { %v12257_v8 = vpop.permute.xlu1 %12256 }
0x1156   :  { %v6623_v47 = vpop.permute.xlu0 %6622  ;;  %v12259_v18 = vunpack.i.h.bf16 %v12257_v8  ;;  %v12258_v15 = vunpack.i.l.bf16 %v12257_v8  ;;  %11658 = vmatprep.subr.msk.bf16.mxu0 %vm14214_vm7, %v11656_v57 }
0x1157   :  { %11661 = vmatpush3.bf16.xpose.msk.msra.mxu0 %vm14214_vm7, %v11656_v57 }
0x1158   :  { %v13179_v7 = vpop.eup %13178  ;;  %v11674_v24 = vpack.c.bf16 %v12259_v18, %v12258_v15  ;;  %11664 = vmatprep.subr.msk.bf16.mxu0 %vm14214_vm7, %v11662_v14 }
0x1159   :  { %v6476_v12 = vpop.permute.xlu1 %6475  ;;  %v5498_v39 = vmul.f32 %v13179_v7, %v17472_v45 }
0x115a   :  { %v12282_v10 = vpop.permute.xlu0 %12281  ;;  %10963 = vmatmul.mubr.msk.f32.vlgmr.msra.gmra.mrb[104].mxu1 %vm1072_vm6, %v6476_v12  ;;  %11676 = vmatprep.subr.msk.bf16.mxu1 %vm14214_vm7, %v11674_v24 }
0x115b   :  { %10944 = vmatmul.mubr.msk.f32.gmra.mrb[58].mxu0 %vm109_vm0, %v5498_v39  ;;  %10965 = vmatprep.mubr.msk.f32.mxu1 %vm1072_vm6, %v6478_v56  ;;  %v12284_v55 = vunpack.i.h.bf16 %v12282_v10  ;;  %v12283_v61 = vunpack.i.l.bf16 %v12282_v10 }
0x115c   :  { %11679 = vmatpush3.bf16.xpose.msk.msra.mxu1 %vm14214_vm7, %v11674_v24  ;;  %10984 = vmatprep.mubr.msk.f32.mxu0 %vm1072_vm6, %v6619_v44 }
0x115d   :  { %v6480_v48 = vpop.permute.xlu1 %6479  ;;  %v11692_v22 = vpack.c.bf16 %v12284_v55, %v12283_v61 }
0x115e   :  { %v12292_v45 = vpop.permute.xlu0 %12291  ;;  %10966 = vmatmul.mubr.msk.f32.gmra.mrb[106].mxu1 %vm1072_vm6, %v6480_v48 }
0x115f   :  { %11667 = vmatpush3.bf16.xpose.msk.msra.mxu0 %vm14214_vm7, %v11662_v14  ;;  %v12294_v56 = vunpack.i.h.bf16 %v12292_v45  ;;  %v12293_v35 = vunpack.i.l.bf16 %v12292_v45 }
0x1160   :  { %11670 = vmatprep.subr.msk.bf16.mxu0 %vm14214_vm7, %v11668_v25 }
0x1161   :  { %v12267_v16 = vpop.permute.xlu1 %12266  ;;  %v11710_v44 = vpack.c.bf16 %v12294_v56, %v12293_v35 }
0x1162   :  { %v6766_v9 = vpop.permute.xlu0 %6765  ;;  %v12269_v4 = vunpack.i.h.bf16 %v12267_v16  ;;  %v12268_v41 = vunpack.i.l.bf16 %v12267_v16 }
0x1164   :  { %v11680_v42 = vpack.c.bf16 %v12269_v4, %v12268_v41 }
0x1165   :  { %v12277_v27 = vpop.permute.xlu1 %12276 }
0x1166   :  { %v6770_v51 = vpop.permute.xlu0 %6769  ;;  %v12279_v34 = vunpack.i.h.bf16 %v12277_v27  ;;  %v12278_v36 = vunpack.i.l.bf16 %v12277_v27  ;;  %11682 = vmatprep.subr.msk.bf16.mxu1 %vm14214_vm7, %v11680_v42 }
0x1167   :  { %11673 = vmatpush3.bf16.xpose.msk.msra.mxu0 %vm14214_vm7, %v11668_v25  ;;  %11685 = vmatpush3.bf16.xpose.msk.msra.mxu1 %vm14214_vm7, %v11680_v42 }
0x1168   :  { %v11698_v58 = vpack.c.bf16 %v12279_v34, %v12278_v36  ;;  %11688 = vmatprep.subr.msk.bf16.mxu1 %vm14214_vm7, %v11686_v6 }
0x1169   :  { %v6621_v23 = vpop.permute.xlu1 %6620 }
0x116a   :  { %v6909_v3 = vpop.permute.xlu0 %6908  ;;  %11700 = vmatprep.subr.msk.bf16.mxu0 %vm14214_vm7, %v11698_v58 }
0x116d   :  { %v6625_v37 = vpop.permute.xlu1 %6624 }
0x116e   :  { %v17671_v29 = vpop.permute.xlu0 %6912  ;;  %10985 = vmatmul.mubr.msk.f32.vlgmr.msra.gmra.mrb[60].mxu0 %vm1072_vm6, %v6621_v23  ;;  %v17674_v30 = vpop.f32.mrb[100].mxu1 }
0x116f   :  { %10987 = vmatprep.mubr.msk.f32.mxu0 %vm1072_vm6, %v6623_v47  ;;  %11691 = vmatpush3.bf16.xpose.msk.msra.mxu1 %vm14214_vm7, %v11686_v6  ;;  %v17679_v53 = vpop.f32.mrb[101].mxu1 }
0x1170   :  { %11703 = vmatpush3.bf16.xpose.msk.msra.mxu0 %vm14214_vm7, %v11698_v58  ;;  %11694 = vmatprep.subr.msk.bf16.mxu1 %vm14214_vm7, %v11692_v22  ;;  %v12450_v11 = vpack.i.bf16 %v17674_v30, %v17679_v53 }
0x1171   :  { %v12287_v21 = vpop.permute.xlu1 %12286 }
0x1172   :  { %v12302_v63 = vpop.permute.xlu0 %12301  ;;  %v12289_v38 = vunpack.i.h.bf16 %v12287_v21  ;;  %v12288_v52 = vunpack.i.l.bf16 %v12287_v21  ;;  %10988 = vmatmul.mubr.msk.f32.gmra.mrb[62].mxu0 %vm1072_vm6, %v6625_v37 }
0x1173   :  { %v12304_v5 = vunpack.i.h.bf16 %v12302_v63  ;;  %v12303_v28 = vunpack.i.l.bf16 %v12302_v63  ;;  %11028 = vmatprep.mubr.msk.f32.mxu0 %vm1072_vm6, %v6909_v3 }
0x1174   :  { %v11704_v50 = vpack.c.bf16 %v12289_v38, %v12288_v52 }
0x1175   :  { %v6764_v17 = vpop.permute.xlu1 %6763  ;;  %v11722_v46 = vpack.c.bf16 %v12304_v5, %v12303_v28 }
0x1176   :  { %11006 = vmatprep.mubr.msk.f32.mxu1 %vm1072_vm6, %v6764_v17  ;;  %11706 = vmatprep.subr.msk.bf16.mxu0 %vm14214_vm7, %v11704_v50  ;;  %v12312_v54 = vpop.permute.xlu0 %12311 }
0x1177   :  { %11697 = vmatpush3.bf16.xpose.msk.msra.mxu1 %vm14214_vm7, %v11692_v22  ;;  %v12313_v4 = vunpack.i.l.bf16 %v12312_v54 }
0x1178   :  { %11709 = vmatpush3.bf16.xpose.msk.msra.mxu0 %vm14214_vm7, %v11704_v50  ;;  %11723 = vmatprep.subr.bf16.mxu1 %v11722_v46 }
0x1179   :  { %11712 = vmatprep.subr.msk.bf16.mxu0 %vm14214_vm7, %v11710_v44  ;;  %v6768_v2 = vpop.permute.xlu1 %6767 }
0x117a   :  { %v17698_v57 = vpop.f32.mrb[52].mxu0  ;;  %v12322_v12 = vpop.permute.xlu0 %12321 }
0x117b   :  { %v17700_v8 = vpop.f32.mrb[53].mxu0  ;;  %v12324_v10 = vunpack.i.h.bf16 %v12322_v12  ;;  %v12323_v48 = vunpack.i.l.bf16 %v12322_v12 }
0x117c   :  { %v12420_v14 = vpack.i.bf16 %v17698_v57, %v17700_v8 }
0x117d   :  { %v12297_v47 = vpop.permute.xlu1 %12296  ;;  %v11738_v45 = vpack.c.bf16 %v12324_v10, %v12323_v48 }
0x117e   :  { %v12299_v18 = vunpack.i.h.bf16 %v12297_v47  ;;  %v12298_v15 = vunpack.i.l.bf16 %v12297_v47  ;;  %v17704_v7 = vpop.f32.mrb[54].mxu0  ;;  %11007 = vmatmul.mubr.msk.f32.vlgmr.msra.gmra.mrb[108].mxu1 %vm1072_vm6, %v6766_v9  ;;  %v12314_v9 = vunpack.i.h.bf16 %v12312_v54 }
0x117f   :  { %v17707_v24 = vpop.f32.mrb[55].mxu0  ;;  %11009 = vmatprep.mubr.msk.f32.mxu1 %vm1072_vm6, %v6768_v2  ;;  %11725 = vmatpush3.bf16.msra.mxu1 %v11722_v46 }
0x1180   :  { %v11716_v39 = vpack.c.bf16 %v12299_v18, %v12298_v15  ;;  %v12425_v32 = vpack.i.bf16 %v17704_v7, %v17707_v24  ;;  %11715 = vmatpush3.bf16.xpose.msk.msra.mxu0 %vm14214_vm7, %v11710_v44  ;;  %v20070_v7 = vld [vmem:[#allocation79_spill] sm:$0xff]  ;;  %v20071_v24 = vld [vmem:[#allocation145_spill] sm:$0xff] }
0x1181   :  { %v6911_v31 = vpop.permute.xlu1 %6910 }
0x1182   :  { %11010 = vmatmul.mubr.msk.f32.gmra.mrb[110].mxu1 %vm1072_vm6, %v6770_v51  ;;  %11718 = vmatprep.subr.msk.bf16.mxu0 %vm14214_vm7, %v11716_v39  ;;  %v11730_v51 = vpack.c.bf16 %v12314_v9, %v12313_v4 }
0x1185   :  { %v6915_v25 = vpop.permute.xlu1 %6914 }
0x1188   :  { %11721 = vmatpush3.bf16.xpose.msk.msra.mxu0 %vm14214_vm7, %v11716_v39 }
0x1189   :  { %11739 = vmatprep.subr.bf16.mxu0 %v11738_v45  ;;  %v12307_v16 = vpop.permute.xlu1 %12306 }
0x118a   :  { %v12309_v0 = vunpack.i.h.bf16 %v12307_v16  ;;  %v12308_v40 = vunpack.i.l.bf16 %v12307_v16 }
0x118c   :  { %v11726_v41 = vpack.c.bf16 %v12309_v0, %v12308_v40 }
0x118d   :  { %v12317_v42 = vpop.permute.xlu1 %12316 }
0x118e   :  { %v12319_v27 = vunpack.i.h.bf16 %v12317_v42  ;;  %v12318_v6 = vunpack.i.l.bf16 %v12317_v42  ;;  %11727 = vmatprep.subr.bf16.mxu1 %v11726_v41 }
0x118f   :  { %11029 = vmatmul.mubr.msk.f32.vlgmr.msra.gmra.mrb[64].mxu0 %vm1072_vm6, %v6911_v31  ;;  %11729 = vmatpush3.bf16.msra.mxu1 %v11726_v41 }
0x1190   :  { %11031 = vmatprep.mubr.msk.f32.mxu0 %vm1072_vm6, %v17671_v29  ;;  %11741 = vmatpush3.bf16.msra.mxu0 %v11738_v45  ;;  %v11734_v58 = vpack.c.bf16 %v12319_v27, %v12318_v6 }
0x1191   :  { %11731 = vmatprep.subr.bf16.mxu1 %v11730_v51  ;;  %v12327_v26 = vpop.permute.xlu1 %12326 }
0x1192   :  { %v12329_v34 = vunpack.i.h.bf16 %v12327_v26  ;;  %v12328_v36 = vunpack.i.l.bf16 %v12327_v26 }
0x1193   :  { %11032 = vmatmul.mubr.msk.f32.gmra.mrb[66].mxu0 %vm1072_vm6, %v6915_v25  ;;  %11733 = vmatpush3.bf16.msra.mxu1 %v11730_v51 }
0x1194   :  { %11735 = vmatprep.subr.bf16.mxu1 %v11734_v58  ;;  %v11742_v23 = vpack.c.bf16 %v12329_v34, %v12328_v36 }
0x1196   :  { %11743 = vmatprep.subr.bf16.mxu0 %v11742_v23 }
0x1197   :  { %11737 = vmatpush3.bf16.msra.mxu1 %v11734_v58  ;;  %11745 = vmatpush3.bf16.msra.mxu0 %v11742_v23 }
0x11f0   :  { %v17723_v55 = vpop.f32.mrb[56].mxu0 }
0x11f1   :  { %v17725_v61 = vpop.f32.mrb[57].mxu0 }
0x11f2   :  { %v12480_v3 = vpack.i.bf16 %v17723_v55, %v17725_v61  ;;  %v17729_v37 = vpop.f32.mrb[102].mxu1 }
0x11f3   :  { %v17731_v22 = vpop.f32.mrb[103].mxu1 }
0x11f4   :  { %v12455_v29 = vpack.i.bf16 %v17729_v37, %v17731_v22 }
0x122d   :  { %v10964_v21 = vpop.f32.mrb[104].mxu1 }
0x122e   :  { %v7050_v63 = vmul.f32 8.0, %v10964_v21  ;;  %v17735_v38 = vpop.f32.mrb[58].mxu0  ;;  %v6595_v52 = vpop.f32.mrb[105].mxu1 }
0x122f   :  { %v7049_v56 = vmul.f32 8.0, %v6595_v52  ;;  %v17737_v35 = vpop.f32.mrb[59].mxu0 }
0x1230   :  { %v7067_v5 = vmul.f32 1.442695, %v7050_v63  ;;  %v12485_v28 = vpack.i.bf16 %v17735_v38, %v17737_v35  ;;  %v20082_v35 = vld [vmem:[#allocation173_spill] sm:$0xff] }
0x1231   :  { %v7065_v50 = vmul.f32 1.442695, %v7049_v56  ;;  %v10967_v17 = vpop.f32.mrb[106].mxu1 }
0x1232   :  { %13180 = vpow2.f32 %v7067_v5  ;;  %v7052_v46 = vmul.f32 8.0, %v10967_v17  ;;  %v6605_v44 = vpop.f32.mrb[107].mxu1 }
0x1233   :  { %13182 = vpow2.f32 %v7065_v50  ;;  %v7051_v2 = vmul.f32 8.0, %v6605_v44 }
0x1234   :  { %v7071_v54 = vmul.f32 1.442695, %v7052_v46 }
0x1235   :  { %v7069_v47 = vmul.f32 1.442695, %v7051_v2 }
0x1236   :  { %13184 = vpow2.f32 %v7071_v54 }
0x1237   :  { %13186 = vpow2.f32 %v7069_v47 }
0x123c   :  { %v17741_v18 = vpop.eup %13180 }
0x123d   :  { %v17743_v15 = vpop.eup %13182  ;;  %v7100_v12 = vsel %vm109_vm0, %v17741_v18, 0.0 }
0x123e   :  { %7101 = vadd.xlane.f32.xlu1 %v7100_v12  ;;  %v7097_v39 = vsel %vm109_vm0, %v17743_v15, 0.0 }
0x123f   :  { %7098 = vadd.xlane.f32.xlu0 %v7097_v39 }
0x1240   :  { %v17749_v31 = vpop.eup %13184 }
0x1241   :  { %v10986_v10 = vpop.f32.mrb[60].mxu0  ;;  %v7106_v48 = vsel %vm109_vm0, %v17749_v31, 0.0  ;;  %v17753_v16 = vpop.eup %13186 }
0x1242   :  { %v7054_v25 = vmul.f32 8.0, %v10986_v10  ;;  %v6740_v45 = vpop.f32.mrb[61].mxu0  ;;  %v7103_v27 = vsel %vm109_vm0, %v17753_v16, 0.0 }
0x1243   :  { %v7053_v0 = vmul.f32 8.0, %v6740_v45  ;;  %7107 = vadd.xlane.f32.xlu0 %v7106_v48 }
0x1244   :  { %v7075_v40 = vmul.f32 1.442695, %v7054_v25 }
0x1245   :  { %v7073_v9 = vmul.f32 1.442695, %v7053_v0  ;;  %v10989_v4 = vpop.f32.mrb[62].mxu0 }
0x1246   :  { %13188 = vpow2.f32 %v7075_v40  ;;  %v7056_v41 = vmul.f32 8.0, %v10989_v4  ;;  %v6750_v42 = vpop.f32.mrb[63].mxu0 }
0x1247   :  { %13190 = vpow2.f32 %v7073_v9  ;;  %v7055_v6 = vmul.f32 8.0, %v6750_v42  ;;  %7104 = vadd.xlane.f32.xlu0 %v7103_v27 }
0x1248   :  { %v7079_v51 = vmul.f32 1.442695, %v7056_v41 }
0x1249   :  { %v7077_v26 = vmul.f32 1.442695, %v7055_v6 }
0x124a   :  { %13192 = vpow2.f32 %v7079_v51 }
0x124b   :  { %13194 = vpow2.f32 %v7077_v26 }
0x1250   :  { %v17757_v34 = vpop.eup %13188 }
0x1251   :  { %v17759_v36 = vpop.eup %13190  ;;  %v11008_v58 = vpop.f32.mrb[108].mxu1  ;;  %v7112_v23 = vsel %vm109_vm0, %v17757_v34, 0.0 }
0x1252   :  { %v7058_v21 = vmul.f32 8.0, %v11008_v58  ;;  %7113 = vadd.xlane.f32.xlu0 %v7112_v23  ;;  %v6885_v63 = vpop.f32.mrb[109].mxu1  ;;  %v7109_v52 = vsel %vm109_vm0, %v17759_v36, 0.0  ;;  %v20048_v58 = vld [vmem:[#allocation67_spill] sm:$0xff]  ;;  %v20049_v23 = vld [vmem:[#allocation72_spill] sm:$0xff] }
0x1253   :  { %v7057_v56 = vmul.f32 8.0, %v6885_v63  ;;  %7110 = vadd.xlane.f32.xlu1 %v7109_v52  ;;  %v20051_v63 = vld [vmem:[#allocation78_spill] sm:$0xff] }
0x1254   :  { %v17765_v5 = vpop.eup %13192  ;;  %v7083_v50 = vmul.f32 1.442695, %v7058_v21  ;;  %v20050_v21 = vld [vmem:[#allocation75_spill] sm:$0xff] }
0x1255   :  { %v7081_v17 = vmul.f32 1.442695, %v7057_v56  ;;  %v11011_v46 = vpop.f32.mrb[110].mxu1  ;;  %v7118_v44 = vsel %vm109_vm0, %v17765_v5, 0.0  ;;  %v17769_v47 = vpop.eup %13194 }
0x1256   :  { %13196 = vpow2.f32 %v7083_v50  ;;  %v7060_v2 = vmul.f32 8.0, %v11011_v46  ;;  %v6895_v54 = vpop.f32.mrb[111].mxu1  ;;  %v7115_v48 = vsel %vm109_vm0, %v17769_v47, 0.0 }
0x1257   :  { %13198 = vpow2.f32 %v7081_v17  ;;  %v7059_v12 = vmul.f32 8.0, %v6895_v54  ;;  %7119 = vadd.xlane.f32.xlu1 %v7118_v44 }
0x1258   :  { %v7087_v39 = vmul.f32 1.442695, %v7060_v2 }
0x1259   :  { %v7085_v10 = vmul.f32 1.442695, %v7059_v12 }
0x125b   :  { %13200 = vpow2.f32 %v7085_v10  ;;  %7116 = vadd.xlane.f32.xlu1 %v7115_v48 }
0x125c   :  { %13202 = vpow2.f32 %v7087_v39 }
0x1260   :  { %v17773_v25 = vpop.eup %13196 }
0x1261   :  { %v17775_v45 = vpop.eup %13198  ;;  %v7124_v0 = vsel %vm109_vm0, %v17773_v25, 0.0 }
0x1262   :  { %v11030_v40 = vpop.f32.mrb[64].mxu0  ;;  %7125 = vadd.xlane.f32.xlu1 %v7124_v0  ;;  %v7121_v9 = vsel %vm109_vm0, %v17775_v45, 0.0 }
0x1263   :  { %v7030_v4 = vpop.f32.mrb[65].mxu0  ;;  %7122 = vadd.xlane.f32.xlu0 %v7121_v9  ;;  %v7062_v52 = vmul.f32 8.0, %v11030_v40 }
0x1264   :  { %v7061_v56 = vmul.f32 8.0, %v7030_v4 }
0x1265   :  { %v17781_v41 = vpop.eup %13200  ;;  %v7091_v50 = vmul.f32 1.442695, %v7062_v52 }
0x1266   :  { %v11033_v42 = vpop.f32.mrb[66].mxu0  ;;  %v7127_v27 = vsel %vm109_vm0, %v17781_v41, 0.0  ;;  %v17785_v6 = vpop.eup %13202  ;;  %v7089_v17 = vmul.f32 1.442695, %v7061_v56 }
0x1267   :  { %v7040_v51 = vpop.f32.mrb[67].mxu0  ;;  %7128 = vadd.xlane.f32.xlu1 %v7127_v27  ;;  %v7130_v26 = vsel %vm109_vm0, %v17785_v6, 0.0  ;;  %13204 = vpow2.f32 %v7091_v50  ;;  %v7064_v44 = vmul.f32 8.0, %v11033_v42  ;;  %v20052_v42 = vld [vmem:[#allocation85_spill] sm:$0xff]  ;;  %v20053_v27 = vld [vmem:[#allocation90_spill] sm:$0xff] }
0x1268   :  { %v7063_v46 = vmul.f32 8.0, %v7040_v51  ;;  %13206 = vpow2.f32 %v7089_v17  ;;  %v20054_v51 = vld [vmem:[#allocation127_spill] sm:$0xff] }
0x1269   :  { %v7095_v54 = vmul.f32 1.442695, %v7064_v44 }
0x126a   :  { %v7093_v2 = vmul.f32 1.442695, %v7063_v46 }
0x126b   :  { %7131 = vadd.xlane.f32.xlu1 %v7130_v26  ;;  %v20055_v26 = vld [vmem:[#allocation122_spill] sm:$0xff] }
0x126c   :  { %13208 = vpow2.f32 %v7093_v2 }
0x126d   :  { %13210 = vpow2.f32 %v7095_v54 }
0x1271   :  { %v17797_v12 = vpop.eup %13204 }
0x1272   :  { %v17799_v39 = vpop.eup %13206  ;;  %v7136_v48 = vsel %vm109_vm0, %v17797_v12, 0.0 }
0x1273   :  { %v7133_v10 = vsel %vm109_vm0, %v17799_v39, 0.0 }
0x1276   :  { %v17805_v0 = vpop.eup %13208 }
0x1277   :  { %v7139_v40 = vsel %vm109_vm0, %v17805_v0, 0.0  ;;  %v17809_v9 = vpop.eup %13210 }
0x1278   :  { %v7142_v4 = vsel %vm109_vm0, %v17809_v9, 0.0 }
0x1279   :  { %12331 = vrot.lane.b32.xlu0 %v20048_v58, %s13509_s24  ;;  %v20056_v58 = vpack.i.bf16 %v20054_v51, %v20055_v26 }
0x127c   :  { %12336 = vrot.lane.b32.xlu1 %v20049_v23, %s13509_s24  ;;  %v20058_v23 = vld [vmem:[#allocation117_spill] sm:$0xff] }
0x127d   :  { %12341 = vrot.lane.b32.xlu0 %v20050_v21, %s13509_s24 }
0x1281   :  { %12346 = vrot.lane.b32.xlu0 %v20051_v63, %s13509_s24 }
0x12a0   :  { %7134 = vadd.xlane.f32.xlu0 %v7133_v10  ;;  %7137 = vadd.xlane.f32.xlu1 %v7136_v48 }
0x12a4   :  { %7140 = vadd.xlane.f32.xlu1 %v7139_v40 }
0x12a8   :  { %7143 = vadd.xlane.f32.xlu1 %v7142_v4 }
0x12b6   :  { %12351 = vrot.lane.b32.xlu0 %v20052_v42, %s13509_s24 }
0x12b9   :  { %12356 = vrot.lane.b32.xlu1 %v20053_v27, %s13509_s24 }
0x12ba   :  { %12361 = vrot.lane.b32.xlu0 %v19988_v59, %s13509_s24  ;;  %v20057_v59 = vld [vmem:[#allocation109_spill] sm:$0xff] }
0x12bd   :  { %12376 = vrot.lane.b32.xlu1 %v19995_v43, %s13509_s24  ;;  %v20059_v43 = vpack.i.bf16 %v20057_v59, %v20058_v23 }
0x12be   :  { %12366 = vrot.lane.b32.xlu0 %v19990_v60, %s13509_s24 }
0x12c1   :  { %12386 = vrot.lane.b32.xlu1 %v20056_v58, %s13509_s24 }
0x12c2   :  { %12371 = vrot.lane.b32.xlu0 %v19993_v13, %s13509_s24 }
0x12c5   :  { %12396 = vrot.lane.b32.xlu1 %v12395_v20, %s13510_s1 }
0x12c6   :  { %12381 = vrot.lane.b32.xlu0 %v20059_v43, %s13509_s24 }
0x12ca   :  { %12391 = vrot.lane.b32.xlu0 %v12390_v1, %s13510_s1 }
0x12cb   :  { %v7102_v60 = vpop.xlane.xlu1 %7101 }
0x12cc   :  { %13212 = vrcp.f32 %v7102_v60  ;;  %v7099_v21 = vpop.xlane.xlu0 %7098 }
0x12cd   :  { %13214 = vrcp.f32 %v7099_v21 }
0x12d0   :  { %v7108_v13 = vpop.xlane.xlu0 %7107 }
0x12d1   :  { %13216 = vrcp.f32 %v7108_v13 }
0x12d4   :  { %v7105_v63 = vpop.xlane.xlu0 %7104 }
0x12d5   :  { %13218 = vrcp.f32 %v7105_v63 }
0x12d6   :  { %v13213_v19 = vpop.eup %13212 }
0x12d7   :  { %v13215_v62 = vpop.eup %13214  ;;  %v7162_v52 = vmul.f32 %v13213_v19, %v17741_v18 }
0x12d8   :  { %v7161_v20 = vmul.f32 %v13215_v62, %v17743_v15 }
0x12da   :  { %11050 = vmatprep.mubr.msk.f32.mxu1 %vm109_vm0, %v7161_v20 }
0x12db   :  { %11051 = vmatmul.mubr.msk.f32.vlgmr.msra.gmra.mrb[112].mxu1 %vm109_vm0, %v7162_v52  ;;  %v13217_v33 = vpop.eup %13216 }
0x12dc   :  { %v7164_v50 = vmul.f32 %v13217_v33, %v17749_v31 }
0x12df   :  { %v13219_v49 = vpop.eup %13218  ;;  %v7114_v18 = vpop.xlane.xlu0 %7113 }
0x12e0   :  { %v7111_v1 = vpop.xlane.xlu1 %7110  ;;  %v7163_v56 = vmul.f32 %v13219_v49, %v17753_v16 }
0x12e1   :  { %13220 = vrcp.f32 %v7111_v1 }
0x12e2   :  { %11053 = vmatprep.mubr.msk.f32.mxu1 %vm109_vm0, %v7163_v56 }
0x12e3   :  { %11054 = vmatmul.mubr.msk.f32.gmra.mrb[114].mxu1 %vm109_vm0, %v7164_v50 }
0x12e4   :  { %v7120_v17 = vpop.xlane.xlu1 %7119 }
0x12e8   :  { %v7117_v46 = vpop.xlane.xlu1 %7116 }
0x12eb   :  { %v13221_v15 = vpop.eup %13220 }
0x12ec   :  { %v7165_v44 = vmul.f32 %v13221_v15, %v17759_v36 }
0x12ee   :  { %11072 = vmatprep.mubr.msk.f32.mxu0 %vm109_vm0, %v7165_v44 }
0x12ef   :  { %v7126_v2 = vpop.xlane.xlu1 %7125 }
0x12f0   :  { %v7123_v54 = vpop.xlane.xlu0 %7122 }
0x12f1   :  { %13222 = vrcp.f32 %v7123_v54 }
0x12f2   :  { %13224 = vrcp.f32 %v7114_v18 }
0x12f3   :  { %13226 = vrcp.f32 %v7117_v46 }
0x12f4   :  { %v12332_v10 = vpop.permute.xlu0 %12331  ;;  %v7129_v16 = vpop.xlane.xlu1 %7128  ;;  %13228 = vrcp.f32 %v7120_v17 }
0x12f5   :  { %v12334_v48 = vunpack.i.h.bf16 %v12332_v10  ;;  %v12333_v40 = vunpack.i.l.bf16 %v12332_v10 }
0x12f7   :  { %v11746_v31 = vpack.c.bf16 %v12334_v48, %v12333_v40 }
0x12f8   :  { %v12342_v4 = vpop.permute.xlu0 %12341  ;;  %v7132_v42 = vpop.xlane.xlu1 %7131 }
0x12f9   :  { %v12344_v27 = vunpack.i.h.bf16 %v12342_v4  ;;  %v12343_v51 = vunpack.i.l.bf16 %v12342_v4  ;;  %11747 = vmatprep.subr.bf16.mxu0 %v11746_v31 }
0x12fa   :  { %11749 = vmatpush3.bf16.msra.mxu0 %v11746_v31 }
0x12fb   :  { %v13223_v36 = vpop.eup %13222  ;;  %v11754_v26 = vpack.c.bf16 %v12344_v27, %v12343_v51 }
0x12fc   :  { %v12347_v58 = vpop.permute.xlu0 %12346  ;;  %v12337_v59 = vpop.permute.xlu1 %12336  ;;  %v7169_v23 = vmul.f32 %v13223_v36, %v17775_v45 }
0x12fd   :  { %v12349_v43 = vunpack.i.h.bf16 %v12347_v58  ;;  %v12348_v60 = vunpack.i.l.bf16 %v12347_v58  ;;  %v12339_v21 = vunpack.i.h.bf16 %v12337_v59  ;;  %v12338_v13 = vunpack.i.l.bf16 %v12337_v59  ;;  %11755 = vmatprep.subr.bf16.mxu1 %v11754_v26  ;;  %v13225_v62 = vpop.eup %13224 }
0x12fe   :  { %11757 = vmatpush3.bf16.msra.mxu1 %v11754_v26  ;;  %11094 = vmatprep.mubr.msk.f32.mxu1 %vm109_vm0, %v7169_v23  ;;  %v13227_v20 = vpop.eup %13226  ;;  %v7166_v52 = vmul.f32 %v13225_v62, %v17757_v34 }
0x12ff   :  { %v11750_v63 = vpack.c.bf16 %v12339_v21, %v12338_v13  ;;  %v11758_v19 = vpack.c.bf16 %v12349_v43, %v12348_v60  ;;  %v13229_v33 = vpop.eup %13228  ;;  %v7167_v45 = vmul.f32 %v13227_v20, %v17769_v47 }
0x1300   :  { %v7168_v49 = vmul.f32 %v13229_v33, %v17765_v5 }
0x1301   :  { %11751 = vmatprep.subr.bf16.mxu0 %v11750_v63  ;;  %11759 = vmatprep.subr.bf16.mxu1 %v11758_v19 }
0x1302   :  { %11753 = vmatpush3.bf16.msra.mxu0 %v11750_v63  ;;  %11761 = vmatpush3.bf16.msra.mxu1 %v11758_v19 }
0x1305   :  { %11073 = vmatmul.mubr.msk.f32.vlgmr.msra.gmra.mrb[68].mxu0 %vm109_vm0, %v7166_v52 }
0x1306   :  { %11075 = vmatprep.mubr.msk.f32.mxu0 %vm109_vm0, %v7167_v45 }
0x1309   :  { %11076 = vmatmul.mubr.msk.f32.gmra.mrb[70].mxu0 %vm109_vm0, %v7168_v49 }
0x132d   :  { %v7135_v1 = vpop.xlane.xlu0 %7134  ;;  %v7138_v56 = vpop.xlane.xlu1 %7137 }
0x132e   :  { %13230 = vrcp.f32 %v7135_v1  ;;  %v20060_v1 = vmov 0  }
0x132f   :  { %13232 = vrcp.f32 %v7126_v2 }
0x1330   :  { %13234 = vrcp.f32 %v7129_v16 }
0x1331   :  { %v12352_v50 = vpop.permute.xlu0 %12351  ;;  %v7141_v17 = vpop.xlane.xlu1 %7140  ;;  %13236 = vrcp.f32 %v7132_v42 }
0x1332   :  { %v12354_v15 = vunpack.i.h.bf16 %v12352_v50  ;;  %v12353_v46 = vunpack.i.l.bf16 %v12352_v50  ;;  %13238 = vrcp.f32 %v7138_v56  ;;  %v12527_v50 = vld [vmem:[%s19000_s4 + $0x18] sm:$0xff]  }
0x1333   :  { %13240 = vrcp.f32 %v7141_v17 }
0x1334   :  { %v11762_v34 = vpack.c.bf16 %v12354_v15, %v12353_v46  ;;  %v20061_v15 = vld [vmem:[#allocation124_spill] sm:$0xff] }
0x1335   :  { %v12362_v18 = vpop.permute.xlu0 %12361  ;;  %v7144_v47 = vpop.xlane.xlu1 %7143  ;;  %v20062_v46 = vld [vmem:[#allocation108_spill] sm:$0xff] }
0x1336   :  { %v12364_v44 = vunpack.i.h.bf16 %v12362_v18  ;;  %v12363_v54 = vunpack.i.l.bf16 %v12362_v18  ;;  %11763 = vmatprep.subr.bf16.mxu1 %v11762_v34  ;;  %13242 = vrcp.f32 %v7144_v47 }
0x1337   :  { %11765 = vmatpush3.bf16.msra.mxu1 %v11762_v34  ;;  %v20063_v34 = vpack.i.bf16 %v20061_v15, %v20062_v46 }
0x1338   :  { %v13231_v10 = vpop.eup %13230  ;;  %v11770_v5 = vpack.c.bf16 %v12364_v44, %v12363_v54  ;;  %v20064_v54 = vld [vmem:[#allocation114_spill] sm:$0xff] }
0x1339   :  { %v12367_v48 = vpop.permute.xlu0 %12366  ;;  %v12357_v40 = vpop.permute.xlu1 %12356  ;;  %v7173_v31 = vmul.f32 %v13231_v10, %v17799_v39  ;;  %v20065_v10 = vld [vmem:[#allocation83_spill] sm:$0xff] }
0x133a   :  { %v12369_v4 = vunpack.i.h.bf16 %v12367_v48  ;;  %v12368_v27 = vunpack.i.l.bf16 %v12367_v48  ;;  %v12359_v51 = vunpack.i.h.bf16 %v12357_v40  ;;  %11771 = vmatprep.subr.bf16.mxu0 %v11770_v5  ;;  %v12358_v2 = vunpack.i.l.bf16 %v12357_v40  ;;  %v13233_v42 = vpop.eup %13232 }
0x133b   :  { %11773 = vmatpush3.bf16.msra.mxu0 %v11770_v5  ;;  %11116 = vmatprep.mubr.msk.f32.mxu0 %vm109_vm0, %v7173_v31  ;;  %v13235_v43 = vpop.eup %13234  ;;  %v7170_v13 = vmul.f32 %v13233_v42, %v17773_v25  ;;  %v20066_v5 = vpack.i.bf16 %v20064_v54, %v20065_v10 }
0x133c   :  { %v11774_v16 = vpack.c.bf16 %v12369_v4, %v12368_v27  ;;  %v11766_v58 = vpack.c.bf16 %v12359_v51, %v12358_v2  ;;  %v13237_v63 = vpop.eup %13236  ;;  %v7171_v19 = vmul.f32 %v13235_v43, %v17781_v41  ;;  %v20068_v27 = vld [vmem:[#allocation125_spill] sm:$0xff] }
0x133d   :  { %v12372_v36 = vpop.permute.xlu0 %12371  ;;  %v12377_v26 = vpop.permute.xlu1 %12376  ;;  %v7172_v52 = vmul.f32 %v13237_v63, %v17785_v6  ;;  %v12524_v6 = vld [vmem:[%s19000_s4] sm:$0xff]  }
0x133e   :  { %v12374_v59 = vunpack.i.h.bf16 %v12372_v36  ;;  %v12373_v23 = vunpack.i.l.bf16 %v12372_v36  ;;  %11775 = vmatprep.subr.bf16.mxu0 %v11774_v16  ;;  %v12379_v39 = vunpack.i.h.bf16 %v12377_v26  ;;  %v12378_v60 = vunpack.i.l.bf16 %v12377_v26  ;;  %11767 = vmatprep.subr.bf16.mxu1 %v11766_v58  ;;  %v13239_v20 = vpop.eup %13238 }
0x133f   :  { %11777 = vmatpush3.bf16.msra.mxu0 %v11774_v16  ;;  %11769 = vmatpush3.bf16.msra.mxu1 %v11766_v58  ;;  %v13241_v33 = vpop.eup %13240  ;;  %v7174_v25 = vmul.f32 %v13239_v20, %v17797_v12  ;;  %v12525_v12 = vld [vmem:[%s19000_s4 + $0x8] sm:$0xff]  }
0x1340   :  { %v11778_v21 = vpack.c.bf16 %v12374_v59, %v12373_v23  ;;  %v11782_v62 = vpack.c.bf16 %v12379_v39, %v12378_v60  ;;  %v13243_v45 = vpop.eup %13242  ;;  %v7175_v49 = vmul.f32 %v13241_v33, %v17805_v0  ;;  %11122 = vmatprep.subr.bf16.mxu1 %v12524_v6  ;;  %v12526_v0 = vld [vmem:[%s19000_s4 + $0x10] sm:$0xff]   ;;  %v20074_v59 = vld [vmem:[#allocation112_spill] sm:$0xff] }
0x1341   :  { %v7176_v41 = vmul.f32 %v13243_v45, %v17809_v9  ;;  %v12382_v26 = vpop.permute.xlu0 %12381  ;;  %v12387_v60 = vpop.permute.xlu1 %12386  ;;  %v20079_v45 = vld [vmem:[#allocation41_spill] sm:$0xff] }
0x1342   :  { %11779 = vmatprep.subr.bf16.mxu0 %v11778_v21  ;;  %11095 = vmatmul.mubr.msk.f32.vlgmr.msra.gmra.mrb[116].mxu1 %vm109_vm0, %v7170_v13  ;;  %v12383_v39 = vunpack.i.l.bf16 %v12382_v26  ;;  %v12388_v15 = vunpack.i.l.bf16 %v12387_v60 }
0x1343   :  { %11781 = vmatpush3.bf16.msra.mxu0 %v11778_v21  ;;  %11097 = vmatprep.mubr.msk.f32.mxu1 %vm109_vm0, %v7171_v19  ;;  %v20076_v19 = vld [vmem:[#allocation152_spill] sm:$0xff] }
0x1344   :  { %11783 = vmatprep.subr.bf16.mxu0 %v11782_v62  ;;  %11123 = vmatpush3.bf16.msra.mxu1 %v12524_v6 }
0x1345   :  { %11124 = vmatprep.subr.bf16.mxu1 %v12525_v12  ;;  %v12392_v37 = vpop.permute.xlu0 %12391 }
0x1346   :  { %11098 = vmatmul.mubr.msk.f32.gmra.mrb[118].mxu1 %vm109_vm0, %v7172_v52  ;;  %v12394_v13 = vunpack.i.h.bf16 %v12392_v37  ;;  %v12393_v63 = vunpack.i.l.bf16 %v12392_v37 }
0x1347   :  { %11785 = vmatpush3.bf16.msra.mxu0 %v11782_v62  ;;  %v20077_v62 = vld [vmem:[#allocation134_spill] sm:$0xff] }
0x1348   :  { %11125 = vmatpush3.bf16.msra.mxu1 %v12525_v12  ;;  %v20078_v20 = vpack.i.bf16 %v20076_v19, %v20077_v62 }
0x1349   :  { %11126 = vmatprep.subr.bf16.mxu1 %v12526_v0 }
0x134a   :  { %11117 = vmatmul.mubr.msk.f32.vlgmr.msra.gmra.mrb[72].mxu0 %vm109_vm0, %v7174_v25 }
0x134b   :  { %11119 = vmatprep.mubr.msk.f32.mxu0 %vm109_vm0, %v7175_v49 }
0x134c   :  { %11127 = vmatpush3.bf16.msra.mxu1 %v12526_v0 }
0x134d   :  { %11128 = vmatprep.subr.bf16.mxu1 %v12527_v50 }
0x134e   :  { %11120 = vmatmul.mubr.msk.f32.gmra.mrb[74].mxu0 %vm109_vm0, %v7176_v41  ;;  %v20080_v41 = vld [vmem:[#allocation40_spill] sm:$0xff] }
0x134f   :  { %8668 = vmatprep.mubr.bf16.mxu0 %v20060_v1  ;;  %v7853_v6 = vsel %vm1072_vm6, %v20080_v41, %v12383_v39 }
0x1350   :  { %11129 = vmatpush3.bf16.msra.mxu1 %v12527_v50  ;;  %v7870_v55 = vsel %vm7869_vm8, %v7853_v6, %v12393_v63 }
0x13ae   :  { %v11052_v9 = vpop.f32.mrb[112].mxu1 }
0x13af   :  { %v7279_v56 = vpop.f32.mrb[113].mxu1 }
0x13b0   :  { %v12400_v17 = vpack.i.bf16 %v11052_v9, %v7279_v56 }
0x13b2   :  { %12401 = vrot.lane.b32.xlu0 %v12400_v17, %s13513_s29  ;;  %v12389_v17 = vunpack.i.h.bf16 %v12387_v60  ;;  %v20085_v60 = vld [vmem:[#allocation107_spill] sm:$0xff] }
0x13b6   :  { %12411 = vrot.lane.b32.xlu0 %v20063_v34, %s13509_s24  ;;  %v11055_v18 = vpop.f32.mrb[114].mxu1 }
0x13b7   :  { %v7289_v47 = vpop.f32.mrb[115].mxu1 }
0x13b8   :  { %v12405_v44 = vpack.i.bf16 %v11055_v18, %v7289_v47  ;;  %v20081_v47 = vld [vmem:[#allocation166_spill] sm:$0xff] }
0x13b9   :  { %v7856_v38 = vsel %vm1072_vm6, %v20081_v47, %v12389_v17 }
0x13ba   :  { %12421 = vrot.lane.b32.xlu0 %v12420_v14, %s13510_s1  ;;  %12406 = vrot.lane.b32.xlu1 %v12405_v44, %s13513_s29  ;;  %v20067_v14 = vld [vmem:[#allocation148_spill] sm:$0xff] }
0x13bb   :  { %v20069_v51 = vpack.i.bf16 %v20067_v14, %v20068_v27 }
0x13be   :  { %12416 = vrot.lane.b32.xlu1 %v20066_v5, %s13509_s24 }
0x13c2   :  { %12426 = vrot.lane.b32.xlu1 %v12425_v32, %s13510_s1  ;;  %v20072_v32 = vpack.i.bf16 %v20070_v7, %v20071_v24 }
0x13d8   :  { %v11074_v48 = vpop.f32.mrb[68].mxu0 }
0x13d9   :  { %v7400_v40 = vpop.f32.mrb[69].mxu0 }
0x13da   :  { %v12430_v31 = vpack.i.bf16 %v11074_v48, %v7400_v40 }
0x13dc   :  { %12431 = vrot.lane.b32.xlu0 %v12430_v31, %s13513_s29  ;;  %v11077_v4 = vpop.f32.mrb[70].mxu0 }
0x13dd   :  { %v7410_v57 = vpop.f32.mrb[71].mxu0 }
0x13de   :  { %v12435_v8 = vpack.i.bf16 %v11077_v4, %v7410_v57 }
0x13e0   :  { %12441 = vrot.lane.b32.xlu0 %v20069_v51, %s13509_s24  ;;  %12436 = vrot.lane.b32.xlu1 %v12435_v8, %s13513_s29 }
0x13e4   :  { %12451 = vrot.lane.b32.xlu0 %v12450_v11, %s13510_s1  ;;  %12446 = vrot.lane.b32.xlu1 %v20072_v32, %s13509_s24  ;;  %v20073_v11 = vld [vmem:[#allocation135_spill] sm:$0xff] }
0x13e5   :  { %v20075_v23 = vpack.i.bf16 %v20073_v11, %v20074_v59  ;;  %v20083_v32 = vld [vmem:[#allocation43_spill] sm:$0xff] }
0x13e8   :  { %12456 = vrot.lane.b32.xlu1 %v12455_v29, %s13510_s1  ;;  %v12384_v29 = vunpack.i.h.bf16 %v12382_v26 }
0x13ea   :  { %v7854_v49 = vsel %vm1072_vm6, %v20079_v45, %v12384_v29 }
0x13eb   :  { %v7871_v61 = vsel %vm7869_vm8, %v7854_v49, %v12394_v13  ;;  %v20086_v13 = vld [vmem:[#allocation113_spill] sm:$0xff] }
0x1415   :  { %v11096_v2 = vpop.f32.mrb[116].mxu1 }
0x1416   :  { %v7521_v16 = vpop.f32.mrb[117].mxu1 }
0x1417   :  { %v12460_v36 = vpack.i.bf16 %v11096_v2, %v7521_v16  ;;  %v20084_v16 = vld [vmem:[#allocation44_spill] sm:$0xff] }
0x1419   :  { %v11099_v58 = vpop.f32.mrb[118].mxu1  ;;  %12461 = vrot.lane.b32.xlu0 %v12460_v36, %s13513_s29 }
0x141a   :  { %v7531_v42 = vpop.f32.mrb[119].mxu1 }
0x141b   :  { %v12465_v30 = vpack.i.bf16 %v11099_v58, %v7531_v42 }
0x141d   :  { %v11118_v53 = vpop.f32.mrb[72].mxu0  ;;  %12471 = vrot.lane.b32.xlu0 %v20075_v23, %s13509_s24  ;;  %12466 = vrot.lane.b32.xlu1 %v12465_v30, %s13513_s29 }
0x141e   :  { %v7642_v43 = vpop.f32.mrb[73].mxu0 }
0x141f   :  { %v12490_v22 = vpack.i.bf16 %v11118_v53, %v7642_v43 }
0x1421   :  { %v11121_v21 = vpop.f32.mrb[74].mxu0  ;;  %12481 = vrot.lane.b32.xlu0 %v12480_v3, %s13510_s1  ;;  %12476 = vrot.lane.b32.xlu1 %v20078_v20, %s13509_s24  ;;  %v12397_v3 = vpop.permute.xlu1 %12396 }
0x1422   :  { %v7652_v52 = vpop.f32.mrb[75].mxu0  ;;  %v12399_v46 = vunpack.i.h.bf16 %v12397_v3  ;;  %v12398_v34 = vunpack.i.l.bf16 %v12397_v3 }
0x1423   :  { %v12495_v33 = vpack.i.bf16 %v11121_v21, %v7652_v52 }
0x1424   :  { %v12402_v25 = vpop.permute.xlu0 %12401  ;;  %v7873_v5 = vsel %vm7869_vm8, %v7856_v38, %v12399_v46 }
0x1425   :  { %v12404_v12 = vunpack.i.h.bf16 %v12402_v25  ;;  %v12403_v0 = vunpack.i.l.bf16 %v12402_v25  ;;  %12486 = vrot.lane.b32.xlu1 %v12485_v28, %s13510_s1  ;;  %12491 = vrot.lane.b32.xlu0 %v12490_v22, %s13513_s29  ;;  %v7855_v28 = vsel %vm1072_vm6, %v20082_v35, %v12388_v15 }
0x1426   :  { %v7872_v10 = vsel %vm7869_vm8, %v7855_v28, %v12398_v34 }
0x1427   :  { %v7888_v9 = vsel %vm7886_vm9, %v7871_v61, %v12404_v12  ;;  %v7887_v56 = vsel %vm7886_vm9, %v7870_v55, %v12403_v0 }
0x1428   :  { %v7911_v50 = vpack.c.bf16 %v7888_v9, %v7887_v56  ;;  %v12412_v4 = vpop.permute.xlu0 %12411  ;;  %v20087_v9 = vld [vmem:[#allocation156_spill] sm:$0xff] }
0x1429   :  { %12496 = vrot.lane.b32.xlu1 %v12495_v33, %s13513_s29  ;;  %v12414_v14 = vunpack.i.h.bf16 %v12412_v4  ;;  %v12413_v27 = vunpack.i.l.bf16 %v12412_v4 }
0x142a   :  { %11130 = vmatprep.mubr.msk.bf16.mxu1 %vm109_vm0, %v7911_v50  ;;  %v20088_v50 = vld [vmem:[#allocation183_spill] sm:$0xff] }
0x142b   :  { %v7858_v2 = vsel %vm1072_vm6, %v20083_v32, %v12414_v14  ;;  %v7857_v36 = vsel %vm1072_vm6, %v20084_v16, %v12413_v27 }
0x142c   :  { %v12407_v18 = vpop.permute.xlu1 %12406  ;;  %v12422_v8 = vpop.permute.xlu0 %12421 }
0x142d   :  { %v12409_v44 = vunpack.i.h.bf16 %v12407_v18  ;;  %v12408_v54 = vunpack.i.l.bf16 %v12407_v18  ;;  %v12424_v51 = vunpack.i.h.bf16 %v12422_v8  ;;  %v12423_v7 = vunpack.i.l.bf16 %v12422_v8 }
0x142f   :  { %v7889_v48 = vsel %vm7886_vm9, %v7872_v10, %v12408_v54  ;;  %v7890_v40 = vsel %vm7886_vm9, %v7873_v5, %v12409_v44  ;;  %v7874_v11 = vsel %vm7869_vm8, %v7857_v36, %v12423_v7  ;;  %v7875_v59 = vsel %vm7869_vm8, %v7858_v2, %v12424_v51 }
0x1430   :  { %v7912_v31 = vpack.c.bf16 %v7890_v40, %v7889_v48  ;;  %v12417_v57 = vpop.permute.xlu1 %12416 }
0x1431   :  { %v12419_v58 = vunpack.i.h.bf16 %v12417_v57  ;;  %v12418_v42 = vunpack.i.l.bf16 %v12417_v57  ;;  %v20090_v57 = vld [vmem:[#allocation126_spill] sm:$0xff] }
0x1432   :  { %11131 = vmatmul.mubr.msk.bf16.vlgmr.msra.gmra.mrb[120].mxu1 %vm109_vm0, %v7912_v31  ;;  %v20089_v31 = vld [vmem:[#allocation116_spill] sm:$0xff] }
0x1433   :  { %v7860_v21 = vsel %vm1072_vm6, %v20085_v60, %v12419_v58  ;;  %v7859_v63 = vsel %vm1072_vm6, %v20086_v13, %v12418_v42 }
0x1434   :  { %v12427_v24 = vpop.permute.xlu1 %12426 }
0x1435   :  { %v12429_v23 = vunpack.i.h.bf16 %v12427_v24  ;;  %v12428_v43 = vunpack.i.l.bf16 %v12427_v24 }
0x1437   :  { %v7876_v20 = vsel %vm7869_vm8, %v7859_v63, %v12428_v43  ;;  %v7877_v52 = vsel %vm7869_vm8, %v7860_v21, %v12429_v23 }
0x144e   :  { %v12432_v26 = vpop.permute.xlu0 %12431 }
0x144f   :  { %v12434_v30 = vunpack.i.h.bf16 %v12432_v26  ;;  %v12433_v53 = vunpack.i.l.bf16 %v12432_v26 }
0x1451   :  { %v7892_v37 = vsel %vm7886_vm9, %v7875_v59, %v12434_v30  ;;  %v7891_v22 = vsel %vm7886_vm9, %v7874_v11, %v12433_v53  ;;  %v20091_v53 = vld [vmem:[#allocation32_spill] sm:$0xff]  ;;  %v20092_v59 = vld [vmem:[#allocation142_spill] sm:$0xff] }
0x1452   :  { %v12437_v29 = vpop.permute.xlu1 %12436  ;;  %v7913_v39 = vpack.c.bf16 %v7892_v37, %v7891_v22  ;;  %v12442_v49 = vpop.permute.xlu0 %12441 }
0x1453   :  { %v12439_v19 = vunpack.i.h.bf16 %v12437_v29  ;;  %v12438_v62 = vunpack.i.l.bf16 %v12437_v29  ;;  %v12444_v12 = vunpack.i.h.bf16 %v12442_v49  ;;  %v12443_v0 = vunpack.i.l.bf16 %v12442_v49  ;;  %v20094_v49 = vld [vmem:[#allocation132_spill] sm:$0xff] }
0x1454   :  { %11134 = vmatprep.mubr.msk.bf16.mxu1 %vm109_vm0, %v7913_v39 }
0x1455   :  { %v7894_v33 = vsel %vm7886_vm9, %v7877_v52, %v12439_v19  ;;  %v7893_v25 = vsel %vm7886_vm9, %v7876_v20, %v12438_v62  ;;  %v7862_v56 = vsel %vm1072_vm6, %v20087_v9, %v12444_v12  ;;  %v7861_v17 = vsel %vm1072_vm6, %v20088_v50, %v12443_v0 }
0x1456   :  { %v7914_v45 = vpack.c.bf16 %v7894_v33, %v7893_v25  ;;  %v12447_v41 = vpop.permute.xlu1 %12446  ;;  %v12452_v6 = vpop.permute.xlu0 %12451  ;;  %v20093_v25 = vld [vmem:[#allocation163_spill] sm:$0xff] }
0x1457   :  { %v12454_v55 = vunpack.i.h.bf16 %v12452_v6  ;;  %v12453_v61 = vunpack.i.l.bf16 %v12452_v6  ;;  %v12449_v46 = vunpack.i.h.bf16 %v12447_v41  ;;  %v12448_v34 = vunpack.i.l.bf16 %v12447_v41 }
0x1458   :  { %11135 = vmatmul.mubr.msk.bf16.gmra.mrb[124].mxu1 %vm109_vm0, %v7914_v45 }
0x1459   :  { %v7878_v38 = vsel %vm7869_vm8, %v7861_v17, %v12453_v61  ;;  %v7879_v35 = vsel %vm7869_vm8, %v7862_v56, %v12454_v55  ;;  %v7864_v4 = vsel %vm1072_vm6, %v20089_v31, %v12449_v46  ;;  %v7863_v8 = vsel %vm1072_vm6, %v20090_v57, %v12448_v34 }
0x145a   :  { %v12457_v3 = vpop.permute.xlu1 %12456 }
0x145b   :  { %v12459_v28 = vunpack.i.h.bf16 %v12457_v3  ;;  %v12458_v44 = vunpack.i.l.bf16 %v12457_v3 }
0x145d   :  { %v7880_v51 = vsel %vm7869_vm8, %v7863_v8, %v12458_v44  ;;  %v7881_v7 = vsel %vm7869_vm8, %v7864_v4, %v12459_v28 }
0x148b   :  { %v12462_v15 = vpop.permute.xlu0 %12461 }
0x148c   :  { %v12464_v18 = vunpack.i.h.bf16 %v12462_v15  ;;  %v12463_v47 = vunpack.i.l.bf16 %v12462_v15 }
0x148e   :  { %v7895_v54 = vsel %vm7886_vm9, %v7878_v38, %v12463_v47  ;;  %v7896_v10 = vsel %vm7886_vm9, %v7879_v35, %v12464_v18 }
0x148f   :  { %v12472_v5 = vpop.permute.xlu0 %12471  ;;  %v12467_v48 = vpop.permute.xlu1 %12466  ;;  %v7915_v40 = vpack.c.bf16 %v7896_v10, %v7895_v54 }
0x1490   :  { %v12469_v14 = vunpack.i.h.bf16 %v12467_v48  ;;  %v12468_v27 = vunpack.i.l.bf16 %v12467_v48  ;;  %v12474_v2 = vunpack.i.h.bf16 %v12472_v5  ;;  %v12473_v16 = vunpack.i.l.bf16 %v12472_v5 }
0x1491   :  { %11138 = vmatprep.mubr.msk.bf16.mxu1 %vm109_vm0, %v7915_v40 }
0x1492   :  { %v7897_v24 = vsel %vm7886_vm9, %v7880_v51, %v12468_v27  ;;  %v7898_v32 = vsel %vm7886_vm9, %v7881_v7, %v12469_v14  ;;  %v7866_v11 = vsel %vm1072_vm6, %v20091_v53, %v12474_v2  ;;  %v7865_v23 = vsel %vm1072_vm6, %v20092_v59, %v12473_v16 }
0x1493   :  { %v12482_v36 = vpop.permute.xlu0 %12481  ;;  %v12477_v26 = vpop.permute.xlu1 %12476  ;;  %v7916_v58 = vpack.c.bf16 %v7898_v32, %v7897_v24 }
0x1494   :  { %v12484_v42 = vunpack.i.h.bf16 %v12482_v36  ;;  %v12483_v30 = vunpack.i.l.bf16 %v12482_v36  ;;  %v12479_v22 = vunpack.i.h.bf16 %v12477_v26  ;;  %v12478_v29 = vunpack.i.l.bf16 %v12477_v26 }
0x1495   :  { %11139 = vmatmul.mubr.msk.bf16.gmra.mrb[128].mxu1 %vm109_vm0, %v7916_v58 }
0x1496   :  { %v7882_v21 = vsel %vm7869_vm8, %v7865_v23, %v12483_v30  ;;  %v7883_v13 = vsel %vm7869_vm8, %v7866_v11, %v12484_v42  ;;  %v7868_v45 = vsel %vm1072_vm6, %v20093_v25, %v12479_v22  ;;  %v7867_v41 = vsel %vm1072_vm6, %v20094_v49, %v12478_v29 }
0x1497   :  { %v12487_v43 = vpop.permute.xlu1 %12486  ;;  %v12492_v37 = vpop.permute.xlu0 %12491 }
0x1498   :  { %v12494_v39 = vunpack.i.h.bf16 %v12492_v37  ;;  %v12493_v60 = vunpack.i.l.bf16 %v12492_v37  ;;  %v12489_v63 = vunpack.i.h.bf16 %v12487_v43  ;;  %v12488_v19 = vunpack.i.l.bf16 %v12487_v43 }
0x149a   :  { %v7900_v62 = vsel %vm7886_vm9, %v7883_v13, %v12494_v39  ;;  %v7899_v20 = vsel %vm7886_vm9, %v7882_v21, %v12493_v60  ;;  %v7884_v0 = vsel %vm7869_vm8, %v7867_v41, %v12488_v19  ;;  %v7885_v55 = vsel %vm7869_vm8, %v7868_v45, %v12489_v63 }
0x149b   :  { %v12497_v52 = vpop.permute.xlu1 %12496  ;;  %v7917_v33 = vpack.c.bf16 %v7900_v62, %v7899_v20 }
0x149c   :  { %v12499_v6 = vunpack.i.h.bf16 %v12497_v52  ;;  %v12498_v12 = vunpack.i.l.bf16 %v12497_v52 }
0x149d   :  { %11142 = vmatprep.mubr.msk.bf16.mxu1 %vm109_vm0, %v7917_v33 }
0x149e   :  { %v7902_v61 = vsel %vm7886_vm9, %v7885_v55, %v12499_v6  ;;  %v7901_v3 = vsel %vm7886_vm9, %v7884_v0, %v12498_v12 }
0x149f   :  { %v7918_v9 = vpack.c.bf16 %v7902_v61, %v7901_v3 }
0x14a1   :  { %11143 = vmatmul.mubr.msk.bf16.gmra.mrb[132].mxu1 %vm109_vm0, %v7918_v9 }
0x1505   :  { %v11132_v56 = vpop.f32.mrb[120].mxu1 }
0x1506   :  { %v8001_v50 = vpop.f32.mrb[121].mxu1  ;;  %v8070_v18 = vsel %vm109_vm0, %v11132_v56, 0.0 }
0x1507   :  { %v18014_v17 = vpop.f32.mrb[122].mxu1  ;;  %v8064_v15 = vsel %vm109_vm0, %v8001_v50, 0.0 }
0x1508   :  { %v8004_v46 = vpop.f32.mrb[123].mxu1  ;;  %8065 = vadd.xlane.f32.xlu0 %v8064_v15  ;;  %v8073_v47 = vsel %vm109_vm0, %v18014_v17, 0.0 }
0x1509   :  { %v8067_v34 = vsel %vm109_vm0, %v8004_v46, 0.0 }
0x150a   :  { %8068 = vadd.xlane.f32.xlu1 %v8067_v34 }
0x150c   :  { %8071 = vadd.xlane.f32.xlu0 %v8070_v18 }
0x1510   :  { %8074 = vadd.xlane.f32.xlu0 %v8073_v47 }
0x152b   :  { %v18021_v38 = vpop.f32.mrb[124].mxu1 }
0x152c   :  { %v8017_v35 = vpop.f32.mrb[125].mxu1  ;;  %v8082_v5 = vsel %vm109_vm0, %v18021_v38, 0.0 }
0x152d   :  { %v18023_v28 = vpop.f32.mrb[126].mxu1  ;;  %v8076_v44 = vsel %vm109_vm0, %v8017_v35, 0.0 }
0x152e   :  { %v8020_v54 = vpop.f32.mrb[127].mxu1  ;;  %8077 = vadd.xlane.f32.xlu0 %v8076_v44  ;;  %v8085_v48 = vsel %vm109_vm0, %v18023_v28, 0.0 }
0x152f   :  { %v8079_v10 = vsel %vm109_vm0, %v8020_v54, 0.0 }
0x1530   :  { %8080 = vadd.xlane.f32.xlu1 %v8079_v10 }
0x1532   :  { %8083 = vadd.xlane.f32.xlu0 %v8082_v5 }
0x1534   :  { %8086 = vadd.xlane.f32.xlu1 %v8085_v48 }
0x1568   :  { %v18031_v40 = vpop.f32.mrb[128].mxu1 }
0x1569   :  { %v18033_v31 = vpop.f32.mrb[129].mxu1  ;;  %v8094_v27 = vsel %vm109_vm0, %v18031_v40, 0.0 }
0x156a   :  { %v18035_v4 = vpop.f32.mrb[130].mxu1  ;;  %v8088_v57 = vsel %vm109_vm0, %v18033_v31, 0.0 }
0x156b   :  { %v18039_v8 = vpop.f32.mrb[131].mxu1  ;;  %8089 = vadd.xlane.f32.xlu0 %v8088_v57  ;;  %v8097_v51 = vsel %vm109_vm0, %v18035_v4, 0.0 }
0x156c   :  { %v8091_v14 = vsel %vm109_vm0, %v18039_v8, 0.0 }
0x156d   :  { %8092 = vadd.xlane.f32.xlu1 %v8091_v14 }
0x156f   :  { %8095 = vadd.xlane.f32.xlu0 %v8094_v27 }
0x1571   :  { %8098 = vadd.xlane.f32.xlu1 %v8097_v51 }
0x1574   :  { %v18047_v7 = vpop.f32.mrb[132].mxu1 }
0x1575   :  { %v18049_v24 = vpop.f32.mrb[133].mxu1  ;;  %v8106_v26 = vsel %vm109_vm0, %v18047_v7, 0.0 }
0x1576   :  { %v18051_v32 = vpop.f32.mrb[134].mxu1  ;;  %v8100_v2 = vsel %vm109_vm0, %v18049_v24, 0.0 }
0x1577   :  { %8101 = vadd.xlane.f32.xlu0 %v8100_v2  ;;  %v18055_v16 = vpop.f32.mrb[135].mxu1  ;;  %v8109_v58 = vsel %vm109_vm0, %v18051_v32, 0.0 }
0x1578   :  { %v8103_v36 = vsel %vm109_vm0, %v18055_v16, 0.0 }
0x1579   :  { %8104 = vadd.xlane.f32.xlu1 %v8103_v36 }
0x157b   :  { %8107 = vadd.xlane.f32.xlu0 %v8106_v26 }
0x157d   :  { %8110 = vadd.xlane.f32.xlu1 %v8109_v58 }
0x1595   :  { %v8066_v42 = vpop.xlane.xlu0 %8065 }
0x1596   :  { %v8112_v30 = vmul.f32 0.015625, %v8066_v42 }
0x1597   :  { %v8069_v53 = vpop.xlane.xlu1 %8068 }
0x1598   :  { %v18063_v11 = vsub.f32 %v8001_v50, %v8112_v30  ;;  %v8113_v59 = vmul.f32 0.015625, %v8069_v53 }
0x1599   :  { %v8072_v23 = vpop.xlane.xlu0 %8071 }
0x159a   :  { %v18065_v43 = vsub.f32 %v8004_v46, %v8113_v59  ;;  %v8114_v37 = vmul.f32 0.015625, %v8072_v23  ;;  %v8144_v22 = vmul.f32 %v18063_v11, %v18063_v11 }
0x159c   :  { %v18069_v29 = vsub.f32 %v11132_v56, %v8114_v37  ;;  %v8160_v39 = vsel %vm109_vm0, %v8144_v22, 0.0  ;;  %v8145_v60 = vmul.f32 %v18065_v43, %v18065_v43 }
0x159d   :  { %v8075_v21 = vpop.xlane.xlu0 %8074  ;;  %8161 = vadd.xlane.f32.xlu0 %v8160_v39 }
0x159e   :  { %v8115_v13 = vmul.f32 0.015625, %v8075_v21  ;;  %v8163_v63 = vsel %vm109_vm0, %v8145_v60, 0.0  ;;  %v8146_v19 = vmul.f32 %v18069_v29, %v18069_v29 }
0x159f   :  { %8164 = vadd.xlane.f32.xlu1 %v8163_v63 }
0x15a0   :  { %v18078_v62 = vsub.f32 %v18014_v17, %v8115_v13  ;;  %v8166_v20 = vsel %vm109_vm0, %v8146_v19, 0.0 }
0x15a1   :  { %8167 = vadd.xlane.f32.xlu0 %v8166_v20 }
0x15a2   :  { %v8147_v52 = vmul.f32 %v18078_v62, %v18078_v62 }
0x15a4   :  { %v8169_v33 = vsel %vm109_vm0, %v8147_v52, 0.0 }
0x15a5   :  { %8170 = vadd.xlane.f32.xlu1 %v8169_v33 }
0x15bb   :  { %v8078_v25 = vpop.xlane.xlu0 %8077 }
0x15bc   :  { %v8116_v45 = vmul.f32 0.015625, %v8078_v25 }
0x15bd   :  { %v8081_v49 = vpop.xlane.xlu1 %8080 }
0x15be   :  { %v18084_v41 = vsub.f32 %v8017_v35, %v8116_v45  ;;  %v8117_v6 = vmul.f32 0.015625, %v8081_v49 }
0x15bf   :  { %v8084_v12 = vpop.xlane.xlu0 %8083 }
0x15c0   :  { %v18086_v0 = vsub.f32 %v8020_v54, %v8117_v6  ;;  %v8118_v55 = vmul.f32 0.015625, %v8084_v12  ;;  %v8148_v61 = vmul.f32 %v18084_v41, %v18084_v41 }
0x15c1   :  { %v8087_v3 = vpop.xlane.xlu1 %8086 }
0x15c2   :  { %v18091_v9 = vsub.f32 %v18021_v38, %v8118_v55  ;;  %v8119_v56 = vmul.f32 0.015625, %v8087_v3  ;;  %v8172_v50 = vsel %vm109_vm0, %v8148_v61, 0.0  ;;  %v8149_v17 = vmul.f32 %v18086_v0, %v18086_v0 }
0x15c3   :  { %8173 = vadd.xlane.f32.xlu0 %v8172_v50 }
0x15c4   :  { %v18097_v15 = vsub.f32 %v18023_v28, %v8119_v56  ;;  %v8175_v46 = vsel %vm109_vm0, %v8149_v17, 0.0  ;;  %v8150_v34 = vmul.f32 %v18091_v9, %v18091_v9 }
0x15c5   :  { %8176 = vadd.xlane.f32.xlu1 %v8175_v46 }
0x15c6   :  { %v8178_v18 = vsel %vm109_vm0, %v8150_v34, 0.0  ;;  %v8151_v47 = vmul.f32 %v18097_v15, %v18097_v15  ;;  %v20095_v34 = vld [vmem:[#allocation15_spill] sm:$0xff] }
0x15c7   :  { %8179 = vadd.xlane.f32.xlu0 %v8178_v18  ;;  %v8274_v18 = vsub.s32 7, %v20095_v34 }
0x15c8   :  { %v8181_v38 = vsel %vm109_vm0, %v8151_v47, 0.0 }
0x15c9   :  { %8182 = vadd.xlane.f32.xlu1 %v8181_v38  ;;  %v13405_v38 = vld [vmem:[#allocation7] sm:$0xff] }
0x15f8   :  { %v8090_v35 = vpop.xlane.xlu0 %8089 }
0x15f9   :  { %v8120_v44 = vmul.f32 0.015625, %v8090_v35  ;;  %v18155_v35 = vrot.slane %v13405_v38, %v8274_v18 }
0x15fa   :  { %v8093_v54 = vpop.xlane.xlu1 %8092 }
0x15fb   :  { %v18107_v28 = vsub.f32 %v18033_v31, %v8120_v44  ;;  %v8121_v10 = vmul.f32 0.015625, %v8093_v54  ;;  %v18157_v54 = vld [vmem:[#allocation7 + $0x10] sm:$0xf] }
0x15fc   :  { %v8096_v5 = vpop.xlane.xlu0 %8095 }
0x15fd   :  { %v18110_v48 = vsub.f32 %v18039_v8, %v8121_v10  ;;  %v8122_v57 = vmul.f32 0.015625, %v8096_v5  ;;  %v8152_v14 = vmul.f32 %v18107_v28, %v18107_v28  ;;  %v20096_v10 = vsub.s32 0, %v20095_v34 }
0x15fe   :  { %v8099_v27 = vpop.xlane.xlu1 %8098 }
0x15ff   :  { %v18115_v51 = vsub.f32 %v18031_v40, %v8122_v57  ;;  %v8123_v2 = vmul.f32 0.015625, %v8099_v27  ;;  %v8184_v36 = vsel %vm109_vm0, %v8152_v14, 0.0  ;;  %v8153_v31 = vmul.f32 %v18110_v48, %v18110_v48 }
0x1600   :  { %8185 = vadd.xlane.f32.xlu0 %v8184_v36  ;;  %v18162_v5 = vrot.slane %v18157_v54, %v20096_v10 }
0x1601   :  { %v18121_v26 = vsub.f32 %v18035_v4, %v8123_v2  ;;  %v8187_v8 = vsel %vm109_vm0, %v8153_v31, 0.0  ;;  %v8154_v58 = vmul.f32 %v18115_v51, %v18115_v51 }
0x1602   :  { %8188 = vadd.xlane.f32.xlu1 %v8187_v8 }
0x1603   :  { %v8190_v42 = vsel %vm109_vm0, %v8154_v58, 0.0  ;;  %v8155_v40 = vmul.f32 %v18121_v26, %v18121_v26 }
0x1604   :  { %8191 = vadd.xlane.f32.xlu0 %v8190_v42  ;;  %v8102_v30 = vpop.xlane.xlu0 %8101  ;;  %v20097_v42 = vld [vmem:[#allocation35_spill] sm:$0xff] }
0x1605   :  { %v8124_v53 = vmul.f32 0.015625, %v8102_v30  ;;  %v8193_v59 = vsel %vm109_vm0, %v8155_v40, 0.0 }
0x1606   :  { %8194 = vadd.xlane.f32.xlu1 %v8193_v59  ;;  %v8105_v23 = vpop.xlane.xlu1 %8104 }
0x1607   :  { %v18131_v4 = vsub.f32 %v18049_v24, %v8124_v53  ;;  %v8125_v37 = vmul.f32 0.015625, %v8105_v23  ;;  %v20099_v23 = vld [vmem:[#allocation12_spill] sm:$0xff] }
0x1608   :  { %v8108_v22 = vpop.xlane.xlu0 %8107 }
0x1609   :  { %v18134_v39 = vsub.f32 %v18055_v16, %v8125_v37  ;;  %v8126_v60 = vmul.f32 0.015625, %v8108_v22  ;;  %v8156_v21 = vmul.f32 %v18131_v4, %v18131_v4 }
0x160a   :  { %v8111_v13 = vpop.xlane.xlu1 %8110 }
0x160b   :  { %v18139_v63 = vsub.f32 %v18047_v7, %v8126_v60  ;;  %v8127_v19 = vmul.f32 0.015625, %v8111_v13  ;;  %v8196_v20 = vsel %vm109_vm0, %v8156_v21, 0.0  ;;  %v8157_v24 = vmul.f32 %v18134_v39, %v18134_v39  ;;  %v20101_v60 = vld [vmem:[#allocation13_spill] sm:$0xff] }
0x160c   :  { %8197 = vadd.xlane.f32.xlu0 %v8196_v20 }
0x160d   :  { %v18145_v52 = vsub.f32 %v18051_v32, %v8127_v19  ;;  %v8199_v16 = vsel %vm109_vm0, %v8157_v24, 0.0  ;;  %v8158_v33 = vmul.f32 %v18139_v63, %v18139_v63  ;;  %v20102_v24 = vld [vmem:[#allocation14_spill] sm:$0xff] }
0x160e   :  { %8200 = vadd.xlane.f32.xlu1 %v8199_v16 }
0x160f   :  { %v8202_v25 = vsel %vm109_vm0, %v8158_v33, 0.0  ;;  %v8159_v7 = vmul.f32 %v18145_v52, %v18145_v52 }
0x1610   :  { %8203 = vadd.xlane.f32.xlu0 %v8202_v25 }
0x1611   :  { %v8205_v45 = vsel %vm109_vm0, %v8159_v7, 0.0 }
0x1612   :  { %8206 = vadd.xlane.f32.xlu1 %v8205_v45 }
0x162a   :  { %v8162_v49 = vpop.xlane.xlu0 %8161 }
0x162b   :  { %v8208_v6 = vmul.f32 0.015625, %v8162_v49 }
0x162c   :  { %v8165_v12 = vpop.xlane.xlu1 %8164 }
0x162d   :  { %v8224_v32 = vadd.f32 1e-05, %v8208_v6  ;;  %v8209_v55 = vmul.f32 0.015625, %v8165_v12 }
0x162e   :  { %v8168_v61 = vpop.xlane.xlu0 %8167 }
0x162f   :  { %13244 = vrsqrt.f32 %v8224_v32  ;;  %v8225_v3 = vadd.f32 1e-05, %v8209_v55  ;;  %v8210_v56 = vmul.f32 0.015625, %v8168_v61 }
0x1631   :  { %13246 = vrsqrt.f32 %v8225_v3  ;;  %v8226_v50 = vadd.f32 1e-05, %v8210_v56 }
0x1632   :  { %v8171_v17 = vpop.xlane.xlu1 %8170 }
0x1633   :  { %13248 = vrsqrt.f32 %v8226_v50  ;;  %v8211_v46 = vmul.f32 0.015625, %v8171_v17 }
0x1635   :  { %v8227_v47 = vadd.f32 1e-05, %v8211_v46 }
0x1637   :  { %13250 = vrsqrt.f32 %v8227_v47 }
0x1639   :  { %v13245_v44 = vpop.eup %13244 }
0x163a   :  { %v8256_v57 = vmul.f32 %v13245_v44, %v18063_v11 }
0x163b   :  { %v13247_v14 = vpop.eup %13246 }
0x163c   :  { %v8276_v27 = vmul.f32 %v18155_v35, %v8256_v57  ;;  %v8257_v2 = vmul.f32 %v13247_v14, %v18065_v43 }
0x163d   :  { %v13249_v36 = vpop.eup %13248 }
0x163e   :  { %v8296_v31 = vadd.f32 %v18162_v5, %v8276_v27  ;;  %v8277_v8 = vmul.f32 %v18155_v35, %v8257_v2  ;;  %v8258_v58 = vmul.f32 %v13249_v36, %v18069_v29  ;;  %v20103_v27 = vld [vmem:[#allocation36_spill] sm:$0xff] }
0x1640   :  { %v18171_v40 = vadd.f32 %v8296_v31, %v20097_v42  ;;  %v8297_v30 = vadd.f32 %v18162_v5, %v8277_v8  ;;  %v8278_v53 = vmul.f32 %v18155_v35, %v8258_v58 }
0x1641   :  { %v13251_v11 = vpop.eup %13250 }
0x1642   :  { %20098 = vst [vmem:[#allocation169_spill] sm:$0xff] %v18171_v40  ;;  %v8328_v59 = vsel %vm109_vm0, %v18171_v40, 0.0  ;;  %v18178_v43 = vadd.f32 %v8297_v30, %v20099_v23  ;;  %v8298_v37 = vadd.f32 %v18162_v5, %v8278_v53  ;;  %v8259_v22 = vmul.f32 %v13251_v11, %v18078_v62 }
0x1643   :  { %8329 = vadd.xlane.f32.xlu0 %v8328_v59 }
0x1644   :  { %20100 = vst [vmem:[#allocation139_spill] sm:$0xff] %v18178_v43  ;;  %v8331_v29 = vsel %vm109_vm0, %v18178_v43, 0.0  ;;  %v18185_v21 = vadd.f32 %v8298_v37, %v20101_v60  ;;  %v8279_v13 = vmul.f32 %v18155_v35, %v8259_v22 }
0x1645   :  { %8332 = vadd.xlane.f32.xlu1 %v8331_v29 }
0x1646   :  { %v8334_v19 = vsel %vm109_vm0, %v18185_v21, 0.0  ;;  %v8299_v20 = vadd.f32 %v18162_v5, %v8279_v13 }
0x1647   :  { %8335 = vadd.xlane.f32.xlu0 %v8334_v19 }
0x1648   :  { %v18192_v16 = vadd.f32 %v8299_v20, %v20102_v24 }
0x164a   :  { %v8337_v62 = vsel %vm109_vm0, %v18192_v16, 0.0 }
0x164b   :  { %8338 = vadd.xlane.f32.xlu1 %v8337_v62 }
0x1650   :  { %v8174_v33 = vpop.xlane.xlu0 %8173 }
0x1651   :  { %v8212_v25 = vmul.f32 0.015625, %v8174_v33 }
0x1652   :  { %v8177_v7 = vpop.xlane.xlu1 %8176 }
0x1653   :  { %v8228_v45 = vadd.f32 1e-05, %v8212_v25  ;;  %v8213_v49 = vmul.f32 0.015625, %v8177_v7 }
0x1654   :  { %v8180_v6 = vpop.xlane.xlu0 %8179 }
0x1655   :  { %13252 = vrsqrt.f32 %v8228_v45  ;;  %v8229_v12 = vadd.f32 1e-05, %v8213_v49  ;;  %v8214_v32 = vmul.f32 0.015625, %v8180_v6 }
0x1656   :  { %v8183_v55 = vpop.xlane.xlu1 %8182 }
0x1657   :  { %13254 = vrsqrt.f32 %v8229_v12  ;;  %v8230_v61 = vadd.f32 1e-05, %v8214_v32  ;;  %v8215_v3 = vmul.f32 0.015625, %v8183_v55 }
0x1659   :  { %13256 = vrsqrt.f32 %v8230_v61  ;;  %v8231_v56 = vadd.f32 1e-05, %v8215_v3 }
0x165b   :  { %13258 = vrsqrt.f32 %v8231_v56 }
0x165f   :  { %v13253_v50 = vpop.eup %13252 }
0x1660   :  { %v8260_v17 = vmul.f32 %v13253_v50, %v18084_v41 }
0x1661   :  { %v13255_v46 = vpop.eup %13254 }
0x1662   :  { %v8280_v18 = vmul.f32 %v18155_v35, %v8260_v17  ;;  %v8261_v47 = vmul.f32 %v13255_v46, %v18086_v0 }
0x1663   :  { %v13257_v38 = vpop.eup %13256 }
0x1664   :  { %v8300_v44 = vadd.f32 %v18162_v5, %v8280_v18  ;;  %v8281_v10 = vmul.f32 %v18155_v35, %v8261_v47  ;;  %v8262_v57 = vmul.f32 %v13257_v38, %v18091_v9 }
0x1665   :  { %v13259_v14 = vpop.eup %13258 }
0x1666   :  { %v18203_v2 = vadd.f32 %v8300_v44, %v20103_v27  ;;  %v8301_v36 = vadd.f32 %v18162_v5, %v8281_v10  ;;  %v8282_v41 = vmul.f32 %v18155_v35, %v8262_v57  ;;  %v8263_v31 = vmul.f32 %v13259_v14, %v18097_v15 }
0x1668   :  { %v8340_v0 = vsel %vm109_vm0, %v18203_v2, 0.0  ;;  %v18211_v8 = vadd.f32 %v8301_v36, %v20099_v23  ;;  %v8302_v58 = vadd.f32 %v18162_v5, %v8282_v41  ;;  %v8283_v9 = vmul.f32 %v18155_v35, %v8263_v31 }
0x1669   :  { %8341 = vadd.xlane.f32.xlu0 %v8340_v0  ;;  %v20104_v0 = vld [vmem:[#allocation34_spill] sm:$0xff] }
0x166a   :  { %v8343_v42 = vsel %vm109_vm0, %v18211_v8, 0.0  ;;  %v18218_v30 = vadd.f32 %v8302_v58, %v20101_v60  ;;  %v8303_v53 = vadd.f32 %v18162_v5, %v8283_v9 }
0x166b   :  { %8344 = vadd.xlane.f32.xlu1 %v8343_v42 }
0x166c   :  { %v8346_v15 = vsel %vm109_vm0, %v18218_v30, 0.0  ;;  %v18224_v11 = vadd.f32 %v8303_v53, %v20102_v24 }
0x166d   :  { %8347 = vadd.xlane.f32.xlu0 %v8346_v15 }
0x166e   :  { %v8349_v59 = vsel %vm109_vm0, %v18224_v11, 0.0 }
0x166f   :  { %8350 = vadd.xlane.f32.xlu1 %v8349_v59 }
0x168d   :  { %v8186_v37 = vpop.xlane.xlu0 %8185 }
0x168e   :  { %v8216_v22 = vmul.f32 0.015625, %v8186_v37 }
0x168f   :  { %v8189_v29 = vpop.xlane.xlu1 %8188 }
0x1690   :  { %v8232_v13 = vadd.f32 1e-05, %v8216_v22  ;;  %v8217_v19 = vmul.f32 0.015625, %v8189_v29 }
0x1691   :  { %v8192_v20 = vpop.xlane.xlu0 %8191 }
0x1692   :  { %13260 = vrsqrt.f32 %v8232_v13  ;;  %v8233_v62 = vadd.f32 1e-05, %v8217_v19  ;;  %v8218_v33 = vmul.f32 0.015625, %v8192_v20 }
0x1693   :  { %v8195_v25 = vpop.xlane.xlu1 %8194 }
0x1694   :  { %13262 = vrsqrt.f32 %v8233_v62  ;;  %v8234_v7 = vadd.f32 1e-05, %v8218_v33  ;;  %v8219_v45 = vmul.f32 0.015625, %v8195_v25 }
0x1696   :  { %13264 = vrsqrt.f32 %v8234_v7  ;;  %v8235_v49 = vadd.f32 1e-05, %v8219_v45 }
0x1698   :  { %13266 = vrsqrt.f32 %v8235_v49 }
0x1699   :  { %v8198_v6 = vpop.xlane.xlu0 %8197 }
0x169a   :  { %v8220_v12 = vmul.f32 0.015625, %v8198_v6 }
0x169b   :  { %v8201_v32 = vpop.xlane.xlu1 %8200 }
0x169c   :  { %v13261_v55 = vpop.eup %13260  ;;  %v8236_v61 = vadd.f32 1e-05, %v8220_v12  ;;  %v8221_v3 = vmul.f32 0.015625, %v8201_v32 }
0x169d   :  { %v8204_v56 = vpop.xlane.xlu0 %8203  ;;  %v8264_v50 = vmul.f32 %v13261_v55, %v18107_v28  ;;  %v20108_v55 = vld [vmem:[#allocation37_spill] sm:$0xff] }
0x169e   :  { %v13263_v17 = vpop.eup %13262  ;;  %13268 = vrsqrt.f32 %v8236_v61  ;;  %v8237_v46 = vadd.f32 1e-05, %v8221_v3  ;;  %v8222_v18 = vmul.f32 0.015625, %v8204_v56 }
0x169f   :  { %v8207_v47 = vpop.xlane.xlu1 %8206  ;;  %v8284_v38 = vmul.f32 %v18155_v35, %v8264_v50  ;;  %v8265_v44 = vmul.f32 %v13263_v17, %v18110_v48 }
0x16a0   :  { %v13265_v10 = vpop.eup %13264  ;;  %13270 = vrsqrt.f32 %v8237_v46  ;;  %v8238_v57 = vadd.f32 1e-05, %v8222_v18  ;;  %v8223_v14 = vmul.f32 0.015625, %v8207_v47 }
0x16a1   :  { %v8304_v27 = vadd.f32 %v18162_v5, %v8284_v38  ;;  %v8285_v36 = vmul.f32 %v18155_v35, %v8265_v44  ;;  %v8266_v41 = vmul.f32 %v13265_v10, %v18115_v51 }
0x16a2   :  { %v13267_v28 = vpop.eup %13266  ;;  %13272 = vrsqrt.f32 %v8238_v57  ;;  %v8239_v31 = vadd.f32 1e-05, %v8223_v14 }
0x16a3   :  { %v18235_v58 = vadd.f32 %v8304_v27, %v20104_v0  ;;  %v8305_v9 = vadd.f32 %v18162_v5, %v8285_v36  ;;  %v8286_v48 = vmul.f32 %v18155_v35, %v8266_v41  ;;  %v8267_v42 = vmul.f32 %v13267_v28, %v18121_v26 }
0x16a4   :  { %13274 = vrsqrt.f32 %v8239_v31 }
0x16a5   :  { %v8352_v53 = vsel %vm109_vm0, %v18235_v58, 0.0  ;;  %v18243_v15 = vadd.f32 %v8305_v9, %v20099_v23  ;;  %v8306_v51 = vadd.f32 %v18162_v5, %v8286_v48  ;;  %v8287_v59 = vmul.f32 %v18155_v35, %v8267_v42 }
0x16a6   :  { %8353 = vadd.xlane.f32.xlu0 %v8352_v53 }
0x16a7   :  { %20105 = vst [vmem:[#allocation186_spill] sm:$0xff] %v18243_v15  ;;  %v8355_v37 = vsel %vm109_vm0, %v18243_v15, 0.0  ;;  %v18250_v22 = vadd.f32 %v8306_v51, %v20101_v60  ;;  %v8307_v26 = vadd.f32 %v18162_v5, %v8287_v59 }
0x16a8   :  { %v13269_v29 = vpop.eup %13268  ;;  %8356 = vadd.xlane.f32.xlu1 %v8355_v37  ;;  %v12530_v37 = vld [vmem:[%s18999_s3 + $0xc] ss:$24 sps:$4 sm:$0xff]  }
0x16a9   :  { %20106 = vst [vmem:[#allocation165_spill] sm:$0xff] %v18250_v22  ;;  %v8358_v13 = vsel %vm109_vm0, %v18250_v22, 0.0  ;;  %v18256_v19 = vadd.f32 %v8307_v26, %v20102_v24  ;;  %v8268_v20 = vmul.f32 %v13269_v29, %v18131_v4  ;;  %v12528_v26 = vld [vmem:[%s18999_s3 + $0x8] ss:$24 sps:$4 sm:$0xff]   ;;  %8636 = vmatprep.subr.bf16.mxu0 %v12530_v37  ;;  %v12533_v29 = vld [vmem:[%s18999_s3 + $0x3c] ss:$24 sps:$4 sm:$0xff]  }
0x16aa   :  { %v13271_v62 = vpop.eup %13270  ;;  %8359 = vadd.xlane.f32.xlu0 %v8358_v13  ;;  %8637 = vmatpush1.bf16.msra.mxu0 %v12528_v26  ;;  %v12531_v13 = vld [vmem:[%s18999_s3 + $0x38] ss:$24 sps:$4 sm:$0xff]  }
0x16ab   :  { %20107 = vst [vmem:[#allocation179_spill] sm:$0xff] %v18256_v19  ;;  %v8361_v33 = vsel %vm109_vm0, %v18256_v19, 0.0  ;;  %v8288_v25 = vmul.f32 %v18155_v35, %v8268_v20  ;;  %v8269_v7 = vmul.f32 %v13271_v62, %v18134_v39  ;;  %8638 = vmatprep.subr.bf16.mxu0 %v12533_v29  ;;  %v12536_v62 = vld [vmem:[%s18999_s3 + $0x6c] ss:$24 sps:$4 sm:$0xff]  }
0x16ac   :  { %v13273_v45 = vpop.eup %13272  ;;  %8362 = vadd.xlane.f32.xlu1 %v8361_v33 }
0x16ad   :  { %v8308_v49 = vadd.f32 %v18162_v5, %v8288_v25  ;;  %v8289_v6 = vmul.f32 %v18155_v35, %v8269_v7  ;;  %v8270_v12 = vmul.f32 %v13273_v45, %v18139_v63  ;;  %v12534_v25 = vld [vmem:[%s18999_s3 + $0x68] ss:$24 sps:$4 sm:$0xff]  }
0x16ae   :  { %v13275_v32 = vpop.eup %13274  ;;  %8639 = vmatpush1.bf16.msra.mxu0 %v12531_v13 }
0x16af   :  { %v18267_v4 = vadd.f32 %v8308_v49, %v20108_v55  ;;  %v8309_v61 = vadd.f32 %v18162_v5, %v8289_v6  ;;  %v8290_v3 = vmul.f32 %v18155_v35, %v8270_v12  ;;  %v8271_v56 = vmul.f32 %v13275_v32, %v18145_v52  ;;  %8640 = vmatprep.subr.bf16.mxu0 %v12536_v62  ;;  %v12539_v12 = vld [vmem:[%s18999_s3 + $0x9c] ss:$24 sps:$4 sm:$0xff]  }
0x16b1   :  { %20109 = vst [vmem:[#allocation190_spill] sm:$0xff] %v18267_v4  ;;  %v8364_v39 = vsel %vm109_vm0, %v18267_v4, 0.0  ;;  %v18275_v50 = vadd.f32 %v8309_v61, %v20099_v23  ;;  %v8310_v17 = vadd.f32 %v18162_v5, %v8290_v3  ;;  %v8291_v63 = vmul.f32 %v18155_v35, %v8271_v56  ;;  %v12537_v3 = vld [vmem:[%s18999_s3 + $0x98] ss:$24 sps:$4 sm:$0xff]  }
0x16b2   :  { %8365 = vadd.xlane.f32.xlu0 %v8364_v39  ;;  %8641 = vmatpush1.bf16.msra.mxu0 %v12534_v25 }
0x16b3   :  { %20110 = vst [vmem:[#allocation164_spill] sm:$0xff] %v18275_v50  ;;  %v8367_v46 = vsel %vm109_vm0, %v18275_v50, 0.0  ;;  %v18282_v18 = vadd.f32 %v8310_v17, %v20101_v60  ;;  %v8311_v47 = vadd.f32 %v18162_v5, %v8291_v63  ;;  %8642 = vmatprep.subr.bf16.mxu0 %v12539_v12 }
0x16b4   :  { %8368 = vadd.xlane.f32.xlu1 %v8367_v46 }
0x16b5   :  { %20111 = vst [vmem:[#allocation181_spill] sm:$0xff] %v18282_v18  ;;  %v8370_v52 = vsel %vm109_vm0, %v18282_v18, 0.0  ;;  %v18288_v23 = vadd.f32 %v8311_v47, %v20102_v24 }
0x16b6   :  { %8371 = vadd.xlane.f32.xlu0 %v8370_v52  ;;  %8643 = vmatpush1.bf16.msra.mxu0 %v12537_v3 }
0x16b7   :  { %20112 = vst [vmem:[#allocation158_spill] sm:$0xff] %v18288_v23  ;;  %v8373_v35 = vsel %vm109_vm0, %v18288_v23, 0.0 }
0x16b8   :  { %8374 = vadd.xlane.f32.xlu1 %v8373_v35 }
0x16d0   :  { %v8330_v38 = vpop.xlane.xlu0 %8329 }
0x16d1   :  { %v8376_v44 = vmul.f32 0.015625, %v8330_v38 }
0x16d2   :  { %v8333_v10 = vpop.xlane.xlu1 %8332 }
0x16d3   :  { %v18293_v60 = vsub.f32 %v18171_v40, %v8376_v44  ;;  %v8377_v57 = vmul.f32 0.015625, %v8333_v10 }
0x16d4   :  { %v8336_v5 = vpop.xlane.xlu0 %8335 }
0x16d5   :  { %v18296_v14 = vsub.f32 %v18178_v43, %v8377_v57  ;;  %v8378_v27 = vmul.f32 0.015625, %v8336_v5  ;;  %v8408_v24 = vmul.f32 %v18293_v60, %v18293_v60 }
0x16d7   :  { %v18301_v36 = vsub.f32 %v18185_v21, %v8378_v27  ;;  %v8424_v41 = vsel %vm109_vm0, %v8408_v24, 0.0  ;;  %v8409_v28 = vmul.f32 %v18296_v14, %v18296_v14 }
0x16d8   :  { %8425 = vadd.xlane.f32.xlu0 %v8424_v41  ;;  %v8339_v31 = vpop.xlane.xlu1 %8338 }
0x16d9   :  { %v8379_v0 = vmul.f32 0.015625, %v8339_v31  ;;  %v8427_v9 = vsel %vm109_vm0, %v8409_v28, 0.0  ;;  %v8410_v48 = vmul.f32 %v18301_v36, %v18301_v36 }
0x16da   :  { %8428 = vadd.xlane.f32.xlu1 %v8427_v9 }
0x16db   :  { %v18310_v42 = vsub.f32 %v18192_v16, %v8379_v0  ;;  %v8430_v53 = vsel %vm109_vm0, %v8410_v48, 0.0 }
0x16dc   :  { %8431 = vadd.xlane.f32.xlu0 %v8430_v53 }
0x16dd   :  { %v8411_v51 = vmul.f32 %v18310_v42, %v18310_v42 }
0x16df   :  { %v8433_v59 = vsel %vm109_vm0, %v8411_v51, 0.0 }
0x16e0   :  { %8434 = vadd.xlane.f32.xlu1 %v8433_v59 }
0x16f6   :  { %v8342_v20 = vpop.xlane.xlu0 %8341 }
0x16f7   :  { %v8380_v33 = vmul.f32 0.015625, %v8342_v20 }
0x16f8   :  { %v8345_v7 = vpop.xlane.xlu1 %8344 }
0x16f9   :  { %v18335_v45 = vsub.f32 %v18203_v2, %v8380_v33  ;;  %v8381_v49 = vmul.f32 0.015625, %v8345_v7 }
0x16fa   :  { %v8348_v6 = vpop.xlane.xlu0 %8347 }
0x16fb   :  { %v18341_v32 = vsub.f32 %v18211_v8, %v8381_v49  ;;  %v8382_v55 = vmul.f32 0.015625, %v8348_v6  ;;  %v8412_v61 = vmul.f32 %v18335_v45, %v18335_v45 }
0x16fc   :  { %v8351_v56 = vpop.xlane.xlu1 %8350 }
0x16fd   :  { %v18349_v39 = vsub.f32 %v18218_v30, %v8382_v55  ;;  %v8383_v17 = vmul.f32 0.015625, %v8351_v56  ;;  %v8436_v63 = vsel %vm109_vm0, %v8412_v61, 0.0  ;;  %v8413_v46 = vmul.f32 %v18341_v32, %v18341_v32 }
0x16fe   :  { %8437 = vadd.xlane.f32.xlu0 %v8436_v63 }
0x16ff   :  { %v18355_v47 = vsub.f32 %v18224_v11, %v8383_v17  ;;  %v8439_v52 = vsel %vm109_vm0, %v8413_v46, 0.0  ;;  %v8414_v35 = vmul.f32 %v18349_v39, %v18349_v39 }
0x1700   :  { %8440 = vadd.xlane.f32.xlu1 %v8439_v52 }
0x1701   :  { %v8442_v38 = vsel %vm109_vm0, %v8414_v35, 0.0  ;;  %v8415_v44 = vmul.f32 %v18355_v47, %v18355_v47 }
0x1702   :  { %8443 = vadd.xlane.f32.xlu0 %v8442_v38 }
0x1703   :  { %v8445_v10 = vsel %vm109_vm0, %v8415_v44, 0.0 }
0x1704   :  { %8446 = vadd.xlane.f32.xlu1 %v8445_v10 }
0x1733   :  { %v8354_v57 = vpop.xlane.xlu0 %8353 }
0x1734   :  { %v8384_v5 = vmul.f32 0.015625, %v8354_v57 }
0x1735   :  { %v8357_v27 = vpop.xlane.xlu1 %8356 }
0x1736   :  { %v18365_v24 = vsub.f32 %v18235_v58, %v8384_v5  ;;  %v8385_v41 = vmul.f32 0.015625, %v8357_v27 }
0x1737   :  { %v8360_v28 = vpop.xlane.xlu0 %8359 }
0x1738   :  { %v18368_v31 = vsub.f32 %v18243_v15, %v8385_v41  ;;  %v8386_v0 = vmul.f32 0.015625, %v8360_v28  ;;  %v8416_v9 = vmul.f32 %v18365_v24, %v18365_v24 }
0x1739   :  { %v8363_v48 = vpop.xlane.xlu1 %8362 }
0x173a   :  { %v18373_v53 = vsub.f32 %v18250_v22, %v8386_v0  ;;  %v8387_v51 = vmul.f32 0.015625, %v8363_v48  ;;  %v8448_v59 = vsel %vm109_vm0, %v8416_v9, 0.0  ;;  %v8417_v37 = vmul.f32 %v18368_v31, %v18368_v31 }
0x173b   :  { %8449 = vadd.xlane.f32.xlu0 %v8448_v59 }
0x173c   :  { %v18379_v26 = vsub.f32 %v18256_v19, %v8387_v51  ;;  %v8451_v29 = vsel %vm109_vm0, %v8417_v37, 0.0  ;;  %v8418_v13 = vmul.f32 %v18373_v53, %v18373_v53 }
0x173d   :  { %8452 = vadd.xlane.f32.xlu1 %v8451_v29 }
0x173e   :  { %v8454_v20 = vsel %vm109_vm0, %v8418_v13, 0.0  ;;  %v8419_v62 = vmul.f32 %v18379_v26, %v18379_v26 }
0x173f   :  { %8455 = vadd.xlane.f32.xlu0 %v8454_v20  ;;  %v8366_v33 = vpop.xlane.xlu0 %8365 }
0x1740   :  { %v8388_v25 = vmul.f32 0.015625, %v8366_v33  ;;  %v8457_v7 = vsel %vm109_vm0, %v8419_v62, 0.0 }
0x1741   :  { %8458 = vadd.xlane.f32.xlu1 %v8457_v7  ;;  %v8369_v49 = vpop.xlane.xlu1 %8368 }
0x1742   :  { %v18389_v6 = vsub.f32 %v18267_v4, %v8388_v25  ;;  %v8389_v12 = vmul.f32 0.015625, %v8369_v49  ;;  %v20113_v25 = vsub.s32 1, %v20095_v34 }
0x1743   :  { %v8372_v55 = vpop.xlane.xlu0 %8371 }
0x1744   :  { %v18392_v61 = vsub.f32 %v18275_v50, %v8389_v12  ;;  %v8390_v3 = vmul.f32 0.015625, %v8372_v55  ;;  %v8420_v56 = vmul.f32 %v18389_v6, %v18389_v6  ;;  %v18415_v7 = vrot.slane %v18157_v54, %v20113_v25 }
0x1745   :  { %v8375_v17 = vpop.xlane.xlu1 %8374 }
0x1746   :  { %v18397_v63 = vsub.f32 %v18282_v18, %v8390_v3  ;;  %v8391_v46 = vmul.f32 0.015625, %v8375_v17  ;;  %v8460_v52 = vsel %vm109_vm0, %v8420_v56, 0.0  ;;  %v8421_v35 = vmul.f32 %v18392_v61, %v18392_v61 }
0x1747   :  { %8461 = vadd.xlane.f32.xlu0 %v8460_v52 }
0x1748   :  { %v18403_v38 = vsub.f32 %v18288_v23, %v8391_v46  ;;  %v8463_v44 = vsel %vm109_vm0, %v8421_v35, 0.0  ;;  %v8422_v10 = vmul.f32 %v18397_v63, %v18397_v63 }
0x1749   :  { %8464 = vadd.xlane.f32.xlu1 %v8463_v44 }
0x174a   :  { %v8466_v57 = vsel %vm109_vm0, %v8422_v10, 0.0  ;;  %v8423_v5 = vmul.f32 %v18403_v38, %v18403_v38 }
0x174b   :  { %8467 = vadd.xlane.f32.xlu0 %v8466_v57 }
0x174c   :  { %v8469_v27 = vsel %vm109_vm0, %v8423_v5, 0.0 }
0x174d   :  { %8470 = vadd.xlane.f32.xlu1 %v8469_v27 }
0x1765   :  { %v8426_v41 = vpop.xlane.xlu0 %8425 }
0x1766   :  { %v8472_v28 = vmul.f32 0.015625, %v8426_v41 }
0x1767   :  { %v8429_v0 = vpop.xlane.xlu1 %8428 }
0x1768   :  { %v8488_v9 = vadd.f32 1e-05, %v8472_v28  ;;  %v8473_v48 = vmul.f32 0.015625, %v8429_v0 }
0x1769   :  { %v8432_v51 = vpop.xlane.xlu0 %8431 }
0x176a   :  { %13276 = vrsqrt.f32 %v8488_v9  ;;  %v8489_v59 = vadd.f32 1e-05, %v8473_v48  ;;  %v8474_v37 = vmul.f32 0.015625, %v8432_v51 }
0x176c   :  { %13278 = vrsqrt.f32 %v8489_v59  ;;  %v8490_v29 = vadd.f32 1e-05, %v8474_v37 }
0x176d   :  { %v8435_v13 = vpop.xlane.xlu1 %8434 }
0x176e   :  { %v8475_v20 = vmul.f32 0.015625, %v8435_v13  ;;  %13280 = vrsqrt.f32 %v8490_v29 }
0x1770   :  { %v8491_v62 = vadd.f32 1e-05, %v8475_v20 }
0x1772   :  { %13282 = vrsqrt.f32 %v8491_v62 }
0x1774   :  { %v13277_v33 = vpop.eup %13276 }
0x1775   :  { %v8520_v49 = vmul.f32 %v13277_v33, %v18293_v60 }
0x1776   :  { %v13279_v12 = vpop.eup %13278 }
0x1777   :  { %v8521_v55 = vmul.f32 %v13279_v12, %v18296_v14  ;;  %v8540_v3 = vmul.f32 %v18415_v7, %v8520_v49 }
0x1778   :  { %v13281_v17 = vpop.eup %13280 }
0x1779   :  { %v8541_v56 = vmul.f32 %v18415_v7, %v8521_v55  ;;  %v8522_v35 = vmul.f32 %v13281_v17, %v18301_v36 }
0x177b   :  { %v8564_v46 = vpack.c.bf16 %v8541_v56, %v8540_v3  ;;  %v8542_v60 = vmul.f32 %v18415_v7, %v8522_v35 }
0x177c   :  { %v13283_v52 = vpop.eup %13282 }
0x177d   :  { %9934 = vmatmul.mubr.msk.bf16.vlgmr.msra.gmra.mrb[76].mxu0 %vm109_vm0, %v8564_v46  ;;  %v8523_v34 = vmul.f32 %v13283_v52, %v18310_v42 }
0x177e   :  { %8678 = vmatprep.mubr.bf16.mxu0 %v20060_v1 }
0x177f   :  { %v8543_v54 = vmul.f32 %v18415_v7, %v8523_v34 }
0x1781   :  { %v8565_v14 = vpack.c.bf16 %v8543_v54, %v8542_v60 }
0x1785   :  { %9935 = vmatmul.mubr.msk.bf16.gmra.mrb[80].mxu0 %vm109_vm0, %v8565_v14 }
0x1786   :  { %8688 = vmatprep.mubr.bf16.mxu0 %v20060_v1 }
0x178b   :  { %v8438_v44 = vpop.xlane.xlu0 %8437 }
0x178c   :  { %v8476_v10 = vmul.f32 0.015625, %v8438_v44 }
0x178d   :  { %v8441_v57 = vpop.xlane.xlu1 %8440 }
0x178e   :  { %v8492_v5 = vadd.f32 1e-05, %v8476_v10  ;;  %v8477_v27 = vmul.f32 0.015625, %v8441_v57 }
0x178f   :  { %v8444_v41 = vpop.xlane.xlu0 %8443 }
0x1790   :  { %13284 = vrsqrt.f32 %v8492_v5  ;;  %v8493_v36 = vadd.f32 1e-05, %v8477_v27  ;;  %v8478_v42 = vmul.f32 0.015625, %v8444_v41 }
0x1791   :  { %v8447_v28 = vpop.xlane.xlu1 %8446 }
0x1792   :  { %13286 = vrsqrt.f32 %v8493_v36  ;;  %v8494_v0 = vadd.f32 1e-05, %v8478_v42  ;;  %v8479_v9 = vmul.f32 0.015625, %v8447_v28 }
0x1794   :  { %v8495_v48 = vadd.f32 1e-05, %v8479_v9  ;;  %13288 = vrsqrt.f32 %v8494_v0 }
0x1796   :  { %13290 = vrsqrt.f32 %v8495_v48 }
0x179a   :  { %v13285_v51 = vpop.eup %13284 }
0x179b   :  { %v8524_v59 = vmul.f32 %v13285_v51, %v18335_v45 }
0x179c   :  { %v13287_v37 = vpop.eup %13286 }
0x179d   :  { %v8525_v29 = vmul.f32 %v13287_v37, %v18341_v32  ;;  %v8544_v20 = vmul.f32 %v18415_v7, %v8524_v59 }
0x179e   :  { %v13289_v13 = vpop.eup %13288 }
0x179f   :  { %v8545_v62 = vmul.f32 %v18415_v7, %v8525_v29  ;;  %v8526_v12 = vmul.f32 %v13289_v13, %v18349_v39 }
0x17a0   :  { %v13291_v33 = vpop.eup %13290 }
0x17a1   :  { %v8566_v25 = vpack.c.bf16 %v8545_v62, %v8544_v20  ;;  %v8527_v49 = vmul.f32 %v13291_v33, %v18355_v47  ;;  %v8546_v55 = vmul.f32 %v18415_v7, %v8526_v12 }
0x17a3   :  { %9936 = vmatmul.mubr.msk.bf16.gmra.mrb[84].mxu0 %vm109_vm0, %v8566_v25  ;;  %v8547_v45 = vmul.f32 %v18415_v7, %v8527_v49 }
0x17a4   :  { %8698 = vmatprep.mubr.bf16.mxu0 %v20060_v1 }
0x17a5   :  { %v8567_v32 = vpack.c.bf16 %v8547_v45, %v8546_v55 }
0x17ab   :  { %9937 = vmatmul.mubr.msk.bf16.gmra.mrb[88].mxu0 %vm109_vm0, %v8567_v32 }
0x17ac   :  { %8708 = vmatprep.mubr.bf16.mxu0 %v20060_v1 }
0x17c8   :  { %v8450_v3 = vpop.xlane.xlu0 %8449 }
0x17c9   :  { %v8480_v56 = vmul.f32 0.015625, %v8450_v3 }
0x17ca   :  { %v8453_v17 = vpop.xlane.xlu1 %8452 }
0x17cb   :  { %v8496_v46 = vadd.f32 1e-05, %v8480_v56  ;;  %v8481_v47 = vmul.f32 0.015625, %v8453_v17 }
0x17cc   :  { %v8456_v52 = vpop.xlane.xlu0 %8455 }
0x17cd   :  { %13292 = vrsqrt.f32 %v8496_v46  ;;  %v8497_v35 = vadd.f32 1e-05, %v8481_v47  ;;  %v8482_v39 = vmul.f32 0.015625, %v8456_v52 }
0x17ce   :  { %v8459_v34 = vpop.xlane.xlu1 %8458 }
0x17cf   :  { %13294 = vrsqrt.f32 %v8497_v35  ;;  %v8498_v54 = vadd.f32 1e-05, %v8482_v39  ;;  %v8483_v60 = vmul.f32 0.015625, %v8459_v34 }
0x17d1   :  { %v8499_v14 = vadd.f32 1e-05, %v8483_v60  ;;  %13296 = vrsqrt.f32 %v8498_v54 }
0x17d3   :  { %13298 = vrsqrt.f32 %v8499_v14 }
0x17d4   :  { %v8462_v44 = vpop.xlane.xlu0 %8461 }
0x17d5   :  { %v8484_v10 = vmul.f32 0.015625, %v8462_v44 }
0x17d6   :  { %v8465_v57 = vpop.xlane.xlu1 %8464 }
0x17d7   :  { %v13293_v5 = vpop.eup %13292  ;;  %v8500_v27 = vadd.f32 1e-05, %v8484_v10  ;;  %v8485_v41 = vmul.f32 0.015625, %v8465_v57 }
0x17d8   :  { %v8468_v36 = vpop.xlane.xlu0 %8467  ;;  %v8528_v42 = vmul.f32 %v13293_v5, %v18365_v24 }
0x17d9   :  { %v13295_v28 = vpop.eup %13294  ;;  %v8501_v0 = vadd.f32 1e-05, %v8485_v41  ;;  %13300 = vrsqrt.f32 %v8500_v27  ;;  %v8486_v51 = vmul.f32 0.015625, %v8468_v36 }
0x17da   :  { %v8471_v9 = vpop.xlane.xlu1 %8470  ;;  %v8529_v48 = vmul.f32 %v13295_v28, %v18368_v31  ;;  %v8548_v29 = vmul.f32 %v18415_v7, %v8528_v42 }
0x17db   :  { %13302 = vrsqrt.f32 %v8501_v0  ;;  %v8487_v59 = vmul.f32 0.015625, %v8471_v9  ;;  %v13297_v37 = vpop.eup %13296  ;;  %v8502_v24 = vadd.f32 1e-05, %v8486_v51 }
0x17dc   :  { %v8549_v13 = vmul.f32 %v18415_v7, %v8529_v48  ;;  %v8530_v49 = vmul.f32 %v13297_v37, %v18373_v53 }
0x17dd   :  { %v13299_v20 = vpop.eup %13298  ;;  %v8503_v62 = vadd.f32 1e-05, %v8487_v59 }
0x17de   :  { %v8568_v33 = vpack.c.bf16 %v8549_v13, %v8548_v29  ;;  %v8531_v25 = vmul.f32 %v13299_v20, %v18379_v26  ;;  %v8550_v45 = vmul.f32 %v18415_v7, %v8530_v49 }
0x17df   :  { %13304 = vrsqrt.f32 %v8503_v62 }
0x17e0   :  { %9938 = vmatmul.mubr.msk.bf16.gmra.mrb[92].mxu0 %vm109_vm0, %v8568_v33  ;;  %v8551_v31 = vmul.f32 %v18415_v7, %v8531_v25  ;;  %13306 = vrsqrt.f32 %v8502_v24 }
0x17e1   :  { %8718 = vmatprep.mubr.bf16.mxu0 %v20060_v1 }
0x17e2   :  { %v8569_v32 = vpack.c.bf16 %v8551_v31, %v8550_v45 }
0x17e3   :  { %v13301_v12 = vpop.eup %13300 }
0x17e4   :  { %v8532_v26 = vmul.f32 %v13301_v12, %v18389_v6 }
0x17e5   :  { %v13303_v55 = vpop.eup %13302 }
0x17e6   :  { %v8533_v3 = vmul.f32 %v13303_v55, %v18392_v61  ;;  %v8552_v17 = vmul.f32 %v18415_v7, %v8532_v26 }
0x17e8   :  { %9939 = vmatmul.mubr.msk.bf16.gmra.mrb[96].mxu0 %vm109_vm0, %v8569_v32  ;;  %v8553_v53 = vmul.f32 %v18415_v7, %v8533_v3 }
0x17e9   :  { %8728 = vmatprep.mubr.bf16.mxu0 %v20060_v1  ;;  %v13305_v56 = vpop.eup %13304 }
0x17ea   :  { %v13307_v46 = vpop.eup %13306  ;;  %v8570_v47 = vpack.c.bf16 %v8553_v53, %v8552_v17  ;;  %v8535_v52 = vmul.f32 %v13305_v56, %v18403_v38 }
0x17eb   :  { %v8534_v35 = vmul.f32 %v13307_v46, %v18397_v63 }
0x17ec   :  { %v8555_v61 = vmul.f32 %v18415_v7, %v8535_v52 }
0x17ed   :  { %v8554_v6 = vmul.f32 %v18415_v7, %v8534_v35 }
0x17ef   :  { %v8571_v39 = vpack.c.bf16 %v8555_v61, %v8554_v6 }
0x17f0   :  { %9940 = vmatmul.mubr.msk.bf16.gmra.mrb[100].mxu0 %vm109_vm0, %v8570_v47 }
0x17f1   :  { %8738 = vmatprep.mubr.bf16.mxu0 %v20060_v1 }
0x17f8   :  { %9941 = vmatmul.mubr.msk.bf16.gmra.mrb[104].mxu0 %vm109_vm0, %v8571_v39 }
0x1850   :  { %v18464_v34 = vpop.f32.mrb[76].mxu0 }
0x1851   :  { %v18466_v54 = vpop.f32.mrb[77].mxu0 }
0x1852   :  { %v18468_v60 = vpop.f32.mrb[78].mxu0 }
0x1853   :  { %v18470_v38 = vpop.f32.mrb[79].mxu0 }
0x1858   :  { %v8680_v14 = vpop.f32.mrb[80].mxu0 }
0x1859   :  { %v8785_v44 = vmul.f32 0.044715, %v8680_v14  ;;  %v8682_v63 = vpop.f32.mrb[81].mxu0  ;;  %v8753_v49 = vmul.f32 0.5, %v8680_v14 }
0x185a   :  { %v8786_v10 = vmul.f32 0.044715, %v8682_v63  ;;  %v8684_v1 = vpop.f32.mrb[82].mxu0  ;;  %v8754_v45 = vmul.f32 0.5, %v8682_v63 }
0x185b   :  { %v8817_v57 = vmul.f32 %v8785_v44, %v8680_v14  ;;  %v8787_v5 = vmul.f32 0.044715, %v8684_v1  ;;  %v8686_v27 = vpop.f32.mrb[83].mxu0  ;;  %v8755_v26 = vmul.f32 0.5, %v8684_v1 }
0x185c   :  { %v8818_v7 = vmul.f32 %v8786_v10, %v8682_v63  ;;  %v8788_v41 = vmul.f32 0.044715, %v8686_v27  ;;  %v8756_v17 = vmul.f32 0.5, %v8686_v27 }
0x185d   :  { %v8849_v36 = vmul.f32 %v8817_v57, %v8680_v14  ;;  %v8819_v42 = vmul.f32 %v8787_v5, %v8684_v1 }
0x185e   :  { %v8850_v28 = vmul.f32 %v8818_v7, %v8682_v63  ;;  %v8820_v0 = vmul.f32 %v8788_v41, %v8686_v27 }
0x185f   :  { %v8881_v9 = vadd.f32 %v8849_v36, %v8680_v14  ;;  %v8851_v48 = vmul.f32 %v8819_v42, %v8684_v1 }
0x1860   :  { %v8882_v51 = vadd.f32 %v8850_v28, %v8682_v63  ;;  %v8852_v59 = vmul.f32 %v8820_v0, %v8686_v27 }
0x1861   :  { %v8913_v37 = vmul.f32 0.7978846, %v8881_v9  ;;  %v8883_v29 = vadd.f32 %v8851_v48, %v8684_v1 }
0x1862   :  { %v8914_v13 = vmul.f32 0.7978846, %v8882_v51  ;;  %v8884_v20 = vadd.f32 %v8852_v59, %v8686_v27 }
0x1863   :  { %13308 = vtanh.f32 %v8913_v37  ;;  %v8915_v62 = vmul.f32 0.7978846, %v8883_v29 }
0x1864   :  { %13310 = vtanh.f32 %v8914_v13  ;;  %v8916_v33 = vmul.f32 0.7978846, %v8884_v20 }
0x1865   :  { %13312 = vtanh.f32 %v8915_v62 }
0x1866   :  { %13314 = vtanh.f32 %v8916_v33 }
0x186d   :  { %v13309_v25 = vpop.eup %13308 }
0x186e   :  { %v13311_v24 = vpop.eup %13310  ;;  %v8977_v31 = vadd.f32 1.0, %v13309_v25 }
0x186f   :  { %v13313_v12 = vpop.eup %13312  ;;  %v8978_v55 = vadd.f32 1.0, %v13311_v24 }
0x1870   :  { %v13315_v32 = vpop.eup %13314  ;;  %v18472_v3 = vmul.f32 %v8977_v31, %v8753_v49  ;;  %v8979_v53 = vadd.f32 1.0, %v13313_v12 }
0x1871   :  { %v18474_v56 = vmul.f32 %v8978_v55, %v8754_v45  ;;  %v8980_v46 = vadd.f32 1.0, %v13315_v32 }
0x1872   :  { %v18476_v47 = vmul.f32 %v8979_v53, %v8755_v26 }
0x1873   :  { %v9043_v52 = vadd.f32 %v18474_v56, %v18472_v3  ;;  %v18480_v35 = vmul.f32 %v8980_v46, %v8756_v17 }
0x1875   :  { %9044 = vadd.xlane.f32.xlu0 %v9043_v52  ;;  %v9046_v61 = vadd.f32 %v18480_v35, %v18476_v47 }
0x1876   :  { %v8690_v6 = vpop.f32.mrb[84].mxu0 }
0x1877   :  { %v8789_v39 = vmul.f32 0.044715, %v8690_v6  ;;  %9047 = vadd.xlane.f32.xlu1 %v9046_v61  ;;  %v8692_v14 = vpop.f32.mrb[85].mxu0 }
0x1878   :  { %v8790_v44 = vmul.f32 0.044715, %v8692_v14  ;;  %v8694_v63 = vpop.f32.mrb[86].mxu0 }
0x1879   :  { %v8821_v10 = vmul.f32 %v8789_v39, %v8690_v6  ;;  %v8791_v1 = vmul.f32 0.044715, %v8694_v63  ;;  %v8696_v57 = vpop.f32.mrb[87].mxu0 }
0x187a   :  { %v8822_v5 = vmul.f32 %v8790_v44, %v8692_v14  ;;  %v8792_v27 = vmul.f32 0.044715, %v8696_v57 }
0x187b   :  { %v8853_v7 = vmul.f32 %v8821_v10, %v8690_v6  ;;  %v8823_v41 = vmul.f32 %v8791_v1, %v8694_v63 }
0x187c   :  { %v8854_v36 = vmul.f32 %v8822_v5, %v8692_v14  ;;  %v8824_v42 = vmul.f32 %v8792_v27, %v8696_v57 }
0x187d   :  { %v8885_v28 = vadd.f32 %v8853_v7, %v8690_v6  ;;  %v8855_v0 = vmul.f32 %v8823_v41, %v8694_v63 }
0x187e   :  { %v8886_v9 = vadd.f32 %v8854_v36, %v8692_v14  ;;  %v8856_v48 = vmul.f32 %v8824_v42, %v8696_v57  ;;  %v8700_v51 = vpop.f32.mrb[88].mxu0 }
0x187f   :  { %v8917_v59 = vmul.f32 0.7978846, %v8885_v28  ;;  %v8887_v37 = vadd.f32 %v8855_v0, %v8694_v63  ;;  %v8793_v29 = vmul.f32 0.044715, %v8700_v51  ;;  %v8702_v13 = vpop.f32.mrb[89].mxu0  ;;  %v8757_v28 = vmul.f32 0.5, %v8690_v6 }
0x1880   :  { %v8918_v20 = vmul.f32 0.7978846, %v8886_v9  ;;  %v8888_v62 = vadd.f32 %v8856_v48, %v8696_v57  ;;  %v8794_v33 = vmul.f32 0.044715, %v8702_v13  ;;  %v8704_v25 = vpop.f32.mrb[90].mxu0  ;;  %v8758_v48 = vmul.f32 0.5, %v8692_v14 }
0x1881   :  { %13316 = vtanh.f32 %v8917_v59  ;;  %v8919_v24 = vmul.f32 0.7978846, %v8887_v37  ;;  %v8825_v49 = vmul.f32 %v8793_v29, %v8700_v51  ;;  %v8795_v31 = vmul.f32 0.044715, %v8704_v25  ;;  %v8706_v12 = vpop.f32.mrb[91].mxu0 }
0x1882   :  { %13318 = vtanh.f32 %v8918_v20  ;;  %v8920_v45 = vmul.f32 0.7978846, %v8888_v62  ;;  %v8826_v55 = vmul.f32 %v8794_v33, %v8702_v13  ;;  %v8796_v32 = vmul.f32 0.044715, %v8706_v12 }
0x1883   :  { %13320 = vtanh.f32 %v8919_v24  ;;  %v8857_v26 = vmul.f32 %v8825_v49, %v8700_v51  ;;  %v8827_v53 = vmul.f32 %v8795_v31, %v8704_v25  ;;  %v8759_v20 = vmul.f32 0.5, %v8694_v63 }
0x1884   :  { %13322 = vtanh.f32 %v8920_v45  ;;  %v8858_v17 = vmul.f32 %v8826_v55, %v8702_v13  ;;  %v8828_v46 = vmul.f32 %v8796_v32, %v8706_v12  ;;  %v8760_v24 = vmul.f32 0.5, %v8696_v57 }
0x1885   :  { %v8889_v52 = vadd.f32 %v8857_v26, %v8700_v51  ;;  %v8859_v61 = vmul.f32 %v8827_v53, %v8704_v25  ;;  %v8761_v26 = vmul.f32 0.5, %v8700_v51 }
0x1886   :  { %v8890_v39 = vadd.f32 %v8858_v17, %v8702_v13  ;;  %v8860_v44 = vmul.f32 %v8828_v46, %v8706_v12  ;;  %v8762_v17 = vmul.f32 0.5, %v8702_v13 }
0x1887   :  { %v8921_v10 = vmul.f32 0.7978846, %v8889_v52  ;;  %v8891_v1 = vadd.f32 %v8859_v61, %v8704_v25  ;;  %v8763_v61 = vmul.f32 0.5, %v8704_v25  ;;  %v8782_v25 = vmul.f32 0.044715, %v18466_v54 }
0x1888   :  { %v8922_v5 = vmul.f32 0.7978846, %v8890_v39  ;;  %v8892_v27 = vadd.f32 %v8860_v44, %v8706_v12 }
0x1889   :  { %13324 = vtanh.f32 %v8921_v10  ;;  %v8923_v7 = vmul.f32 0.7978846, %v8891_v1  ;;  %v8764_v10 = vmul.f32 0.5, %v8706_v12  ;;  %v8784_v12 = vmul.f32 0.044715, %v18470_v38 }
0x188a   :  { %13326 = vtanh.f32 %v8922_v5  ;;  %v8924_v41 = vmul.f32 0.7978846, %v8892_v27 }
0x188b   :  { %v13317_v36 = vpop.eup %13316  ;;  %13328 = vtanh.f32 %v8923_v7  ;;  %v8781_v7 = vmul.f32 0.044715, %v18464_v34 }
0x188c   :  { %v13319_v42 = vpop.eup %13318  ;;  %13330 = vtanh.f32 %v8924_v41  ;;  %v8981_v0 = vadd.f32 1.0, %v13317_v36  ;;  %v8783_v41 = vmul.f32 0.044715, %v18468_v60 }
0x188d   :  { %v13321_v9 = vpop.eup %13320  ;;  %v8982_v59 = vadd.f32 1.0, %v13319_v42  ;;  %v8813_v36 = vmul.f32 %v8781_v7, %v18464_v34  ;;  %v8814_v42 = vmul.f32 %v8782_v25, %v18466_v54 }
0x188e   :  { %v13323_v37 = vpop.eup %13322  ;;  %v18484_v29 = vmul.f32 %v8981_v0, %v8757_v28  ;;  %v8983_v62 = vadd.f32 1.0, %v13321_v9  ;;  %v8815_v28 = vmul.f32 %v8783_v41, %v18468_v60  ;;  %v8816_v0 = vmul.f32 %v8784_v12, %v18470_v38 }
0x188f   :  { %v18486_v33 = vmul.f32 %v8982_v59, %v8758_v48  ;;  %v8984_v49 = vadd.f32 1.0, %v13323_v37  ;;  %v8845_v9 = vmul.f32 %v8813_v36, %v18464_v34  ;;  %v8846_v48 = vmul.f32 %v8814_v42, %v18466_v54 }
0x1890   :  { %v18488_v31 = vmul.f32 %v8983_v62, %v8759_v20  ;;  %v8847_v59 = vmul.f32 %v8815_v28, %v18468_v60  ;;  %v8848_v37 = vmul.f32 %v8816_v0, %v18470_v38 }
0x1891   :  { %v9049_v45 = vadd.f32 %v18486_v33, %v18484_v29  ;;  %v18492_v55 = vmul.f32 %v8984_v49, %v8760_v24  ;;  %v8877_v20 = vadd.f32 %v8845_v9, %v18464_v34  ;;  %v8878_v62 = vadd.f32 %v8846_v48, %v18466_v54 }
0x1892   :  { %v8879_v49 = vadd.f32 %v8847_v59, %v18468_v60 }
0x1893   :  { %v13325_v6 = vpop.eup %13324  ;;  %9050 = vadd.xlane.f32.xlu0 %v9049_v45  ;;  %v9052_v14 = vadd.f32 %v18492_v55, %v18488_v31 }
0x1894   :  { %v13327_v32 = vpop.eup %13326  ;;  %v8985_v63 = vadd.f32 1.0, %v13325_v6 }
0x1895   :  { %v13329_v53 = vpop.eup %13328  ;;  %9053 = vadd.xlane.f32.xlu1 %v9052_v14  ;;  %v8986_v57 = vadd.f32 1.0, %v13327_v32  ;;  %v8880_v14 = vadd.f32 %v8848_v37, %v18470_v38 }
0x1896   :  { %v13331_v46 = vpop.eup %13330  ;;  %v18496_v52 = vmul.f32 %v8985_v63, %v8761_v26  ;;  %v8987_v39 = vadd.f32 1.0, %v13329_v53  ;;  %v8909_v63 = vmul.f32 0.7978846, %v8877_v20 }
0x1897   :  { %v18498_v44 = vmul.f32 %v8986_v57, %v8762_v17  ;;  %v8988_v1 = vadd.f32 1.0, %v13331_v46  ;;  %v8910_v46 = vmul.f32 0.7978846, %v8878_v62 }
0x1898   :  { %v18500_v5 = vmul.f32 %v8987_v39, %v8763_v61  ;;  %13332 = vtanh.f32 %v8909_v63 }
0x1899   :  { %v9055_v27 = vadd.f32 %v18498_v44, %v18496_v52  ;;  %v18504_v51 = vmul.f32 %v8988_v1, %v8764_v10  ;;  %v8911_v10 = vmul.f32 0.7978846, %v8879_v49  ;;  %13334 = vtanh.f32 %v8910_v46 }
0x189b   :  { %9056 = vadd.xlane.f32.xlu0 %v9055_v27  ;;  %v9058_v13 = vadd.f32 %v18504_v51, %v18500_v5  ;;  %13336 = vtanh.f32 %v8911_v10 }
0x189d   :  { %9059 = vadd.xlane.f32.xlu1 %v9058_v13  ;;  %v8912_v13 = vmul.f32 0.7978846, %v8880_v14 }
0x189f   :  { %13338 = vtanh.f32 %v8912_v13 }
0x18b3   :  { %v8710_v24 = vpop.f32.mrb[92].mxu0 }
0x18b4   :  { %v8797_v45 = vmul.f32 0.044715, %v8710_v24  ;;  %v8712_v6 = vpop.f32.mrb[93].mxu0 }
0x18b5   :  { %v8798_v32 = vmul.f32 0.044715, %v8712_v6  ;;  %v8714_v26 = vpop.f32.mrb[94].mxu0 }
0x18b6   :  { %v8829_v53 = vmul.f32 %v8797_v45, %v8710_v24  ;;  %v8799_v17 = vmul.f32 0.044715, %v8714_v26  ;;  %v8716_v57 = vpop.f32.mrb[95].mxu0 }
0x18b7   :  { %v8830_v61 = vmul.f32 %v8798_v32, %v8712_v6  ;;  %v8800_v39 = vmul.f32 0.044715, %v8716_v57 }
0x18b8   :  { %v8861_v1 = vmul.f32 %v8829_v53, %v8710_v24  ;;  %v8831_v27 = vmul.f32 %v8799_v17, %v8714_v26 }
0x18b9   :  { %v8862_v7 = vmul.f32 %v8830_v61, %v8712_v6  ;;  %v8832_v25 = vmul.f32 %v8800_v39, %v8716_v57 }
0x18ba   :  { %v8893_v41 = vadd.f32 %v8861_v1, %v8710_v24  ;;  %v8863_v12 = vmul.f32 %v8831_v27, %v8714_v26 }
0x18bb   :  { %v8894_v36 = vadd.f32 %v8862_v7, %v8712_v6  ;;  %v8864_v42 = vmul.f32 %v8832_v25, %v8716_v57  ;;  %v8720_v28 = vpop.f32.mrb[96].mxu0  ;;  %v8765_v7 = vmul.f32 0.5, %v8710_v24  ;;  %v8766_v25 = vmul.f32 0.5, %v8712_v6 }
0x18bc   :  { %v8925_v0 = vmul.f32 0.7978846, %v8893_v41  ;;  %v8895_v9 = vadd.f32 %v8863_v12, %v8714_v26  ;;  %v8801_v48 = vmul.f32 0.044715, %v8720_v28  ;;  %v8722_v59 = vpop.f32.mrb[97].mxu0 }
0x18bd   :  { %v8926_v37 = vmul.f32 0.7978846, %v8894_v36  ;;  %v8896_v20 = vadd.f32 %v8864_v42, %v8716_v57  ;;  %v8802_v62 = vmul.f32 0.044715, %v8722_v59  ;;  %v8724_v49 = vpop.f32.mrb[98].mxu0  ;;  %v18526_v42 = vmul.f32 0.5, %v8714_v26 }
0x18be   :  { %13340 = vtanh.f32 %v8925_v0  ;;  %v8927_v45 = vmul.f32 0.7978846, %v8895_v9  ;;  %v8833_v14 = vmul.f32 %v8801_v48, %v8720_v28  ;;  %v8803_v32 = vmul.f32 0.044715, %v8724_v49  ;;  %v8726_v63 = vpop.f32.mrb[99].mxu0  ;;  %v18530_v9 = vpop.eup %13332 }
0x18bf   :  { %13342 = vtanh.f32 %v8926_v37  ;;  %v8928_v53 = vmul.f32 0.7978846, %v8896_v20  ;;  %v8834_v17 = vmul.f32 %v8802_v62, %v8722_v59  ;;  %v8804_v46 = vmul.f32 0.044715, %v8726_v63  ;;  %v18537_v24 = vpop.eup %13334 }
0x18c0   :  { %13344 = vtanh.f32 %v8927_v45  ;;  %v8865_v61 = vmul.f32 %v8833_v14, %v8720_v28  ;;  %v8835_v39 = vmul.f32 %v8803_v32, %v8724_v49  ;;  %v18528_v0 = vmul.f32 0.5, %v8716_v57 }
0x18c1   :  { %13346 = vtanh.f32 %v8928_v53  ;;  %v8866_v10 = vmul.f32 %v8834_v17, %v8722_v59  ;;  %v8836_v1 = vmul.f32 %v8804_v46, %v8726_v63  ;;  %v18535_v45 = vmul.f32 0.5, %v8720_v28  ;;  %v18544_v53 = vpop.eup %13336 }
0x18c2   :  { %v8897_v27 = vadd.f32 %v8865_v61, %v8720_v28  ;;  %v8867_v13 = vmul.f32 %v8835_v39, %v8724_v49  ;;  %v18542_v57 = vmul.f32 0.5, %v8722_v59  ;;  %v18550_v39 = vpop.eup %13338 }
0x18c3   :  { %v8898_v41 = vadd.f32 %v8866_v10, %v8722_v59  ;;  %v8868_v12 = vmul.f32 %v8836_v1, %v8726_v63  ;;  %v18524_v36 = vpop.f32.mrb[100].mxu0 }
0x18c4   :  { %v8929_v48 = vmul.f32 0.7978846, %v8897_v27  ;;  %v8899_v37 = vadd.f32 %v8867_v13, %v8724_v49  ;;  %v8805_v20 = vmul.f32 0.044715, %v18524_v36  ;;  %v18533_v62 = vpop.f32.mrb[101].mxu0 }
0x18c5   :  { %v8930_v6 = vmul.f32 0.7978846, %v8898_v41  ;;  %v8900_v14 = vadd.f32 %v8868_v12, %v8726_v63  ;;  %v8806_v32 = vmul.f32 0.044715, %v18533_v62  ;;  %v18540_v26 = vpop.f32.mrb[102].mxu0  ;;  %v18556_v12 = vmul.f32 0.5, %v8724_v49 }
0x18c6   :  { %13348 = vtanh.f32 %v8929_v48  ;;  %v8931_v17 = vmul.f32 0.7978846, %v8899_v37  ;;  %v8837_v46 = vmul.f32 %v8805_v20, %v18524_v36  ;;  %v8807_v61 = vmul.f32 0.044715, %v18540_v26  ;;  %v18548_v28 = vpop.f32.mrb[103].mxu0 }
0x18c7   :  { %13350 = vtanh.f32 %v8930_v6  ;;  %v8932_v10 = vmul.f32 0.7978846, %v8900_v14  ;;  %v8838_v1 = vmul.f32 %v8806_v32, %v18533_v62  ;;  %v8808_v27 = vmul.f32 0.044715, %v18548_v28 }
0x18c8   :  { %v13341_v59 = vpop.eup %13340  ;;  %13352 = vtanh.f32 %v8931_v17  ;;  %v8869_v13 = vmul.f32 %v8837_v46, %v18524_v36  ;;  %v8839_v41 = vmul.f32 %v8807_v61, %v18540_v26  ;;  %v8772_v17 = vmul.f32 0.5, %v8726_v63 }
0x18c9   :  { %v13343_v48 = vpop.eup %13342  ;;  %13354 = vtanh.f32 %v8932_v10  ;;  %v8870_v37 = vmul.f32 %v8838_v1, %v18533_v62  ;;  %v8840_v20 = vmul.f32 %v8808_v27, %v18548_v28  ;;  %v8989_v6 = vadd.f32 1.0, %v13341_v59 }
0x18ca   :  { %v13345_v14 = vpop.eup %13344  ;;  %v8901_v32 = vadd.f32 %v8869_v13, %v18524_v36  ;;  %v8871_v23 = vmul.f32 %v8839_v41, %v18540_v26  ;;  %v8990_v18 = vadd.f32 1.0, %v13343_v48 }
0x18cb   :  { %v13347_v43 = vpop.eup %13346  ;;  %v8902_v46 = vadd.f32 %v8870_v37, %v18533_v62  ;;  %v8872_v49 = vmul.f32 %v8840_v20, %v18548_v28  ;;  %v18564_v61 = vpop.f32.mrb[104].mxu0  ;;  %v18566_v10 = vmul.f32 %v8989_v6, %v8765_v7  ;;  %v8991_v1 = vadd.f32 1.0, %v13345_v14 }
0x18cc   :  { %v8933_v50 = vmul.f32 0.7978846, %v8901_v32  ;;  %v8903_v27 = vadd.f32 %v8871_v23, %v18540_v26  ;;  %v8809_v59 = vmul.f32 0.044715, %v18564_v61  ;;  %v18570_v13 = vpop.f32.mrb[105].mxu0  ;;  %v18572_v41 = vmul.f32 %v8990_v18, %v8766_v25 }
0x18cd   :  { %v8934_v63 = vmul.f32 0.7978846, %v8902_v46  ;;  %v8904_v48 = vadd.f32 %v8872_v49, %v18548_v28  ;;  %v8810_v37 = vmul.f32 0.044715, %v18570_v13  ;;  %v18576_v20 = vpop.f32.mrb[106].mxu0  ;;  %v8992_v40 = vadd.f32 1.0, %v13347_v43 }
0x18ce   :  { %13356 = vtanh.f32 %v8933_v50  ;;  %v8935_v7 = vmul.f32 0.7978846, %v8903_v27  ;;  %v8841_v6 = vmul.f32 %v8809_v59, %v18564_v61  ;;  %v8811_v23 = vmul.f32 0.044715, %v18576_v20  ;;  %v18580_v14 = vpop.f32.mrb[107].mxu0 }
0x18cf   :  { %13358 = vtanh.f32 %v8934_v63  ;;  %v8936_v32 = vmul.f32 0.7978846, %v8904_v48  ;;  %v8842_v18 = vmul.f32 %v8810_v37, %v18570_v13  ;;  %v8812_v25 = vmul.f32 0.044715, %v18580_v14 }
0x18d0   :  { %v13349_v46 = vpop.eup %13348  ;;  %13360 = vtanh.f32 %v8935_v7  ;;  %v8873_v49 = vmul.f32 %v8841_v6, %v18564_v61  ;;  %v8843_v43 = vmul.f32 %v8811_v23, %v18576_v20  ;;  %v9061_v50 = vadd.f32 %v18572_v41, %v18566_v10 }
0x18d1   :  { %v13351_v27 = vpop.eup %13350  ;;  %13362 = vtanh.f32 %v8936_v32  ;;  %v8874_v59 = vmul.f32 %v8842_v18, %v18570_v13  ;;  %v8844_v63 = vmul.f32 %v8812_v25, %v18580_v14  ;;  %v18591_v48 = vmul.f32 %v8991_v1, %v18526_v42 }
0x18d2   :  { %v13353_v37 = vpop.eup %13352  ;;  %v8905_v4 = vadd.f32 %v8873_v49, %v18564_v61  ;;  %v8875_v7 = vmul.f32 %v8843_v43, %v18576_v20  ;;  %9062 = vadd.xlane.f32.xlu0 %v9061_v50  ;;  %v18596_v6 = vmul.f32 %v8992_v40, %v18528_v0  ;;  %v8993_v23 = vadd.f32 1.0, %v13349_v46 }
0x18d3   :  { %v13355_v19 = vpop.eup %13354  ;;  %v8906_v32 = vadd.f32 %v8874_v59, %v18570_v13  ;;  %v8876_v18 = vmul.f32 %v8844_v63, %v18580_v14  ;;  %v8994_v22 = vadd.f32 1.0, %v13351_v27  ;;  %v8995_v25 = vadd.f32 1.0, %v13353_v37 }
0x18d4   :  { %v8937_v15 = vmul.f32 0.7978846, %v8905_v4  ;;  %v8907_v42 = vadd.f32 %v8875_v7, %v18576_v20  ;;  %v9064_v1 = vadd.f32 %v18596_v6, %v18591_v48  ;;  %v18604_v49 = vmul.f32 %v8993_v23, %v18535_v45 }
0x18d5   :  { %v8938_v43 = vmul.f32 0.7978846, %v8906_v32  ;;  %v8908_v40 = vadd.f32 %v8876_v18, %v18580_v14  ;;  %v18608_v0 = vmul.f32 %v8994_v22, %v18542_v57  ;;  %v8996_v46 = vadd.f32 1.0, %v13355_v19 }
0x18d6   :  { %13364 = vtanh.f32 %v8937_v15  ;;  %v8939_v50 = vmul.f32 0.7978846, %v8907_v42  ;;  %9065 = vadd.xlane.f32.xlu1 %v9064_v1  ;;  %v18611_v4 = vmul.f32 %v8995_v25, %v18556_v12  ;;  %v8749_v37 = vmul.f32 0.5, %v18464_v34 }
0x18d7   :  { %13366 = vtanh.f32 %v8938_v43  ;;  %v8940_v27 = vmul.f32 0.7978846, %v8908_v40  ;;  %v9067_v59 = vadd.f32 %v18608_v0, %v18604_v49  ;;  %v18615_v45 = vmul.f32 %v8996_v46, %v8772_v17 }
0x18d8   :  { %v13357_v63 = vpop.eup %13356  ;;  %13368 = vtanh.f32 %v8939_v50  ;;  %v8750_v22 = vmul.f32 0.5, %v18466_v54  ;;  %v8773_v57 = vmul.f32 0.5, %v18524_v36  ;;  %v8774_v23 = vmul.f32 0.5, %v18533_v62 }
0x18d9   :  { %v13359_v19 = vpop.eup %13358  ;;  %13370 = vtanh.f32 %v8940_v27  ;;  %9068 = vadd.xlane.f32.xlu0 %v9067_v59  ;;  %v9070_v15 = vadd.f32 %v18615_v45, %v18611_v4  ;;  %v8997_v12 = vadd.f32 1.0, %v13357_v63  ;;  %v8973_v32 = vadd.f32 1.0, %v18530_v9 }
0x18da   :  { %v13361_v7 = vpop.eup %13360  ;;  %v8998_v17 = vadd.f32 1.0, %v13359_v19  ;;  %v8974_v18 = vadd.f32 1.0, %v18537_v24  ;;  %v8775_v25 = vmul.f32 0.5, %v18540_v26  ;;  %v8975_v1 = vadd.f32 1.0, %v18544_v53 }
0x18db   :  { %v13363_v34 = vpop.eup %13362  ;;  %9071 = vadd.xlane.f32.xlu1 %v9070_v15  ;;  %v18625_v54 = vmul.f32 %v8997_v12, %v8773_v57  ;;  %v8999_v42 = vadd.f32 1.0, %v13361_v7  ;;  %v8776_v36 = vmul.f32 0.5, %v18548_v28  ;;  %v8976_v62 = vadd.f32 1.0, %v18550_v39 }
0x18dc   :  { %v18629_v43 = vmul.f32 %v8998_v17, %v8774_v23  ;;  %v9000_v40 = vadd.f32 1.0, %v13363_v34  ;;  %v8751_v9 = vmul.f32 0.5, %v18468_v60  ;;  %v8752_v24 = vmul.f32 0.5, %v18470_v38 }
0x18dd   :  { %v18633_v46 = vmul.f32 %v8999_v42, %v8775_v25  ;;  %v18641_v27 = vmul.f32 %v8973_v32, %v8749_v37  ;;  %v18643_v53 = vmul.f32 %v8974_v18, %v8750_v22  ;;  %v8777_v38 = vmul.f32 0.5, %v18564_v61 }
0x18de   :  { %v9073_v50 = vadd.f32 %v18629_v43, %v18625_v54  ;;  %v18639_v26 = vmul.f32 %v9000_v40, %v8776_v36  ;;  %v18647_v39 = vmul.f32 %v8975_v1, %v8751_v9  ;;  %v18649_v63 = vmul.f32 %v8976_v62, %v8752_v24  ;;  %v12540_v36 = vld [vmem:[%s19000_s4 + $0x60] sm:$0xff]   ;;  %v12542_v40 = vld [vmem:[%s19000_s4 + $0x68] sm:$0xff]  }
0x18df   :  { %v9037_v37 = vadd.f32 %v18643_v53, %v18641_v27  ;;  %v8778_v22 = vmul.f32 0.5, %v18570_v13  ;;  %v8779_v23 = vmul.f32 0.5, %v18576_v20  ;;  %v8780_v18 = vmul.f32 0.5, %v18580_v14  ;;  %v12541_v14 = vld [vmem:[%s19000_s4 + $0x20] sm:$0xff]   ;;  %11786 = vmatprep.subr.bf16.mxu1 %v12540_v36  ;;  %10354 = vmatprep.subr.bf16.mxu0 %v12540_v36 }
0x18e0   :  { %v13365_v59 = vpop.eup %13364  ;;  %9074 = vadd.xlane.f32.xlu0 %v9073_v50  ;;  %v9076_v28 = vadd.f32 %v18639_v26, %v18633_v46  ;;  %v9040_v32 = vadd.f32 %v18649_v63, %v18647_v39  ;;  %11794 = vmatpush3.bf16.msra.mxu1 %v12541_v14 }
0x18e1   :  { %v13367_v60 = vpop.eup %13366  ;;  %v9001_v19 = vadd.f32 1.0, %v13365_v59  ;;  %10355 = vmatpush3.bf16.msra.mxu0 %v12541_v14  ;;  %11787 = vmatprep.subr.bf16.mxu1 %v12542_v40  ;;  %v12546_v14 = vld [vmem:[%s19000_s4 + $0x78] sm:$0xff]  }
0x18e2   :  { %v13369_v15 = vpop.eup %13368  ;;  %9077 = vadd.xlane.f32.xlu1 %v9076_v28  ;;  %v9002_v57 = vadd.f32 1.0, %v13367_v60  ;;  %v12543_v28 = vld [vmem:[%s19000_s4 + $0x28] sm:$0xff]   ;;  %10356 = vmatprep.subr.bf16.mxu0 %v12542_v40 }
0x18e3   :  { %v13371_v12 = vpop.eup %13370  ;;  %v18655_v7 = vmul.f32 %v9001_v19, %v8777_v38  ;;  %v9003_v17 = vadd.f32 1.0, %v13369_v15 }
0x18e4   :  { %9038 = vadd.xlane.f32.xlu0 %v9037_v37  ;;  %v18660_v61 = vmul.f32 %v9002_v57, %v8778_v22  ;;  %v9004_v34 = vadd.f32 1.0, %v13371_v12  ;;  %11795 = vmatpush3.bf16.msra.mxu1 %v12543_v28 }
0x18e5   :  { %v18663_v25 = vmul.f32 %v9003_v17, %v8779_v23  ;;  %10357 = vmatpush3.bf16.msra.mxu0 %v12543_v28  ;;  %v12549_v28 = vld [vmem:[%s19000_s4 + $0x40] sm:$0xff]  }
0x18e6   :  { %9041 = vadd.xlane.f32.xlu1 %v9040_v32  ;;  %v9079_v13 = vadd.f32 %v18660_v61, %v18655_v7  ;;  %v18667_v42 = vmul.f32 %v9004_v34, %v8780_v18  ;;  %v12544_v32 = vld [vmem:[%s19000_s4 + $0x70] sm:$0xff]  }
0x18e7   :  { %v12545_v18 = vld [vmem:[%s19000_s4 + $0x30] sm:$0xff]   ;;  %11788 = vmatprep.subr.bf16.mxu1 %v12544_v32  ;;  %10358 = vmatprep.subr.bf16.mxu0 %v12544_v32 }
0x18e8   :  { %9080 = vadd.xlane.f32.xlu0 %v9079_v13  ;;  %v9082_v20 = vadd.f32 %v18667_v42, %v18663_v25  ;;  %11796 = vmatpush3.bf16.msra.mxu1 %v12545_v18  ;;  %v12553_v32 = vld [vmem:[%s19000_s4 + $0x50] sm:$0xff]  }
0x18e9   :  { %10359 = vmatpush3.bf16.msra.mxu0 %v12545_v18  ;;  %11789 = vmatprep.subr.bf16.mxu1 %v12546_v14  ;;  %v12554_v18 = vld [vmem:[%s19000_s4 + $0x98] sm:$0xff]  }
0x18ea   :  { %9083 = vadd.xlane.f32.xlu1 %v9082_v20  ;;  %10360 = vmatprep.subr.bf16.mxu0 %v12546_v14 }
0x1902   :  { %v9045_v1 = vpop.xlane.xlu0 %9044 }
0x1903   :  { %v9088_v62 = vmul.f32 0.00390625, %v9045_v1 }
0x1904   :  { %v9048_v9 = vpop.xlane.xlu1 %9047 }
0x1905   :  { %v18681_v24 = vsub.f32 %v18472_v3, %v9088_v62  ;;  %v18684_v50 = vsub.f32 %v18474_v56, %v9088_v62  ;;  %v9089_v59 = vmul.f32 0.00390625, %v9048_v9 }
0x1907   :  { %v9138_v60 = vmul.f32 %v18681_v24, %v18681_v24  ;;  %v9139_v38 = vmul.f32 %v18684_v50, %v18684_v50  ;;  %v18694_v3 = vsub.f32 %v18476_v47, %v9089_v59  ;;  %v18697_v56 = vsub.f32 %v18480_v35, %v9089_v59  ;;  %v12548_v59 = vld [vmem:[%s19000_s4 + $0x80] sm:$0xff]  }
0x1909   :  { %v9140_v19 = vmul.f32 %v18694_v3, %v18694_v3  ;;  %v9141_v15 = vmul.f32 %v18697_v56, %v18697_v56  ;;  %v9172_v37 = vadd.f32 %v9139_v38, %v9138_v60 }
0x190b   :  { %9173 = vadd.xlane.f32.xlu0 %v9172_v37  ;;  %v9175_v22 = vadd.f32 %v9141_v15, %v9140_v19  ;;  %v12550_v15 = vld [vmem:[%s19000_s4 + $0x88] sm:$0xff]  }
0x190d   :  { %9176 = vadd.xlane.f32.xlu1 %v9175_v22 }
0x1920   :  { %v9051_v57 = vpop.xlane.xlu0 %9050 }
0x1921   :  { %v9090_v12 = vmul.f32 0.00390625, %v9051_v57  ;;  %v12551_v57 = vld [vmem:[%s19000_s4 + $0x48] sm:$0xff]  }
0x1922   :  { %v9054_v23 = vpop.xlane.xlu1 %9053 }
0x1923   :  { %v18704_v47 = vsub.f32 %v18484_v29, %v9090_v12  ;;  %v18707_v35 = vsub.f32 %v18486_v33, %v9090_v12  ;;  %v9091_v17 = vmul.f32 0.00390625, %v9054_v23 }
0x1925   :  { %v9142_v34 = vmul.f32 %v18704_v47, %v18704_v47  ;;  %v9143_v13 = vmul.f32 %v18707_v35, %v18707_v35  ;;  %v18720_v29 = vsub.f32 %v18488_v31, %v9091_v17  ;;  %v18723_v33 = vsub.f32 %v18492_v55, %v9091_v17  ;;  %v12547_v55 = vld [vmem:[%s19000_s4 + $0x38] sm:$0xff]  }
0x1926   :  { %11797 = vmatpush3.bf16.msra.mxu1 %v12547_v55  ;;  %10361 = vmatpush3.bf16.msra.mxu0 %v12547_v55 }
0x1927   :  { %v9144_v20 = vmul.f32 %v18720_v29, %v18720_v29  ;;  %v9145_v1 = vmul.f32 %v18723_v33, %v18723_v33  ;;  %v9178_v36 = vadd.f32 %v9143_v13, %v9142_v34  ;;  %11790 = vmatprep.subr.bf16.mxu1 %v12548_v59  ;;  %10362 = vmatprep.subr.bf16.mxu0 %v12548_v59  ;;  %v12555_v34 = vld [vmem:[%s19000_s4 + $0x58] sm:$0xff]  }
0x1928   :  { %v9057_v31 = vpop.xlane.xlu0 %9056 }
0x1929   :  { %v9092_v40 = vmul.f32 0.00390625, %v9057_v31  ;;  %9179 = vadd.xlane.f32.xlu0 %v9178_v36  ;;  %v9181_v62 = vadd.f32 %v9145_v1, %v9144_v20 }
0x192a   :  { %v9060_v9 = vpop.xlane.xlu1 %9059  ;;  %11798 = vmatpush3.bf16.msra.mxu1 %v12549_v28  ;;  %10363 = vmatpush3.bf16.msra.mxu0 %v12549_v28 }
0x192b   :  { %v18742_v60 = vsub.f32 %v18496_v52, %v9092_v40  ;;  %v18745_v38 = vsub.f32 %v18498_v44, %v9092_v40  ;;  %v9093_v19 = vmul.f32 0.00390625, %v9060_v9  ;;  %9182 = vadd.xlane.f32.xlu1 %v9181_v62  ;;  %11791 = vmatprep.subr.bf16.mxu1 %v12550_v15 }
0x192c   :  { %10364 = vmatprep.subr.bf16.mxu0 %v12550_v15 }
0x192d   :  { %v9146_v37 = vmul.f32 %v18742_v60, %v18742_v60  ;;  %v9147_v22 = vmul.f32 %v18745_v38, %v18745_v38  ;;  %v18755_v52 = vsub.f32 %v18500_v5, %v9093_v19  ;;  %v18758_v44 = vsub.f32 %v18504_v51, %v9093_v19  ;;  %v12552_v5 = vld [vmem:[%s19000_s4 + $0x90] sm:$0xff]   ;;  %s13520_s4 = smov [#allocation8]  }
0x192e   :  { %11799 = vmatpush3.bf16.msra.mxu1 %v12551_v57  ;;  %10365 = vmatpush3.bf16.msra.mxu0 %v12551_v57  ;;  %s9612_s12 = sshll.u32 %s13520_s4, 4  ;;  %s9613_s12 = int_to_ptr.vmem [resolvable:$true] %s9612_s12 }
0x192f   :  { %v9148_v12 = vmul.f32 %v18755_v52, %v18755_v52  ;;  %v9149_v23 = vmul.f32 %v18758_v44, %v18758_v44  ;;  %v9184_v17 = vadd.f32 %v9147_v22, %v9146_v37  ;;  %11792 = vmatprep.subr.bf16.mxu1 %v12552_v5  ;;  %10366 = vmatprep.subr.bf16.mxu0 %v12552_v5  ;;  %s13475_s13 = scalar_lea.vmem %s9613_s12, 2048  ;;  %p13480_p11 = scmp.lt.s32.totalorder %s9613_s12, %s9613_s12 }
0x1930   :  { %p13476_p10 = scmp.ne.s32.totalorder %s9613_s12, %s13475_s13  ;;  %p13481_p12 = scmp.lt.s32.totalorder %s13475_s13, %s13475_s13 }
0x1931   :  { %9185 = vadd.xlane.f32.xlu0 %v9184_v17  ;;  %v9187_v51 = vadd.f32 %v9149_v23, %v9148_v12 }
0x1932   :  { %11800 = vmatpush3.bf16.msra.mxu1 %v12553_v32  ;;  %10367 = vmatpush3.bf16.msra.mxu0 %v12553_v32  ;;  %p13482_p13 = por %p13481_p12, %p13480_p11 }
0x1933   :  { %9188 = vadd.xlane.f32.xlu1 %v9187_v51  ;;  %11793 = vmatprep.subr.bf16.mxu1 %v12554_v18 }
0x1934   :  { %10368 = vmatprep.subr.bf16.mxu0 %v12554_v18  ;;  %p13483_p0 = pnand %p13482_p13, %p13476_p10 }
0x1936   :  { %11801 = vmatpush3.bf16.msra.mxu1 %v12555_v34  ;;  %10369 = vmatpush3.bf16.msra.mxu0 %v12555_v34 }
0x195f   :  { %v9063_v13 = vpop.xlane.xlu0 %9062 }
0x1960   :  { %v9094_v20 = vmul.f32 0.00390625, %v9063_v13 }
0x1962   :  { %v18780_v1 = vsub.f32 %v18566_v10, %v9094_v20  ;;  %v18783_v36 = vsub.f32 %v18572_v41, %v9094_v20 }
0x1963   :  { %v9066_v14 = vpop.xlane.xlu1 %9065 }
0x1964   :  { %v9150_v31 = vmul.f32 %v18780_v1, %v18780_v1  ;;  %v9151_v55 = vmul.f32 %v18783_v36, %v18783_v36  ;;  %v9095_v40 = vmul.f32 0.00390625, %v9066_v14 }
0x1966   :  { %v18790_v62 = vsub.f32 %v18591_v48, %v9095_v40  ;;  %v18793_v9 = vsub.f32 %v18596_v6, %v9095_v40  ;;  %v9069_v59 = vpop.xlane.xlu0 %9068  ;;  %v9190_v10 = vadd.f32 %v9151_v55, %v9150_v31 }
0x1967   :  { %v9096_v28 = vmul.f32 0.00390625, %v9069_v59 }
0x1968   :  { %v9152_v41 = vmul.f32 %v18790_v62, %v18790_v62  ;;  %v9153_v19 = vmul.f32 %v18793_v9, %v18793_v9  ;;  %9191 = vadd.xlane.f32.xlu0 %v9190_v10  ;;  %v9072_v15 = vpop.xlane.xlu1 %9071 }
0x1969   :  { %v18800_v37 = vsub.f32 %v18604_v49, %v9096_v28  ;;  %v18803_v48 = vsub.f32 %v18608_v0, %v9096_v28  ;;  %v9097_v22 = vmul.f32 0.00390625, %v9072_v15 }
0x196a   :  { %v9193_v6 = vadd.f32 %v9153_v19, %v9152_v41 }
0x196b   :  { %v9154_v57 = vmul.f32 %v18800_v37, %v18800_v37  ;;  %v9155_v12 = vmul.f32 %v18803_v48, %v18803_v48  ;;  %v18810_v23 = vsub.f32 %v18611_v4, %v9097_v22  ;;  %v18813_v17 = vsub.f32 %v18615_v45, %v9097_v22 }
0x196c   :  { %9194 = vadd.xlane.f32.xlu1 %v9193_v6 }
0x196d   :  { %v9156_v49 = vmul.f32 %v18810_v23, %v18810_v23  ;;  %v9157_v0 = vmul.f32 %v18813_v17, %v18813_v17  ;;  %v9075_v5 = vpop.xlane.xlu0 %9074  ;;  %v9196_v51 = vadd.f32 %v9155_v12, %v9154_v57 }
0x196e   :  { %v9098_v32 = vmul.f32 0.00390625, %v9075_v5 }
0x196f   :  { %9197 = vadd.xlane.f32.xlu0 %v9196_v51  ;;  %v9078_v18 = vpop.xlane.xlu1 %9077  ;;  %v9199_v34 = vadd.f32 %v9157_v0, %v9156_v49 }
0x1970   :  { %v18820_v13 = vsub.f32 %v18625_v54, %v9098_v32  ;;  %v18823_v4 = vsub.f32 %v18629_v43, %v9098_v32  ;;  %v9099_v45 = vmul.f32 0.00390625, %v9078_v18 }
0x1971   :  { %9200 = vadd.xlane.f32.xlu1 %v9199_v34  ;;  %v9039_v20 = vpop.xlane.xlu0 %9038 }
0x1972   :  { %v9158_v14 = vmul.f32 %v18820_v13, %v18820_v13  ;;  %v9159_v31 = vmul.f32 %v18823_v4, %v18823_v4  ;;  %v18830_v55 = vsub.f32 %v18633_v46, %v9099_v45  ;;  %v18833_v40 = vsub.f32 %v18639_v26, %v9099_v45 }
0x1973   :  { %v9086_v54 = vmul.f32 0.00390625, %v9039_v20  ;;  %v9042_v59 = vpop.xlane.xlu1 %9041 }
0x1974   :  { %v9160_v43 = vmul.f32 %v18830_v55, %v18830_v55  ;;  %v9161_v10 = vmul.f32 %v18833_v40, %v18833_v40  ;;  %v9087_v28 = vmul.f32 0.00390625, %v9042_v59  ;;  %v9202_v41 = vadd.f32 %v9159_v31, %v9158_v14 }
0x1975   :  { %v18840_v19 = vsub.f32 %v18641_v27, %v9086_v54  ;;  %v18843_v15 = vsub.f32 %v18643_v53, %v9086_v54  ;;  %v9081_v46 = vpop.xlane.xlu0 %9080 }
0x1976   :  { %v18846_v26 = vsub.f32 %v18647_v39, %v9087_v28  ;;  %v18849_v22 = vsub.f32 %v18649_v63, %v9087_v28  ;;  %v9100_v6 = vmul.f32 0.00390625, %v9081_v46  ;;  %9203 = vadd.xlane.f32.xlu0 %v9202_v41  ;;  %v9205_v57 = vadd.f32 %v9161_v10, %v9160_v43  ;;  %v13407_v41 = vld [vmem:[#allocation7 + $0x10] sm:$0xf] }
0x1977   :  { %v9134_v12 = vmul.f32 %v18840_v19, %v18840_v19  ;;  %v9135_v27 = vmul.f32 %v18843_v15, %v18843_v15  ;;  %v9084_v49 = vpop.xlane.xlu1 %9083  ;;  %v20114_v46 = vld [vmem:[#allocation42_spill] sm:$0xff] }
0x1978   :  { %v9136_v53 = vmul.f32 %v18846_v26, %v18846_v26  ;;  %v9137_v39 = vmul.f32 %v18849_v22, %v18849_v22  ;;  %v18860_v0 = vsub.f32 %v18655_v7, %v9100_v6  ;;  %v18863_v63 = vsub.f32 %v18660_v61, %v9100_v6  ;;  %9206 = vadd.xlane.f32.xlu1 %v9205_v57  ;;  %v13408_v57 = vld [vmem:[#allocation7 + $0x18] sm:$0xf] }
0x1979   :  { %v9101_v5 = vmul.f32 0.00390625, %v9084_v49  ;;  %v9166_v51 = vadd.f32 %v9135_v27, %v9134_v12  ;;  %v18880_v6 = vrot.slane %v13407_v41, %v20114_v46  ;;  %v18883_v12 = vrot.slane %v13408_v57, %v20114_v46 }
0x197a   :  { %v9162_v32 = vmul.f32 %v18860_v0, %v18860_v0  ;;  %v9163_v18 = vmul.f32 %v18863_v63, %v18863_v63  ;;  %v9169_v34 = vadd.f32 %v9137_v39, %v9136_v53 }
0x197b   :  { %v18870_v45 = vsub.f32 %v18663_v25, %v9101_v5  ;;  %v18873_v20 = vsub.f32 %v18667_v42, %v9101_v5  ;;  %9167 = vadd.xlane.f32.xlu0 %v9166_v51 }
0x197c   :  { %9170 = vadd.xlane.f32.xlu1 %v9169_v34  ;;  %v9208_v7 = vadd.f32 %v9163_v18, %v9162_v32 }
0x197d   :  { %v9164_v61 = vmul.f32 %v18870_v45, %v18870_v45  ;;  %v9165_v14 = vmul.f32 %v18873_v20, %v18873_v20 }
0x197f   :  { %9209 = vadd.xlane.f32.xlu0 %v9208_v7  ;;  %v9211_v31 = vadd.f32 %v9165_v14, %v9164_v61 }
0x1981   :  { %9212 = vadd.xlane.f32.xlu1 %v9211_v31 }
0x1998   :  { %v9174_v54 = vpop.xlane.xlu0 %9173 }
0x1999   :  { %v9216_v59 = vmul.f32 0.00390625, %v9174_v54 }
0x199a   :  { %v9177_v43 = vpop.xlane.xlu1 %9176 }
0x199b   :  { %v9232_v25 = vadd.f32 1e-05, %v9216_v59  ;;  %v9217_v10 = vmul.f32 0.00390625, %v9177_v43 }
0x199d   :  { %13372 = vrsqrt.f32 %v9232_v25  ;;  %v9233_v42 = vadd.f32 1e-05, %v9217_v10 }
0x199f   :  { %13374 = vrsqrt.f32 %v9233_v42 }
0x19a7   :  { %v13373_v28 = vpop.eup %13372 }
0x19a8   :  { %v9266_v27 = vmul.f32 %v13373_v28, %v18681_v24  ;;  %v9267_v49 = vmul.f32 %v13373_v28, %v18684_v50 }
0x19a9   :  { %v13375_v53 = vpop.eup %13374 }
0x19aa   :  { %v9268_v39 = vmul.f32 %v13375_v53, %v18694_v3  ;;  %v9269_v5 = vmul.f32 %v13375_v53, %v18697_v56  ;;  %v9307_v51 = vmul.f32 %v18883_v12, %v9267_v49  ;;  %v9306_v18 = vmul.f32 %v18880_v6, %v9266_v27 }
0x19ac   :  { %v9309_v32 = vmul.f32 %v18883_v12, %v9269_v5  ;;  %v9308_v34 = vmul.f32 %v18880_v6, %v9268_v39 }
0x19ae   :  { %v9369_v7 = vpack.c.bf16 %v9309_v32, %v9307_v51  ;;  %v9368_v61 = vpack.c.bf16 %v9308_v34, %v9306_v18 }
0x19b0   :  { %9518 = vmatprep.mubr.bf16.mxu1 %v9369_v7 }
0x19b1   :  { %9519 = vmatmul.mubr.bf16.vlgmr.msra.gmra.mrb[136].mxu1 %v9368_v61 }
0x19b6   :  { %v9180_v24 = vpop.xlane.xlu0 %9179 }
0x19b7   :  { %v9218_v14 = vmul.f32 0.00390625, %v9180_v24 }
0x19b8   :  { %v9183_v50 = vpop.xlane.xlu1 %9182 }
0x19b9   :  { %v9234_v31 = vadd.f32 1e-05, %v9218_v14  ;;  %v9219_v54 = vmul.f32 0.00390625, %v9183_v50 }
0x19bb   :  { %13376 = vrsqrt.f32 %v9234_v31  ;;  %v9235_v3 = vadd.f32 1e-05, %v9219_v54 }
0x19bd   :  { %13378 = vrsqrt.f32 %v9235_v3 }
0x19be   :  { %v9186_v56 = vpop.xlane.xlu0 %9185 }
0x19bf   :  { %v9220_v59 = vmul.f32 0.00390625, %v9186_v56 }
0x19c0   :  { %v9189_v43 = vpop.xlane.xlu1 %9188 }
0x19c1   :  { %v9236_v25 = vadd.f32 1e-05, %v9220_v59  ;;  %v9221_v10 = vmul.f32 0.00390625, %v9189_v43 }
0x19c3   :  { %13380 = vrsqrt.f32 %v9236_v25  ;;  %v9237_v42 = vadd.f32 1e-05, %v9221_v10 }
0x19c5   :  { %v13377_v28 = vpop.eup %13376  ;;  %13382 = vrsqrt.f32 %v9237_v42 }
0x19c6   :  { %v9271_v41 = vmul.f32 %v13377_v28, %v18707_v35  ;;  %v9270_v46 = vmul.f32 %v13377_v28, %v18704_v47 }
0x19c7   :  { %v13379_v57 = vpop.eup %13378 }
0x19c8   :  { %v9273_v27 = vmul.f32 %v13379_v57, %v18723_v33  ;;  %v9272_v49 = vmul.f32 %v13379_v57, %v18720_v29  ;;  %v9311_v53 = vmul.f32 %v18883_v12, %v9271_v41  ;;  %v9310_v5 = vmul.f32 %v18880_v6, %v9270_v46 }
0x19ca   :  { %v9313_v39 = vmul.f32 %v18883_v12, %v9273_v27  ;;  %v9312_v51 = vmul.f32 %v18880_v6, %v9272_v49 }
0x19cc   :  { %v9371_v32 = vpack.c.bf16 %v9313_v39, %v9311_v53  ;;  %v9370_v18 = vpack.c.bf16 %v9312_v51, %v9310_v5 }
0x19cd   :  { %v13381_v34 = vpop.eup %13380 }
0x19ce   :  { %9526 = vmatprep.mubr.bf16.mxu1 %v9371_v32  ;;  %v9275_v35 = vmul.f32 %v13381_v34, %v18745_v38  ;;  %v9274_v47 = vmul.f32 %v13381_v34, %v18742_v60 }
0x19cf   :  { %v13383_v7 = vpop.eup %13382  ;;  %9527 = vmatmul.mubr.bf16.gmra.mrb[140].mxu1 %v9370_v18 }
0x19d0   :  { %v9277_v29 = vmul.f32 %v13383_v7, %v18758_v44  ;;  %v9276_v33 = vmul.f32 %v13383_v7, %v18755_v52  ;;  %v9315_v61 = vmul.f32 %v18883_v12, %v9275_v35  ;;  %v9314_v14 = vmul.f32 %v18880_v6, %v9274_v47 }
0x19d2   :  { %v9317_v24 = vmul.f32 %v18883_v12, %v9277_v29  ;;  %v9316_v50 = vmul.f32 %v18880_v6, %v9276_v33 }
0x19d4   :  { %v9373_v31 = vpack.c.bf16 %v9317_v24, %v9315_v61  ;;  %v9372_v54 = vpack.c.bf16 %v9316_v50, %v9314_v14 }
0x19d6   :  { %9534 = vmatprep.mubr.bf16.mxu1 %v9373_v31 }
0x19d7   :  { %9535 = vmatmul.mubr.bf16.gmra.mrb[144].mxu1 %v9372_v54 }
0x19f5   :  { %v9192_v38 = vpop.xlane.xlu0 %9191 }
0x19f6   :  { %v9222_v60 = vmul.f32 0.00390625, %v9192_v38 }
0x19f8   :  { %v9238_v3 = vadd.f32 1e-05, %v9222_v60 }
0x19f9   :  { %v9195_v56 = vpop.xlane.xlu1 %9194 }
0x19fa   :  { %13384 = vrsqrt.f32 %v9238_v3  ;;  %v9223_v44 = vmul.f32 0.00390625, %v9195_v56 }
0x19fc   :  { %v9239_v59 = vadd.f32 1e-05, %v9223_v44  ;;  %v9198_v52 = vpop.xlane.xlu0 %9197 }
0x19fd   :  { %v9224_v43 = vmul.f32 0.00390625, %v9198_v52 }
0x19fe   :  { %13386 = vrsqrt.f32 %v9239_v59  ;;  %v9201_v25 = vpop.xlane.xlu1 %9200 }
0x19ff   :  { %v9240_v10 = vadd.f32 1e-05, %v9224_v43  ;;  %v9225_v42 = vmul.f32 0.00390625, %v9201_v25 }
0x1a01   :  { %13388 = vrsqrt.f32 %v9240_v10  ;;  %v9241_v28 = vadd.f32 1e-05, %v9225_v42 }
0x1a03   :  { %13390 = vrsqrt.f32 %v9241_v28  ;;  %v9204_v41 = vpop.xlane.xlu0 %9203 }
0x1a04   :  { %v13385_v46 = vpop.eup %13384  ;;  %v9226_v57 = vmul.f32 0.00390625, %v9204_v41 }
0x1a05   :  { %v9207_v27 = vpop.xlane.xlu1 %9206  ;;  %v9279_v39 = vmul.f32 %v13385_v46, %v18783_v36  ;;  %v9278_v5 = vmul.f32 %v13385_v46, %v18780_v1 }
0x1a06   :  { %v9242_v49 = vadd.f32 1e-05, %v9226_v57  ;;  %v9227_v53 = vmul.f32 0.00390625, %v9207_v27 }
0x1a07   :  { %v9319_v33 = vmul.f32 %v18883_v12, %v9279_v39  ;;  %v9318_v1 = vmul.f32 %v18880_v6, %v9278_v5 }
0x1a08   :  { %v13387_v51 = vpop.eup %13386  ;;  %13392 = vrsqrt.f32 %v9242_v49  ;;  %v9243_v32 = vadd.f32 1e-05, %v9227_v53  ;;  %v9168_v18 = vpop.xlane.xlu0 %9167 }
0x1a09   :  { %v9214_v34 = vmul.f32 0.00390625, %v9168_v18  ;;  %v9171_v35 = vpop.xlane.xlu1 %9170  ;;  %v9281_v47 = vmul.f32 %v13387_v51, %v18793_v9  ;;  %v9280_v7 = vmul.f32 %v13387_v51, %v18790_v62 }
0x1a0a   :  { %13394 = vrsqrt.f32 %v9243_v32  ;;  %v9215_v29 = vmul.f32 0.00390625, %v9171_v35 }
0x1a0b   :  { %v13389_v61 = vpop.eup %13388  ;;  %v9230_v24 = vadd.f32 1e-05, %v9214_v34  ;;  %v9321_v36 = vmul.f32 %v18883_v12, %v9281_v47  ;;  %v9320_v14 = vmul.f32 %v18880_v6, %v9280_v7 }
0x1a0c   :  { %v9231_v50 = vadd.f32 1e-05, %v9215_v29  ;;  %v9210_v31 = vpop.xlane.xlu0 %9209  ;;  %v9283_v54 = vmul.f32 %v13389_v61, %v18803_v48  ;;  %v9282_v44 = vmul.f32 %v13389_v61, %v18800_v37 }
0x1a0d   :  { %v13391_v38 = vpop.eup %13390  ;;  %13396 = vrsqrt.f32 %v9230_v24  ;;  %v9228_v9 = vmul.f32 0.00390625, %v9210_v31  ;;  %v9375_v62 = vpack.c.bf16 %v9321_v36, %v9319_v33  ;;  %v9374_v60 = vpack.c.bf16 %v9320_v14, %v9318_v1 }
0x1a0e   :  { %13398 = vrsqrt.f32 %v9231_v50  ;;  %v9213_v3 = vpop.xlane.xlu1 %9212  ;;  %v9285_v56 = vmul.f32 %v13391_v38, %v18813_v17  ;;  %v9284_v59 = vmul.f32 %v13391_v38, %v18810_v23  ;;  %v9323_v25 = vmul.f32 %v18883_v12, %v9283_v54 }
0x1a0f   :  { %v9244_v52 = vadd.f32 1e-05, %v9228_v9  ;;  %9542 = vmatprep.mubr.bf16.mxu1 %v9375_v62  ;;  %v9229_v43 = vmul.f32 0.00390625, %v9213_v3  ;;  %v9322_v17 = vmul.f32 %v18880_v6, %v9282_v44 }
0x1a10   :  { %9543 = vmatmul.mubr.bf16.gmra.mrb[148].mxu1 %v9374_v60  ;;  %v9325_v48 = vmul.f32 %v18883_v12, %v9285_v56  ;;  %v9324_v10 = vmul.f32 %v18880_v6, %v9284_v59 }
0x1a11   :  { %13400 = vrsqrt.f32 %v9244_v52  ;;  %v9245_v42 = vadd.f32 1e-05, %v9229_v43 }
0x1a12   :  { %v13393_v28 = vpop.eup %13392  ;;  %v9377_v41 = vpack.c.bf16 %v9325_v48, %v9323_v25  ;;  %v9376_v46 = vpack.c.bf16 %v9324_v10, %v9322_v17 }
0x1a13   :  { %13402 = vrsqrt.f32 %v9245_v42  ;;  %v9287_v37 = vmul.f32 %v13393_v28, %v18823_v4  ;;  %v9286_v49 = vmul.f32 %v13393_v28, %v18820_v13 }
0x1a14   :  { %v13395_v23 = vpop.eup %13394  ;;  %9550 = vmatprep.mubr.bf16.mxu1 %v9377_v41 }
0x1a15   :  { %v9289_v57 = vmul.f32 %v13395_v23, %v18833_v40  ;;  %v9288_v27 = vmul.f32 %v13395_v23, %v18830_v55  ;;  %v9327_v39 = vmul.f32 %v18883_v12, %v9287_v37  ;;  %v9326_v13 = vmul.f32 %v18880_v6, %v9286_v49 }
0x1a17   :  { %v13397_v53 = vpop.eup %13396  ;;  %v9329_v5 = vmul.f32 %v18883_v12, %v9289_v57  ;;  %v9328_v4 = vmul.f32 %v18880_v6, %v9288_v27 }
0x1a18   :  { %v13399_v51 = vpop.eup %13398  ;;  %v9262_v32 = vmul.f32 %v13397_v53, %v18840_v19  ;;  %9551 = vmatmul.mubr.bf16.gmra.mrb[152].mxu1 %v9376_v46  ;;  %v9263_v18 = vmul.f32 %v13397_v53, %v18843_v15  ;;  %v20115_v53 = vld [vmem:[#allocation186_spill] sm:$0xff] }
0x1a19   :  { %v9264_v34 = vmul.f32 %v13399_v51, %v18846_v26  ;;  %v9379_v40 = vpack.c.bf16 %v9329_v5, %v9327_v39  ;;  %v9265_v55 = vmul.f32 %v13399_v51, %v18849_v22  ;;  %v9378_v33 = vpack.c.bf16 %v9328_v4, %v9326_v13  ;;  %v20116_v4 = vld [vmem:[#allocation165_spill] sm:$0xff] }
0x1a1a   :  { %v9303_v47 = vmul.f32 %v18883_v12, %v9263_v18  ;;  %v9302_v19 = vmul.f32 %v18880_v6, %v9262_v32 }
0x1a1b   :  { %v13401_v35 = vpop.eup %13400  ;;  %9558 = vmatprep.mubr.bf16.mxu1 %v9379_v40  ;;  %v9305_v7 = vmul.f32 %v18883_v12, %v9265_v55  ;;  %v9304_v29 = vmul.f32 %v18880_v6, %v9264_v34  ;;  %v20117_v40 = vld [vmem:[#allocation179_spill] sm:$0xff] }
0x1a1c   :  { %v9291_v15 = vmul.f32 %v13401_v35, %v18863_v63  ;;  %v9290_v36 = vmul.f32 %v13401_v35, %v18860_v0 }
0x1a1d   :  { %v13403_v61 = vpop.eup %13402  ;;  %v9367_v26 = vpack.c.bf16 %v9305_v7, %v9303_v47  ;;  %v9366_v24 = vpack.c.bf16 %v9304_v29, %v9302_v19 }
0x1a1e   :  { %v9293_v22 = vmul.f32 %v13403_v61, %v18873_v20  ;;  %v9292_v1 = vmul.f32 %v13403_v61, %v18870_v45  ;;  %v9331_v14 = vmul.f32 %v18883_v12, %v9291_v15  ;;  %v9330_v63 = vmul.f32 %v18880_v6, %v9290_v36  ;;  %v20119_v36 = vld [vmem:[#allocation169_spill] sm:$0xff] }
0x1a1f   :  { %9510 = vmatprep.mubr.bf16.mxu0 %v9367_v26  ;;  %v20118_v26 = vld [vmem:[#allocation190_spill] sm:$0xff] }
0x1a20   :  { %9559 = vmatmul.mubr.bf16.gmra.mrb[156].mxu1 %v9378_v33  ;;  %9511 = vmatmul.mubr.bf16.vlgmr.msra.gmra.mrb[108].mxu0 %v9366_v24  ;;  %v9333_v50 = vmul.f32 %v18883_v12, %v9293_v22  ;;  %v9332_v31 = vmul.f32 %v18880_v6, %v9292_v1 }
0x1a22   :  { %v9381_v54 = vpack.c.bf16 %v9333_v50, %v9331_v14  ;;  %v9380_v38 = vpack.c.bf16 %v9332_v31, %v9330_v63  ;;  %v20120_v50 = vld [vmem:[#allocation164_spill] sm:$0xff] }
0x1a24   :  { %9566 = vmatprep.mubr.bf16.mxu1 %v9381_v54  ;;  %v20121_v54 = vld [vmem:[#allocation139_spill] sm:$0xff] }
0x1a28   :  { %9567 = vmatmul.mubr.bf16.gmra.mrb[160].mxu1 %v9380_v38 }
0x1a84   :  { %v10376_v20 = vpop.f32.mrb[136].mxu1 }
0x1a85   :  { %v10377_v9 = vpop.f32.mrb[137].mxu1 }
0x1a86   :  { %v10378_v0 = vadd.f32 %v10377_v9, %v10376_v20  ;;  %v10379_v62 = vpop.f32.mrb[138].mxu1 }
0x1a87   :  { %v10380_v45 = vpop.f32.mrb[139].mxu1 }
0x1a88   :  { %v9577_v60 = vadd.f32 %v10378_v0, %v18185_v21  ;;  %v10381_v3 = vadd.f32 %v10380_v45, %v10379_v62  ;;  %v20122_v45 = vld [vmem:[#allocation181_spill] sm:$0xff] }
0x1a8a   :  { %9593 = vst.msk [vmem:[#allocation8 + $0x10] sm:$0xff] %vm109_vm0, %v9577_v60  ;;  %v9578_v12 = vadd.f32 %v10381_v3, %v18192_v16 }
0x1a8c   :  { %9594 = vst.msk [vmem:[#allocation8 + $0x18] sm:$0xff] %vm109_vm0, %v9578_v12  ;;  %v20123_v12 = vld [vmem:[#allocation158_spill] sm:$0xff] }
0x1aa2   :  { %v10382_v56 = vpop.f32.mrb[140].mxu1 }
0x1aa3   :  { %v10383_v44 = vpop.f32.mrb[141].mxu1 }
0x1aa4   :  { %v10384_v6 = vadd.f32 %v10383_v44, %v10382_v56  ;;  %v10385_v59 = vpop.f32.mrb[142].mxu1 }
0x1aa5   :  { %v10386_v52 = vpop.f32.mrb[143].mxu1 }
0x1aa6   :  { %v9579_v43 = vadd.f32 %v10384_v6, %v18203_v2  ;;  %v10387_v25 = vadd.f32 %v10386_v52, %v10385_v59 }
0x1aa8   :  { %9595 = vst.msk [vmem:[#allocation8 + $0x20] sm:$0xff] %vm109_vm0, %v9579_v43  ;;  %v9580_v48 = vadd.f32 %v10387_v25, %v18211_v8 }
0x1aaa   :  { %9596 = vst.msk [vmem:[#allocation8 + $0x28] sm:$0xff] %vm109_vm0, %v9580_v48  ;;  %v10388_v21 = vpop.f32.mrb[144].mxu1 }
0x1aab   :  { %v10389_v10 = vpop.f32.mrb[145].mxu1 }
0x1aac   :  { %v10390_v42 = vadd.f32 %v10389_v10, %v10388_v21  ;;  %v10391_v16 = vpop.f32.mrb[146].mxu1 }
0x1aad   :  { %v10392_v28 = vpop.f32.mrb[147].mxu1 }
0x1aae   :  { %v9581_v41 = vadd.f32 %v10390_v42, %v18218_v30  ;;  %v10393_v17 = vadd.f32 %v10392_v28, %v10391_v16 }
0x1ab0   :  { %9597 = vst.msk [vmem:[#allocation8 + $0x30] sm:$0xff] %vm109_vm0, %v9581_v41  ;;  %v9582_v37 = vadd.f32 %v10393_v17, %v18224_v11 }
0x1ab2   :  { %9598 = vst.msk [vmem:[#allocation8 + $0x38] sm:$0xff] %vm109_vm0, %v9582_v37 }
0x1ae3   :  { %v10394_v2 = vpop.f32.mrb[148].mxu1 }
0x1ae4   :  { %v10395_v23 = vpop.f32.mrb[149].mxu1 }
0x1ae5   :  { %v10396_v46 = vadd.f32 %v10395_v23, %v10394_v2  ;;  %v10397_v8 = vpop.f32.mrb[150].mxu1 }
0x1ae6   :  { %v10398_v57 = vpop.f32.mrb[151].mxu1 }
0x1ae7   :  { %v9583_v27 = vadd.f32 %v10396_v46, %v18235_v58  ;;  %v10399_v49 = vadd.f32 %v10398_v57, %v10397_v8 }
0x1ae9   :  { %9599 = vst.msk [vmem:[#allocation8 + $0x40] sm:$0xff] %vm109_vm0, %v9583_v27  ;;  %v9584_v39 = vadd.f32 %v10399_v49, %v20115_v53 }
0x1aeb   :  { %9600 = vst.msk [vmem:[#allocation8 + $0x48] sm:$0xff] %vm109_vm0, %v9584_v39  ;;  %v10400_v30 = vpop.f32.mrb[152].mxu1 }
0x1aec   :  { %v10401_v5 = vpop.f32.mrb[153].mxu1 }
0x1aed   :  { %v10402_v51 = vadd.f32 %v10401_v5, %v10400_v30  ;;  %v10403_v11 = vpop.f32.mrb[154].mxu1 }
0x1aee   :  { %v10404_v32 = vpop.f32.mrb[155].mxu1 }
0x1aef   :  { %v9585_v18 = vadd.f32 %v10402_v51, %v20116_v4  ;;  %v10405_v34 = vadd.f32 %v10404_v32, %v10403_v11 }
0x1af1   :  { %9601 = vst.msk [vmem:[#allocation8 + $0x50] sm:$0xff] %vm109_vm0, %v9585_v18  ;;  %v9586_v55 = vadd.f32 %v10405_v34, %v20117_v40 }
0x1af3   :  { %9602 = vst.msk [vmem:[#allocation8 + $0x58] sm:$0xff] %vm109_vm0, %v9586_v55  ;;  %v10406_v58 = vpop.f32.mrb[156].mxu1  ;;  %v10370_v13 = vpop.f32.mrb[108].mxu0 }
0x1af4   :  { %v10407_v35 = vpop.f32.mrb[157].mxu1  ;;  %v10371_v47 = vpop.f32.mrb[109].mxu0 }
0x1af5   :  { %v10408_v7 = vadd.f32 %v10407_v35, %v10406_v58  ;;  %v10409_v19 = vpop.f32.mrb[158].mxu1  ;;  %v10372_v29 = vadd.f32 %v10371_v47, %v10370_v13  ;;  %v10373_v33 = vpop.f32.mrb[110].mxu0 }
0x1af6   :  { %v10410_v15 = vpop.f32.mrb[159].mxu1  ;;  %v10374_v61 = vpop.f32.mrb[111].mxu0 }
0x1af7   :  { %v9587_v24 = vadd.f32 %v10408_v7, %v20118_v26  ;;  %v10411_v22 = vadd.f32 %v10410_v15, %v10409_v19  ;;  %v9575_v1 = vadd.f32 %v10372_v29, %v20119_v36  ;;  %v10375_v14 = vadd.f32 %v10374_v61, %v10373_v33 }
0x1af9   :  { %9603 = vst.msk [vmem:[#allocation8 + $0x60] sm:$0xff] %vm109_vm0, %v9587_v24  ;;  %v9588_v31 = vadd.f32 %v10411_v22, %v20120_v50  ;;  %9591 = vst.msk [vmem:[#allocation8] sm:$0xff] %vm109_vm0, %v9575_v1  ;;  %v9576_v63 = vadd.f32 %v10375_v14, %v20121_v54 }
0x1afb   :  { %9604 = vst.msk [vmem:[#allocation8 + $0x68] sm:$0xff] %vm109_vm0, %v9588_v31  ;;  %9592 = vst.msk [vmem:[#allocation8 + $0x8] sm:$0xff] %vm109_vm0, %v9576_v63  ;;  %v10412_v38 = vpop.f32.mrb[160].mxu1 }
0x1afc   :  { %v10413_v20 = vpop.f32.mrb[161].mxu1 }
0x1afd   :  { %v10414_v9 = vadd.f32 %v10413_v20, %v10412_v38  ;;  %v10415_v0 = vpop.f32.mrb[162].mxu1 }
0x1afe   :  { %v10416_v62 = vpop.f32.mrb[163].mxu1 }
0x1aff   :  { %v9589_v60 = vadd.f32 %v10414_v9, %v20122_v45  ;;  %v10417_v3 = vadd.f32 %v10416_v62, %v10415_v0 }
0x1b01   :  { %9605 = vst.msk [vmem:[#allocation8 + $0x70] sm:$0xff] %vm109_vm0, %v9589_v60  ;;  %v9590_v56 = vadd.f32 %v10417_v3, %v20123_v12 }
0x1b03   :  { %9606 = vst.msk [vmem:[#allocation8 + $0x78] sm:$0xff] %vm109_vm0, %v9590_v56 }
0x1b04   :  { %13486 = shalt.err (!%p13483_p0)
}
0x1b05   :  { %s13487_s16 = scalar_lea.hbm %s19002_s6, 2048 }
0x1b06   :  { %p13488_p1 = scmp.ne.s32.totalorder %s19002_s6, %s13487_s16  ;;  %p13491_p2 = scmp.lt.u32.totalorder %s13487_s16, %s19002_s6 }
0x1b08   :  { %p13493_p3 = pnand %p13491_p2, %p13488_p1 }
0x1b0a   :  { %13496 = shalt.err (!%p13493_p3)
}
0x1b0b   :  { %9618 = dma.vmem_to_hbm [thread:$0]  %s9613_s12, 2048, %s19002_s6, [#allocation4], %s13505_s9, %s13505_s9, %s13506_s10  }
0x1b0c   :  { %13501 = dma.done.wait [#allocation4], 2048  }
0x1b0d   :  { %13502 = vsyncadd [#allocation4], 4294965248 }
0x1b0e   :  { %9622 = vsyncpa [#allocation3], 1 }
0x1b0f   :  { %9623 = vsyncpa [#allocation6], 1 }
0x1b10   :  { %9624 = vsyncpa [#allocation4], 1 }

</bundles_post_ra>
